<compile_context>
chip_gen: v5e
topology: v5e:2x2
jax: 0.10.0
libtpu: 0.0.40
codegen_flags: <defaults>
</compile_context>

<pallas_src>
import functools

import numpy as np
import jax
import jax.numpy as jnp
from jax import lax
from jax.experimental import pallas as pl
from jax.experimental.pallas import tpu as pltpu

MASK_VALUE = -1e30
RMS_EPS = 1e-8


# --------------------------- in-kernel building blocks ---------------------- #

def _mm(a, b):
    """MXU matmul: bf16 operands, f32 accumulation."""
    return jnp.dot(a.astype(jnp.bfloat16), b.astype(jnp.bfloat16),
                   preferred_element_type=jnp.float32)


def _rms_normalize(x, eps=RMS_EPS):
    """x / max(sqrt(mean(x^2)), eps); gamma is applied by the caller so the
    cross-lane reduction + rsqrt are shared between self-/cross-attn norms."""
    ms = jnp.mean(x * x, axis=-1, keepdims=True)
    return x * lax.rsqrt(jnp.maximum(ms, eps * eps))


def _gelu(x):
    # TODO(synk): torch nn.GELU default is erf-exact; tanh approximation used here.
    c = 0.7978845608028654  # sqrt(2/pi)
    return 0.5 * x * (1.0 + jnp.tanh(c * (x + 0.044715 * x * x * x)))


def _attention(w_refs, q_in, kv_in, cos, sin, rot, bias, use_rotary, heads):
    """One Attention block on a folded (B_TILE*len, dim) slab.

    w_refs = (wq, wk, wv, wo, bo); wq/wk/wv are (heads, dim, dim_head) so each
    head's q/k/v comes directly out of a matmul (no 64-lane value slices); wo is
    (heads, dim_head, dim) and the output projection is accumulated per head
    (no lane concat).  `bias` is the host-precomputed additive mask holding the
    block-diagonal batch mask (and the causal mask for the causal self-attn);
    it is head-invariant so it is applied once per head with a single add.
    """
    wq_ref, wk_ref, wv_ref, wo_ref, bo_ref = w_refs
    acc = None
    for h in range(heads):                               # static unroll
        q = _mm(q_in, wq_ref[h])                         # (Mq, dh), scale folded into wq
        k = _mm(kv_in, wk_ref[h])                        # (Mk, dh)
        v = _mm(kv_in, wv_ref[h])                        # (Mk, dh)
        if use_rotary:
            # apply_rotary_pos_emb: t*cos + rotate_half(t)*sin, rotate_half via
            # the block +/-1 matrix `rot` (zero past rotary_dim; sin=0 there).
            q = q * cos + _mm(q, rot) * sin
            k = k * cos + _mm(k, rot) * sin
        s = lax.dot_general(q.astype(jnp.bfloat16), k.astype(jnp.bfloat16),
                            (((1,), (1,)), ((), ())),
                            preferred_element_type=jnp.float32)   # (Mq, Mk)
        s = s + bias
        s = s - jnp.max(s, axis=-1, keepdims=True)
        p = jnp.exp(s)
        p = p * pl.reciprocal(jnp.sum(p, axis=-1, keepdims=True), approx=True)
        part = _mm(_mm(p, v), wo_ref[h])                 # per-head out-proj accumulation
        acc = part if acc is None else acc + part
    return acc + bo_ref[...]


def _gate(v, s, wg_ref, bg_ref):
    """RecurrentStateGate with fused (D, 3D) weight laid out [main | input | forget]."""
    d = s.shape[-1]
    g = _mm(v, wg_ref[...]) + bg_ref[...]
    z = jnp.tanh(g[:, :d])
    i = jax.nn.sigmoid(g[:, d:2 * d] - 1.0)
    f = jax.nn.sigmoid(g[:, 2 * d:] + 1.0)
    return s * f + z * i


# ----------------------------- fused forward kernel ------------------------- #

def _brt_kernel(*refs, heads):
    it = iter(refs)
    nx = lambda: next(it)
    # per-grid-step activations (B_TILE batch elements folded into rows)
    x_ref, st_ref = nx(), nx()
    # constants (single-buffered)
    g_in_ref, g_st_ref = nx(), nx()                                  # (3, dim) gammas
    cos_x_ref, sin_x_ref, cos_s_ref, sin_s_ref, rot_ref = nx(), nx(), nx(), nx(), nx()
    bias_xx_ref, bias_xs_ref, bias_ss_ref, bias_sx_ref = nx(), nx(), nx(), nx()
    attn_is = [nx() for _ in range(5)]                               # input self-attn
    attn_ic = [nx() for _ in range(5)]                               # input<-state cross-attn
    attn_ss = [nx() for _ in range(5)]                               # state self-attn
    attn_sx = [nx() for _ in range(5)]                               # state<-input cross-attn
    wpi_c_ref, wpi_s_ref, wps_c_ref, wps_s_ref = nx(), nx(), nx(), nx()
    wg_p_ref, bg_p_ref, wg_f_ref, bg_f_ref = nx(), nx(), nx(), nx()
    ff_in = [nx() for _ in range(4)]
    ff_st = [nx() for _ in range(4)]
    # outputs
    out_x_ref, out_s_ref = nx(), nx()

    x = x_ref[...].astype(jnp.float32)            # (B_TILE*n, dim)
    st = st_ref[...].astype(jnp.float32)          # (B_TILE*m, dim)
    g_in, g_st = g_in_ref[...], g_st_ref[...]
    cos_x, sin_x = cos_x_ref[...], sin_x_ref[...]
    cos_s, sin_s = cos_s_ref[...], sin_s_ref[...]
    rot = rot_ref[...]

    # RMSNorm statistics shared between the self-/cross-attn norms of each path.
    xn = _rms_normalize(x)
    stn = _rms_normalize(st)

    # ------------------------------ input path ------------------------------ #
    xs = xn * g_in[0:1]
    a_self_x = _attention(attn_is, xs, xs, cos_x, sin_x, rot,
                          bias_xx_ref[...], True, heads)             # causal (via bias)
    xc = xn * g_in[1:2]
    a_cross_x = _attention(attn_ic, xc, st, None, None, None,
                           bias_xs_ref[...], False, heads)
    # input_proj(concat(cross, self)) as two matmuls on the host-split weight.
    proj_x = _mm(a_cross_x, wpi_c_ref[...]) + _mm(a_self_x, wpi_s_ref[...])
    resid = proj_x + x
    hx = _rms_normalize(resid) * g_in[2:3]                           # input FeedForward
    hx = _gelu(_mm(hx, ff_in[0][...]) + ff_in[1][...])
    hx = _mm(hx, ff_in[2][...]) + ff_in[3][...]
    out_x_ref[...] = (hx + resid).astype(out_x_ref.dtype)

    # ------------------------------ state path ------------------------------ #
    ss = stn * g_st[0:1]
    a_self_s = _attention(attn_ss, ss, ss, cos_s, sin_s, rot,
                          bias_ss_ref[...], True, heads)             # rotary, non-causal
    sc = stn * g_st[1:2]
    a_cross_s = _attention(attn_sx, sc, x, None, None, None,
                           bias_sx_ref[...], False, heads)
    proj_s = _mm(a_cross_s, wps_c_ref[...]) + _mm(a_self_s, wps_s_ref[...])
    state_resid = _gate(proj_s, st, wg_p_ref, bg_p_ref)              # proj_gate
    hs = _rms_normalize(state_resid) * g_st[2:3]                     # state FeedForward
    hs = _gelu(_mm(hs, ff_st[0][...]) + ff_st[1][...])
    hs = _mm(hs, ff_st[2][...]) + ff_st[3][...]
    out_s_ref[...] = _gate(hs, state_resid, wg_f_ref, bg_f_ref).astype(out_s_ref.dtype)


# ------------------------------ host-side glue ------------------------------ #

def _pick_b_tile(b, n, m):
    """Largest divisor of b whose folded row count stays <= 256 (MXU-friendly M),
    preferring >= 2 grid steps (v7x megacore) when that keeps M >= 128."""
    rows = max(n, m)
    bt = 1
    for cand in range(1, b + 1):
        if b % cand == 0 and cand * rows <= 256:
            bt = cand
    if b // bt < 2:
        for cand in range(bt - 1, 0, -1):
            if b % cand == 0 and b // cand >= 2 and cand * rows >= 128:
                bt = cand
                break
    return bt


def _rotary_tables(seq_len, rotary_dim, dim_head, b_tile):
    inv_freq = 1.0 / (10000.0 ** (jnp.arange(0, rotary_dim, 2, dtype=jnp.float32) / rotary_dim))
    t = jnp.arange(seq_len, dtype=jnp.float32)
    freqs = t[:, None] * inv_freq[None, :]
    emb = jnp.concatenate([freqs, freqs], axis=-1)                   # (seq, rotary_dim)
    cos, sin = jnp.cos(emb), jnp.sin(emb)
    if rotary_dim < dim_head:
        cos = jnp.concatenate([cos, jnp.ones((seq_len, dim_head - rotary_dim), jnp.float32)], -1)
        sin = jnp.concatenate([sin, jnp.zeros((seq_len, dim_head - rotary_dim), jnp.float32)], -1)
    # tile over the folded batch elements: row t*seq + p holds position p
    return jnp.tile(cos, (b_tile, 1)), jnp.tile(sin, (b_tile, 1))    # (b_tile*seq, dim_head)


def _rotation_matrix(rotary_dim, dim_head):
    """(t @ R) == rotate_half(t[..., :rotary_dim]) padded with zeros."""
    half = rotary_dim // 2
    r = np.zeros((dim_head, dim_head), np.float32)
    for j in range(half):
        r[j + half, j] = -1.0      # out[j]        = -t[j + half]
        r[j, j + half] = 1.0       # out[j + half] =  t[j]
    return jnp.asarray(r, jnp.bfloat16)


def _block_bias(b_tile, nq, nk, causal):
    """Additive mask for a folded batch tile: 0 where same batch element (and,
    if causal, key position <= query position), -1e30 elsewhere."""
    rq = np.arange(b_tile * nq)
    rk = np.arange(b_tile * nk)
    ok = (rq[:, None] // nq) == (rk[None, :] // nk)
    if causal:
        ok = ok & ((rk[None, :] % nk) <= (rq[:, None] % nq))
    return jnp.asarray(np.where(ok, 0.0, MASK_VALUE), jnp.float32)


def _prep_attention(p, heads, dim_head, scale):
    inner = heads * dim_head
    bf = lambda a: a.astype(jnp.bfloat16)
    wq = (p["w_q"] * scale).reshape(-1, heads, dim_head).transpose(1, 0, 2)   # (H, dim, dh)
    wk = p["w_kv"][:, :inner].reshape(-1, heads, dim_head).transpose(1, 0, 2)
    wv = p["w_kv"][:, inner:].reshape(-1, heads, dim_head).transpose(1, 0, 2)
    wo = p["w_out"].reshape(heads, dim_head, -1)                              # (H, dh, dim)
    return [bf(wq), bf(wk), bf(wv), bf(wo), p["b_out"].reshape(1, -1).astype(jnp.float32)]


def _prep_gate(p):
    wg = jnp.concatenate([p["w_main"], p["w_input"], p["w_forget"]], axis=1).astype(jnp.bfloat16)
    bg = jnp.concatenate([p["b_main"], p["b_input"], p["b_forget"]]).reshape(1, -1).astype(jnp.float32)
    return [wg, bg]


def _prep_ff(p):
    return [p["w1"].astype(jnp.bfloat16), p["b1"].reshape(1, -1).astype(jnp.float32),
            p["w2"].astype(jnp.bfloat16), p["b2"].reshape(1, -1).astype(jnp.float32)]


def block_recurrent_attention(x, state, params, *, heads, dim_head, rotary_dim,
                              single_buffer_consts=True):
    b, n, dim = x.shape
    _, m, dim_state = state.shape
    assert dim == dim_state, "module's gates/projections require dim == dim_state"
    scale = dim_head ** (-0.5)

    b_tile = _pick_b_tile(b, n, m)
    grid = (b // b_tile,)
    mn, mm = b_tile * n, b_tile * m

    cos_x, sin_x = _rotary_tables(n, rotary_dim, dim_head, b_tile)
    cos_s, sin_s = _rotary_tables(m, rotary_dim, dim_head, b_tile)
    rot = _rotation_matrix(rotary_dim, dim_head)

    g_in = jnp.stack([params["input_self_attn"]["norm_g"],
                      params["input_state_cross_attn"]["norm_g"],
                      params["input_ff"]["norm_g"]]).astype(jnp.float32)
    g_st = jnp.stack([params["state_self_attn"]["norm_g"],
                      params["state_input_cross_attn"]["norm_g"],
                      params["state_ff"]["norm_g"]]).astype(jnp.float32)

    bias_xx = _block_bias(b_tile, n, n, causal=True)
    bias_xs = _block_bias(b_tile, n, m, causal=False)
    bias_ss = _block_bias(b_tile, m, m, causal=False)
    bias_sx = _block_bias(b_tile, m, n, causal=False)

    bf = lambda a: a.astype(jnp.bfloat16)
    wpi, wps = params["input_proj_w"], params["state_proj_w"]

    # Order must exactly mirror the unpack in _brt_kernel.
    consts = ([g_in, g_st, cos_x, sin_x, cos_s, sin_s, rot,
               bias_xx, bias_xs, bias_ss, bias_sx]
              + _prep_attention(params["input_self_attn"], heads, dim_head, scale)
              + _prep_attention(params["input_state_cross_attn"], heads, dim_head, scale)
              + _prep_attention(params["state_self_attn"], heads, dim_head, scale)
              + _prep_attention(params["state_input_cross_attn"], heads, dim_head, scale)
              + [bf(wpi[:dim]), bf(wpi[dim:]), bf(wps[:dim]), bf(wps[dim:])]
              + _prep_gate(params["proj_gate"]) + _prep_gate(params["ff_gate"])
              + _prep_ff(params["input_ff"]) + _prep_ff(params["state_ff"]))

    # flat (batch*seq, dim) activation slabs, bf16 to halve HBM->VMEM DMA
    x2 = x.reshape(b * n, dim).astype(jnp.bfloat16)
    s2 = state.reshape(b * m, dim_state).astype(jnp.bfloat16)

    def act_spec(rows, cols):
        return pl.BlockSpec((rows, cols), lambda i: (i, 0))

    def const_spec(a):
        if single_buffer_consts:
            return pl.BlockSpec(a.shape, lambda i: (0,) * a.ndim,
                                pipeline_mode=pl.Buffered(1))
        return pl.BlockSpec(a.shape, lambda i: (0,) * a.ndim)

    out_x, out_s = pl.pallas_call(
        functools.partial(_brt_kernel, heads=heads),
        out_shape=(jax.ShapeDtypeStruct((b * n, dim), jnp.float32),
                   jax.ShapeDtypeStruct((b * m, dim_state), jnp.float32)),
        grid=grid,
        in_specs=[act_spec(mn, dim), act_spec(mm, dim_state)]
                 + [const_spec(a) for a in consts],
        out_specs=(act_spec(mn, dim), act_spec(mm, dim_state)),
        compiler_params=pltpu.CompilerParams(dimension_semantics=("parallel",)),
    )(x2, s2, *consts)

    return out_x.reshape(b, n, dim), out_s.reshape(b, m, dim_state)


# --------------------------- deterministic parameters ------------------------ #

def init_params(key, dim, dim_state, heads, dim_head):
    inner = heads * dim_head
    keys = jax.random.split(key, 10)

    def lin(k, i, o, s=0.05):
        return jax.random.normal(k, (i, o), jnp.float32) * s

    def attn_p(k, d):
        k1, k2, k3, k4 = jax.random.split(k, 4)
        return {"norm_g": jnp.ones((d,), jnp.float32),
                "w_q": lin(k1, d, inner),
                "w_kv": lin(k2, d, 2 * inner),
                "w_out": lin(k3, inner, d),
                "b_out": jax.random.normal(k4, (d,), jnp.float32) * 0.02}

    def gate_p(k, d):
        k1, k2, k3, k4, k5, k6 = jax.random.split(k, 6)
        return {"w_main": lin(k1, d, d), "b_main": jax.random.normal(k2, (d,), jnp.float32) * 0.02,
                "w_input": lin(k3, d, d), "b_input": jax.random.normal(k4, (d,), jnp.float32) * 0.02,
                "w_forget": lin(k5, d, d), "b_forget": jax.random.normal(k6, (d,), jnp.float32) * 0.02}

    def ff_p(k, d, mult=4):
        k1, k2, k3, k4 = jax.random.split(k, 4)
        return {"norm_g": jnp.ones((d,), jnp.float32),
                "w1": lin(k1, d, d * mult), "b1": jax.random.normal(k2, (d * mult,), jnp.float32) * 0.02,
                "w2": lin(k3, d * mult, d), "b2": jax.random.normal(k4, (d,), jnp.float32) * 0.02}

    return {
        "input_self_attn": attn_p(keys[0], dim),
        "state_self_attn": attn_p(keys[1], dim_state),
        "input_state_cross_attn": attn_p(keys[2], dim),
        "state_input_cross_attn": attn_p(keys[3], dim_state),
        "proj_gate": gate_p(keys[4], dim),
        "ff_gate": gate_p(keys[5], dim),
        "input_proj_w": lin(keys[6], dim + dim_state, dim),
        "state_proj_w": lin(keys[7], dim + dim_state, dim),
        "input_ff": ff_p(keys[8], dim),
        "state_ff": ff_p(keys[9], dim_state),
    }


if __name__ == "__main__":
    # dim must equal dim_state for the PyTorch module's gates/projections to type-check.
    batch, seq_len, state_len = 2, 8, 8
    dim = dim_state = 64
    heads, dim_head = 2, 64                      # Attention's default dim_head=64
    rotary_dim = max(dim_head // 2, 32)          # MIN_DIM_HEAD = 32

    root = jax.random.PRNGKey(0)
    kp, kx, ks = jax.random.split(root, 3)
    params = init_params(kp, dim, dim_state, heads, dim_head)
    x = jax.random.normal(kx, (batch, seq_len, dim), jnp.float32)
    state = jax.random.normal(ks, (batch, state_len, dim_state), jnp.float32)

    def build(single_buffer_consts):
        return jax.jit(functools.partial(
            block_recurrent_attention, heads=heads, dim_head=dim_head,
            rotary_dim=rotary_dim, single_buffer_consts=single_buffer_consts))

    try:
        output, next_state = build(True)(x, state, params)
        jax.block_until_ready((output, next_state))
    except Exception:
        # Fallback: identical kernel with default (double-buffered) constant
        # operands, in case this JAX build rejects pl.Buffered(1).
        output, next_state = build(False)(x, state, params)
        jax.block_until_ready((output, next_state))

    assert output.shape == (batch, seq_len, dim)
    assert next_state.shape == (batch, state_len, dim_state)
    assert bool(jnp.all(jnp.isfinite(output))) and bool(jnp.all(jnp.isfinite(next_state)))
    print("KERNEL_OK")
</pallas_src>

<mosaic_0001>
module attributes {stable_mosaic.version = 11 : i64} {
  func.func @_brt_kernel(%arg0: i32, %arg1: memref<16x64xbf16, #tpu.memory_space<vmem>>, %arg2: memref<16x64xbf16, #tpu.memory_space<vmem>>, %arg3: memref<3x64xf32, #tpu.memory_space<vmem>>, %arg4: memref<3x64xf32, #tpu.memory_space<vmem>>, %arg5: memref<16x64xf32, #tpu.memory_space<vmem>>, %arg6: memref<16x64xf32, #tpu.memory_space<vmem>>, %arg7: memref<16x64xf32, #tpu.memory_space<vmem>>, %arg8: memref<16x64xf32, #tpu.memory_space<vmem>>, %arg9: memref<64x64xbf16, #tpu.memory_space<vmem>>, %arg10: memref<16x16xf32, #tpu.memory_space<vmem>>, %arg11: memref<16x16xf32, #tpu.memory_space<vmem>>, %arg12: memref<16x16xf32, #tpu.memory_space<vmem>>, %arg13: memref<16x16xf32, #tpu.memory_space<vmem>>, %arg14: memref<2x64x64xbf16, #tpu.memory_space<vmem>>, %arg15: memref<2x64x64xbf16, #tpu.memory_space<vmem>>, %arg16: memref<2x64x64xbf16, #tpu.memory_space<vmem>>, %arg17: memref<2x64x64xbf16, #tpu.memory_space<vmem>>, %arg18: memref<1x64xf32, #tpu.memory_space<vmem>>, %arg19: memref<2x64x64xbf16, #tpu.memory_space<vmem>>, %arg20: memref<2x64x64xbf16, #tpu.memory_space<vmem>>, %arg21: memref<2x64x64xbf16, #tpu.memory_space<vmem>>, %arg22: memref<2x64x64xbf16, #tpu.memory_space<vmem>>, %arg23: memref<1x64xf32, #tpu.memory_space<vmem>>, %arg24: memref<2x64x64xbf16, #tpu.memory_space<vmem>>, %arg25: memref<2x64x64xbf16, #tpu.memory_space<vmem>>, %arg26: memref<2x64x64xbf16, #tpu.memory_space<vmem>>, %arg27: memref<2x64x64xbf16, #tpu.memory_space<vmem>>, %arg28: memref<1x64xf32, #tpu.memory_space<vmem>>, %arg29: memref<2x64x64xbf16, #tpu.memory_space<vmem>>, %arg30: memref<2x64x64xbf16, #tpu.memory_space<vmem>>, %arg31: memref<2x64x64xbf16, #tpu.memory_space<vmem>>, %arg32: memref<2x64x64xbf16, #tpu.memory_space<vmem>>, %arg33: memref<1x64xf32, #tpu.memory_space<vmem>>, %arg34: memref<64x64xbf16, #tpu.memory_space<vmem>>, %arg35: memref<64x64xbf16, #tpu.memory_space<vmem>>, %arg36: memref<64x64xbf16, #tpu.memory_space<vmem>>, %arg37: memref<64x64xbf16, #tpu.memory_space<vmem>>, %arg38: memref<64x192xbf16, #tpu.memory_space<vmem>>, %arg39: memref<1x192xf32, #tpu.memory_space<vmem>>, %arg40: memref<64x192xbf16, #tpu.memory_space<vmem>>, %arg41: memref<1x192xf32, #tpu.memory_space<vmem>>, %arg42: memref<64x256xbf16, #tpu.memory_space<vmem>>, %arg43: memref<1x256xf32, #tpu.memory_space<vmem>>, %arg44: memref<256x64xbf16, #tpu.memory_space<vmem>>, %arg45: memref<1x64xf32, #tpu.memory_space<vmem>>, %arg46: memref<64x256xbf16, #tpu.memory_space<vmem>>, %arg47: memref<1x256xf32, #tpu.memory_space<vmem>>, %arg48: memref<256x64xbf16, #tpu.memory_space<vmem>>, %arg49: memref<1x64xf32, #tpu.memory_space<vmem>>, %arg50: memref<16x64xf32, #tpu.memory_space<vmem>>, %arg51: memref<16x64xf32, #tpu.memory_space<vmem>>) attributes {dimension_semantics = [#tpu.dimension_semantics<parallel>], iteration_bounds = array<i64: 1>, scalar_prefetch = 0 : i64, scratch_operands = 0 : i64, tpu.core_type = #tpu.core_type<tc>, window_params = [{transform_indices = @transform_0, window_bounds = array<i64: 16, 64>}, {transform_indices = @transform_1, window_bounds = array<i64: 16, 64>}, {pipeline_mode = #tpu.pipeline_mode<synchronous>, transform_indices = @transform_2, window_bounds = array<i64: 3, 64>}, {pipeline_mode = #tpu.pipeline_mode<synchronous>, transform_indices = @transform_3, window_bounds = array<i64: 3, 64>}, {pipeline_mode = #tpu.pipeline_mode<synchronous>, transform_indices = @transform_4, window_bounds = array<i64: 16, 64>}, {pipeline_mode = #tpu.pipeline_mode<synchronous>, transform_indices = @transform_5, window_bounds = array<i64: 16, 64>}, {pipeline_mode = #tpu.pipeline_mode<synchronous>, transform_indices = @transform_6, window_bounds = array<i64: 16, 64>}, {pipeline_mode = #tpu.pipeline_mode<synchronous>, transform_indices = @transform_7, window_bounds = array<i64: 16, 64>}, {pipeline_mode = #tpu.pipeline_mode<synchronous>, transform_indices = @transform_8, window_bounds = array<i64: 64, 64>}, {pipeline_mode = #tpu.pipeline_mode<synchronous>, transform_indices = @transform_9, window_bounds = array<i64: 16, 16>}, {pipeline_mode = #tpu.pipeline_mode<synchronous>, transform_indices = @transform_10, window_bounds = array<i64: 16, 16>}, {pipeline_mode = #tpu.pipeline_mode<synchronous>, transform_indices = @transform_11, window_bounds = array<i64: 16, 16>}, {pipeline_mode = #tpu.pipeline_mode<synchronous>, transform_indices = @transform_12, window_bounds = array<i64: 16, 16>}, {pipeline_mode = #tpu.pipeline_mode<synchronous>, transform_indices = @transform_13, window_bounds = array<i64: 2, 64, 64>}, {pipeline_mode = #tpu.pipeline_mode<synchronous>, transform_indices = @transform_14, window_bounds = array<i64: 2, 64, 64>}, {pipeline_mode = #tpu.pipeline_mode<synchronous>, transform_indices = @transform_15, window_bounds = array<i64: 2, 64, 64>}, {pipeline_mode = #tpu.pipeline_mode<synchronous>, transform_indices = @transform_16, window_bounds = array<i64: 2, 64, 64>}, {pipeline_mode = #tpu.pipeline_mode<synchronous>, transform_indices = @transform_17, window_bounds = array<i64: 1, 64>}, {pipeline_mode = #tpu.pipeline_mode<synchronous>, transform_indices = @transform_18, window_bounds = array<i64: 2, 64, 64>}, {pipeline_mode = #tpu.pipeline_mode<synchronous>, transform_indices = @transform_19, window_bounds = array<i64: 2, 64, 64>}, {pipeline_mode = #tpu.pipeline_mode<synchronous>, transform_indices = @transform_20, window_bounds = array<i64: 2, 64, 64>}, {pipeline_mode = #tpu.pipeline_mode<synchronous>, transform_indices = @transform_21, window_bounds = array<i64: 2, 64, 64>}, {pipeline_mode = #tpu.pipeline_mode<synchronous>, transform_indices = @transform_22, window_bounds = array<i64: 1, 64>}, {pipeline_mode = #tpu.pipeline_mode<synchronous>, transform_indices = @transform_23, window_bounds = array<i64: 2, 64, 64>}, {pipeline_mode = #tpu.pipeline_mode<synchronous>, transform_indices = @transform_24, window_bounds = array<i64: 2, 64, 64>}, {pipeline_mode = #tpu.pipeline_mode<synchronous>, transform_indices = @transform_25, window_bounds = array<i64: 2, 64, 64>}, {pipeline_mode = #tpu.pipeline_mode<synchronous>, transform_indices = @transform_26, window_bounds = array<i64: 2, 64, 64>}, {pipeline_mode = #tpu.pipeline_mode<synchronous>, transform_indices = @transform_27, window_bounds = array<i64: 1, 64>}, {pipeline_mode = #tpu.pipeline_mode<synchronous>, transform_indices = @transform_28, window_bounds = array<i64: 2, 64, 64>}, {pipeline_mode = #tpu.pipeline_mode<synchronous>, transform_indices = @transform_29, window_bounds = array<i64: 2, 64, 64>}, {pipeline_mode = #tpu.pipeline_mode<synchronous>, transform_indices = @transform_30, window_bounds = array<i64: 2, 64, 64>}, {pipeline_mode = #tpu.pipeline_mode<synchronous>, transform_indices = @transform_31, window_bounds = array<i64: 2, 64, 64>}, {pipeline_mode = #tpu.pipeline_mode<synchronous>, transform_indices = @transform_32, window_bounds = array<i64: 1, 64>}, {pipeline_mode = #tpu.pipeline_mode<synchronous>, transform_indices = @transform_33, window_bounds = array<i64: 64, 64>}, {pipeline_mode = #tpu.pipeline_mode<synchronous>, transform_indices = @transform_34, window_bounds = array<i64: 64, 64>}, {pipeline_mode = #tpu.pipeline_mode<synchronous>, transform_indices = @transform_35, window_bounds = array<i64: 64, 64>}, {pipeline_mode = #tpu.pipeline_mode<synchronous>, transform_indices = @transform_36, window_bounds = array<i64: 64, 64>}, {pipeline_mode = #tpu.pipeline_mode<synchronous>, transform_indices = @transform_37, window_bounds = array<i64: 64, 192>}, {pipeline_mode = #tpu.pipeline_mode<synchronous>, transform_indices = @transform_38, window_bounds = array<i64: 1, 192>}, {pipeline_mode = #tpu.pipeline_mode<synchronous>, transform_indices = @transform_39, window_bounds = array<i64: 64, 192>}, {pipeline_mode = #tpu.pipeline_mode<synchronous>, transform_indices = @transform_40, window_bounds = array<i64: 1, 192>}, {pipeline_mode = #tpu.pipeline_mode<synchronous>, transform_indices = @transform_41, window_bounds = array<i64: 64, 256>}, {pipeline_mode = #tpu.pipeline_mode<synchronous>, transform_indices = @transform_42, window_bounds = array<i64: 1, 256>}, {pipeline_mode = #tpu.pipeline_mode<synchronous>, transform_indices = @transform_43, window_bounds = array<i64: 256, 64>}, {pipeline_mode = #tpu.pipeline_mode<synchronous>, transform_indices = @transform_44, window_bounds = array<i64: 1, 64>}, {pipeline_mode = #tpu.pipeline_mode<synchronous>, transform_indices = @transform_45, window_bounds = array<i64: 64, 256>}, {pipeline_mode = #tpu.pipeline_mode<synchronous>, transform_indices = @transform_46, window_bounds = array<i64: 1, 256>}, {pipeline_mode = #tpu.pipeline_mode<synchronous>, transform_indices = @transform_47, window_bounds = array<i64: 256, 64>}, {pipeline_mode = #tpu.pipeline_mode<synchronous>, transform_indices = @transform_48, window_bounds = array<i64: 1, 64>}, {transform_indices = @transform_49, window_bounds = array<i64: 16, 64>}, {transform_indices = @transform_50, window_bounds = array<i64: 16, 64>}]} {
    %c0 = arith.constant 0 : index
    %c0_0 = arith.constant 0 : index
    %0 = vector.load %arg1[%c0, %c0_0] : memref<16x64xbf16, #tpu.memory_space<vmem>>, vector<16x64xbf16>
    %1 = arith.extf %0 : vector<16x64xbf16> to vector<16x64xf32>
    %c0_1 = arith.constant 0 : index
    %c0_2 = arith.constant 0 : index
    %2 = vector.load %arg2[%c0_1, %c0_2] : memref<16x64xbf16, #tpu.memory_space<vmem>>, vector<16x64xbf16>
    %3 = arith.extf %2 : vector<16x64xbf16> to vector<16x64xf32>
    %c0_3 = arith.constant 0 : index
    %c0_4 = arith.constant 0 : index
    %4 = vector.load %arg3[%c0_3, %c0_4] : memref<3x64xf32, #tpu.memory_space<vmem>>, vector<3x64xf32>
    %c0_5 = arith.constant 0 : index
    %c0_6 = arith.constant 0 : index
    %5 = vector.load %arg4[%c0_5, %c0_6] : memref<3x64xf32, #tpu.memory_space<vmem>>, vector<3x64xf32>
    %c0_7 = arith.constant 0 : index
    %c0_8 = arith.constant 0 : index
    %6 = vector.load %arg5[%c0_7, %c0_8] : memref<16x64xf32, #tpu.memory_space<vmem>>, vector<16x64xf32>
    %c0_9 = arith.constant 0 : index
    %c0_10 = arith.constant 0 : index
    %7 = vector.load %arg6[%c0_9, %c0_10] : memref<16x64xf32, #tpu.memory_space<vmem>>, vector<16x64xf32>
    %c0_11 = arith.constant 0 : index
    %c0_12 = arith.constant 0 : index
    %8 = vector.load %arg7[%c0_11, %c0_12] : memref<16x64xf32, #tpu.memory_space<vmem>>, vector<16x64xf32>
    %c0_13 = arith.constant 0 : index
    %c0_14 = arith.constant 0 : index
    %9 = vector.load %arg8[%c0_13, %c0_14] : memref<16x64xf32, #tpu.memory_space<vmem>>, vector<16x64xf32>
    %c0_15 = arith.constant 0 : index
    %c0_16 = arith.constant 0 : index
    %10 = vector.load %arg9[%c0_15, %c0_16] : memref<64x64xbf16, #tpu.memory_space<vmem>>, vector<64x64xbf16>
    %11 = arith.mulf %1, %1 : vector<16x64xf32>
    %cst = arith.constant dense<0.000000e+00> : vector<16xf32>
    %12 = vector.multi_reduction <add>, %11, %cst [1] : vector<16x64xf32> to vector<16xf32>
    %13 = vector.shape_cast %12 : vector<16xf32> to vector<16x1xf32>
    %cst_17 = arith.constant 6.400000e+01 : f32
    %14 = vector.broadcast %cst_17 : f32 to vector<16x1xf32>
    %15 = arith.divf %13, %14 : vector<16x1xf32>
    %cst_18 = arith.constant 1.000000e-16 : f32
    %16 = vector.broadcast %cst_18 : f32 to vector<16x1xf32>
    %17 = arith.maximumf %15, %16 : vector<16x1xf32>
    %18 = math.rsqrt %17 : vector<16x1xf32>
    %19 = vector.broadcast %18 : vector<16x1xf32> to vector<16x64xf32>
    %20 = arith.mulf %1, %19 : vector<16x64xf32>
    %21 = arith.mulf %3, %3 : vector<16x64xf32>
    %cst_19 = arith.constant dense<0.000000e+00> : vector<16xf32>
    %22 = vector.multi_reduction <add>, %21, %cst_19 [1] : vector<16x64xf32> to vector<16xf32>
    %23 = vector.shape_cast %22 : vector<16xf32> to vector<16x1xf32>
    %cst_20 = arith.constant 6.400000e+01 : f32
    %24 = vector.broadcast %cst_20 : f32 to vector<16x1xf32>
    %25 = arith.divf %23, %24 : vector<16x1xf32>
    %cst_21 = arith.constant 1.000000e-16 : f32
    %26 = vector.broadcast %cst_21 : f32 to vector<16x1xf32>
    %27 = arith.maximumf %25, %26 : vector<16x1xf32>
    %28 = math.rsqrt %27 : vector<16x1xf32>
    %29 = vector.broadcast %28 : vector<16x1xf32> to vector<16x64xf32>
    %30 = arith.mulf %3, %29 : vector<16x64xf32>
    %31 = vector.extract_strided_slice %4 {offsets = [0, 0], sizes = [1, 64], strides = [1, 1]} : vector<3x64xf32> to vector<1x64xf32>
    %32 = vector.broadcast %31 : vector<1x64xf32> to vector<16x64xf32>
    %33 = arith.mulf %20, %32 : vector<16x64xf32>
    %c0_22 = arith.constant 0 : index
    %c0_23 = arith.constant 0 : index
    %34 = vector.load %arg10[%c0_22, %c0_23] : memref<16x16xf32, #tpu.memory_space<vmem>>, vector<16x16xf32>
    %c0_24 = arith.constant 0 : index
    %c0_25 = arith.constant 0 : index
    %c0_26 = arith.constant 0 : index
    %35 = vector.load %arg14[%c0_24, %c0_25, %c0_26] : memref<2x64x64xbf16, #tpu.memory_space<vmem>>, vector<1x64x64xbf16>
    %36 = vector.shape_cast %35 : vector<1x64x64xbf16> to vector<64x64xbf16>
    %37 = arith.truncf %33 : vector<16x64xf32> to vector<16x64xbf16>
    %cst_27 = arith.constant dense<0.000000e+00> : vector<16x64xf32>
    %38 = tpu.matmul %37, %36, %cst_27 {dimension_numbers = #tpu.dot_dimension_numbers<[1], [0], [0], [1], [0, 0, 1, 1], [], []>} : vector<16x64xbf16>, vector<64x64xbf16>, vector<16x64xf32> -> vector<16x64xf32>
    %c0_28 = arith.constant 0 : index
    %c0_29 = arith.constant 0 : index
    %c0_30 = arith.constant 0 : index
    %39 = vector.load %arg15[%c0_28, %c0_29, %c0_30] : memref<2x64x64xbf16, #tpu.memory_space<vmem>>, vector<1x64x64xbf16>
    %40 = vector.shape_cast %39 : vector<1x64x64xbf16> to vector<64x64xbf16>
    %41 = arith.truncf %33 : vector<16x64xf32> to vector<16x64xbf16>
    %cst_31 = arith.constant dense<0.000000e+00> : vector<16x64xf32>
    %42 = tpu.matmul %41, %40, %cst_31 {dimension_numbers = #tpu.dot_dimension_numbers<[1], [0], [0], [1], [0, 0, 1, 1], [], []>} : vector<16x64xbf16>, vector<64x64xbf16>, vector<16x64xf32> -> vector<16x64xf32>
    %c0_32 = arith.constant 0 : index
    %c0_33 = arith.constant 0 : index
    %c0_34 = arith.constant 0 : index
    %43 = vector.load %arg16[%c0_32, %c0_33, %c0_34] : memref<2x64x64xbf16, #tpu.memory_space<vmem>>, vector<1x64x64xbf16>
    %44 = vector.shape_cast %43 : vector<1x64x64xbf16> to vector<64x64xbf16>
    %45 = arith.truncf %33 : vector<16x64xf32> to vector<16x64xbf16>
    %cst_35 = arith.constant dense<0.000000e+00> : vector<16x64xf32>
    %46 = tpu.matmul %45, %44, %cst_35 {dimension_numbers = #tpu.dot_dimension_numbers<[1], [0], [0], [1], [0, 0, 1, 1], [], []>} : vector<16x64xbf16>, vector<64x64xbf16>, vector<16x64xf32> -> vector<16x64xf32>
    %47 = arith.mulf %38, %6 : vector<16x64xf32>
    %48 = arith.truncf %38 : vector<16x64xf32> to vector<16x64xbf16>
    %cst_36 = arith.constant dense<0.000000e+00> : vector<16x64xf32>
    %49 = tpu.matmul %48, %10, %cst_36 {dimension_numbers = #tpu.dot_dimension_numbers<[1], [0], [0], [1], [0, 0, 1, 1], [], []>} : vector<16x64xbf16>, vector<64x64xbf16>, vector<16x64xf32> -> vector<16x64xf32>
    %50 = arith.mulf %49, %7 : vector<16x64xf32>
    %51 = arith.addf %47, %50 : vector<16x64xf32>
    %52 = arith.mulf %42, %6 : vector<16x64xf32>
    %53 = arith.truncf %42 : vector<16x64xf32> to vector<16x64xbf16>
    %cst_37 = arith.constant dense<0.000000e+00> : vector<16x64xf32>
    %54 = tpu.matmul %53, %10, %cst_37 {dimension_numbers = #tpu.dot_dimension_numbers<[1], [0], [0], [1], [0, 0, 1, 1], [], []>} : vector<16x64xbf16>, vector<64x64xbf16>, vector<16x64xf32> -> vector<16x64xf32>
    %55 = arith.mulf %54, %7 : vector<16x64xf32>
    %56 = arith.addf %52, %55 : vector<16x64xf32>
    %57 = arith.truncf %51 : vector<16x64xf32> to vector<16x64xbf16>
    %58 = arith.truncf %56 : vector<16x64xf32> to vector<16x64xbf16>
    %cst_38 = arith.constant dense<0.000000e+00> : vector<16x16xf32>
    %59 = tpu.matmul %57, %58, %cst_38 {dimension_numbers = #tpu.dot_dimension_numbers<[1], [1], [0], [0], [0, 0, 1, 0], [], []>} : vector<16x64xbf16>, vector<16x64xbf16>, vector<16x16xf32> -> vector<16x16xf32>
    %60 = arith.addf %59, %34 : vector<16x16xf32>
    %cst_39 = arith.constant dense<0xFF800000> : vector<16xf32>
    %61 = vector.multi_reduction <maximumf>, %60, %cst_39 [1] : vector<16x16xf32> to vector<16xf32>
    %62 = vector.shape_cast %61 : vector<16xf32> to vector<16x1xf32>
    %63 = vector.broadcast %62 : vector<16x1xf32> to vector<16x16xf32>
    %64 = arith.subf %60, %63 : vector<16x16xf32>
    %65 = math.exp %64 : vector<16x16xf32>
    %cst_40 = arith.constant dense<0.000000e+00> : vector<16xf32>
    %66 = vector.multi_reduction <add>, %65, %cst_40 [1] : vector<16x16xf32> to vector<16xf32>
    %67 = vector.shape_cast %66 : vector<16xf32> to vector<16x1xf32>
    %68 = tpu.reciprocal %67 {approx = true} : vector<16x1xf32> -> vector<16x1xf32>
    %69 = vector.broadcast %68 : vector<16x1xf32> to vector<16x16xf32>
    %70 = arith.mulf %65, %69 : vector<16x16xf32>
    %71 = arith.truncf %70 : vector<16x16xf32> to vector<16x16xbf16>
    %72 = arith.truncf %46 : vector<16x64xf32> to vector<16x64xbf16>
    %cst_41 = arith.constant dense<0.000000e+00> : vector<16x64xf32>
    %73 = tpu.matmul %71, %72, %cst_41 {dimension_numbers = #tpu.dot_dimension_numbers<[1], [0], [0], [1], [0, 0, 1, 1], [], []>} : vector<16x16xbf16>, vector<16x64xbf16>, vector<16x64xf32> -> vector<16x64xf32>
    %c0_42 = arith.constant 0 : index
    %c0_43 = arith.constant 0 : index
    %c0_44 = arith.constant 0 : index
    %74 = vector.load %arg17[%c0_42, %c0_43, %c0_44] : memref<2x64x64xbf16, #tpu.memory_space<vmem>>, vector<1x64x64xbf16>
    %75 = vector.shape_cast %74 : vector<1x64x64xbf16> to vector<64x64xbf16>
    %76 = arith.truncf %73 : vector<16x64xf32> to vector<16x64xbf16>
    %cst_45 = arith.constant dense<0.000000e+00> : vector<16x64xf32>
    %77 = tpu.matmul %76, %75, %cst_45 {dimension_numbers = #tpu.dot_dimension_numbers<[1], [0], [0], [1], [0, 0, 1, 1], [], []>} : vector<16x64xbf16>, vector<64x64xbf16>, vector<16x64xf32> -> vector<16x64xf32>
    %c1 = arith.constant 1 : index
    %c0_46 = arith.constant 0 : index
    %c0_47 = arith.constant 0 : index
    %78 = vector.load %arg14[%c1, %c0_46, %c0_47] : memref<2x64x64xbf16, #tpu.memory_space<vmem>>, vector<1x64x64xbf16>
    %79 = vector.shape_cast %78 : vector<1x64x64xbf16> to vector<64x64xbf16>
    %80 = arith.truncf %33 : vector<16x64xf32> to vector<16x64xbf16>
    %cst_48 = arith.constant dense<0.000000e+00> : vector<16x64xf32>
    %81 = tpu.matmul %80, %79, %cst_48 {dimension_numbers = #tpu.dot_dimension_numbers<[1], [0], [0], [1], [0, 0, 1, 1], [], []>} : vector<16x64xbf16>, vector<64x64xbf16>, vector<16x64xf32> -> vector<16x64xf32>
    %c1_49 = arith.constant 1 : index
    %c0_50 = arith.constant 0 : index
    %c0_51 = arith.constant 0 : index
    %82 = vector.load %arg15[%c1_49, %c0_50, %c0_51] : memref<2x64x64xbf16, #tpu.memory_space<vmem>>, vector<1x64x64xbf16>
    %83 = vector.shape_cast %82 : vector<1x64x64xbf16> to vector<64x64xbf16>
    %84 = arith.truncf %33 : vector<16x64xf32> to vector<16x64xbf16>
    %cst_52 = arith.constant dense<0.000000e+00> : vector<16x64xf32>
    %85 = tpu.matmul %84, %83, %cst_52 {dimension_numbers = #tpu.dot_dimension_numbers<[1], [0], [0], [1], [0, 0, 1, 1], [], []>} : vector<16x64xbf16>, vector<64x64xbf16>, vector<16x64xf32> -> vector<16x64xf32>
    %c1_53 = arith.constant 1 : index
    %c0_54 = arith.constant 0 : index
    %c0_55 = arith.constant 0 : index
    %86 = vector.load %arg16[%c1_53, %c0_54, %c0_55] : memref<2x64x64xbf16, #tpu.memory_space<vmem>>, vector<1x64x64xbf16>
    %87 = vector.shape_cast %86 : vector<1x64x64xbf16> to vector<64x64xbf16>
    %88 = arith.truncf %33 : vector<16x64xf32> to vector<16x64xbf16>
    %cst_56 = arith.constant dense<0.000000e+00> : vector<16x64xf32>
    %89 = tpu.matmul %88, %87, %cst_56 {dimension_numbers = #tpu.dot_dimension_numbers<[1], [0], [0], [1], [0, 0, 1, 1], [], []>} : vector<16x64xbf16>, vector<64x64xbf16>, vector<16x64xf32> -> vector<16x64xf32>
    %90 = arith.mulf %81, %6 : vector<16x64xf32>
    %91 = arith.truncf %81 : vector<16x64xf32> to vector<16x64xbf16>
    %cst_57 = arith.constant dense<0.000000e+00> : vector<16x64xf32>
    %92 = tpu.matmul %91, %10, %cst_57 {dimension_numbers = #tpu.dot_dimension_numbers<[1], [0], [0], [1], [0, 0, 1, 1], [], []>} : vector<16x64xbf16>, vector<64x64xbf16>, vector<16x64xf32> -> vector<16x64xf32>
    %93 = arith.mulf %92, %7 : vector<16x64xf32>
    %94 = arith.addf %90, %93 : vector<16x64xf32>
    %95 = arith.mulf %85, %6 : vector<16x64xf32>
    %96 = arith.truncf %85 : vector<16x64xf32> to vector<16x64xbf16>
    %cst_58 = arith.constant dense<0.000000e+00> : vector<16x64xf32>
    %97 = tpu.matmul %96, %10, %cst_58 {dimension_numbers = #tpu.dot_dimension_numbers<[1], [0], [0], [1], [0, 0, 1, 1], [], []>} : vector<16x64xbf16>, vector<64x64xbf16>, vector<16x64xf32> -> vector<16x64xf32>
    %98 = arith.mulf %97, %7 : vector<16x64xf32>
    %99 = arith.addf %95, %98 : vector<16x64xf32>
    %100 = arith.truncf %94 : vector<16x64xf32> to vector<16x64xbf16>
    %101 = arith.truncf %99 : vector<16x64xf32> to vector<16x64xbf16>
    %cst_59 = arith.constant dense<0.000000e+00> : vector<16x16xf32>
    %102 = tpu.matmul %100, %101, %cst_59 {dimension_numbers = #tpu.dot_dimension_numbers<[1], [1], [0], [0], [0, 0, 1, 0], [], []>} : vector<16x64xbf16>, vector<16x64xbf16>, vector<16x16xf32> -> vector<16x16xf32>
    %103 = arith.addf %102, %34 : vector<16x16xf32>
    %cst_60 = arith.constant dense<0xFF800000> : vector<16xf32>
    %104 = vector.multi_reduction <maximumf>, %103, %cst_60 [1] : vector<16x16xf32> to vector<16xf32>
    %105 = vector.shape_cast %104 : vector<16xf32> to vector<16x1xf32>
    %106 = vector.broadcast %105 : vector<16x1xf32> to vector<16x16xf32>
    %107 = arith.subf %103, %106 : vector<16x16xf32>
    %108 = math.exp %107 : vector<16x16xf32>
    %cst_61 = arith.constant dense<0.000000e+00> : vector<16xf32>
    %109 = vector.multi_reduction <add>, %108, %cst_61 [1] : vector<16x16xf32> to vector<16xf32>
    %110 = vector.shape_cast %109 : vector<16xf32> to vector<16x1xf32>
    %111 = tpu.reciprocal %110 {approx = true} : vector<16x1xf32> -> vector<16x1xf32>
    %112 = vector.broadcast %111 : vector<16x1xf32> to vector<16x16xf32>
    %113 = arith.mulf %108, %112 : vector<16x16xf32>
    %114 = arith.truncf %113 : vector<16x16xf32> to vector<16x16xbf16>
    %115 = arith.truncf %89 : vector<16x64xf32> to vector<16x64xbf16>
    %cst_62 = arith.constant dense<0.000000e+00> : vector<16x64xf32>
    %116 = tpu.matmul %114, %115, %cst_62 {dimension_numbers = #tpu.dot_dimension_numbers<[1], [0], [0], [1], [0, 0, 1, 1], [], []>} : vector<16x16xbf16>, vector<16x64xbf16>, vector<16x64xf32> -> vector<16x64xf32>
    %c1_63 = arith.constant 1 : index
    %c0_64 = arith.constant 0 : index
    %c0_65 = arith.constant 0 : index
    %117 = vector.load %arg17[%c1_63, %c0_64, %c0_65] : memref<2x64x64xbf16, #tpu.memory_space<vmem>>, vector<1x64x64xbf16>
    %118 = vector.shape_cast %117 : vector<1x64x64xbf16> to vector<64x64xbf16>
    %119 = arith.truncf %116 : vector<16x64xf32> to vector<16x64xbf16>
    %cst_66 = arith.constant dense<0.000000e+00> : vector<16x64xf32>
    %120 = tpu.matmul %119, %118, %cst_66 {dimension_numbers = #tpu.dot_dimension_numbers<[1], [0], [0], [1], [0, 0, 1, 1], [], []>} : vector<16x64xbf16>, vector<64x64xbf16>, vector<16x64xf32> -> vector<16x64xf32>
    %121 = arith.addf %77, %120 : vector<16x64xf32>
    %c0_67 = arith.constant 0 : index
    %c0_68 = arith.constant 0 : index
    %122 = vector.load %arg18[%c0_67, %c0_68] : memref<1x64xf32, #tpu.memory_space<vmem>>, vector<1x64xf32>
    %123 = vector.broadcast %122 : vector<1x64xf32> to vector<16x64xf32>
    %124 = arith.addf %121, %123 : vector<16x64xf32>
    %125 = vector.extract_strided_slice %4 {offsets = [1, 0], sizes = [1, 64], strides = [1, 1]} : vector<3x64xf32> to vector<1x64xf32>
    %126 = vector.broadcast %125 : vector<1x64xf32> to vector<16x64xf32>
    %127 = arith.mulf %20, %126 : vector<16x64xf32>
    %c0_69 = arith.constant 0 : index
    %c0_70 = arith.constant 0 : index
    %128 = vector.load %arg11[%c0_69, %c0_70] : memref<16x16xf32, #tpu.memory_space<vmem>>, vector<16x16xf32>
    %c0_71 = arith.constant 0 : index
    %c0_72 = arith.constant 0 : index
    %c0_73 = arith.constant 0 : index
    %129 = vector.load %arg19[%c0_71, %c0_72, %c0_73] : memref<2x64x64xbf16, #tpu.memory_space<vmem>>, vector<1x64x64xbf16>
    %130 = vector.shape_cast %129 : vector<1x64x64xbf16> to vector<64x64xbf16>
    %131 = arith.truncf %127 : vector<16x64xf32> to vector<16x64xbf16>
    %cst_74 = arith.constant dense<0.000000e+00> : vector<16x64xf32>
    %132 = tpu.matmul %131, %130, %cst_74 {dimension_numbers = #tpu.dot_dimension_numbers<[1], [0], [0], [1], [0, 0, 1, 1], [], []>} : vector<16x64xbf16>, vector<64x64xbf16>, vector<16x64xf32> -> vector<16x64xf32>
    %c0_75 = arith.constant 0 : index
    %c0_76 = arith.constant 0 : index
    %c0_77 = arith.constant 0 : index
    %133 = vector.load %arg20[%c0_75, %c0_76, %c0_77] : memref<2x64x64xbf16, #tpu.memory_space<vmem>>, vector<1x64x64xbf16>
    %134 = vector.shape_cast %133 : vector<1x64x64xbf16> to vector<64x64xbf16>
    %135 = arith.truncf %3 : vector<16x64xf32> to vector<16x64xbf16>
    %cst_78 = arith.constant dense<0.000000e+00> : vector<16x64xf32>
    %136 = tpu.matmul %135, %134, %cst_78 {dimension_numbers = #tpu.dot_dimension_numbers<[1], [0], [0], [1], [0, 0, 1, 1], [], []>} : vector<16x64xbf16>, vector<64x64xbf16>, vector<16x64xf32> -> vector<16x64xf32>
    %c0_79 = arith.constant 0 : index
    %c0_80 = arith.constant 0 : index
    %c0_81 = arith.constant 0 : index
    %137 = vector.load %arg21[%c0_79, %c0_80, %c0_81] : memref<2x64x64xbf16, #tpu.memory_space<vmem>>, vector<1x64x64xbf16>
    %138 = vector.shape_cast %137 : vector<1x64x64xbf16> to vector<64x64xbf16>
    %139 = arith.truncf %3 : vector<16x64xf32> to vector<16x64xbf16>
    %cst_82 = arith.constant dense<0.000000e+00> : vector<16x64xf32>
    %140 = tpu.matmul %139, %138, %cst_82 {dimension_numbers = #tpu.dot_dimension_numbers<[1], [0], [0], [1], [0, 0, 1, 1], [], []>} : vector<16x64xbf16>, vector<64x64xbf16>, vector<16x64xf32> -> vector<16x64xf32>
    %141 = arith.truncf %132 : vector<16x64xf32> to vector<16x64xbf16>
    %142 = arith.truncf %136 : vector<16x64xf32> to vector<16x64xbf16>
    %cst_83 = arith.constant dense<0.000000e+00> : vector<16x16xf32>
    %143 = tpu.matmul %141, %142, %cst_83 {dimension_numbers = #tpu.dot_dimension_numbers<[1], [1], [0], [0], [0, 0, 1, 0], [], []>} : vector<16x64xbf16>, vector<16x64xbf16>, vector<16x16xf32> -> vector<16x16xf32>
    %144 = arith.addf %143, %128 : vector<16x16xf32>
    %cst_84 = arith.constant dense<0xFF800000> : vector<16xf32>
    %145 = vector.multi_reduction <maximumf>, %144, %cst_84 [1] : vector<16x16xf32> to vector<16xf32>
    %146 = vector.shape_cast %145 : vector<16xf32> to vector<16x1xf32>
    %147 = vector.broadcast %146 : vector<16x1xf32> to vector<16x16xf32>
    %148 = arith.subf %144, %147 : vector<16x16xf32>
    %149 = math.exp %148 : vector<16x16xf32>
    %cst_85 = arith.constant dense<0.000000e+00> : vector<16xf32>
    %150 = vector.multi_reduction <add>, %149, %cst_85 [1] : vector<16x16xf32> to vector<16xf32>
    %151 = vector.shape_cast %150 : vector<16xf32> to vector<16x1xf32>
    %152 = tpu.reciprocal %151 {approx = true} : vector<16x1xf32> -> vector<16x1xf32>
    %153 = vector.broadcast %152 : vector<16x1xf32> to vector<16x16xf32>
    %154 = arith.mulf %149, %153 : vector<16x16xf32>
    %155 = arith.truncf %154 : vector<16x16xf32> to vector<16x16xbf16>
    %156 = arith.truncf %140 : vector<16x64xf32> to vector<16x64xbf16>
    %cst_86 = arith.constant dense<0.000000e+00> : vector<16x64xf32>
    %157 = tpu.matmul %155, %156, %cst_86 {dimension_numbers = #tpu.dot_dimension_numbers<[1], [0], [0], [1], [0, 0, 1, 1], [], []>} : vector<16x16xbf16>, vector<16x64xbf16>, vector<16x64xf32> -> vector<16x64xf32>
    %c0_87 = arith.constant 0 : index
    %c0_88 = arith.constant 0 : index
    %c0_89 = arith.constant 0 : index
    %158 = vector.load %arg22[%c0_87, %c0_88, %c0_89] : memref<2x64x64xbf16, #tpu.memory_space<vmem>>, vector<1x64x64xbf16>
    %159 = vector.shape_cast %158 : vector<1x64x64xbf16> to vector<64x64xbf16>
    %160 = arith.truncf %157 : vector<16x64xf32> to vector<16x64xbf16>
    %cst_90 = arith.constant dense<0.000000e+00> : vector<16x64xf32>
    %161 = tpu.matmul %160, %159, %cst_90 {dimension_numbers = #tpu.dot_dimension_numbers<[1], [0], [0], [1], [0, 0, 1, 1], [], []>} : vector<16x64xbf16>, vector<64x64xbf16>, vector<16x64xf32> -> vector<16x64xf32>
    %c1_91 = arith.constant 1 : index
    %c0_92 = arith.constant 0 : index
    %c0_93 = arith.constant 0 : index
    %162 = vector.load %arg19[%c1_91, %c0_92, %c0_93] : memref<2x64x64xbf16, #tpu.memory_space<vmem>>, vector<1x64x64xbf16>
    %163 = vector.shape_cast %162 : vector<1x64x64xbf16> to vector<64x64xbf16>
    %164 = arith.truncf %127 : vector<16x64xf32> to vector<16x64xbf16>
    %cst_94 = arith.constant dense<0.000000e+00> : vector<16x64xf32>
    %165 = tpu.matmul %164, %163, %cst_94 {dimension_numbers = #tpu.dot_dimension_numbers<[1], [0], [0], [1], [0, 0, 1, 1], [], []>} : vector<16x64xbf16>, vector<64x64xbf16>, vector<16x64xf32> -> vector<16x64xf32>
    %c1_95 = arith.constant 1 : index
    %c0_96 = arith.constant 0 : index
    %c0_97 = arith.constant 0 : index
    %166 = vector.load %arg20[%c1_95, %c0_96, %c0_97] : memref<2x64x64xbf16, #tpu.memory_space<vmem>>, vector<1x64x64xbf16>
    %167 = vector.shape_cast %166 : vector<1x64x64xbf16> to vector<64x64xbf16>
    %168 = arith.truncf %3 : vector<16x64xf32> to vector<16x64xbf16>
    %cst_98 = arith.constant dense<0.000000e+00> : vector<16x64xf32>
    %169 = tpu.matmul %168, %167, %cst_98 {dimension_numbers = #tpu.dot_dimension_numbers<[1], [0], [0], [1], [0, 0, 1, 1], [], []>} : vector<16x64xbf16>, vector<64x64xbf16>, vector<16x64xf32> -> vector<16x64xf32>
    %c1_99 = arith.constant 1 : index
    %c0_100 = arith.constant 0 : index
    %c0_101 = arith.constant 0 : index
    %170 = vector.load %arg21[%c1_99, %c0_100, %c0_101] : memref<2x64x64xbf16, #tpu.memory_space<vmem>>, vector<1x64x64xbf16>
    %171 = vector.shape_cast %170 : vector<1x64x64xbf16> to vector<64x64xbf16>
    %172 = arith.truncf %3 : vector<16x64xf32> to vector<16x64xbf16>
    %cst_102 = arith.constant dense<0.000000e+00> : vector<16x64xf32>
    %173 = tpu.matmul %172, %171, %cst_102 {dimension_numbers = #tpu.dot_dimension_numbers<[1], [0], [0], [1], [0, 0, 1, 1], [], []>} : vector<16x64xbf16>, vector<64x64xbf16>, vector<16x64xf32> -> vector<16x64xf32>
    %174 = arith.truncf %165 : vector<16x64xf32> to vector<16x64xbf16>
    %175 = arith.truncf %169 : vector<16x64xf32> to vector<16x64xbf16>
    %cst_103 = arith.constant dense<0.000000e+00> : vector<16x16xf32>
    %176 = tpu.matmul %174, %175, %cst_103 {dimension_numbers = #tpu.dot_dimension_numbers<[1], [1], [0], [0], [0, 0, 1, 0], [], []>} : vector<16x64xbf16>, vector<16x64xbf16>, vector<16x16xf32> -> vector<16x16xf32>
    %177 = arith.addf %176, %128 : vector<16x16xf32>
    %cst_104 = arith.constant dense<0xFF800000> : vector<16xf32>
    %178 = vector.multi_reduction <maximumf>, %177, %cst_104 [1] : vector<16x16xf32> to vector<16xf32>
    %179 = vector.shape_cast %178 : vector<16xf32> to vector<16x1xf32>
    %180 = vector.broadcast %179 : vector<16x1xf32> to vector<16x16xf32>
    %181 = arith.subf %177, %180 : vector<16x16xf32>
    %182 = math.exp %181 : vector<16x16xf32>
    %cst_105 = arith.constant dense<0.000000e+00> : vector<16xf32>
    %183 = vector.multi_reduction <add>, %182, %cst_105 [1] : vector<16x16xf32> to vector<16xf32>
    %184 = vector.shape_cast %183 : vector<16xf32> to vector<16x1xf32>
    %185 = tpu.reciprocal %184 {approx = true} : vector<16x1xf32> -> vector<16x1xf32>
    %186 = vector.broadcast %185 : vector<16x1xf32> to vector<16x16xf32>
    %187 = arith.mulf %182, %186 : vector<16x16xf32>
    %188 = arith.truncf %187 : vector<16x16xf32> to vector<16x16xbf16>
    %189 = arith.truncf %173 : vector<16x64xf32> to vector<16x64xbf16>
    %cst_106 = arith.constant dense<0.000000e+00> : vector<16x64xf32>
    %190 = tpu.matmul %188, %189, %cst_106 {dimension_numbers = #tpu.dot_dimension_numbers<[1], [0], [0], [1], [0, 0, 1, 1], [], []>} : vector<16x16xbf16>, vector<16x64xbf16>, vector<16x64xf32> -> vector<16x64xf32>
    %c1_107 = arith.constant 1 : index
    %c0_108 = arith.constant 0 : index
    %c0_109 = arith.constant 0 : index
    %191 = vector.load %arg22[%c1_107, %c0_108, %c0_109] : memref<2x64x64xbf16, #tpu.memory_space<vmem>>, vector<1x64x64xbf16>
    %192 = vector.shape_cast %191 : vector<1x64x64xbf16> to vector<64x64xbf16>
    %193 = arith.truncf %190 : vector<16x64xf32> to vector<16x64xbf16>
    %cst_110 = arith.constant dense<0.000000e+00> : vector<16x64xf32>
    %194 = tpu.matmul %193, %192, %cst_110 {dimension_numbers = #tpu.dot_dimension_numbers<[1], [0], [0], [1], [0, 0, 1, 1], [], []>} : vector<16x64xbf16>, vector<64x64xbf16>, vector<16x64xf32> -> vector<16x64xf32>
    %195 = arith.addf %161, %194 : vector<16x64xf32>
    %c0_111 = arith.constant 0 : index
    %c0_112 = arith.constant 0 : index
    %196 = vector.load %arg23[%c0_111, %c0_112] : memref<1x64xf32, #tpu.memory_space<vmem>>, vector<1x64xf32>
    %197 = vector.broadcast %196 : vector<1x64xf32> to vector<16x64xf32>
    %198 = arith.addf %195, %197 : vector<16x64xf32>
    %c0_113 = arith.constant 0 : index
    %c0_114 = arith.constant 0 : index
    %199 = vector.load %arg34[%c0_113, %c0_114] : memref<64x64xbf16, #tpu.memory_space<vmem>>, vector<64x64xbf16>
    %200 = arith.truncf %198 : vector<16x64xf32> to vector<16x64xbf16>
    %cst_115 = arith.constant dense<0.000000e+00> : vector<16x64xf32>
    %201 = tpu.matmul %200, %199, %cst_115 {dimension_numbers = #tpu.dot_dimension_numbers<[1], [0], [0], [1], [0, 0, 1, 1], [], []>} : vector<16x64xbf16>, vector<64x64xbf16>, vector<16x64xf32> -> vector<16x64xf32>
    %c0_116 = arith.constant 0 : index
    %c0_117 = arith.constant 0 : index
    %202 = vector.load %arg35[%c0_116, %c0_117] : memref<64x64xbf16, #tpu.memory_space<vmem>>, vector<64x64xbf16>
    %203 = arith.truncf %124 : vector<16x64xf32> to vector<16x64xbf16>
    %cst_118 = arith.constant dense<0.000000e+00> : vector<16x64xf32>
    %204 = tpu.matmul %203, %202, %cst_118 {dimension_numbers = #tpu.dot_dimension_numbers<[1], [0], [0], [1], [0, 0, 1, 1], [], []>} : vector<16x64xbf16>, vector<64x64xbf16>, vector<16x64xf32> -> vector<16x64xf32>
    %205 = arith.addf %201, %204 : vector<16x64xf32>
    %206 = arith.addf %205, %1 : vector<16x64xf32>
    %207 = arith.mulf %206, %206 : vector<16x64xf32>
    %cst_119 = arith.constant dense<0.000000e+00> : vector<16xf32>
    %208 = vector.multi_reduction <add>, %207, %cst_119 [1] : vector<16x64xf32> to vector<16xf32>
    %209 = vector.shape_cast %208 : vector<16xf32> to vector<16x1xf32>
    %cst_120 = arith.constant 6.400000e+01 : f32
    %210 = vector.broadcast %cst_120 : f32 to vector<16x1xf32>
    %211 = arith.divf %209, %210 : vector<16x1xf32>
    %cst_121 = arith.constant 1.000000e-16 : f32
    %212 = vector.broadcast %cst_121 : f32 to vector<16x1xf32>
    %213 = arith.maximumf %211, %212 : vector<16x1xf32>
    %214 = math.rsqrt %213 : vector<16x1xf32>
    %215 = vector.broadcast %214 : vector<16x1xf32> to vector<16x64xf32>
    %216 = arith.mulf %206, %215 : vector<16x64xf32>
    %217 = vector.extract_strided_slice %4 {offsets = [2, 0], sizes = [1, 64], strides = [1, 1]} : vector<3x64xf32> to vector<1x64xf32>
    %218 = vector.broadcast %217 : vector<1x64xf32> to vector<16x64xf32>
    %219 = arith.mulf %216, %218 : vector<16x64xf32>
    %c0_122 = arith.constant 0 : index
    %c0_123 = arith.constant 0 : index
    %220 = vector.load %arg42[%c0_122, %c0_123] : memref<64x256xbf16, #tpu.memory_space<vmem>>, vector<64x256xbf16>
    %221 = arith.truncf %219 : vector<16x64xf32> to vector<16x64xbf16>
    %cst_124 = arith.constant dense<0.000000e+00> : vector<16x256xf32>
    %222 = tpu.matmul %221, %220, %cst_124 {dimension_numbers = #tpu.dot_dimension_numbers<[1], [0], [0], [1], [0, 0, 1, 1], [], []>} : vector<16x64xbf16>, vector<64x256xbf16>, vector<16x256xf32> -> vector<16x256xf32>
    %c0_125 = arith.constant 0 : index
    %c0_126 = arith.constant 0 : index
    %223 = vector.load %arg43[%c0_125, %c0_126] : memref<1x256xf32, #tpu.memory_space<vmem>>, vector<1x256xf32>
    %224 = vector.broadcast %223 : vector<1x256xf32> to vector<16x256xf32>
    %225 = arith.addf %222, %224 : vector<16x256xf32>
    %cst_127 = arith.constant 5.000000e-01 : f32
    %226 = vector.broadcast %cst_127 : f32 to vector<16x256xf32>
    %227 = arith.mulf %226, %225 : vector<16x256xf32>
    %cst_128 = arith.constant 4.471500e-02 : f32
    %228 = vector.broadcast %cst_128 : f32 to vector<16x256xf32>
    %229 = arith.mulf %228, %225 : vector<16x256xf32>
    %230 = arith.mulf %229, %225 : vector<16x256xf32>
    %231 = arith.mulf %230, %225 : vector<16x256xf32>
    %232 = arith.addf %225, %231 : vector<16x256xf32>
    %cst_129 = arith.constant 0.797884583 : f32
    %233 = vector.broadcast %cst_129 : f32 to vector<16x256xf32>
    %234 = arith.mulf %233, %232 : vector<16x256xf32>
    %235 = math.tanh %234 : vector<16x256xf32>
    %cst_130 = arith.constant 1.000000e+00 : f32
    %236 = vector.broadcast %cst_130 : f32 to vector<16x256xf32>
    %237 = arith.addf %236, %235 : vector<16x256xf32>
    %238 = arith.mulf %227, %237 : vector<16x256xf32>
    %c0_131 = arith.constant 0 : index
    %c0_132 = arith.constant 0 : index
    %239 = vector.load %arg44[%c0_131, %c0_132] : memref<256x64xbf16, #tpu.memory_space<vmem>>, vector<256x64xbf16>
    %240 = arith.truncf %238 : vector<16x256xf32> to vector<16x256xbf16>
    %cst_133 = arith.constant dense<0.000000e+00> : vector<16x64xf32>
    %241 = tpu.matmul %240, %239, %cst_133 {dimension_numbers = #tpu.dot_dimension_numbers<[1], [0], [0], [1], [0, 0, 1, 1], [], []>} : vector<16x256xbf16>, vector<256x64xbf16>, vector<16x64xf32> -> vector<16x64xf32>
    %c0_134 = arith.constant 0 : index
    %c0_135 = arith.constant 0 : index
    %242 = vector.load %arg45[%c0_134, %c0_135] : memref<1x64xf32, #tpu.memory_space<vmem>>, vector<1x64xf32>
    %243 = vector.broadcast %242 : vector<1x64xf32> to vector<16x64xf32>
    %244 = arith.addf %241, %243 : vector<16x64xf32>
    %245 = arith.addf %244, %206 : vector<16x64xf32>
    %c0_136 = arith.constant 0 : index
    %c0_137 = arith.constant 0 : index
    %246 = vector.load %arg50[%c0_136, %c0_137] : memref<16x64xf32, #tpu.memory_space<vmem>>, vector<16x64xf32>
    tpu.vector_store %arg50[%c0_136, %c0_137], %245 {strides = array<i32>} : memref<16x64xf32, #tpu.memory_space<vmem>>, vector<16x64xf32>,
    %247 = vector.extract_strided_slice %5 {offsets = [0, 0], sizes = [1, 64], strides = [1, 1]} : vector<3x64xf32> to vector<1x64xf32>
    %248 = vector.broadcast %247 : vector<1x64xf32> to vector<16x64xf32>
    %249 = arith.mulf %30, %248 : vector<16x64xf32>
    %c0_138 = arith.constant 0 : index
    %c0_139 = arith.constant 0 : index
    %250 = vector.load %arg12[%c0_138, %c0_139] : memref<16x16xf32, #tpu.memory_space<vmem>>, vector<16x16xf32>
    %c0_140 = arith.constant 0 : index
    %c0_141 = arith.constant 0 : index
    %c0_142 = arith.constant 0 : index
    %251 = vector.load %arg24[%c0_140, %c0_141, %c0_142] : memref<2x64x64xbf16, #tpu.memory_space<vmem>>, vector<1x64x64xbf16>
    %252 = vector.shape_cast %251 : vector<1x64x64xbf16> to vector<64x64xbf16>
    %253 = arith.truncf %249 : vector<16x64xf32> to vector<16x64xbf16>
    %cst_143 = arith.constant dense<0.000000e+00> : vector<16x64xf32>
    %254 = tpu.matmul %253, %252, %cst_143 {dimension_numbers = #tpu.dot_dimension_numbers<[1], [0], [0], [1], [0, 0, 1, 1], [], []>} : vector<16x64xbf16>, vector<64x64xbf16>, vector<16x64xf32> -> vector<16x64xf32>
    %c0_144 = arith.constant 0 : index
    %c0_145 = arith.constant 0 : index
    %c0_146 = arith.constant 0 : index
    %255 = vector.load %arg25[%c0_144, %c0_145, %c0_146] : memref<2x64x64xbf16, #tpu.memory_space<vmem>>, vector<1x64x64xbf16>
    %256 = vector.shape_cast %255 : vector<1x64x64xbf16> to vector<64x64xbf16>
    %257 = arith.truncf %249 : vector<16x64xf32> to vector<16x64xbf16>
    %cst_147 = arith.constant dense<0.000000e+00> : vector<16x64xf32>
    %258 = tpu.matmul %257, %256, %cst_147 {dimension_numbers = #tpu.dot_dimension_numbers<[1], [0], [0], [1], [0, 0, 1, 1], [], []>} : vector<16x64xbf16>, vector<64x64xbf16>, vector<16x64xf32> -> vector<16x64xf32>
    %c0_148 = arith.constant 0 : index
    %c0_149 = arith.constant 0 : index
    %c0_150 = arith.constant 0 : index
    %259 = vector.load %arg26[%c0_148, %c0_149, %c0_150] : memref<2x64x64xbf16, #tpu.memory_space<vmem>>, vector<1x64x64xbf16>
    %260 = vector.shape_cast %259 : vector<1x64x64xbf16> to vector<64x64xbf16>
    %261 = arith.truncf %249 : vector<16x64xf32> to vector<16x64xbf16>
    %cst_151 = arith.constant dense<0.000000e+00> : vector<16x64xf32>
    %262 = tpu.matmul %261, %260, %cst_151 {dimension_numbers = #tpu.dot_dimension_numbers<[1], [0], [0], [1], [0, 0, 1, 1], [], []>} : vector<16x64xbf16>, vector<64x64xbf16>, vector<16x64xf32> -> vector<16x64xf32>
    %263 = arith.mulf %254, %8 : vector<16x64xf32>
    %264 = arith.truncf %254 : vector<16x64xf32> to vector<16x64xbf16>
    %cst_152 = arith.constant dense<0.000000e+00> : vector<16x64xf32>
    %265 = tpu.matmul %264, %10, %cst_152 {dimension_numbers = #tpu.dot_dimension_numbers<[1], [0], [0], [1], [0, 0, 1, 1], [], []>} : vector<16x64xbf16>, vector<64x64xbf16>, vector<16x64xf32> -> vector<16x64xf32>
    %266 = arith.mulf %265, %9 : vector<16x64xf32>
    %267 = arith.addf %263, %266 : vector<16x64xf32>
    %268 = arith.mulf %258, %8 : vector<16x64xf32>
    %269 = arith.truncf %258 : vector<16x64xf32> to vector<16x64xbf16>
    %cst_153 = arith.constant dense<0.000000e+00> : vector<16x64xf32>
    %270 = tpu.matmul %269, %10, %cst_153 {dimension_numbers = #tpu.dot_dimension_numbers<[1], [0], [0], [1], [0, 0, 1, 1], [], []>} : vector<16x64xbf16>, vector<64x64xbf16>, vector<16x64xf32> -> vector<16x64xf32>
    %271 = arith.mulf %270, %9 : vector<16x64xf32>
    %272 = arith.addf %268, %271 : vector<16x64xf32>
    %273 = arith.truncf %267 : vector<16x64xf32> to vector<16x64xbf16>
    %274 = arith.truncf %272 : vector<16x64xf32> to vector<16x64xbf16>
    %cst_154 = arith.constant dense<0.000000e+00> : vector<16x16xf32>
    %275 = tpu.matmul %273, %274, %cst_154 {dimension_numbers = #tpu.dot_dimension_numbers<[1], [1], [0], [0], [0, 0, 1, 0], [], []>} : vector<16x64xbf16>, vector<16x64xbf16>, vector<16x16xf32> -> vector<16x16xf32>
    %276 = arith.addf %275, %250 : vector<16x16xf32>
    %cst_155 = arith.constant dense<0xFF800000> : vector<16xf32>
    %277 = vector.multi_reduction <maximumf>, %276, %cst_155 [1] : vector<16x16xf32> to vector<16xf32>
    %278 = vector.shape_cast %277 : vector<16xf32> to vector<16x1xf32>
    %279 = vector.broadcast %278 : vector<16x1xf32> to vector<16x16xf32>
    %280 = arith.subf %276, %279 : vector<16x16xf32>
    %281 = math.exp %280 : vector<16x16xf32>
    %cst_156 = arith.constant dense<0.000000e+00> : vector<16xf32>
    %282 = vector.multi_reduction <add>, %281, %cst_156 [1] : vector<16x16xf32> to vector<16xf32>
    %283 = vector.shape_cast %282 : vector<16xf32> to vector<16x1xf32>
    %284 = tpu.reciprocal %283 {approx = true} : vector<16x1xf32> -> vector<16x1xf32>
    %285 = vector.broadcast %284 : vector<16x1xf32> to vector<16x16xf32>
    %286 = arith.mulf %281, %285 : vector<16x16xf32>
    %287 = arith.truncf %286 : vector<16x16xf32> to vector<16x16xbf16>
    %288 = arith.truncf %262 : vector<16x64xf32> to vector<16x64xbf16>
    %cst_157 = arith.constant dense<0.000000e+00> : vector<16x64xf32>
    %289 = tpu.matmul %287, %288, %cst_157 {dimension_numbers = #tpu.dot_dimension_numbers<[1], [0], [0], [1], [0, 0, 1, 1], [], []>} : vector<16x16xbf16>, vector<16x64xbf16>, vector<16x64xf32> -> vector<16x64xf32>
    %c0_158 = arith.constant 0 : index
    %c0_159 = arith.constant 0 : index
    %c0_160 = arith.constant 0 : index
    %290 = vector.load %arg27[%c0_158, %c0_159, %c0_160] : memref<2x64x64xbf16, #tpu.memory_space<vmem>>, vector<1x64x64xbf16>
    %291 = vector.shape_cast %290 : vector<1x64x64xbf16> to vector<64x64xbf16>
    %292 = arith.truncf %289 : vector<16x64xf32> to vector<16x64xbf16>
    %cst_161 = arith.constant dense<0.000000e+00> : vector<16x64xf32>
    %293 = tpu.matmul %292, %291, %cst_161 {dimension_numbers = #tpu.dot_dimension_numbers<[1], [0], [0], [1], [0, 0, 1, 1], [], []>} : vector<16x64xbf16>, vector<64x64xbf16>, vector<16x64xf32> -> vector<16x64xf32>
    %c1_162 = arith.constant 1 : index
    %c0_163 = arith.constant 0 : index
    %c0_164 = arith.constant 0 : index
    %294 = vector.load %arg24[%c1_162, %c0_163, %c0_164] : memref<2x64x64xbf16, #tpu.memory_space<vmem>>, vector<1x64x64xbf16>
    %295 = vector.shape_cast %294 : vector<1x64x64xbf16> to vector<64x64xbf16>
    %296 = arith.truncf %249 : vector<16x64xf32> to vector<16x64xbf16>
    %cst_165 = arith.constant dense<0.000000e+00> : vector<16x64xf32>
    %297 = tpu.matmul %296, %295, %cst_165 {dimension_numbers = #tpu.dot_dimension_numbers<[1], [0], [0], [1], [0, 0, 1, 1], [], []>} : vector<16x64xbf16>, vector<64x64xbf16>, vector<16x64xf32> -> vector<16x64xf32>
    %c1_166 = arith.constant 1 : index
    %c0_167 = arith.constant 0 : index
    %c0_168 = arith.constant 0 : index
    %298 = vector.load %arg25[%c1_166, %c0_167, %c0_168] : memref<2x64x64xbf16, #tpu.memory_space<vmem>>, vector<1x64x64xbf16>
    %299 = vector.shape_cast %298 : vector<1x64x64xbf16> to vector<64x64xbf16>
    %300 = arith.truncf %249 : vector<16x64xf32> to vector<16x64xbf16>
    %cst_169 = arith.constant dense<0.000000e+00> : vector<16x64xf32>
    %301 = tpu.matmul %300, %299, %cst_169 {dimension_numbers = #tpu.dot_dimension_numbers<[1], [0], [0], [1], [0, 0, 1, 1], [], []>} : vector<16x64xbf16>, vector<64x64xbf16>, vector<16x64xf32> -> vector<16x64xf32>
    %c1_170 = arith.constant 1 : index
    %c0_171 = arith.constant 0 : index
    %c0_172 = arith.constant 0 : index
    %302 = vector.load %arg26[%c1_170, %c0_171, %c0_172] : memref<2x64x64xbf16, #tpu.memory_space<vmem>>, vector<1x64x64xbf16>
    %303 = vector.shape_cast %302 : vector<1x64x64xbf16> to vector<64x64xbf16>
    %304 = arith.truncf %249 : vector<16x64xf32> to vector<16x64xbf16>
    %cst_173 = arith.constant dense<0.000000e+00> : vector<16x64xf32>
    %305 = tpu.matmul %304, %303, %cst_173 {dimension_numbers = #tpu.dot_dimension_numbers<[1], [0], [0], [1], [0, 0, 1, 1], [], []>} : vector<16x64xbf16>, vector<64x64xbf16>, vector<16x64xf32> -> vector<16x64xf32>
    %306 = arith.mulf %297, %8 : vector<16x64xf32>
    %307 = arith.truncf %297 : vector<16x64xf32> to vector<16x64xbf16>
    %cst_174 = arith.constant dense<0.000000e+00> : vector<16x64xf32>
    %308 = tpu.matmul %307, %10, %cst_174 {dimension_numbers = #tpu.dot_dimension_numbers<[1], [0], [0], [1], [0, 0, 1, 1], [], []>} : vector<16x64xbf16>, vector<64x64xbf16>, vector<16x64xf32> -> vector<16x64xf32>
    %309 = arith.mulf %308, %9 : vector<16x64xf32>
    %310 = arith.addf %306, %309 : vector<16x64xf32>
    %311 = arith.mulf %301, %8 : vector<16x64xf32>
    %312 = arith.truncf %301 : vector<16x64xf32> to vector<16x64xbf16>
    %cst_175 = arith.constant dense<0.000000e+00> : vector<16x64xf32>
    %313 = tpu.matmul %312, %10, %cst_175 {dimension_numbers = #tpu.dot_dimension_numbers<[1], [0], [0], [1], [0, 0, 1, 1], [], []>} : vector<16x64xbf16>, vector<64x64xbf16>, vector<16x64xf32> -> vector<16x64xf32>
    %314 = arith.mulf %313, %9 : vector<16x64xf32>
    %315 = arith.addf %311, %314 : vector<16x64xf32>
    %316 = arith.truncf %310 : vector<16x64xf32> to vector<16x64xbf16>
    %317 = arith.truncf %315 : vector<16x64xf32> to vector<16x64xbf16>
    %cst_176 = arith.constant dense<0.000000e+00> : vector<16x16xf32>
    %318 = tpu.matmul %316, %317, %cst_176 {dimension_numbers = #tpu.dot_dimension_numbers<[1], [1], [0], [0], [0, 0, 1, 0], [], []>} : vector<16x64xbf16>, vector<16x64xbf16>, vector<16x16xf32> -> vector<16x16xf32>
    %319 = arith.addf %318, %250 : vector<16x16xf32>
    %cst_177 = arith.constant dense<0xFF800000> : vector<16xf32>
    %320 = vector.multi_reduction <maximumf>, %319, %cst_177 [1] : vector<16x16xf32> to vector<16xf32>
    %321 = vector.shape_cast %320 : vector<16xf32> to vector<16x1xf32>
    %322 = vector.broadcast %321 : vector<16x1xf32> to vector<16x16xf32>
    %323 = arith.subf %319, %322 : vector<16x16xf32>
    %324 = math.exp %323 : vector<16x16xf32>
    %cst_178 = arith.constant dense<0.000000e+00> : vector<16xf32>
    %325 = vector.multi_reduction <add>, %324, %cst_178 [1] : vector<16x16xf32> to vector<16xf32>
    %326 = vector.shape_cast %325 : vector<16xf32> to vector<16x1xf32>
    %327 = tpu.reciprocal %326 {approx = true} : vector<16x1xf32> -> vector<16x1xf32>
    %328 = vector.broadcast %327 : vector<16x1xf32> to vector<16x16xf32>
    %329 = arith.mulf %324, %328 : vector<16x16xf32>
    %330 = arith.truncf %329 : vector<16x16xf32> to vector<16x16xbf16>
    %331 = arith.truncf %305 : vector<16x64xf32> to vector<16x64xbf16>
    %cst_179 = arith.constant dense<0.000000e+00> : vector<16x64xf32>
    %332 = tpu.matmul %330, %331, %cst_179 {dimension_numbers = #tpu.dot_dimension_numbers<[1], [0], [0], [1], [0, 0, 1, 1], [], []>} : vector<16x16xbf16>, vector<16x64xbf16>, vector<16x64xf32> -> vector<16x64xf32>
    %c1_180 = arith.constant 1 : index
    %c0_181 = arith.constant 0 : index
    %c0_182 = arith.constant 0 : index
    %333 = vector.load %arg27[%c1_180, %c0_181, %c0_182] : memref<2x64x64xbf16, #tpu.memory_space<vmem>>, vector<1x64x64xbf16>
    %334 = vector.shape_cast %333 : vector<1x64x64xbf16> to vector<64x64xbf16>
    %335 = arith.truncf %332 : vector<16x64xf32> to vector<16x64xbf16>
    %cst_183 = arith.constant dense<0.000000e+00> : vector<16x64xf32>
    %336 = tpu.matmul %335, %334, %cst_183 {dimension_numbers = #tpu.dot_dimension_numbers<[1], [0], [0], [1], [0, 0, 1, 1], [], []>} : vector<16x64xbf16>, vector<64x64xbf16>, vector<16x64xf32> -> vector<16x64xf32>
    %337 = arith.addf %293, %336 : vector<16x64xf32>
    %c0_184 = arith.constant 0 : index
    %c0_185 = arith.constant 0 : index
    %338 = vector.load %arg28[%c0_184, %c0_185] : memref<1x64xf32, #tpu.memory_space<vmem>>, vector<1x64xf32>
    %339 = vector.broadcast %338 : vector<1x64xf32> to vector<16x64xf32>
    %340 = arith.addf %337, %339 : vector<16x64xf32>
    %341 = vector.extract_strided_slice %5 {offsets = [1, 0], sizes = [1, 64], strides = [1, 1]} : vector<3x64xf32> to vector<1x64xf32>
    %342 = vector.broadcast %341 : vector<1x64xf32> to vector<16x64xf32>
    %343 = arith.mulf %30, %342 : vector<16x64xf32>
    %c0_186 = arith.constant 0 : index
    %c0_187 = arith.constant 0 : index
    %344 = vector.load %arg13[%c0_186, %c0_187] : memref<16x16xf32, #tpu.memory_space<vmem>>, vector<16x16xf32>
    %c0_188 = arith.constant 0 : index
    %c0_189 = arith.constant 0 : index
    %c0_190 = arith.constant 0 : index
    %345 = vector.load %arg29[%c0_188, %c0_189, %c0_190] : memref<2x64x64xbf16, #tpu.memory_space<vmem>>, vector<1x64x64xbf16>
    %346 = vector.shape_cast %345 : vector<1x64x64xbf16> to vector<64x64xbf16>
    %347 = arith.truncf %343 : vector<16x64xf32> to vector<16x64xbf16>
    %cst_191 = arith.constant dense<0.000000e+00> : vector<16x64xf32>
    %348 = tpu.matmul %347, %346, %cst_191 {dimension_numbers = #tpu.dot_dimension_numbers<[1], [0], [0], [1], [0, 0, 1, 1], [], []>} : vector<16x64xbf16>, vector<64x64xbf16>, vector<16x64xf32> -> vector<16x64xf32>
    %c0_192 = arith.constant 0 : index
    %c0_193 = arith.constant 0 : index
    %c0_194 = arith.constant 0 : index
    %349 = vector.load %arg30[%c0_192, %c0_193, %c0_194] : memref<2x64x64xbf16, #tpu.memory_space<vmem>>, vector<1x64x64xbf16>
    %350 = vector.shape_cast %349 : vector<1x64x64xbf16> to vector<64x64xbf16>
    %351 = arith.truncf %1 : vector<16x64xf32> to vector<16x64xbf16>
    %cst_195 = arith.constant dense<0.000000e+00> : vector<16x64xf32>
    %352 = tpu.matmul %351, %350, %cst_195 {dimension_numbers = #tpu.dot_dimension_numbers<[1], [0], [0], [1], [0, 0, 1, 1], [], []>} : vector<16x64xbf16>, vector<64x64xbf16>, vector<16x64xf32> -> vector<16x64xf32>
    %c0_196 = arith.constant 0 : index
    %c0_197 = arith.constant 0 : index
    %c0_198 = arith.constant 0 : index
    %353 = vector.load %arg31[%c0_196, %c0_197, %c0_198] : memref<2x64x64xbf16, #tpu.memory_space<vmem>>, vector<1x64x64xbf16>
    %354 = vector.shape_cast %353 : vector<1x64x64xbf16> to vector<64x64xbf16>
    %355 = arith.truncf %1 : vector<16x64xf32> to vector<16x64xbf16>
    %cst_199 = arith.constant dense<0.000000e+00> : vector<16x64xf32>
    %356 = tpu.matmul %355, %354, %cst_199 {dimension_numbers = #tpu.dot_dimension_numbers<[1], [0], [0], [1], [0, 0, 1, 1], [], []>} : vector<16x64xbf16>, vector<64x64xbf16>, vector<16x64xf32> -> vector<16x64xf32>
    %357 = arith.truncf %348 : vector<16x64xf32> to vector<16x64xbf16>
    %358 = arith.truncf %352 : vector<16x64xf32> to vector<16x64xbf16>
    %cst_200 = arith.constant dense<0.000000e+00> : vector<16x16xf32>
    %359 = tpu.matmul %357, %358, %cst_200 {dimension_numbers = #tpu.dot_dimension_numbers<[1], [1], [0], [0], [0, 0, 1, 0], [], []>} : vector<16x64xbf16>, vector<16x64xbf16>, vector<16x16xf32> -> vector<16x16xf32>
    %360 = arith.addf %359, %344 : vector<16x16xf32>
    %cst_201 = arith.constant dense<0xFF800000> : vector<16xf32>
    %361 = vector.multi_reduction <maximumf>, %360, %cst_201 [1] : vector<16x16xf32> to vector<16xf32>
    %362 = vector.shape_cast %361 : vector<16xf32> to vector<16x1xf32>
    %363 = vector.broadcast %362 : vector<16x1xf32> to vector<16x16xf32>
    %364 = arith.subf %360, %363 : vector<16x16xf32>
    %365 = math.exp %364 : vector<16x16xf32>
    %cst_202 = arith.constant dense<0.000000e+00> : vector<16xf32>
    %366 = vector.multi_reduction <add>, %365, %cst_202 [1] : vector<16x16xf32> to vector<16xf32>
    %367 = vector.shape_cast %366 : vector<16xf32> to vector<16x1xf32>
    %368 = tpu.reciprocal %367 {approx = true} : vector<16x1xf32> -> vector<16x1xf32>
    %369 = vector.broadcast %368 : vector<16x1xf32> to vector<16x16xf32>
    %370 = arith.mulf %365, %369 : vector<16x16xf32>
    %371 = arith.truncf %370 : vector<16x16xf32> to vector<16x16xbf16>
    %372 = arith.truncf %356 : vector<16x64xf32> to vector<16x64xbf16>
    %cst_203 = arith.constant dense<0.000000e+00> : vector<16x64xf32>
    %373 = tpu.matmul %371, %372, %cst_203 {dimension_numbers = #tpu.dot_dimension_numbers<[1], [0], [0], [1], [0, 0, 1, 1], [], []>} : vector<16x16xbf16>, vector<16x64xbf16>, vector<16x64xf32> -> vector<16x64xf32>
    %c0_204 = arith.constant 0 : index
    %c0_205 = arith.constant 0 : index
    %c0_206 = arith.constant 0 : index
    %374 = vector.load %arg32[%c0_204, %c0_205, %c0_206] : memref<2x64x64xbf16, #tpu.memory_space<vmem>>, vector<1x64x64xbf16>
    %375 = vector.shape_cast %374 : vector<1x64x64xbf16> to vector<64x64xbf16>
    %376 = arith.truncf %373 : vector<16x64xf32> to vector<16x64xbf16>
    %cst_207 = arith.constant dense<0.000000e+00> : vector<16x64xf32>
    %377 = tpu.matmul %376, %375, %cst_207 {dimension_numbers = #tpu.dot_dimension_numbers<[1], [0], [0], [1], [0, 0, 1, 1], [], []>} : vector<16x64xbf16>, vector<64x64xbf16>, vector<16x64xf32> -> vector<16x64xf32>
    %c1_208 = arith.constant 1 : index
    %c0_209 = arith.constant 0 : index
    %c0_210 = arith.constant 0 : index
    %378 = vector.load %arg29[%c1_208, %c0_209, %c0_210] : memref<2x64x64xbf16, #tpu.memory_space<vmem>>, vector<1x64x64xbf16>
    %379 = vector.shape_cast %378 : vector<1x64x64xbf16> to vector<64x64xbf16>
    %380 = arith.truncf %343 : vector<16x64xf32> to vector<16x64xbf16>
    %cst_211 = arith.constant dense<0.000000e+00> : vector<16x64xf32>
    %381 = tpu.matmul %380, %379, %cst_211 {dimension_numbers = #tpu.dot_dimension_numbers<[1], [0], [0], [1], [0, 0, 1, 1], [], []>} : vector<16x64xbf16>, vector<64x64xbf16>, vector<16x64xf32> -> vector<16x64xf32>
    %c1_212 = arith.constant 1 : index
    %c0_213 = arith.constant 0 : index
    %c0_214 = arith.constant 0 : index
    %382 = vector.load %arg30[%c1_212, %c0_213, %c0_214] : memref<2x64x64xbf16, #tpu.memory_space<vmem>>, vector<1x64x64xbf16>
    %383 = vector.shape_cast %382 : vector<1x64x64xbf16> to vector<64x64xbf16>
    %384 = arith.truncf %1 : vector<16x64xf32> to vector<16x64xbf16>
    %cst_215 = arith.constant dense<0.000000e+00> : vector<16x64xf32>
    %385 = tpu.matmul %384, %383, %cst_215 {dimension_numbers = #tpu.dot_dimension_numbers<[1], [0], [0], [1], [0, 0, 1, 1], [], []>} : vector<16x64xbf16>, vector<64x64xbf16>, vector<16x64xf32> -> vector<16x64xf32>
    %c1_216 = arith.constant 1 : index
    %c0_217 = arith.constant 0 : index
    %c0_218 = arith.constant 0 : index
    %386 = vector.load %arg31[%c1_216, %c0_217, %c0_218] : memref<2x64x64xbf16, #tpu.memory_space<vmem>>, vector<1x64x64xbf16>
    %387 = vector.shape_cast %386 : vector<1x64x64xbf16> to vector<64x64xbf16>
    %388 = arith.truncf %1 : vector<16x64xf32> to vector<16x64xbf16>
    %cst_219 = arith.constant dense<0.000000e+00> : vector<16x64xf32>
    %389 = tpu.matmul %388, %387, %cst_219 {dimension_numbers = #tpu.dot_dimension_numbers<[1], [0], [0], [1], [0, 0, 1, 1], [], []>} : vector<16x64xbf16>, vector<64x64xbf16>, vector<16x64xf32> -> vector<16x64xf32>
    %390 = arith.truncf %381 : vector<16x64xf32> to vector<16x64xbf16>
    %391 = arith.truncf %385 : vector<16x64xf32> to vector<16x64xbf16>
    %cst_220 = arith.constant dense<0.000000e+00> : vector<16x16xf32>
    %392 = tpu.matmul %390, %391, %cst_220 {dimension_numbers = #tpu.dot_dimension_numbers<[1], [1], [0], [0], [0, 0, 1, 0], [], []>} : vector<16x64xbf16>, vector<16x64xbf16>, vector<16x16xf32> -> vector<16x16xf32>
    %393 = arith.addf %392, %344 : vector<16x16xf32>
    %cst_221 = arith.constant dense<0xFF800000> : vector<16xf32>
    %394 = vector.multi_reduction <maximumf>, %393, %cst_221 [1] : vector<16x16xf32> to vector<16xf32>
    %395 = vector.shape_cast %394 : vector<16xf32> to vector<16x1xf32>
    %396 = vector.broadcast %395 : vector<16x1xf32> to vector<16x16xf32>
    %397 = arith.subf %393, %396 : vector<16x16xf32>
    %398 = math.exp %397 : vector<16x16xf32>
    %cst_222 = arith.constant dense<0.000000e+00> : vector<16xf32>
    %399 = vector.multi_reduction <add>, %398, %cst_222 [1] : vector<16x16xf32> to vector<16xf32>
    %400 = vector.shape_cast %399 : vector<16xf32> to vector<16x1xf32>
    %401 = tpu.reciprocal %400 {approx = true} : vector<16x1xf32> -> vector<16x1xf32>
    %402 = vector.broadcast %401 : vector<16x1xf32> to vector<16x16xf32>
    %403 = arith.mulf %398, %402 : vector<16x16xf32>
    %404 = arith.truncf %403 : vector<16x16xf32> to vector<16x16xbf16>
    %405 = arith.truncf %389 : vector<16x64xf32> to vector<16x64xbf16>
    %cst_223 = arith.constant dense<0.000000e+00> : vector<16x64xf32>
    %406 = tpu.matmul %404, %405, %cst_223 {dimension_numbers = #tpu.dot_dimension_numbers<[1], [0], [0], [1], [0, 0, 1, 1], [], []>} : vector<16x16xbf16>, vector<16x64xbf16>, vector<16x64xf32> -> vector<16x64xf32>
    %c1_224 = arith.constant 1 : index
    %c0_225 = arith.constant 0 : index
    %c0_226 = arith.constant 0 : index
    %407 = vector.load %arg32[%c1_224, %c0_225, %c0_226] : memref<2x64x64xbf16, #tpu.memory_space<vmem>>, vector<1x64x64xbf16>
    %408 = vector.shape_cast %407 : vector<1x64x64xbf16> to vector<64x64xbf16>
    %409 = arith.truncf %406 : vector<16x64xf32> to vector<16x64xbf16>
    %cst_227 = arith.constant dense<0.000000e+00> : vector<16x64xf32>
    %410 = tpu.matmul %409, %408, %cst_227 {dimension_numbers = #tpu.dot_dimension_numbers<[1], [0], [0], [1], [0, 0, 1, 1], [], []>} : vector<16x64xbf16>, vector<64x64xbf16>, vector<16x64xf32> -> vector<16x64xf32>
    %411 = arith.addf %377, %410 : vector<16x64xf32>
    %c0_228 = arith.constant 0 : index
    %c0_229 = arith.constant 0 : index
    %412 = vector.load %arg33[%c0_228, %c0_229] : memref<1x64xf32, #tpu.memory_space<vmem>>, vector<1x64xf32>
    %413 = vector.broadcast %412 : vector<1x64xf32> to vector<16x64xf32>
    %414 = arith.addf %411, %413 : vector<16x64xf32>
    %c0_230 = arith.constant 0 : index
    %c0_231 = arith.constant 0 : index
    %415 = vector.load %arg36[%c0_230, %c0_231] : memref<64x64xbf16, #tpu.memory_space<vmem>>, vector<64x64xbf16>
    %416 = arith.truncf %414 : vector<16x64xf32> to vector<16x64xbf16>
    %cst_232 = arith.constant dense<0.000000e+00> : vector<16x64xf32>
    %417 = tpu.matmul %416, %415, %cst_232 {dimension_numbers = #tpu.dot_dimension_numbers<[1], [0], [0], [1], [0, 0, 1, 1], [], []>} : vector<16x64xbf16>, vector<64x64xbf16>, vector<16x64xf32> -> vector<16x64xf32>
    %c0_233 = arith.constant 0 : index
    %c0_234 = arith.constant 0 : index
    %418 = vector.load %arg37[%c0_233, %c0_234] : memref<64x64xbf16, #tpu.memory_space<vmem>>, vector<64x64xbf16>
    %419 = arith.truncf %340 : vector<16x64xf32> to vector<16x64xbf16>
    %cst_235 = arith.constant dense<0.000000e+00> : vector<16x64xf32>
    %420 = tpu.matmul %419, %418, %cst_235 {dimension_numbers = #tpu.dot_dimension_numbers<[1], [0], [0], [1], [0, 0, 1, 1], [], []>} : vector<16x64xbf16>, vector<64x64xbf16>, vector<16x64xf32> -> vector<16x64xf32>
    %421 = arith.addf %417, %420 : vector<16x64xf32>
    %c0_236 = arith.constant 0 : index
    %c0_237 = arith.constant 0 : index
    %422 = vector.load %arg38[%c0_236, %c0_237] : memref<64x192xbf16, #tpu.memory_space<vmem>>, vector<64x192xbf16>
    %423 = arith.truncf %421 : vector<16x64xf32> to vector<16x64xbf16>
    %cst_238 = arith.constant dense<0.000000e+00> : vector<16x192xf32>
    %424 = tpu.matmul %423, %422, %cst_238 {dimension_numbers = #tpu.dot_dimension_numbers<[1], [0], [0], [1], [0, 0, 1, 1], [], []>} : vector<16x64xbf16>, vector<64x192xbf16>, vector<16x192xf32> -> vector<16x192xf32>
    %c0_239 = arith.constant 0 : index
    %c0_240 = arith.constant 0 : index
    %425 = vector.load %arg39[%c0_239, %c0_240] : memref<1x192xf32, #tpu.memory_space<vmem>>, vector<1x192xf32>
    %426 = vector.broadcast %425 : vector<1x192xf32> to vector<16x192xf32>
    %427 = arith.addf %424, %426 : vector<16x192xf32>
    %428 = vector.extract_strided_slice %427 {offsets = [0, 0], sizes = [16, 64], strides = [1, 1]} : vector<16x192xf32> to vector<16x64xf32>
    %429 = math.tanh %428 : vector<16x64xf32>
    %430 = vector.extract_strided_slice %427 {offsets = [0, 64], sizes = [16, 64], strides = [1, 1]} : vector<16x192xf32> to vector<16x64xf32>
    %cst_241 = arith.constant 1.000000e+00 : f32
    %431 = vector.broadcast %cst_241 : f32 to vector<16x64xf32>
    %432 = arith.subf %430, %431 : vector<16x64xf32>
    %433 = arith.negf %432 : vector<16x64xf32>
    %434 = math.exp %433 : vector<16x64xf32>
    %cst_242 = arith.constant 1.000000e+00 : f32
    %435 = vector.broadcast %cst_242 : f32 to vector<16x64xf32>
    %436 = arith.addf %435, %434 : vector<16x64xf32>
    %437 = arith.divf %435, %436 : vector<16x64xf32>
    %438 = vector.extract_strided_slice %427 {offsets = [0, 128], sizes = [16, 64], strides = [1, 1]} : vector<16x192xf32> to vector<16x64xf32>
    %cst_243 = arith.constant 1.000000e+00 : f32
    %439 = vector.broadcast %cst_243 : f32 to vector<16x64xf32>
    %440 = arith.addf %438, %439 : vector<16x64xf32>
    %441 = arith.negf %440 : vector<16x64xf32>
    %442 = math.exp %441 : vector<16x64xf32>
    %cst_244 = arith.constant 1.000000e+00 : f32
    %443 = vector.broadcast %cst_244 : f32 to vector<16x64xf32>
    %444 = arith.addf %443, %442 : vector<16x64xf32>
    %445 = arith.divf %443, %444 : vector<16x64xf32>
    %446 = arith.mulf %3, %445 : vector<16x64xf32>
    %447 = arith.mulf %429, %437 : vector<16x64xf32>
    %448 = arith.addf %446, %447 : vector<16x64xf32>
    %449 = arith.mulf %448, %448 : vector<16x64xf32>
    %cst_245 = arith.constant dense<0.000000e+00> : vector<16xf32>
    %450 = vector.multi_reduction <add>, %449, %cst_245 [1] : vector<16x64xf32> to vector<16xf32>
    %451 = vector.shape_cast %450 : vector<16xf32> to vector<16x1xf32>
    %cst_246 = arith.constant 6.400000e+01 : f32
    %452 = vector.broadcast %cst_246 : f32 to vector<16x1xf32>
    %453 = arith.divf %451, %452 : vector<16x1xf32>
    %cst_247 = arith.constant 1.000000e-16 : f32
    %454 = vector.broadcast %cst_247 : f32 to vector<16x1xf32>
    %455 = arith.maximumf %453, %454 : vector<16x1xf32>
    %456 = math.rsqrt %455 : vector<16x1xf32>
    %457 = vector.broadcast %456 : vector<16x1xf32> to vector<16x64xf32>
    %458 = arith.mulf %448, %457 : vector<16x64xf32>
    %459 = vector.extract_strided_slice %5 {offsets = [2, 0], sizes = [1, 64], strides = [1, 1]} : vector<3x64xf32> to vector<1x64xf32>
    %460 = vector.broadcast %459 : vector<1x64xf32> to vector<16x64xf32>
    %461 = arith.mulf %458, %460 : vector<16x64xf32>
    %c0_248 = arith.constant 0 : index
    %c0_249 = arith.constant 0 : index
    %462 = vector.load %arg46[%c0_248, %c0_249] : memref<64x256xbf16, #tpu.memory_space<vmem>>, vector<64x256xbf16>
    %463 = arith.truncf %461 : vector<16x64xf32> to vector<16x64xbf16>
    %cst_250 = arith.constant dense<0.000000e+00> : vector<16x256xf32>
    %464 = tpu.matmul %463, %462, %cst_250 {dimension_numbers = #tpu.dot_dimension_numbers<[1], [0], [0], [1], [0, 0, 1, 1], [], []>} : vector<16x64xbf16>, vector<64x256xbf16>, vector<16x256xf32> -> vector<16x256xf32>
    %c0_251 = arith.constant 0 : index
    %c0_252 = arith.constant 0 : index
    %465 = vector.load %arg47[%c0_251, %c0_252] : memref<1x256xf32, #tpu.memory_space<vmem>>, vector<1x256xf32>
    %466 = vector.broadcast %465 : vector<1x256xf32> to vector<16x256xf32>
    %467 = arith.addf %464, %466 : vector<16x256xf32>
    %cst_253 = arith.constant 5.000000e-01 : f32
    %468 = vector.broadcast %cst_253 : f32 to vector<16x256xf32>
    %469 = arith.mulf %468, %467 : vector<16x256xf32>
    %cst_254 = arith.constant 4.471500e-02 : f32
    %470 = vector.broadcast %cst_254 : f32 to vector<16x256xf32>
    %471 = arith.mulf %470, %467 : vector<16x256xf32>
    %472 = arith.mulf %471, %467 : vector<16x256xf32>
    %473 = arith.mulf %472, %467 : vector<16x256xf32>
    %474 = arith.addf %467, %473 : vector<16x256xf32>
    %cst_255 = arith.constant 0.797884583 : f32
    %475 = vector.broadcast %cst_255 : f32 to vector<16x256xf32>
    %476 = arith.mulf %475, %474 : vector<16x256xf32>
    %477 = math.tanh %476 : vector<16x256xf32>
    %cst_256 = arith.constant 1.000000e+00 : f32
    %478 = vector.broadcast %cst_256 : f32 to vector<16x256xf32>
    %479 = arith.addf %478, %477 : vector<16x256xf32>
    %480 = arith.mulf %469, %479 : vector<16x256xf32>
    %c0_257 = arith.constant 0 : index
    %c0_258 = arith.constant 0 : index
    %481 = vector.load %arg48[%c0_257, %c0_258] : memref<256x64xbf16, #tpu.memory_space<vmem>>, vector<256x64xbf16>
    %482 = arith.truncf %480 : vector<16x256xf32> to vector<16x256xbf16>
    %cst_259 = arith.constant dense<0.000000e+00> : vector<16x64xf32>
    %483 = tpu.matmul %482, %481, %cst_259 {dimension_numbers = #tpu.dot_dimension_numbers<[1], [0], [0], [1], [0, 0, 1, 1], [], []>} : vector<16x256xbf16>, vector<256x64xbf16>, vector<16x64xf32> -> vector<16x64xf32>
    %c0_260 = arith.constant 0 : index
    %c0_261 = arith.constant 0 : index
    %484 = vector.load %arg49[%c0_260, %c0_261] : memref<1x64xf32, #tpu.memory_space<vmem>>, vector<1x64xf32>
    %485 = vector.broadcast %484 : vector<1x64xf32> to vector<16x64xf32>
    %486 = arith.addf %483, %485 : vector<16x64xf32>
    %c0_262 = arith.constant 0 : index
    %c0_263 = arith.constant 0 : index
    %487 = vector.load %arg40[%c0_262, %c0_263] : memref<64x192xbf16, #tpu.memory_space<vmem>>, vector<64x192xbf16>
    %488 = arith.truncf %486 : vector<16x64xf32> to vector<16x64xbf16>
    %cst_264 = arith.constant dense<0.000000e+00> : vector<16x192xf32>
    %489 = tpu.matmul %488, %487, %cst_264 {dimension_numbers = #tpu.dot_dimension_numbers<[1], [0], [0], [1], [0, 0, 1, 1], [], []>} : vector<16x64xbf16>, vector<64x192xbf16>, vector<16x192xf32> -> vector<16x192xf32>
    %c0_265 = arith.constant 0 : index
    %c0_266 = arith.constant 0 : index
    %490 = vector.load %arg41[%c0_265, %c0_266] : memref<1x192xf32, #tpu.memory_space<vmem>>, vector<1x192xf32>
    %491 = vector.broadcast %490 : vector<1x192xf32> to vector<16x192xf32>
    %492 = arith.addf %489, %491 : vector<16x192xf32>
    %493 = vector.extract_strided_slice %492 {offsets = [0, 0], sizes = [16, 64], strides = [1, 1]} : vector<16x192xf32> to vector<16x64xf32>
    %494 = math.tanh %493 : vector<16x64xf32>
    %495 = vector.extract_strided_slice %492 {offsets = [0, 64], sizes = [16, 64], strides = [1, 1]} : vector<16x192xf32> to vector<16x64xf32>
    %cst_267 = arith.constant 1.000000e+00 : f32
    %496 = vector.broadcast %cst_267 : f32 to vector<16x64xf32>
    %497 = arith.subf %495, %496 : vector<16x64xf32>
    %498 = arith.negf %497 : vector<16x64xf32>
    %499 = math.exp %498 : vector<16x64xf32>
    %cst_268 = arith.constant 1.000000e+00 : f32
    %500 = vector.broadcast %cst_268 : f32 to vector<16x64xf32>
    %501 = arith.addf %500, %499 : vector<16x64xf32>
    %502 = arith.divf %500, %501 : vector<16x64xf32>
    %503 = vector.extract_strided_slice %492 {offsets = [0, 128], sizes = [16, 64], strides = [1, 1]} : vector<16x192xf32> to vector<16x64xf32>
    %cst_269 = arith.constant 1.000000e+00 : f32
    %504 = vector.broadcast %cst_269 : f32 to vector<16x64xf32>
    %505 = arith.addf %503, %504 : vector<16x64xf32>
    %506 = arith.negf %505 : vector<16x64xf32>
    %507 = math.exp %506 : vector<16x64xf32>
    %cst_270 = arith.constant 1.000000e+00 : f32
    %508 = vector.broadcast %cst_270 : f32 to vector<16x64xf32>
    %509 = arith.addf %508, %507 : vector<16x64xf32>
    %510 = arith.divf %508, %509 : vector<16x64xf32>
    %511 = arith.mulf %448, %510 : vector<16x64xf32>
    %512 = arith.mulf %494, %502 : vector<16x64xf32>
    %513 = arith.addf %511, %512 : vector<16x64xf32>
    %c0_271 = arith.constant 0 : index
    %c0_272 = arith.constant 0 : index
    %514 = vector.load %arg51[%c0_271, %c0_272] : memref<16x64xf32, #tpu.memory_space<vmem>>, vector<16x64xf32>
    tpu.vector_store %arg51[%c0_271, %c0_272], %513 {strides = array<i32>} : memref<16x64xf32, #tpu.memory_space<vmem>>, vector<16x64xf32>,
    return
  }
  func.func @transform_0(%arg0: i32) -> (i32, i32) {
    %c0_i32 = arith.constant 0 : i32
    %c0_i32_0 = arith.constant 0 : i32
    return %arg0, %c0_i32 : i32, i32
  }
  func.func @transform_1(%arg0: i32) -> (i32, i32) {
    %c0_i32 = arith.constant 0 : i32
    %c0_i32_0 = arith.constant 0 : i32
    return %arg0, %c0_i32 : i32, i32
  }
  func.func @transform_2(%arg0: i32) -> (i32, i32) {
    %c0_i32 = arith.constant 0 : i32
    %c0_i32_0 = arith.constant 0 : i32
    %c0_i32_1 = arith.constant 0 : i32
    return %c0_i32, %c0_i32_0 : i32, i32
  }
  func.func @transform_3(%arg0: i32) -> (i32, i32) {
    %c0_i32 = arith.constant 0 : i32
    %c0_i32_0 = arith.constant 0 : i32
    %c0_i32_1 = arith.constant 0 : i32
    return %c0_i32, %c0_i32_0 : i32, i32
  }
  func.func @transform_4(%arg0: i32) -> (i32, i32) {
    %c0_i32 = arith.constant 0 : i32
    %c0_i32_0 = arith.constant 0 : i32
    %c0_i32_1 = arith.constant 0 : i32
    return %c0_i32, %c0_i32_0 : i32, i32
  }
  func.func @transform_5(%arg0: i32) -> (i32, i32) {
    %c0_i32 = arith.constant 0 : i32
    %c0_i32_0 = arith.constant 0 : i32
    %c0_i32_1 = arith.constant 0 : i32
    return %c0_i32, %c0_i32_0 : i32, i32
  }
  func.func @transform_6(%arg0: i32) -> (i32, i32) {
    %c0_i32 = arith.constant 0 : i32
    %c0_i32_0 = arith.constant 0 : i32
    %c0_i32_1 = arith.constant 0 : i32
    return %c0_i32, %c0_i32_0 : i32, i32
  }
  func.func @transform_7(%arg0: i32) -> (i32, i32) {
    %c0_i32 = arith.constant 0 : i32
    %c0_i32_0 = arith.constant 0 : i32
    %c0_i32_1 = arith.constant 0 : i32
    return %c0_i32, %c0_i32_0 : i32, i32
  }
  func.func @transform_8(%arg0: i32) -> (i32, i32) {
    %c0_i32 = arith.constant 0 : i32
    %c0_i32_0 = arith.constant 0 : i32
    %c0_i32_1 = arith.constant 0 : i32
    return %c0_i32, %c0_i32_0 : i32, i32
  }
  func.func @transform_9(%arg0: i32) -> (i32, i32) {
    %c0_i32 = arith.constant 0 : i32
    %c0_i32_0 = arith.constant 0 : i32
    %c0_i32_1 = arith.constant 0 : i32
    return %c0_i32, %c0_i32_0 : i32, i32
  }
  func.func @transform_10(%arg0: i32) -> (i32, i32) {
    %c0_i32 = arith.constant 0 : i32
    %c0_i32_0 = arith.constant 0 : i32
    %c0_i32_1 = arith.constant 0 : i32
    return %c0_i32, %c0_i32_0 : i32, i32
  }
  func.func @transform_11(%arg0: i32) -> (i32, i32) {
    %c0_i32 = arith.constant 0 : i32
    %c0_i32_0 = arith.constant 0 : i32
    %c0_i32_1 = arith.constant 0 : i32
    return %c0_i32, %c0_i32_0 : i32, i32
  }
  func.func @transform_12(%arg0: i32) -> (i32, i32) {
    %c0_i32 = arith.constant 0 : i32
    %c0_i32_0 = arith.constant 0 : i32
    %c0_i32_1 = arith.constant 0 : i32
    return %c0_i32, %c0_i32_0 : i32, i32
  }
  func.func @transform_13(%arg0: i32) -> (i32, i32, i32) {
    %c0_i32 = arith.constant 0 : i32
    %c0_i32_0 = arith.constant 0 : i32
    %c0_i32_1 = arith.constant 0 : i32
    %c0_i32_2 = arith.constant 0 : i32
    return %c0_i32, %c0_i32_0, %c0_i32_1 : i32, i32, i32
  }
  func.func @transform_14(%arg0: i32) -> (i32, i32, i32) {
    %c0_i32 = arith.constant 0 : i32
    %c0_i32_0 = arith.constant 0 : i32
    %c0_i32_1 = arith.constant 0 : i32
    %c0_i32_2 = arith.constant 0 : i32
    return %c0_i32, %c0_i32_0, %c0_i32_1 : i32, i32, i32
  }
  func.func @transform_15(%arg0: i32) -> (i32, i32, i32) {
    %c0_i32 = arith.constant 0 : i32
    %c0_i32_0 = arith.constant 0 : i32
    %c0_i32_1 = arith.constant 0 : i32
    %c0_i32_2 = arith.constant 0 : i32
    return %c0_i32, %c0_i32_0, %c0_i32_1 : i32, i32, i32
  }
  func.func @transform_16(%arg0: i32) -> (i32, i32, i32) {
    %c0_i32 = arith.constant 0 : i32
    %c0_i32_0 = arith.constant 0 : i32
    %c0_i32_1 = arith.constant 0 : i32
    %c0_i32_2 = arith.constant 0 : i32
    return %c0_i32, %c0_i32_0, %c0_i32_1 : i32, i32, i32
  }
  func.func @transform_17(%arg0: i32) -> (i32, i32) {
    %c0_i32 = arith.constant 0 : i32
    %c0_i32_0 = arith.constant 0 : i32
    %c0_i32_1 = arith.constant 0 : i32
    return %c0_i32, %c0_i32_0 : i32, i32
  }
  func.func @transform_18(%arg0: i32) -> (i32, i32, i32) {
    %c0_i32 = arith.constant 0 : i32
    %c0_i32_0 = arith.constant 0 : i32
    %c0_i32_1 = arith.constant 0 : i32
    %c0_i32_2 = arith.constant 0 : i32
    return %c0_i32, %c0_i32_0, %c0_i32_1 : i32, i32, i32
  }
  func.func @transform_19(%arg0: i32) -> (i32, i32, i32) {
    %c0_i32 = arith.constant 0 : i32
    %c0_i32_0 = arith.constant 0 : i32
    %c0_i32_1 = arith.constant 0 : i32
    %c0_i32_2 = arith.constant 0 : i32
    return %c0_i32, %c0_i32_0, %c0_i32_1 : i32, i32, i32
  }
  func.func @transform_20(%arg0: i32) -> (i32, i32, i32) {
    %c0_i32 = arith.constant 0 : i32
    %c0_i32_0 = arith.constant 0 : i32
    %c0_i32_1 = arith.constant 0 : i32
    %c0_i32_2 = arith.constant 0 : i32
    return %c0_i32, %c0_i32_0, %c0_i32_1 : i32, i32, i32
  }
  func.func @transform_21(%arg0: i32) -> (i32, i32, i32) {
    %c0_i32 = arith.constant 0 : i32
    %c0_i32_0 = arith.constant 0 : i32
    %c0_i32_1 = arith.constant 0 : i32
    %c0_i32_2 = arith.constant 0 : i32
    return %c0_i32, %c0_i32_0, %c0_i32_1 : i32, i32, i32
  }
  func.func @transform_22(%arg0: i32) -> (i32, i32) {
    %c0_i32 = arith.constant 0 : i32
    %c0_i32_0 = arith.constant 0 : i32
    %c0_i32_1 = arith.constant 0 : i32
    return %c0_i32, %c0_i32_0 : i32, i32
  }
  func.func @transform_23(%arg0: i32) -> (i32, i32, i32) {
    %c0_i32 = arith.constant 0 : i32
    %c0_i32_0 = arith.constant 0 : i32
    %c0_i32_1 = arith.constant 0 : i32
    %c0_i32_2 = arith.constant 0 : i32
    return %c0_i32, %c0_i32_0, %c0_i32_1 : i32, i32, i32
  }
  func.func @transform_24(%arg0: i32) -> (i32, i32, i32) {
    %c0_i32 = arith.constant 0 : i32
    %c0_i32_0 = arith.constant 0 : i32
    %c0_i32_1 = arith.constant 0 : i32
    %c0_i32_2 = arith.constant 0 : i32
    return %c0_i32, %c0_i32_0, %c0_i32_1 : i32, i32, i32
  }
  func.func @transform_25(%arg0: i32) -> (i32, i32, i32) {
    %c0_i32 = arith.constant 0 : i32
    %c0_i32_0 = arith.constant 0 : i32
    %c0_i32_1 = arith.constant 0 : i32
    %c0_i32_2 = arith.constant 0 : i32
    return %c0_i32, %c0_i32_0, %c0_i32_1 : i32, i32, i32
  }
  func.func @transform_26(%arg0: i32) -> (i32, i32, i32) {
    %c0_i32 = arith.constant 0 : i32
    %c0_i32_0 = arith.constant 0 : i32
    %c0_i32_1 = arith.constant 0 : i32
    %c0_i32_2 = arith.constant 0 : i32
    return %c0_i32, %c0_i32_0, %c0_i32_1 : i32, i32, i32
  }
  func.func @transform_27(%arg0: i32) -> (i32, i32) {
    %c0_i32 = arith.constant 0 : i32
    %c0_i32_0 = arith.constant 0 : i32
    %c0_i32_1 = arith.constant 0 : i32
    return %c0_i32, %c0_i32_0 : i32, i32
  }
  func.func @transform_28(%arg0: i32) -> (i32, i32, i32) {
    %c0_i32 = arith.constant 0 : i32
    %c0_i32_0 = arith.constant 0 : i32
    %c0_i32_1 = arith.constant 0 : i32
    %c0_i32_2 = arith.constant 0 : i32
    return %c0_i32, %c0_i32_0, %c0_i32_1 : i32, i32, i32
  }
  func.func @transform_29(%arg0: i32) -> (i32, i32, i32) {
    %c0_i32 = arith.constant 0 : i32
    %c0_i32_0 = arith.constant 0 : i32
    %c0_i32_1 = arith.constant 0 : i32
    %c0_i32_2 = arith.constant 0 : i32
    return %c0_i32, %c0_i32_0, %c0_i32_1 : i32, i32, i32
  }
  func.func @transform_30(%arg0: i32) -> (i32, i32, i32) {
    %c0_i32 = arith.constant 0 : i32
    %c0_i32_0 = arith.constant 0 : i32
    %c0_i32_1 = arith.constant 0 : i32
    %c0_i32_2 = arith.constant 0 : i32
    return %c0_i32, %c0_i32_0, %c0_i32_1 : i32, i32, i32
  }
  func.func @transform_31(%arg0: i32) -> (i32, i32, i32) {
    %c0_i32 = arith.constant 0 : i32
    %c0_i32_0 = arith.constant 0 : i32
    %c0_i32_1 = arith.constant 0 : i32
    %c0_i32_2 = arith.constant 0 : i32
    return %c0_i32, %c0_i32_0, %c0_i32_1 : i32, i32, i32
  }
  func.func @transform_32(%arg0: i32) -> (i32, i32) {
    %c0_i32 = arith.constant 0 : i32
    %c0_i32_0 = arith.constant 0 : i32
    %c0_i32_1 = arith.constant 0 : i32
    return %c0_i32, %c0_i32_0 : i32, i32
  }
  func.func @transform_33(%arg0: i32) -> (i32, i32) {
    %c0_i32 = arith.constant 0 : i32
    %c0_i32_0 = arith.constant 0 : i32
    %c0_i32_1 = arith.constant 0 : i32
    return %c0_i32, %c0_i32_0 : i32, i32
  }
  func.func @transform_34(%arg0: i32) -> (i32, i32) {
    %c0_i32 = arith.constant 0 : i32
    %c0_i32_0 = arith.constant 0 : i32
    %c0_i32_1 = arith.constant 0 : i32
    return %c0_i32, %c0_i32_0 : i32, i32
  }
  func.func @transform_35(%arg0: i32) -> (i32, i32) {
    %c0_i32 = arith.constant 0 : i32
    %c0_i32_0 = arith.constant 0 : i32
    %c0_i32_1 = arith.constant 0 : i32
    return %c0_i32, %c0_i32_0 : i32, i32
  }
  func.func @transform_36(%arg0: i32) -> (i32, i32) {
    %c0_i32 = arith.constant 0 : i32
    %c0_i32_0 = arith.constant 0 : i32
    %c0_i32_1 = arith.constant 0 : i32
    return %c0_i32, %c0_i32_0 : i32, i32
  }
  func.func @transform_37(%arg0: i32) -> (i32, i32) {
    %c0_i32 = arith.constant 0 : i32
    %c0_i32_0 = arith.constant 0 : i32
    %c0_i32_1 = arith.constant 0 : i32
    return %c0_i32, %c0_i32_0 : i32, i32
  }
  func.func @transform_38(%arg0: i32) -> (i32, i32) {
    %c0_i32 = arith.constant 0 : i32
    %c0_i32_0 = arith.constant 0 : i32
    %c0_i32_1 = arith.constant 0 : i32
    return %c0_i32, %c0_i32_0 : i32, i32
  }
  func.func @transform_39(%arg0: i32) -> (i32, i32) {
    %c0_i32 = arith.constant 0 : i32
    %c0_i32_0 = arith.constant 0 : i32
    %c0_i32_1 = arith.constant 0 : i32
    return %c0_i32, %c0_i32_0 : i32, i32
  }
  func.func @transform_40(%arg0: i32) -> (i32, i32) {
    %c0_i32 = arith.constant 0 : i32
    %c0_i32_0 = arith.constant 0 : i32
    %c0_i32_1 = arith.constant 0 : i32
    return %c0_i32, %c0_i32_0 : i32, i32
  }
  func.func @transform_41(%arg0: i32) -> (i32, i32) {
    %c0_i32 = arith.constant 0 : i32
    %c0_i32_0 = arith.constant 0 : i32
    %c0_i32_1 = arith.constant 0 : i32
    return %c0_i32, %c0_i32_0 : i32, i32
  }
  func.func @transform_42(%arg0: i32) -> (i32, i32) {
    %c0_i32 = arith.constant 0 : i32
    %c0_i32_0 = arith.constant 0 : i32
    %c0_i32_1 = arith.constant 0 : i32
    return %c0_i32, %c0_i32_0 : i32, i32
  }
  func.func @transform_43(%arg0: i32) -> (i32, i32) {
    %c0_i32 = arith.constant 0 : i32
    %c0_i32_0 = arith.constant 0 : i32
    %c0_i32_1 = arith.constant 0 : i32
    return %c0_i32, %c0_i32_0 : i32, i32
  }
  func.func @transform_44(%arg0: i32) -> (i32, i32) {
    %c0_i32 = arith.constant 0 : i32
    %c0_i32_0 = arith.constant 0 : i32
    %c0_i32_1 = arith.constant 0 : i32
    return %c0_i32, %c0_i32_0 : i32, i32
  }
  func.func @transform_45(%arg0: i32) -> (i32, i32) {
    %c0_i32 = arith.constant 0 : i32
    %c0_i32_0 = arith.constant 0 : i32
    %c0_i32_1 = arith.constant 0 : i32
    return %c0_i32, %c0_i32_0 : i32, i32
  }
  func.func @transform_46(%arg0: i32) -> (i32, i32) {
    %c0_i32 = arith.constant 0 : i32
    %c0_i32_0 = arith.constant 0 : i32
    %c0_i32_1 = arith.constant 0 : i32
    return %c0_i32, %c0_i32_0 : i32, i32
  }
  func.func @transform_47(%arg0: i32) -> (i32, i32) {
    %c0_i32 = arith.constant 0 : i32
    %c0_i32_0 = arith.constant 0 : i32
    %c0_i32_1 = arith.constant 0 : i32
    return %c0_i32, %c0_i32_0 : i32, i32
  }
  func.func @transform_48(%arg0: i32) -> (i32, i32) {
    %c0_i32 = arith.constant 0 : i32
    %c0_i32_0 = arith.constant 0 : i32
    %c0_i32_1 = arith.constant 0 : i32
    return %c0_i32, %c0_i32_0 : i32, i32
  }
  func.func @transform_49(%arg0: i32) -> (i32, i32) {
    %c0_i32 = arith.constant 0 : i32
    %c0_i32_0 = arith.constant 0 : i32
    return %arg0, %c0_i32 : i32, i32
  }
  func.func @transform_50(%arg0: i32) -> (i32, i32) {
    %c0_i32 = arith.constant 0 : i32
    %c0_i32_0 = arith.constant 0 : i32
    return %arg0, %c0_i32 : i32, i32
  }
}

module attributes {stable_mosaic.version = 11 : i64} {
  func.func @_brt_kernel(%arg0: i32, %arg1: memref<16x64xbf16, #tpu.memory_space<vmem>>, %arg2: memref<16x64xbf16, #tpu.memory_space<vmem>>, %arg3: memref<3x64xf32, #tpu.memory_space<vmem>>, %arg4: memref<3x64xf32, #tpu.memory_space<vmem>>, %arg5: memref<16x64xf32, #tpu.memory_space<vmem>>, %arg6: memref<16x64xf32, #tpu.memory_space<vmem>>, %arg7: memref<16x64xf32, #tpu.memory_space<vmem>>, %arg8: memref<16x64xf32, #tpu.memory_space<vmem>>, %arg9: memref<64x64xbf16, #tpu.memory_space<vmem>>, %arg10: memref<16x16xf32, #tpu.memory_space<vmem>>, %arg11: memref<16x16xf32, #tpu.memory_space<vmem>>, %arg12: memref<16x16xf32, #tpu.memory_space<vmem>>, %arg13: memref<16x16xf32, #tpu.memory_space<vmem>>, %arg14: memref<2x64x64xbf16, #tpu.memory_space<vmem>>, %arg15: memref<2x64x64xbf16, #tpu.memory_space<vmem>>, %arg16: memref<2x64x64xbf16, #tpu.memory_space<vmem>>, %arg17: memref<2x64x64xbf16, #tpu.memory_space<vmem>>, %arg18: memref<1x64xf32, #tpu.memory_space<vmem>>, %arg19: memref<2x64x64xbf16, #tpu.memory_space<vmem>>, %arg20: memref<2x64x64xbf16, #tpu.memory_space<vmem>>, %arg21: memref<2x64x64xbf16, #tpu.memory_space<vmem>>, %arg22: memref<2x64x64xbf16, #tpu.memory_space<vmem>>, %arg23: memref<1x64xf32, #tpu.memory_space<vmem>>, %arg24: memref<2x64x64xbf16, #tpu.memory_space<vmem>>, %arg25: memref<2x64x64xbf16, #tpu.memory_space<vmem>>, %arg26: memref<2x64x64xbf16, #tpu.memory_space<vmem>>, %arg27: memref<2x64x64xbf16, #tpu.memory_space<vmem>>, %arg28: memref<1x64xf32, #tpu.memory_space<vmem>>, %arg29: memref<2x64x64xbf16, #tpu.memory_space<vmem>>, %arg30: memref<2x64x64xbf16, #tpu.memory_space<vmem>>, %arg31: memref<2x64x64xbf16, #tpu.memory_space<vmem>>, %arg32: memref<2x64x64xbf16, #tpu.memory_space<vmem>>, %arg33: memref<1x64xf32, #tpu.memory_space<vmem>>, %arg34: memref<64x64xbf16, #tpu.memory_space<vmem>>, %arg35: memref<64x64xbf16, #tpu.memory_space<vmem>>, %arg36: memref<64x64xbf16, #tpu.memory_space<vmem>>, %arg37: memref<64x64xbf16, #tpu.memory_space<vmem>>, %arg38: memref<64x192xbf16, #tpu.memory_space<vmem>>, %arg39: memref<1x192xf32, #tpu.memory_space<vmem>>, %arg40: memref<64x192xbf16, #tpu.memory_space<vmem>>, %arg41: memref<1x192xf32, #tpu.memory_space<vmem>>, %arg42: memref<64x256xbf16, #tpu.memory_space<vmem>>, %arg43: memref<1x256xf32, #tpu.memory_space<vmem>>, %arg44: memref<256x64xbf16, #tpu.memory_space<vmem>>, %arg45: memref<1x64xf32, #tpu.memory_space<vmem>>, %arg46: memref<64x256xbf16, #tpu.memory_space<vmem>>, %arg47: memref<1x256xf32, #tpu.memory_space<vmem>>, %arg48: memref<256x64xbf16, #tpu.memory_space<vmem>>, %arg49: memref<1x64xf32, #tpu.memory_space<vmem>>, %arg50: memref<16x64xf32, #tpu.memory_space<vmem>>, %arg51: memref<16x64xf32, #tpu.memory_space<vmem>>) attributes {dimension_semantics = [#tpu.dimension_semantics<parallel>], iteration_bounds = array<i64: 1>, scalar_prefetch = 0 : i64, scratch_operands = 0 : i64, tpu.core_type = #tpu.core_type<tc>, window_params = [{transform_indices = @transform_0, window_bounds = array<i64: 16, 64>}, {transform_indices = @transform_1, window_bounds = array<i64: 16, 64>}, {pipeline_mode = #tpu.pipeline_mode<synchronous>, transform_indices = @transform_2, window_bounds = array<i64: 3, 64>}, {pipeline_mode = #tpu.pipeline_mode<synchronous>, transform_indices = @transform_3, window_bounds = array<i64: 3, 64>}, {pipeline_mode = #tpu.pipeline_mode<synchronous>, transform_indices = @transform_4, window_bounds = array<i64: 16, 64>}, {pipeline_mode = #tpu.pipeline_mode<synchronous>, transform_indices = @transform_5, window_bounds = array<i64: 16, 64>}, {pipeline_mode = #tpu.pipeline_mode<synchronous>, transform_indices = @transform_6, window_bounds = array<i64: 16, 64>}, {pipeline_mode = #tpu.pipeline_mode<synchronous>, transform_indices = @transform_7, window_bounds = array<i64: 16, 64>}, {pipeline_mode = #tpu.pipeline_mode<synchronous>, transform_indices = @transform_8, window_bounds = array<i64: 64, 64>}, {pipeline_mode = #tpu.pipeline_mode<synchronous>, transform_indices = @transform_9, window_bounds = array<i64: 16, 16>}, {pipeline_mode = #tpu.pipeline_mode<synchronous>, transform_indices = @transform_10, window_bounds = array<i64: 16, 16>}, {pipeline_mode = #tpu.pipeline_mode<synchronous>, transform_indices = @transform_11, window_bounds = array<i64: 16, 16>}, {pipeline_mode = #tpu.pipeline_mode<synchronous>, transform_indices = @transform_12, window_bounds = array<i64: 16, 16>}, {pipeline_mode = #tpu.pipeline_mode<synchronous>, transform_indices = @transform_13, window_bounds = array<i64: 2, 64, 64>}, {pipeline_mode = #tpu.pipeline_mode<synchronous>, transform_indices = @transform_14, window_bounds = array<i64: 2, 64, 64>}, {pipeline_mode = #tpu.pipeline_mode<synchronous>, transform_indices = @transform_15, window_bounds = array<i64: 2, 64, 64>}, {pipeline_mode = #tpu.pipeline_mode<synchronous>, transform_indices = @transform_16, window_bounds = array<i64: 2, 64, 64>}, {pipeline_mode = #tpu.pipeline_mode<synchronous>, transform_indices = @transform_17, window_bounds = array<i64: 1, 64>}, {pipeline_mode = #tpu.pipeline_mode<synchronous>, transform_indices = @transform_18, window_bounds = array<i64: 2, 64, 64>}, {pipeline_mode = #tpu.pipeline_mode<synchronous>, transform_indices = @transform_19, window_bounds = array<i64: 2, 64, 64>}, {pipeline_mode = #tpu.pipeline_mode<synchronous>, transform_indices = @transform_20, window_bounds = array<i64: 2, 64, 64>}, {pipeline_mode = #tpu.pipeline_mode<synchronous>, transform_indices = @transform_21, window_bounds = array<i64: 2, 64, 64>}, {pipeline_mode = #tpu.pipeline_mode<synchronous>, transform_indices = @transform_22, window_bounds = array<i64: 1, 64>}, {pipeline_mode = #tpu.pipeline_mode<synchronous>, transform_indices = @transform_23, window_bounds = array<i64: 2, 64, 64>}, {pipeline_mode = #tpu.pipeline_mode<synchronous>, transform_indices = @transform_24, window_bounds = array<i64: 2, 64, 64>}, {pipeline_mode = #tpu.pipeline_mode<synchronous>, transform_indices = @transform_25, window_bounds = array<i64: 2, 64, 64>}, {pipeline_mode = #tpu.pipeline_mode<synchronous>, transform_indices = @transform_26, window_bounds = array<i64: 2, 64, 64>}, {pipeline_mode = #tpu.pipeline_mode<synchronous>, transform_indices = @transform_27, window_bounds = array<i64: 1, 64>}, {pipeline_mode = #tpu.pipeline_mode<synchronous>, transform_indices = @transform_28, window_bounds = array<i64: 2, 64, 64>}, {pipeline_mode = #tpu.pipeline_mode<synchronous>, transform_indices = @transform_29, window_bounds = array<i64: 2, 64, 64>}, {pipeline_mode = #tpu.pipeline_mode<synchronous>, transform_indices = @transform_30, window_bounds = array<i64: 2, 64, 64>}, {pipeline_mode = #tpu.pipeline_mode<synchronous>, transform_indices = @transform_31, window_bounds = array<i64: 2, 64, 64>}, {pipeline_mode = #tpu.pipeline_mode<synchronous>, transform_indices = @transform_32, window_bounds = array<i64: 1, 64>}, {pipeline_mode = #tpu.pipeline_mode<synchronous>, transform_indices = @transform_33, window_bounds = array<i64: 64, 64>}, {pipeline_mode = #tpu.pipeline_mode<synchronous>, transform_indices = @transform_34, window_bounds = array<i64: 64, 64>}, {pipeline_mode = #tpu.pipeline_mode<synchronous>, transform_indices = @transform_35, window_bounds = array<i64: 64, 64>}, {pipeline_mode = #tpu.pipeline_mode<synchronous>, transform_indices = @transform_36, window_bounds = array<i64: 64, 64>}, {pipeline_mode = #tpu.pipeline_mode<synchronous>, transform_indices = @transform_37, window_bounds = array<i64: 64, 192>}, {pipeline_mode = #tpu.pipeline_mode<synchronous>, transform_indices = @transform_38, window_bounds = array<i64: 1, 192>}, {pipeline_mode = #tpu.pipeline_mode<synchronous>, transform_indices = @transform_39, window_bounds = array<i64: 64, 192>}, {pipeline_mode = #tpu.pipeline_mode<synchronous>, transform_indices = @transform_40, window_bounds = array<i64: 1, 192>}, {pipeline_mode = #tpu.pipeline_mode<synchronous>, transform_indices = @transform_41, window_bounds = array<i64: 64, 256>}, {pipeline_mode = #tpu.pipeline_mode<synchronous>, transform_indices = @transform_42, window_bounds = array<i64: 1, 256>}, {pipeline_mode = #tpu.pipeline_mode<synchronous>, transform_indices = @transform_43, window_bounds = array<i64: 256, 64>}, {pipeline_mode = #tpu.pipeline_mode<synchronous>, transform_indices = @transform_44, window_bounds = array<i64: 1, 64>}, {pipeline_mode = #tpu.pipeline_mode<synchronous>, transform_indices = @transform_45, window_bounds = array<i64: 64, 256>}, {pipeline_mode = #tpu.pipeline_mode<synchronous>, transform_indices = @transform_46, window_bounds = array<i64: 1, 256>}, {pipeline_mode = #tpu.pipeline_mode<synchronous>, transform_indices = @transform_47, window_bounds = array<i64: 256, 64>}, {pipeline_mode = #tpu.pipeline_mode<synchronous>, transform_indices = @transform_48, window_bounds = array<i64: 1, 64>}, {transform_indices = @transform_49, window_bounds = array<i64: 16, 64>}, {transform_indices = @transform_50, window_bounds = array<i64: 16, 64>}]} {
    %c0 = arith.constant 0 : index
    %c0_0 = arith.constant 0 : index
    %0 = vector.load %arg1[%c0, %c0_0] : memref<16x64xbf16, #tpu.memory_space<vmem>>, vector<16x64xbf16>
    %1 = arith.extf %0 : vector<16x64xbf16> to vector<16x64xf32>
    %c0_1 = arith.constant 0 : index
    %c0_2 = arith.constant 0 : index
    %2 = vector.load %arg2[%c0_1, %c0_2] : memref<16x64xbf16, #tpu.memory_space<vmem>>, vector<16x64xbf16>
    %3 = arith.extf %2 : vector<16x64xbf16> to vector<16x64xf32>
    %c0_3 = arith.constant 0 : index
    %c0_4 = arith.constant 0 : index
    %4 = vector.load %arg3[%c0_3, %c0_4] : memref<3x64xf32, #tpu.memory_space<vmem>>, vector<3x64xf32>
    %c0_5 = arith.constant 0 : index
    %c0_6 = arith.constant 0 : index
    %5 = vector.load %arg4[%c0_5, %c0_6] : memref<3x64xf32, #tpu.memory_space<vmem>>, vector<3x64xf32>
    %c0_7 = arith.constant 0 : index
    %c0_8 = arith.constant 0 : index
    %6 = vector.load %arg5[%c0_7, %c0_8] : memref<16x64xf32, #tpu.memory_space<vmem>>, vector<16x64xf32>
    %c0_9 = arith.constant 0 : index
    %c0_10 = arith.constant 0 : index
    %7 = vector.load %arg6[%c0_9, %c0_10] : memref<16x64xf32, #tpu.memory_space<vmem>>, vector<16x64xf32>
    %c0_11 = arith.constant 0 : index
    %c0_12 = arith.constant 0 : index
    %8 = vector.load %arg7[%c0_11, %c0_12] : memref<16x64xf32, #tpu.memory_space<vmem>>, vector<16x64xf32>
    %c0_13 = arith.constant 0 : index
    %c0_14 = arith.constant 0 : index
    %9 = vector.load %arg8[%c0_13, %c0_14] : memref<16x64xf32, #tpu.memory_space<vmem>>, vector<16x64xf32>
    %c0_15 = arith.constant 0 : index
    %c0_16 = arith.constant 0 : index
    %10 = vector.load %arg9[%c0_15, %c0_16] : memref<64x64xbf16, #tpu.memory_space<vmem>>, vector<64x64xbf16>
    %11 = arith.mulf %1, %1 : vector<16x64xf32>
    %cst = arith.constant dense<0.000000e+00> : vector<16xf32>
    %12 = vector.multi_reduction <add>, %11, %cst [1] : vector<16x64xf32> to vector<16xf32>
    %13 = vector.shape_cast %12 : vector<16xf32> to vector<16x1xf32>
    %cst_17 = arith.constant 6.400000e+01 : f32
    %14 = vector.broadcast %cst_17 : f32 to vector<16x1xf32>
    %15 = arith.divf %13, %14 : vector<16x1xf32>
    %cst_18 = arith.constant 1.000000e-16 : f32
    %16 = vector.broadcast %cst_18 : f32 to vector<16x1xf32>
    %17 = arith.maximumf %15, %16 : vector<16x1xf32>
    %18 = math.rsqrt %17 : vector<16x1xf32>
    %19 = vector.broadcast %18 : vector<16x1xf32> to vector<16x64xf32>
    %20 = arith.mulf %1, %19 : vector<16x64xf32>
    %21 = arith.mulf %3, %3 : vector<16x64xf32>
    %cst_19 = arith.constant dense<0.000000e+00> : vector<16xf32>
    %22 = vector.multi_reduction <add>, %21, %cst_19 [1] : vector<16x64xf32> to vector<16xf32>
    %23 = vector.shape_cast %22 : vector<16xf32> to vector<16x1xf32>
    %cst_20 = arith.constant 6.400000e+01 : f32
    %24 = vector.broadcast %cst_20 : f32 to vector<16x1xf32>
    %25 = arith.divf %23, %24 : vector<16x1xf32>
    %cst_21 = arith.constant 1.000000e-16 : f32
    %26 = vector.broadcast %cst_21 : f32 to vector<16x1xf32>
    %27 = arith.maximumf %25, %26 : vector<16x1xf32>
    %28 = math.rsqrt %27 : vector<16x1xf32>
    %29 = vector.broadcast %28 : vector<16x1xf32> to vector<16x64xf32>
    %30 = arith.mulf %3, %29 : vector<16x64xf32>
    %31 = vector.extract_strided_slice %4 {offsets = [0, 0], sizes = [1, 64], strides = [1, 1]} : vector<3x64xf32> to vector<1x64xf32>
    %32 = vector.broadcast %31 : vector<1x64xf32> to vector<16x64xf32>
    %33 = arith.mulf %20, %32 : vector<16x64xf32>
    %c0_22 = arith.constant 0 : index
    %c0_23 = arith.constant 0 : index
    %34 = vector.load %arg10[%c0_22, %c0_23] : memref<16x16xf32, #tpu.memory_space<vmem>>, vector<16x16xf32>
    %c0_24 = arith.constant 0 : index
    %c0_25 = arith.constant 0 : index
    %c0_26 = arith.constant 0 : index
    %35 = vector.load %arg14[%c0_24, %c0_25, %c0_26] : memref<2x64x64xbf16, #tpu.memory_space<vmem>>, vector<1x64x64xbf16>
    %36 = vector.shape_cast %35 : vector<1x64x64xbf16> to vector<64x64xbf16>
    %37 = arith.truncf %33 : vector<16x64xf32> to vector<16x64xbf16>
    %cst_27 = arith.constant dense<0.000000e+00> : vector<16x64xf32>
    %38 = tpu.matmul %37, %36, %cst_27 {dimension_numbers = #tpu.dot_dimension_numbers<[1], [0], [0], [1], [0, 0, 1, 1], [], []>} : vector<16x64xbf16>, vector<64x64xbf16>, vector<16x64xf32> -> vector<16x64xf32>
    %c0_28 = arith.constant 0 : index
    %c0_29 = arith.constant 0 : index
    %c0_30 = arith.constant 0 : index
    %39 = vector.load %arg15[%c0_28, %c0_29, %c0_30] : memref<2x64x64xbf16, #tpu.memory_space<vmem>>, vector<1x64x64xbf16>
    %40 = vector.shape_cast %39 : vector<1x64x64xbf16> to vector<64x64xbf16>
    %41 = arith.truncf %33 : vector<16x64xf32> to vector<16x64xbf16>
    %cst_31 = arith.constant dense<0.000000e+00> : vector<16x64xf32>
    %42 = tpu.matmul %41, %40, %cst_31 {dimension_numbers = #tpu.dot_dimension_numbers<[1], [0], [0], [1], [0, 0, 1, 1], [], []>} : vector<16x64xbf16>, vector<64x64xbf16>, vector<16x64xf32> -> vector<16x64xf32>
    %c0_32 = arith.constant 0 : index
    %c0_33 = arith.constant 0 : index
    %c0_34 = arith.constant 0 : index
    %43 = vector.load %arg16[%c0_32, %c0_33, %c0_34] : memref<2x64x64xbf16, #tpu.memory_space<vmem>>, vector<1x64x64xbf16>
    %44 = vector.shape_cast %43 : vector<1x64x64xbf16> to vector<64x64xbf16>
    %45 = arith.truncf %33 : vector<16x64xf32> to vector<16x64xbf16>
    %cst_35 = arith.constant dense<0.000000e+00> : vector<16x64xf32>
    %46 = tpu.matmul %45, %44, %cst_35 {dimension_numbers = #tpu.dot_dimension_numbers<[1], [0], [0], [1], [0, 0, 1, 1], [], []>} : vector<16x64xbf16>, vector<64x64xbf16>, vector<16x64xf32> -> vector<16x64xf32>
    %47 = arith.mulf %38, %6 : vector<16x64xf32>
    %48 = arith.truncf %38 : vector<16x64xf32> to vector<16x64xbf16>
    %cst_36 = arith.constant dense<0.000000e+00> : vector<16x64xf32>
    %49 = tpu.matmul %48, %10, %cst_36 {dimension_numbers = #tpu.dot_dimension_numbers<[1], [0], [0], [1], [0, 0, 1, 1], [], []>} : vector<16x64xbf16>, vector<64x64xbf16>, vector<16x64xf32> -> vector<16x64xf32>
    %50 = arith.mulf %49, %7 : vector<16x64xf32>
    %51 = arith.addf %47, %50 : vector<16x64xf32>
    %52 = arith.mulf %42, %6 : vector<16x64xf32>
    %53 = arith.truncf %42 : vector<16x64xf32> to vector<16x64xbf16>
    %cst_37 = arith.constant dense<0.000000e+00> : vector<16x64xf32>
    %54 = tpu.matmul %53, %10, %cst_37 {dimension_numbers = #tpu.dot_dimension_numbers<[1], [0], [0], [1], [0, 0, 1, 1], [], []>} : vector<16x64xbf16>, vector<64x64xbf16>, vector<16x64xf32> -> vector<16x64xf32>
    %55 = arith.mulf %54, %7 : vector<16x64xf32>
    %56 = arith.addf %52, %55 : vector<16x64xf32>
    %57 = arith.truncf %51 : vector<16x64xf32> to vector<16x64xbf16>
    %58 = arith.truncf %56 : vector<16x64xf32> to vector<16x64xbf16>
    %cst_38 = arith.constant dense<0.000000e+00> : vector<16x16xf32>
    %59 = tpu.matmul %57, %58, %cst_38 {dimension_numbers = #tpu.dot_dimension_numbers<[1], [1], [0], [0], [0, 0, 1, 0], [], []>} : vector<16x64xbf16>, vector<16x64xbf16>, vector<16x16xf32> -> vector<16x16xf32>
    %60 = arith.addf %59, %34 : vector<16x16xf32>
    %cst_39 = arith.constant dense<0xFF800000> : vector<16xf32>
    %61 = vector.multi_reduction <maximumf>, %60, %cst_39 [1] : vector<16x16xf32> to vector<16xf32>
    %62 = vector.shape_cast %61 : vector<16xf32> to vector<16x1xf32>
    %63 = vector.broadcast %62 : vector<16x1xf32> to vector<16x16xf32>
    %64 = arith.subf %60, %63 : vector<16x16xf32>
    %65 = math.exp %64 : vector<16x16xf32>
    %cst_40 = arith.constant dense<0.000000e+00> : vector<16xf32>
    %66 = vector.multi_reduction <add>, %65, %cst_40 [1] : vector<16x16xf32> to vector<16xf32>
    %67 = vector.shape_cast %66 : vector<16xf32> to vector<16x1xf32>
    %68 = tpu.reciprocal %67 {approx = true} : vector<16x1xf32> -> vector<16x1xf32>
    %69 = vector.broadcast %68 : vector<16x1xf32> to vector<16x16xf32>
    %70 = arith.mulf %65, %69 : vector<16x16xf32>
    %71 = arith.truncf %70 : vector<16x16xf32> to vector<16x16xbf16>
    %72 = arith.truncf %46 : vector<16x64xf32> to vector<16x64xbf16>
    %cst_41 = arith.constant dense<0.000000e+00> : vector<16x64xf32>
    %73 = tpu.matmul %71, %72, %cst_41 {dimension_numbers = #tpu.dot_dimension_numbers<[1], [0], [0], [1], [0, 0, 1, 1], [], []>} : vector<16x16xbf16>, vector<16x64xbf16>, vector<16x64xf32> -> vector<16x64xf32>
    %c0_42 = arith.constant 0 : index
    %c0_43 = arith.constant 0 : index
    %c0_44 = arith.constant 0 : index
    %74 = vector.load %arg17[%c0_42, %c0_43, %c0_44] : memref<2x64x64xbf16, #tpu.memory_space<vmem>>, vector<1x64x64xbf16>
    %75 = vector.shape_cast %74 : vector<1x64x64xbf16> to vector<64x64xbf16>
    %76 = arith.truncf %73 : vector<16x64xf32> to vector<16x64xbf16>
    %cst_45 = arith.constant dense<0.000000e+00> : vector<16x64xf32>
    %77 = tpu.matmul %76, %75, %cst_45 {dimension_numbers = #tpu.dot_dimension_numbers<[1], [0], [0], [1], [0, 0, 1, 1], [], []>} : vector<16x64xbf16>, vector<64x64xbf16>, vector<16x64xf32> -> vector<16x64xf32>
    %c1 = arith.constant 1 : index
    %c0_46 = arith.constant 0 : index
    %c0_47 = arith.constant 0 : index
    %78 = vector.load %arg14[%c1, %c0_46, %c0_47] : memref<2x64x64xbf16, #tpu.memory_space<vmem>>, vector<1x64x64xbf16>
    %79 = vector.shape_cast %78 : vector<1x64x64xbf16> to vector<64x64xbf16>
    %80 = arith.truncf %33 : vector<16x64xf32> to vector<16x64xbf16>
    %cst_48 = arith.constant dense<0.000000e+00> : vector<16x64xf32>
    %81 = tpu.matmul %80, %79, %cst_48 {dimension_numbers = #tpu.dot_dimension_numbers<[1], [0], [0], [1], [0, 0, 1, 1], [], []>} : vector<16x64xbf16>, vector<64x64xbf16>, vector<16x64xf32> -> vector<16x64xf32>
    %c1_49 = arith.constant 1 : index
    %c0_50 = arith.constant 0 : index
    %c0_51 = arith.constant 0 : index
    %82 = vector.load %arg15[%c1_49, %c0_50, %c0_51] : memref<2x64x64xbf16, #tpu.memory_space<vmem>>, vector<1x64x64xbf16>
    %83 = vector.shape_cast %82 : vector<1x64x64xbf16> to vector<64x64xbf16>
    %84 = arith.truncf %33 : vector<16x64xf32> to vector<16x64xbf16>
    %cst_52 = arith.constant dense<0.000000e+00> : vector<16x64xf32>
    %85 = tpu.matmul %84, %83, %cst_52 {dimension_numbers = #tpu.dot_dimension_numbers<[1], [0], [0], [1], [0, 0, 1, 1], [], []>} : vector<16x64xbf16>, vector<64x64xbf16>, vector<16x64xf32> -> vector<16x64xf32>
    %c1_53 = arith.constant 1 : index
    %c0_54 = arith.constant 0 : index
    %c0_55 = arith.constant 0 : index
    %86 = vector.load %arg16[%c1_53, %c0_54, %c0_55] : memref<2x64x64xbf16, #tpu.memory_space<vmem>>, vector<1x64x64xbf16>
    %87 = vector.shape_cast %86 : vector<1x64x64xbf16> to vector<64x64xbf16>
    %88 = arith.truncf %33 : vector<16x64xf32> to vector<16x64xbf16>
    %cst_56 = arith.constant dense<0.000000e+00> : vector<16x64xf32>
    %89 = tpu.matmul %88, %87, %cst_56 {dimension_numbers = #tpu.dot_dimension_numbers<[1], [0], [0], [1], [0, 0, 1, 1], [], []>} : vector<16x64xbf16>, vector<64x64xbf16>, vector<16x64xf32> -> vector<16x64xf32>
    %90 = arith.mulf %81, %6 : vector<16x64xf32>
    %91 = arith.truncf %81 : vector<16x64xf32> to vector<16x64xbf16>
    %cst_57 = arith.constant dense<0.000000e+00> : vector<16x64xf32>
    %92 = tpu.matmul %91, %10, %cst_57 {dimension_numbers = #tpu.dot_dimension_numbers<[1], [0], [0], [1], [0, 0, 1, 1], [], []>} : vector<16x64xbf16>, vector<64x64xbf16>, vector<16x64xf32> -> vector<16x64xf32>
    %93 = arith.mulf %92, %7 : vector<16x64xf32>
    %94 = arith.addf %90, %93 : vector<16x64xf32>
    %95 = arith.mulf %85, %6 : vector<16x64xf32>
    %96 = arith.truncf %85 : vector<16x64xf32> to vector<16x64xbf16>
    %cst_58 = arith.constant dense<0.000000e+00> : vector<16x64xf32>
    %97 = tpu.matmul %96, %10, %cst_58 {dimension_numbers = #tpu.dot_dimension_numbers<[1], [0], [0], [1], [0, 0, 1, 1], [], []>} : vector<16x64xbf16>, vector<64x64xbf16>, vector<16x64xf32> -> vector<16x64xf32>
    %98 = arith.mulf %97, %7 : vector<16x64xf32>
    %99 = arith.addf %95, %98 : vector<16x64xf32>
    %100 = arith.truncf %94 : vector<16x64xf32> to vector<16x64xbf16>
    %101 = arith.truncf %99 : vector<16x64xf32> to vector<16x64xbf16>
    %cst_59 = arith.constant dense<0.000000e+00> : vector<16x16xf32>
    %102 = tpu.matmul %100, %101, %cst_59 {dimension_numbers = #tpu.dot_dimension_numbers<[1], [1], [0], [0], [0, 0, 1, 0], [], []>} : vector<16x64xbf16>, vector<16x64xbf16>, vector<16x16xf32> -> vector<16x16xf32>
    %103 = arith.addf %102, %34 : vector<16x16xf32>
    %cst_60 = arith.constant dense<0xFF800000> : vector<16xf32>
    %104 = vector.multi_reduction <maximumf>, %103, %cst_60 [1] : vector<16x16xf32> to vector<16xf32>
    %105 = vector.shape_cast %104 : vector<16xf32> to vector<16x1xf32>
    %106 = vector.broadcast %105 : vector<16x1xf32> to vector<16x16xf32>
    %107 = arith.subf %103, %106 : vector<16x16xf32>
    %108 = math.exp %107 : vector<16x16xf32>
    %cst_61 = arith.constant dense<0.000000e+00> : vector<16xf32>
    %109 = vector.multi_reduction <add>, %108, %cst_61 [1] : vector<16x16xf32> to vector<16xf32>
    %110 = vector.shape_cast %109 : vector<16xf32> to vector<16x1xf32>
    %111 = tpu.reciprocal %110 {approx = true} : vector<16x1xf32> -> vector<16x1xf32>
    %112 = vector.broadcast %111 : vector<16x1xf32> to vector<16x16xf32>
    %113 = arith.mulf %108, %112 : vector<16x16xf32>
    %114 = arith.truncf %113 : vector<16x16xf32> to vector<16x16xbf16>
    %115 = arith.truncf %89 : vector<16x64xf32> to vector<16x64xbf16>
    %cst_62 = arith.constant dense<0.000000e+00> : vector<16x64xf32>
    %116 = tpu.matmul %114, %115, %cst_62 {dimension_numbers = #tpu.dot_dimension_numbers<[1], [0], [0], [1], [0, 0, 1, 1], [], []>} : vector<16x16xbf16>, vector<16x64xbf16>, vector<16x64xf32> -> vector<16x64xf32>
    %c1_63 = arith.constant 1 : index
    %c0_64 = arith.constant 0 : index
    %c0_65 = arith.constant 0 : index
    %117 = vector.load %arg17[%c1_63, %c0_64, %c0_65] : memref<2x64x64xbf16, #tpu.memory_space<vmem>>, vector<1x64x64xbf16>
    %118 = vector.shape_cast %117 : vector<1x64x64xbf16> to vector<64x64xbf16>
    %119 = arith.truncf %116 : vector<16x64xf32> to vector<16x64xbf16>
    %cst_66 = arith.constant dense<0.000000e+00> : vector<16x64xf32>
    %120 = tpu.matmul %119, %118, %cst_66 {dimension_numbers = #tpu.dot_dimension_numbers<[1], [0], [0], [1], [0, 0, 1, 1], [], []>} : vector<16x64xbf16>, vector<64x64xbf16>, vector<16x64xf32> -> vector<16x64xf32>
    %121 = arith.addf %77, %120 : vector<16x64xf32>
    %c0_67 = arith.constant 0 : index
    %c0_68 = arith.constant 0 : index
    %122 = vector.load %arg18[%c0_67, %c0_68] : memref<1x64xf32, #tpu.memory_space<vmem>>, vector<1x64xf32>
    %123 = vector.broadcast %122 : vector<1x64xf32> to vector<16x64xf32>
    %124 = arith.addf %121, %123 : vector<16x64xf32>
    %125 = vector.extract_strided_slice %4 {offsets = [1, 0], sizes = [1, 64], strides = [1, 1]} : vector<3x64xf32> to vector<1x64xf32>
    %126 = vector.broadcast %125 : vector<1x64xf32> to vector<16x64xf32>
    %127 = arith.mulf %20, %126 : vector<16x64xf32>
    %c0_69 = arith.constant 0 : index
    %c0_70 = arith.constant 0 : index
    %128 = vector.load %arg11[%c0_69, %c0_70] : memref<16x16xf32, #tpu.memory_space<vmem>>, vector<16x16xf32>
    %c0_71 = arith.constant 0 : index
    %c0_72 = arith.constant 0 : index
    %c0_73 = arith.constant 0 : index
    %129 = vector.load %arg19[%c0_71, %c0_72, %c0_73] : memref<2x64x64xbf16, #tpu.memory_space<vmem>>, vector<1x64x64xbf16>
    %130 = vector.shape_cast %129 : vector<1x64x64xbf16> to vector<64x64xbf16>
    %131 = arith.truncf %127 : vector<16x64xf32> to vector<16x64xbf16>
    %cst_74 = arith.constant dense<0.000000e+00> : vector<16x64xf32>
    %132 = tpu.matmul %131, %130, %cst_74 {dimension_numbers = #tpu.dot_dimension_numbers<[1], [0], [0], [1], [0, 0, 1, 1], [], []>} : vector<16x64xbf16>, vector<64x64xbf16>, vector<16x64xf32> -> vector<16x64xf32>
    %c0_75 = arith.constant 0 : index
    %c0_76 = arith.constant 0 : index
    %c0_77 = arith.constant 0 : index
    %133 = vector.load %arg20[%c0_75, %c0_76, %c0_77] : memref<2x64x64xbf16, #tpu.memory_space<vmem>>, vector<1x64x64xbf16>
    %134 = vector.shape_cast %133 : vector<1x64x64xbf16> to vector<64x64xbf16>
    %135 = arith.truncf %3 : vector<16x64xf32> to vector<16x64xbf16>
    %cst_78 = arith.constant dense<0.000000e+00> : vector<16x64xf32>
    %136 = tpu.matmul %135, %134, %cst_78 {dimension_numbers = #tpu.dot_dimension_numbers<[1], [0], [0], [1], [0, 0, 1, 1], [], []>} : vector<16x64xbf16>, vector<64x64xbf16>, vector<16x64xf32> -> vector<16x64xf32>
    %c0_79 = arith.constant 0 : index
    %c0_80 = arith.constant 0 : index
    %c0_81 = arith.constant 0 : index
    %137 = vector.load %arg21[%c0_79, %c0_80, %c0_81] : memref<2x64x64xbf16, #tpu.memory_space<vmem>>, vector<1x64x64xbf16>
    %138 = vector.shape_cast %137 : vector<1x64x64xbf16> to vector<64x64xbf16>
    %139 = arith.truncf %3 : vector<16x64xf32> to vector<16x64xbf16>
    %cst_82 = arith.constant dense<0.000000e+00> : vector<16x64xf32>
    %140 = tpu.matmul %139, %138, %cst_82 {dimension_numbers = #tpu.dot_dimension_numbers<[1], [0], [0], [1], [0, 0, 1, 1], [], []>} : vector<16x64xbf16>, vector<64x64xbf16>, vector<16x64xf32> -> vector<16x64xf32>
    %141 = arith.truncf %132 : vector<16x64xf32> to vector<16x64xbf16>
    %142 = arith.truncf %136 : vector<16x64xf32> to vector<16x64xbf16>
    %cst_83 = arith.constant dense<0.000000e+00> : vector<16x16xf32>
    %143 = tpu.matmul %141, %142, %cst_83 {dimension_numbers = #tpu.dot_dimension_numbers<[1], [1], [0], [0], [0, 0, 1, 0], [], []>} : vector<16x64xbf16>, vector<16x64xbf16>, vector<16x16xf32> -> vector<16x16xf32>
    %144 = arith.addf %143, %128 : vector<16x16xf32>
    %cst_84 = arith.constant dense<0xFF800000> : vector<16xf32>
    %145 = vector.multi_reduction <maximumf>, %144, %cst_84 [1] : vector<16x16xf32> to vector<16xf32>
    %146 = vector.shape_cast %145 : vector<16xf32> to vector<16x1xf32>
    %147 = vector.broadcast %146 : vector<16x1xf32> to vector<16x16xf32>
    %148 = arith.subf %144, %147 : vector<16x16xf32>
    %149 = math.exp %148 : vector<16x16xf32>
    %cst_85 = arith.constant dense<0.000000e+00> : vector<16xf32>
    %150 = vector.multi_reduction <add>, %149, %cst_85 [1] : vector<16x16xf32> to vector<16xf32>
    %151 = vector.shape_cast %150 : vector<16xf32> to vector<16x1xf32>
    %152 = tpu.reciprocal %151 {approx = true} : vector<16x1xf32> -> vector<16x1xf32>
    %153 = vector.broadcast %152 : vector<16x1xf32> to vector<16x16xf32>
    %154 = arith.mulf %149, %153 : vector<16x16xf32>
    %155 = arith.truncf %154 : vector<16x16xf32> to vector<16x16xbf16>
    %156 = arith.truncf %140 : vector<16x64xf32> to vector<16x64xbf16>
    %cst_86 = arith.constant dense<0.000000e+00> : vector<16x64xf32>
    %157 = tpu.matmul %155, %156, %cst_86 {dimension_numbers = #tpu.dot_dimension_numbers<[1], [0], [0], [1], [0, 0, 1, 1], [], []>} : vector<16x16xbf16>, vector<16x64xbf16>, vector<16x64xf32> -> vector<16x64xf32>
    %c0_87 = arith.constant 0 : index
    %c0_88 = arith.constant 0 : index
    %c0_89 = arith.constant 0 : index
    %158 = vector.load %arg22[%c0_87, %c0_88, %c0_89] : memref<2x64x64xbf16, #tpu.memory_space<vmem>>, vector<1x64x64xbf16>
    %159 = vector.shape_cast %158 : vector<1x64x64xbf16> to vector<64x64xbf16>
    %160 = arith.truncf %157 : vector<16x64xf32> to vector<16x64xbf16>
    %cst_90 = arith.constant dense<0.000000e+00> : vector<16x64xf32>
    %161 = tpu.matmul %160, %159, %cst_90 {dimension_numbers = #tpu.dot_dimension_numbers<[1], [0], [0], [1], [0, 0, 1, 1], [], []>} : vector<16x64xbf16>, vector<64x64xbf16>, vector<16x64xf32> -> vector<16x64xf32>
    %c1_91 = arith.constant 1 : index
    %c0_92 = arith.constant 0 : index
    %c0_93 = arith.constant 0 : index
    %162 = vector.load %arg19[%c1_91, %c0_92, %c0_93] : memref<2x64x64xbf16, #tpu.memory_space<vmem>>, vector<1x64x64xbf16>
    %163 = vector.shape_cast %162 : vector<1x64x64xbf16> to vector<64x64xbf16>
    %164 = arith.truncf %127 : vector<16x64xf32> to vector<16x64xbf16>
    %cst_94 = arith.constant dense<0.000000e+00> : vector<16x64xf32>
    %165 = tpu.matmul %164, %163, %cst_94 {dimension_numbers = #tpu.dot_dimension_numbers<[1], [0], [0], [1], [0, 0, 1, 1], [], []>} : vector<16x64xbf16>, vector<64x64xbf16>, vector<16x64xf32> -> vector<16x64xf32>
    %c1_95 = arith.constant 1 : index
    %c0_96 = arith.constant 0 : index
    %c0_97 = arith.constant 0 : index
    %166 = vector.load %arg20[%c1_95, %c0_96, %c0_97] : memref<2x64x64xbf16, #tpu.memory_space<vmem>>, vector<1x64x64xbf16>
    %167 = vector.shape_cast %166 : vector<1x64x64xbf16> to vector<64x64xbf16>
    %168 = arith.truncf %3 : vector<16x64xf32> to vector<16x64xbf16>
    %cst_98 = arith.constant dense<0.000000e+00> : vector<16x64xf32>
    %169 = tpu.matmul %168, %167, %cst_98 {dimension_numbers = #tpu.dot_dimension_numbers<[1], [0], [0], [1], [0, 0, 1, 1], [], []>} : vector<16x64xbf16>, vector<64x64xbf16>, vector<16x64xf32> -> vector<16x64xf32>
    %c1_99 = arith.constant 1 : index
    %c0_100 = arith.constant 0 : index
    %c0_101 = arith.constant 0 : index
    %170 = vector.load %arg21[%c1_99, %c0_100, %c0_101] : memref<2x64x64xbf16, #tpu.memory_space<vmem>>, vector<1x64x64xbf16>
    %171 = vector.shape_cast %170 : vector<1x64x64xbf16> to vector<64x64xbf16>
    %172 = arith.truncf %3 : vector<16x64xf32> to vector<16x64xbf16>
    %cst_102 = arith.constant dense<0.000000e+00> : vector<16x64xf32>
    %173 = tpu.matmul %172, %171, %cst_102 {dimension_numbers = #tpu.dot_dimension_numbers<[1], [0], [0], [1], [0, 0, 1, 1], [], []>} : vector<16x64xbf16>, vector<64x64xbf16>, vector<16x64xf32> -> vector<16x64xf32>
    %174 = arith.truncf %165 : vector<16x64xf32> to vector<16x64xbf16>
    %175 = arith.truncf %169 : vector<16x64xf32> to vector<16x64xbf16>
    %cst_103 = arith.constant dense<0.000000e+00> : vector<16x16xf32>
    %176 = tpu.matmul %174, %175, %cst_103 {dimension_numbers = #tpu.dot_dimension_numbers<[1], [1], [0], [0], [0, 0, 1, 0], [], []>} : vector<16x64xbf16>, vector<16x64xbf16>, vector<16x16xf32> -> vector<16x16xf32>
    %177 = arith.addf %176, %128 : vector<16x16xf32>
    %cst_104 = arith.constant dense<0xFF800000> : vector<16xf32>
    %178 = vector.multi_reduction <maximumf>, %177, %cst_104 [1] : vector<16x16xf32> to vector<16xf32>
    %179 = vector.shape_cast %178 : vector<16xf32> to vector<16x1xf32>
    %180 = vector.broadcast %179 : vector<16x1xf32> to vector<16x16xf32>
    %181 = arith.subf %177, %180 : vector<16x16xf32>
    %182 = math.exp %181 : vector<16x16xf32>
    %cst_105 = arith.constant dense<0.000000e+00> : vector<16xf32>
    %183 = vector.multi_reduction <add>, %182, %cst_105 [1] : vector<16x16xf32> to vector<16xf32>
    %184 = vector.shape_cast %183 : vector<16xf32> to vector<16x1xf32>
    %185 = tpu.reciprocal %184 {approx = true} : vector<16x1xf32> -> vector<16x1xf32>
    %186 = vector.broadcast %185 : vector<16x1xf32> to vector<16x16xf32>
    %187 = arith.mulf %182, %186 : vector<16x16xf32>
    %188 = arith.truncf %187 : vector<16x16xf32> to vector<16x16xbf16>
    %189 = arith.truncf %173 : vector<16x64xf32> to vector<16x64xbf16>
    %cst_106 = arith.constant dense<0.000000e+00> : vector<16x64xf32>
    %190 = tpu.matmul %188, %189, %cst_106 {dimension_numbers = #tpu.dot_dimension_numbers<[1], [0], [0], [1], [0, 0, 1, 1], [], []>} : vector<16x16xbf16>, vector<16x64xbf16>, vector<16x64xf32> -> vector<16x64xf32>
    %c1_107 = arith.constant 1 : index
    %c0_108 = arith.constant 0 : index
    %c0_109 = arith.constant 0 : index
    %191 = vector.load %arg22[%c1_107, %c0_108, %c0_109] : memref<2x64x64xbf16, #tpu.memory_space<vmem>>, vector<1x64x64xbf16>
    %192 = vector.shape_cast %191 : vector<1x64x64xbf16> to vector<64x64xbf16>
    %193 = arith.truncf %190 : vector<16x64xf32> to vector<16x64xbf16>
    %cst_110 = arith.constant dense<0.000000e+00> : vector<16x64xf32>
    %194 = tpu.matmul %193, %192, %cst_110 {dimension_numbers = #tpu.dot_dimension_numbers<[1], [0], [0], [1], [0, 0, 1, 1], [], []>} : vector<16x64xbf16>, vector<64x64xbf16>, vector<16x64xf32> -> vector<16x64xf32>
    %195 = arith.addf %161, %194 : vector<16x64xf32>
    %c0_111 = arith.constant 0 : index
    %c0_112 = arith.constant 0 : index
    %196 = vector.load %arg23[%c0_111, %c0_112] : memref<1x64xf32, #tpu.memory_space<vmem>>, vector<1x64xf32>
    %197 = vector.broadcast %196 : vector<1x64xf32> to vector<16x64xf32>
    %198 = arith.addf %195, %197 : vector<16x64xf32>
    %c0_113 = arith.constant 0 : index
    %c0_114 = arith.constant 0 : index
    %199 = vector.load %arg34[%c0_113, %c0_114] : memref<64x64xbf16, #tpu.memory_space<vmem>>, vector<64x64xbf16>
    %200 = arith.truncf %198 : vector<16x64xf32> to vector<16x64xbf16>
    %cst_115 = arith.constant dense<0.000000e+00> : vector<16x64xf32>
    %201 = tpu.matmul %200, %199, %cst_115 {dimension_numbers = #tpu.dot_dimension_numbers<[1], [0], [0], [1], [0, 0, 1, 1], [], []>} : vector<16x64xbf16>, vector<64x64xbf16>, vector<16x64xf32> -> vector<16x64xf32>
    %c0_116 = arith.constant 0 : index
    %c0_117 = arith.constant 0 : index
    %202 = vector.load %arg35[%c0_116, %c0_117] : memref<64x64xbf16, #tpu.memory_space<vmem>>, vector<64x64xbf16>
    %203 = arith.truncf %124 : vector<16x64xf32> to vector<16x64xbf16>
    %cst_118 = arith.constant dense<0.000000e+00> : vector<16x64xf32>
    %204 = tpu.matmul %203, %202, %cst_118 {dimension_numbers = #tpu.dot_dimension_numbers<[1], [0], [0], [1], [0, 0, 1, 1], [], []>} : vector<16x64xbf16>, vector<64x64xbf16>, vector<16x64xf32> -> vector<16x64xf32>
    %205 = arith.addf %201, %204 : vector<16x64xf32>
    %206 = arith.addf %205, %1 : vector<16x64xf32>
    %207 = arith.mulf %206, %206 : vector<16x64xf32>
    %cst_119 = arith.constant dense<0.000000e+00> : vector<16xf32>
    %208 = vector.multi_reduction <add>, %207, %cst_119 [1] : vector<16x64xf32> to vector<16xf32>
    %209 = vector.shape_cast %208 : vector<16xf32> to vector<16x1xf32>
    %cst_120 = arith.constant 6.400000e+01 : f32
    %210 = vector.broadcast %cst_120 : f32 to vector<16x1xf32>
    %211 = arith.divf %209, %210 : vector<16x1xf32>
    %cst_121 = arith.constant 1.000000e-16 : f32
    %212 = vector.broadcast %cst_121 : f32 to vector<16x1xf32>
    %213 = arith.maximumf %211, %212 : vector<16x1xf32>
    %214 = math.rsqrt %213 : vector<16x1xf32>
    %215 = vector.broadcast %214 : vector<16x1xf32> to vector<16x64xf32>
    %216 = arith.mulf %206, %215 : vector<16x64xf32>
    %217 = vector.extract_strided_slice %4 {offsets = [2, 0], sizes = [1, 64], strides = [1, 1]} : vector<3x64xf32> to vector<1x64xf32>
    %218 = vector.broadcast %217 : vector<1x64xf32> to vector<16x64xf32>
    %219 = arith.mulf %216, %218 : vector<16x64xf32>
    %c0_122 = arith.constant 0 : index
    %c0_123 = arith.constant 0 : index
    %220 = vector.load %arg42[%c0_122, %c0_123] : memref<64x256xbf16, #tpu.memory_space<vmem>>, vector<64x256xbf16>
    %221 = arith.truncf %219 : vector<16x64xf32> to vector<16x64xbf16>
    %cst_124 = arith.constant dense<0.000000e+00> : vector<16x256xf32>
    %222 = tpu.matmul %221, %220, %cst_124 {dimension_numbers = #tpu.dot_dimension_numbers<[1], [0], [0], [1], [0, 0, 1, 1], [], []>} : vector<16x64xbf16>, vector<64x256xbf16>, vector<16x256xf32> -> vector<16x256xf32>
    %c0_125 = arith.constant 0 : index
    %c0_126 = arith.constant 0 : index
    %223 = vector.load %arg43[%c0_125, %c0_126] : memref<1x256xf32, #tpu.memory_space<vmem>>, vector<1x256xf32>
    %224 = vector.broadcast %223 : vector<1x256xf32> to vector<16x256xf32>
    %225 = arith.addf %222, %224 : vector<16x256xf32>
    %cst_127 = arith.constant 5.000000e-01 : f32
    %226 = vector.broadcast %cst_127 : f32 to vector<16x256xf32>
    %227 = arith.mulf %226, %225 : vector<16x256xf32>
    %cst_128 = arith.constant 4.471500e-02 : f32
    %228 = vector.broadcast %cst_128 : f32 to vector<16x256xf32>
    %229 = arith.mulf %228, %225 : vector<16x256xf32>
    %230 = arith.mulf %229, %225 : vector<16x256xf32>
    %231 = arith.mulf %230, %225 : vector<16x256xf32>
    %232 = arith.addf %225, %231 : vector<16x256xf32>
    %cst_129 = arith.constant 0.797884583 : f32
    %233 = vector.broadcast %cst_129 : f32 to vector<16x256xf32>
    %234 = arith.mulf %233, %232 : vector<16x256xf32>
    %235 = math.tanh %234 : vector<16x256xf32>
    %cst_130 = arith.constant 1.000000e+00 : f32
    %236 = vector.broadcast %cst_130 : f32 to vector<16x256xf32>
    %237 = arith.addf %236, %235 : vector<16x256xf32>
    %238 = arith.mulf %227, %237 : vector<16x256xf32>
    %c0_131 = arith.constant 0 : index
    %c0_132 = arith.constant 0 : index
    %239 = vector.load %arg44[%c0_131, %c0_132] : memref<256x64xbf16, #tpu.memory_space<vmem>>, vector<256x64xbf16>
    %240 = arith.truncf %238 : vector<16x256xf32> to vector<16x256xbf16>
    %cst_133 = arith.constant dense<0.000000e+00> : vector<16x64xf32>
    %241 = tpu.matmul %240, %239, %cst_133 {dimension_numbers = #tpu.dot_dimension_numbers<[1], [0], [0], [1], [0, 0, 1, 1], [], []>} : vector<16x256xbf16>, vector<256x64xbf16>, vector<16x64xf32> -> vector<16x64xf32>
    %c0_134 = arith.constant 0 : index
    %c0_135 = arith.constant 0 : index
    %242 = vector.load %arg45[%c0_134, %c0_135] : memref<1x64xf32, #tpu.memory_space<vmem>>, vector<1x64xf32>
    %243 = vector.broadcast %242 : vector<1x64xf32> to vector<16x64xf32>
    %244 = arith.addf %241, %243 : vector<16x64xf32>
    %245 = arith.addf %244, %206 : vector<16x64xf32>
    %c0_136 = arith.constant 0 : index
    %c0_137 = arith.constant 0 : index
    %246 = vector.load %arg50[%c0_136, %c0_137] : memref<16x64xf32, #tpu.memory_space<vmem>>, vector<16x64xf32>
    tpu.vector_store %arg50[%c0_136, %c0_137], %245 {strides = array<i32>} : memref<16x64xf32, #tpu.memory_space<vmem>>, vector<16x64xf32>,
    %247 = vector.extract_strided_slice %5 {offsets = [0, 0], sizes = [1, 64], strides = [1, 1]} : vector<3x64xf32> to vector<1x64xf32>
    %248 = vector.broadcast %247 : vector<1x64xf32> to vector<16x64xf32>
    %249 = arith.mulf %30, %248 : vector<16x64xf32>
    %c0_138 = arith.constant 0 : index
    %c0_139 = arith.constant 0 : index
    %250 = vector.load %arg12[%c0_138, %c0_139] : memref<16x16xf32, #tpu.memory_space<vmem>>, vector<16x16xf32>
    %c0_140 = arith.constant 0 : index
    %c0_141 = arith.constant 0 : index
    %c0_142 = arith.constant 0 : index
    %251 = vector.load %arg24[%c0_140, %c0_141, %c0_142] : memref<2x64x64xbf16, #tpu.memory_space<vmem>>, vector<1x64x64xbf16>
    %252 = vector.shape_cast %251 : vector<1x64x64xbf16> to vector<64x64xbf16>
    %253 = arith.truncf %249 : vector<16x64xf32> to vector<16x64xbf16>
    %cst_143 = arith.constant dense<0.000000e+00> : vector<16x64xf32>
    %254 = tpu.matmul %253, %252, %cst_143 {dimension_numbers = #tpu.dot_dimension_numbers<[1], [0], [0], [1], [0, 0, 1, 1], [], []>} : vector<16x64xbf16>, vector<64x64xbf16>, vector<16x64xf32> -> vector<16x64xf32>
    %c0_144 = arith.constant 0 : index
    %c0_145 = arith.constant 0 : index
    %c0_146 = arith.constant 0 : index
    %255 = vector.load %arg25[%c0_144, %c0_145, %c0_146] : memref<2x64x64xbf16, #tpu.memory_space<vmem>>, vector<1x64x64xbf16>
    %256 = vector.shape_cast %255 : vector<1x64x64xbf16> to vector<64x64xbf16>
    %257 = arith.truncf %249 : vector<16x64xf32> to vector<16x64xbf16>
    %cst_147 = arith.constant dense<0.000000e+00> : vector<16x64xf32>
    %258 = tpu.matmul %257, %256, %cst_147 {dimension_numbers = #tpu.dot_dimension_numbers<[1], [0], [0], [1], [0, 0, 1, 1], [], []>} : vector<16x64xbf16>, vector<64x64xbf16>, vector<16x64xf32> -> vector<16x64xf32>
    %c0_148 = arith.constant 0 : index
    %c0_149 = arith.constant 0 : index
    %c0_150 = arith.constant 0 : index
    %259 = vector.load %arg26[%c0_148, %c0_149, %c0_150] : memref<2x64x64xbf16, #tpu.memory_space<vmem>>, vector<1x64x64xbf16>
    %260 = vector.shape_cast %259 : vector<1x64x64xbf16> to vector<64x64xbf16>
    %261 = arith.truncf %249 : vector<16x64xf32> to vector<16x64xbf16>
    %cst_151 = arith.constant dense<0.000000e+00> : vector<16x64xf32>
    %262 = tpu.matmul %261, %260, %cst_151 {dimension_numbers = #tpu.dot_dimension_numbers<[1], [0], [0], [1], [0, 0, 1, 1], [], []>} : vector<16x64xbf16>, vector<64x64xbf16>, vector<16x64xf32> -> vector<16x64xf32>
    %263 = arith.mulf %254, %8 : vector<16x64xf32>
    %264 = arith.truncf %254 : vector<16x64xf32> to vector<16x64xbf16>
    %cst_152 = arith.constant dense<0.000000e+00> : vector<16x64xf32>
    %265 = tpu.matmul %264, %10, %cst_152 {dimension_numbers = #tpu.dot_dimension_numbers<[1], [0], [0], [1], [0, 0, 1, 1], [], []>} : vector<16x64xbf16>, vector<64x64xbf16>, vector<16x64xf32> -> vector<16x64xf32>
    %266 = arith.mulf %265, %9 : vector<16x64xf32>
    %267 = arith.addf %263, %266 : vector<16x64xf32>
    %268 = arith.mulf %258, %8 : vector<16x64xf32>
    %269 = arith.truncf %258 : vector<16x64xf32> to vector<16x64xbf16>
    %cst_153 = arith.constant dense<0.000000e+00> : vector<16x64xf32>
    %270 = tpu.matmul %269, %10, %cst_153 {dimension_numbers = #tpu.dot_dimension_numbers<[1], [0], [0], [1], [0, 0, 1, 1], [], []>} : vector<16x64xbf16>, vector<64x64xbf16>, vector<16x64xf32> -> vector<16x64xf32>
    %271 = arith.mulf %270, %9 : vector<16x64xf32>
    %272 = arith.addf %268, %271 : vector<16x64xf32>
    %273 = arith.truncf %267 : vector<16x64xf32> to vector<16x64xbf16>
    %274 = arith.truncf %272 : vector<16x64xf32> to vector<16x64xbf16>
    %cst_154 = arith.constant dense<0.000000e+00> : vector<16x16xf32>
    %275 = tpu.matmul %273, %274, %cst_154 {dimension_numbers = #tpu.dot_dimension_numbers<[1], [1], [0], [0], [0, 0, 1, 0], [], []>} : vector<16x64xbf16>, vector<16x64xbf16>, vector<16x16xf32> -> vector<16x16xf32>
    %276 = arith.addf %275, %250 : vector<16x16xf32>
    %cst_155 = arith.constant dense<0xFF800000> : vector<16xf32>
    %277 = vector.multi_reduction <maximumf>, %276, %cst_155 [1] : vector<16x16xf32> to vector<16xf32>
    %278 = vector.shape_cast %277 : vector<16xf32> to vector<16x1xf32>
    %279 = vector.broadcast %278 : vector<16x1xf32> to vector<16x16xf32>
    %280 = arith.subf %276, %279 : vector<16x16xf32>
    %281 = math.exp %280 : vector<16x16xf32>
    %cst_156 = arith.constant dense<0.000000e+00> : vector<16xf32>
    %282 = vector.multi_reduction <add>, %281, %cst_156 [1] : vector<16x16xf32> to vector<16xf32>
    %283 = vector.shape_cast %282 : vector<16xf32> to vector<16x1xf32>
    %284 = tpu.reciprocal %283 {approx = true} : vector<16x1xf32> -> vector<16x1xf32>
    %285 = vector.broadcast %284 : vector<16x1xf32> to vector<16x16xf32>
    %286 = arith.mulf %281, %285 : vector<16x16xf32>
    %287 = arith.truncf %286 : vector<16x16xf32> to vector<16x16xbf16>
    %288 = arith.truncf %262 : vector<16x64xf32> to vector<16x64xbf16>
    %cst_157 = arith.constant dense<0.000000e+00> : vector<16x64xf32>
    %289 = tpu.matmul %287, %288, %cst_157 {dimension_numbers = #tpu.dot_dimension_numbers<[1], [0], [0], [1], [0, 0, 1, 1], [], []>} : vector<16x16xbf16>, vector<16x64xbf16>, vector<16x64xf32> -> vector<16x64xf32>
    %c0_158 = arith.constant 0 : index
    %c0_159 = arith.constant 0 : index
    %c0_160 = arith.constant 0 : index
    %290 = vector.load %arg27[%c0_158, %c0_159, %c0_160] : memref<2x64x64xbf16, #tpu.memory_space<vmem>>, vector<1x64x64xbf16>
    %291 = vector.shape_cast %290 : vector<1x64x64xbf16> to vector<64x64xbf16>
    %292 = arith.truncf %289 : vector<16x64xf32> to vector<16x64xbf16>
    %cst_161 = arith.constant dense<0.000000e+00> : vector<16x64xf32>
    %293 = tpu.matmul %292, %291, %cst_161 {dimension_numbers = #tpu.dot_dimension_numbers<[1], [0], [0], [1], [0, 0, 1, 1], [], []>} : vector<16x64xbf16>, vector<64x64xbf16>, vector<16x64xf32> -> vector<16x64xf32>
    %c1_162 = arith.constant 1 : index
    %c0_163 = arith.constant 0 : index
    %c0_164 = arith.constant 0 : index
    %294 = vector.load %arg24[%c1_162, %c0_163, %c0_164] : memref<2x64x64xbf16, #tpu.memory_space<vmem>>, vector<1x64x64xbf16>
    %295 = vector.shape_cast %294 : vector<1x64x64xbf16> to vector<64x64xbf16>
    %296 = arith.truncf %249 : vector<16x64xf32> to vector<16x64xbf16>
    %cst_165 = arith.constant dense<0.000000e+00> : vector<16x64xf32>
    %297 = tpu.matmul %296, %295, %cst_165 {dimension_numbers = #tpu.dot_dimension_numbers<[1], [0], [0], [1], [0, 0, 1, 1], [], []>} : vector<16x64xbf16>, vector<64x64xbf16>, vector<16x64xf32> -> vector<16x64xf32>
    %c1_166 = arith.constant 1 : index
    %c0_167 = arith.constant 0 : index
    %c0_168 = arith.constant 0 : index
    %298 = vector.load %arg25[%c1_166, %c0_167, %c0_168] : memref<2x64x64xbf16, #tpu.memory_space<vmem>>, vector<1x64x64xbf16>
    %299 = vector.shape_cast %298 : vector<1x64x64xbf16> to vector<64x64xbf16>
    %300 = arith.truncf %249 : vector<16x64xf32> to vector<16x64xbf16>
    %cst_169 = arith.constant dense<0.000000e+00> : vector<16x64xf32>
    %301 = tpu.matmul %300, %299, %cst_169 {dimension_numbers = #tpu.dot_dimension_numbers<[1], [0], [0], [1], [0, 0, 1, 1], [], []>} : vector<16x64xbf16>, vector<64x64xbf16>, vector<16x64xf32> -> vector<16x64xf32>
    %c1_170 = arith.constant 1 : index
    %c0_171 = arith.constant 0 : index
    %c0_172 = arith.constant 0 : index
    %302 = vector.load %arg26[%c1_170, %c0_171, %c0_172] : memref<2x64x64xbf16, #tpu.memory_space<vmem>>, vector<1x64x64xbf16>
    %303 = vector.shape_cast %302 : vector<1x64x64xbf16> to vector<64x64xbf16>
    %304 = arith.truncf %249 : vector<16x64xf32> to vector<16x64xbf16>
    %cst_173 = arith.constant dense<0.000000e+00> : vector<16x64xf32>
    %305 = tpu.matmul %304, %303, %cst_173 {dimension_numbers = #tpu.dot_dimension_numbers<[1], [0], [0], [1], [0, 0, 1, 1], [], []>} : vector<16x64xbf16>, vector<64x64xbf16>, vector<16x64xf32> -> vector<16x64xf32>
    %306 = arith.mulf %297, %8 : vector<16x64xf32>
    %307 = arith.truncf %297 : vector<16x64xf32> to vector<16x64xbf16>
    %cst_174 = arith.constant dense<0.000000e+00> : vector<16x64xf32>
    %308 = tpu.matmul %307, %10, %cst_174 {dimension_numbers = #tpu.dot_dimension_numbers<[1], [0], [0], [1], [0, 0, 1, 1], [], []>} : vector<16x64xbf16>, vector<64x64xbf16>, vector<16x64xf32> -> vector<16x64xf32>
    %309 = arith.mulf %308, %9 : vector<16x64xf32>
    %310 = arith.addf %306, %309 : vector<16x64xf32>
    %311 = arith.mulf %301, %8 : vector<16x64xf32>
    %312 = arith.truncf %301 : vector<16x64xf32> to vector<16x64xbf16>
    %cst_175 = arith.constant dense<0.000000e+00> : vector<16x64xf32>
    %313 = tpu.matmul %312, %10, %cst_175 {dimension_numbers = #tpu.dot_dimension_numbers<[1], [0], [0], [1], [0, 0, 1, 1], [], []>} : vector<16x64xbf16>, vector<64x64xbf16>, vector<16x64xf32> -> vector<16x64xf32>
    %314 = arith.mulf %313, %9 : vector<16x64xf32>
    %315 = arith.addf %311, %314 : vector<16x64xf32>
    %316 = arith.truncf %310 : vector<16x64xf32> to vector<16x64xbf16>
    %317 = arith.truncf %315 : vector<16x64xf32> to vector<16x64xbf16>
    %cst_176 = arith.constant dense<0.000000e+00> : vector<16x16xf32>
    %318 = tpu.matmul %316, %317, %cst_176 {dimension_numbers = #tpu.dot_dimension_numbers<[1], [1], [0], [0], [0, 0, 1, 0], [], []>} : vector<16x64xbf16>, vector<16x64xbf16>, vector<16x16xf32> -> vector<16x16xf32>
    %319 = arith.addf %318, %250 : vector<16x16xf32>
    %cst_177 = arith.constant dense<0xFF800000> : vector<16xf32>
    %320 = vector.multi_reduction <maximumf>, %319, %cst_177 [1] : vector<16x16xf32> to vector<16xf32>
    %321 = vector.shape_cast %320 : vector<16xf32> to vector<16x1xf32>
    %322 = vector.broadcast %321 : vector<16x1xf32> to vector<16x16xf32>
    %323 = arith.subf %319, %322 : vector<16x16xf32>
    %324 = math.exp %323 : vector<16x16xf32>
    %cst_178 = arith.constant dense<0.000000e+00> : vector<16xf32>
    %325 = vector.multi_reduction <add>, %324, %cst_178 [1] : vector<16x16xf32> to vector<16xf32>
    %326 = vector.shape_cast %325 : vector<16xf32> to vector<16x1xf32>
    %327 = tpu.reciprocal %326 {approx = true} : vector<16x1xf32> -> vector<16x1xf32>
    %328 = vector.broadcast %327 : vector<16x1xf32> to vector<16x16xf32>
    %329 = arith.mulf %324, %328 : vector<16x16xf32>
    %330 = arith.truncf %329 : vector<16x16xf32> to vector<16x16xbf16>
    %331 = arith.truncf %305 : vector<16x64xf32> to vector<16x64xbf16>
    %cst_179 = arith.constant dense<0.000000e+00> : vector<16x64xf32>
    %332 = tpu.matmul %330, %331, %cst_179 {dimension_numbers = #tpu.dot_dimension_numbers<[1], [0], [0], [1], [0, 0, 1, 1], [], []>} : vector<16x16xbf16>, vector<16x64xbf16>, vector<16x64xf32> -> vector<16x64xf32>
    %c1_180 = arith.constant 1 : index
    %c0_181 = arith.constant 0 : index
    %c0_182 = arith.constant 0 : index
    %333 = vector.load %arg27[%c1_180, %c0_181, %c0_182] : memref<2x64x64xbf16, #tpu.memory_space<vmem>>, vector<1x64x64xbf16>
    %334 = vector.shape_cast %333 : vector<1x64x64xbf16> to vector<64x64xbf16>
    %335 = arith.truncf %332 : vector<16x64xf32> to vector<16x64xbf16>
    %cst_183 = arith.constant dense<0.000000e+00> : vector<16x64xf32>
    %336 = tpu.matmul %335, %334, %cst_183 {dimension_numbers = #tpu.dot_dimension_numbers<[1], [0], [0], [1], [0, 0, 1, 1], [], []>} : vector<16x64xbf16>, vector<64x64xbf16>, vector<16x64xf32> -> vector<16x64xf32>
    %337 = arith.addf %293, %336 : vector<16x64xf32>
    %c0_184 = arith.constant 0 : index
    %c0_185 = arith.constant 0 : index
    %338 = vector.load %arg28[%c0_184, %c0_185] : memref<1x64xf32, #tpu.memory_space<vmem>>, vector<1x64xf32>
    %339 = vector.broadcast %338 : vector<1x64xf32> to vector<16x64xf32>
    %340 = arith.addf %337, %339 : vector<16x64xf32>
    %341 = vector.extract_strided_slice %5 {offsets = [1, 0], sizes = [1, 64], strides = [1, 1]} : vector<3x64xf32> to vector<1x64xf32>
    %342 = vector.broadcast %341 : vector<1x64xf32> to vector<16x64xf32>
    %343 = arith.mulf %30, %342 : vector<16x64xf32>
    %c0_186 = arith.constant 0 : index
    %c0_187 = arith.constant 0 : index
    %344 = vector.load %arg13[%c0_186, %c0_187] : memref<16x16xf32, #tpu.memory_space<vmem>>, vector<16x16xf32>
    %c0_188 = arith.constant 0 : index
    %c0_189 = arith.constant 0 : index
    %c0_190 = arith.constant 0 : index
    %345 = vector.load %arg29[%c0_188, %c0_189, %c0_190] : memref<2x64x64xbf16, #tpu.memory_space<vmem>>, vector<1x64x64xbf16>
    %346 = vector.shape_cast %345 : vector<1x64x64xbf16> to vector<64x64xbf16>
    %347 = arith.truncf %343 : vector<16x64xf32> to vector<16x64xbf16>
    %cst_191 = arith.constant dense<0.000000e+00> : vector<16x64xf32>
    %348 = tpu.matmul %347, %346, %cst_191 {dimension_numbers = #tpu.dot_dimension_numbers<[1], [0], [0], [1], [0, 0, 1, 1], [], []>} : vector<16x64xbf16>, vector<64x64xbf16>, vector<16x64xf32> -> vector<16x64xf32>
    %c0_192 = arith.constant 0 : index
    %c0_193 = arith.constant 0 : index
    %c0_194 = arith.constant 0 : index
    %349 = vector.load %arg30[%c0_192, %c0_193, %c0_194] : memref<2x64x64xbf16, #tpu.memory_space<vmem>>, vector<1x64x64xbf16>
    %350 = vector.shape_cast %349 : vector<1x64x64xbf16> to vector<64x64xbf16>
    %351 = arith.truncf %1 : vector<16x64xf32> to vector<16x64xbf16>
    %cst_195 = arith.constant dense<0.000000e+00> : vector<16x64xf32>
    %352 = tpu.matmul %351, %350, %cst_195 {dimension_numbers = #tpu.dot_dimension_numbers<[1], [0], [0], [1], [0, 0, 1, 1], [], []>} : vector<16x64xbf16>, vector<64x64xbf16>, vector<16x64xf32> -> vector<16x64xf32>
    %c0_196 = arith.constant 0 : index
    %c0_197 = arith.constant 0 : index
    %c0_198 = arith.constant 0 : index
    %353 = vector.load %arg31[%c0_196, %c0_197, %c0_198] : memref<2x64x64xbf16, #tpu.memory_space<vmem>>, vector<1x64x64xbf16>
    %354 = vector.shape_cast %353 : vector<1x64x64xbf16> to vector<64x64xbf16>
    %355 = arith.truncf %1 : vector<16x64xf32> to vector<16x64xbf16>
    %cst_199 = arith.constant dense<0.000000e+00> : vector<16x64xf32>
    %356 = tpu.matmul %355, %354, %cst_199 {dimension_numbers = #tpu.dot_dimension_numbers<[1], [0], [0], [1], [0, 0, 1, 1], [], []>} : vector<16x64xbf16>, vector<64x64xbf16>, vector<16x64xf32> -> vector<16x64xf32>
    %357 = arith.truncf %348 : vector<16x64xf32> to vector<16x64xbf16>
    %358 = arith.truncf %352 : vector<16x64xf32> to vector<16x64xbf16>
    %cst_200 = arith.constant dense<0.000000e+00> : vector<16x16xf32>
    %359 = tpu.matmul %357, %358, %cst_200 {dimension_numbers = #tpu.dot_dimension_numbers<[1], [1], [0], [0], [0, 0, 1, 0], [], []>} : vector<16x64xbf16>, vector<16x64xbf16>, vector<16x16xf32> -> vector<16x16xf32>
    %360 = arith.addf %359, %344 : vector<16x16xf32>
    %cst_201 = arith.constant dense<0xFF800000> : vector<16xf32>
    %361 = vector.multi_reduction <maximumf>, %360, %cst_201 [1] : vector<16x16xf32> to vector<16xf32>
    %362 = vector.shape_cast %361 : vector<16xf32> to vector<16x1xf32>
    %363 = vector.broadcast %362 : vector<16x1xf32> to vector<16x16xf32>
    %364 = arith.subf %360, %363 : vector<16x16xf32>
    %365 = math.exp %364 : vector<16x16xf32>
    %cst_202 = arith.constant dense<0.000000e+00> : vector<16xf32>
    %366 = vector.multi_reduction <add>, %365, %cst_202 [1] : vector<16x16xf32> to vector<16xf32>
    %367 = vector.shape_cast %366 : vector<16xf32> to vector<16x1xf32>
    %368 = tpu.reciprocal %367 {approx = true} : vector<16x1xf32> -> vector<16x1xf32>
    %369 = vector.broadcast %368 : vector<16x1xf32> to vector<16x16xf32>
    %370 = arith.mulf %365, %369 : vector<16x16xf32>
    %371 = arith.truncf %370 : vector<16x16xf32> to vector<16x16xbf16>
    %372 = arith.truncf %356 : vector<16x64xf32> to vector<16x64xbf16>
    %cst_203 = arith.constant dense<0.000000e+00> : vector<16x64xf32>
    %373 = tpu.matmul %371, %372, %cst_203 {dimension_numbers = #tpu.dot_dimension_numbers<[1], [0], [0], [1], [0, 0, 1, 1], [], []>} : vector<16x16xbf16>, vector<16x64xbf16>, vector<16x64xf32> -> vector<16x64xf32>
    %c0_204 = arith.constant 0 : index
    %c0_205 = arith.constant 0 : index
    %c0_206 = arith.constant 0 : index
    %374 = vector.load %arg32[%c0_204, %c0_205, %c0_206] : memref<2x64x64xbf16, #tpu.memory_space<vmem>>, vector<1x64x64xbf16>
    %375 = vector.shape_cast %374 : vector<1x64x64xbf16> to vector<64x64xbf16>
    %376 = arith.truncf %373 : vector<16x64xf32> to vector<16x64xbf16>
    %cst_207 = arith.constant dense<0.000000e+00> : vector<16x64xf32>
    %377 = tpu.matmul %376, %375, %cst_207 {dimension_numbers = #tpu.dot_dimension_numbers<[1], [0], [0], [1], [0, 0, 1, 1], [], []>} : vector<16x64xbf16>, vector<64x64xbf16>, vector<16x64xf32> -> vector<16x64xf32>
    %c1_208 = arith.constant 1 : index
    %c0_209 = arith.constant 0 : index
    %c0_210 = arith.constant 0 : index
    %378 = vector.load %arg29[%c1_208, %c0_209, %c0_210] : memref<2x64x64xbf16, #tpu.memory_space<vmem>>, vector<1x64x64xbf16>
    %379 = vector.shape_cast %378 : vector<1x64x64xbf16> to vector<64x64xbf16>
    %380 = arith.truncf %343 : vector<16x64xf32> to vector<16x64xbf16>
    %cst_211 = arith.constant dense<0.000000e+00> : vector<16x64xf32>
    %381 = tpu.matmul %380, %379, %cst_211 {dimension_numbers = #tpu.dot_dimension_numbers<[1], [0], [0], [1], [0, 0, 1, 1], [], []>} : vector<16x64xbf16>, vector<64x64xbf16>, vector<16x64xf32> -> vector<16x64xf32>
    %c1_212 = arith.constant 1 : index
    %c0_213 = arith.constant 0 : index
    %c0_214 = arith.constant 0 : index
    %382 = vector.load %arg30[%c1_212, %c0_213, %c0_214] : memref<2x64x64xbf16, #tpu.memory_space<vmem>>, vector<1x64x64xbf16>
    %383 = vector.shape_cast %382 : vector<1x64x64xbf16> to vector<64x64xbf16>
    %384 = arith.truncf %1 : vector<16x64xf32> to vector<16x64xbf16>
    %cst_215 = arith.constant dense<0.000000e+00> : vector<16x64xf32>
    %385 = tpu.matmul %384, %383, %cst_215 {dimension_numbers = #tpu.dot_dimension_numbers<[1], [0], [0], [1], [0, 0, 1, 1], [], []>} : vector<16x64xbf16>, vector<64x64xbf16>, vector<16x64xf32> -> vector<16x64xf32>
    %c1_216 = arith.constant 1 : index
    %c0_217 = arith.constant 0 : index
    %c0_218 = arith.constant 0 : index
    %386 = vector.load %arg31[%c1_216, %c0_217, %c0_218] : memref<2x64x64xbf16, #tpu.memory_space<vmem>>, vector<1x64x64xbf16>
    %387 = vector.shape_cast %386 : vector<1x64x64xbf16> to vector<64x64xbf16>
    %388 = arith.truncf %1 : vector<16x64xf32> to vector<16x64xbf16>
    %cst_219 = arith.constant dense<0.000000e+00> : vector<16x64xf32>
    %389 = tpu.matmul %388, %387, %cst_219 {dimension_numbers = #tpu.dot_dimension_numbers<[1], [0], [0], [1], [0, 0, 1, 1], [], []>} : vector<16x64xbf16>, vector<64x64xbf16>, vector<16x64xf32> -> vector<16x64xf32>
    %390 = arith.truncf %381 : vector<16x64xf32> to vector<16x64xbf16>
    %391 = arith.truncf %385 : vector<16x64xf32> to vector<16x64xbf16>
    %cst_220 = arith.constant dense<0.000000e+00> : vector<16x16xf32>
    %392 = tpu.matmul %390, %391, %cst_220 {dimension_numbers = #tpu.dot_dimension_numbers<[1], [1], [0], [0], [0, 0, 1, 0], [], []>} : vector<16x64xbf16>, vector<16x64xbf16>, vector<16x16xf32> -> vector<16x16xf32>
    %393 = arith.addf %392, %344 : vector<16x16xf32>
    %cst_221 = arith.constant dense<0xFF800000> : vector<16xf32>
    %394 = vector.multi_reduction <maximumf>, %393, %cst_221 [1] : vector<16x16xf32> to vector<16xf32>
    %395 = vector.shape_cast %394 : vector<16xf32> to vector<16x1xf32>
    %396 = vector.broadcast %395 : vector<16x1xf32> to vector<16x16xf32>
    %397 = arith.subf %393, %396 : vector<16x16xf32>
    %398 = math.exp %397 : vector<16x16xf32>
    %cst_222 = arith.constant dense<0.000000e+00> : vector<16xf32>
    %399 = vector.multi_reduction <add>, %398, %cst_222 [1] : vector<16x16xf32> to vector<16xf32>
    %400 = vector.shape_cast %399 : vector<16xf32> to vector<16x1xf32>
    %401 = tpu.reciprocal %400 {approx = true} : vector<16x1xf32> -> vector<16x1xf32>
    %402 = vector.broadcast %401 : vector<16x1xf32> to vector<16x16xf32>
    %403 = arith.mulf %398, %402 : vector<16x16xf32>
    %404 = arith.truncf %403 : vector<16x16xf32> to vector<16x16xbf16>
    %405 = arith.truncf %389 : vector<16x64xf32> to vector<16x64xbf16>
    %cst_223 = arith.constant dense<0.000000e+00> : vector<16x64xf32>
    %406 = tpu.matmul %404, %405, %cst_223 {dimension_numbers = #tpu.dot_dimension_numbers<[1], [0], [0], [1], [0, 0, 1, 1], [], []>} : vector<16x16xbf16>, vector<16x64xbf16>, vector<16x64xf32> -> vector<16x64xf32>
    %c1_224 = arith.constant 1 : index
    %c0_225 = arith.constant 0 : index
    %c0_226 = arith.constant 0 : index
    %407 = vector.load %arg32[%c1_224, %c0_225, %c0_226] : memref<2x64x64xbf16, #tpu.memory_space<vmem>>, vector<1x64x64xbf16>
    %408 = vector.shape_cast %407 : vector<1x64x64xbf16> to vector<64x64xbf16>
    %409 = arith.truncf %406 : vector<16x64xf32> to vector<16x64xbf16>
    %cst_227 = arith.constant dense<0.000000e+00> : vector<16x64xf32>
    %410 = tpu.matmul %409, %408, %cst_227 {dimension_numbers = #tpu.dot_dimension_numbers<[1], [0], [0], [1], [0, 0, 1, 1], [], []>} : vector<16x64xbf16>, vector<64x64xbf16>, vector<16x64xf32> -> vector<16x64xf32>
    %411 = arith.addf %377, %410 : vector<16x64xf32>
    %c0_228 = arith.constant 0 : index
    %c0_229 = arith.constant 0 : index
    %412 = vector.load %arg33[%c0_228, %c0_229] : memref<1x64xf32, #tpu.memory_space<vmem>>, vector<1x64xf32>
    %413 = vector.broadcast %412 : vector<1x64xf32> to vector<16x64xf32>
    %414 = arith.addf %411, %413 : vector<16x64xf32>
    %c0_230 = arith.constant 0 : index
    %c0_231 = arith.constant 0 : index
    %415 = vector.load %arg36[%c0_230, %c0_231] : memref<64x64xbf16, #tpu.memory_space<vmem>>, vector<64x64xbf16>
    %416 = arith.truncf %414 : vector<16x64xf32> to vector<16x64xbf16>
    %cst_232 = arith.constant dense<0.000000e+00> : vector<16x64xf32>
    %417 = tpu.matmul %416, %415, %cst_232 {dimension_numbers = #tpu.dot_dimension_numbers<[1], [0], [0], [1], [0, 0, 1, 1], [], []>} : vector<16x64xbf16>, vector<64x64xbf16>, vector<16x64xf32> -> vector<16x64xf32>
    %c0_233 = arith.constant 0 : index
    %c0_234 = arith.constant 0 : index
    %418 = vector.load %arg37[%c0_233, %c0_234] : memref<64x64xbf16, #tpu.memory_space<vmem>>, vector<64x64xbf16>
    %419 = arith.truncf %340 : vector<16x64xf32> to vector<16x64xbf16>
    %cst_235 = arith.constant dense<0.000000e+00> : vector<16x64xf32>
    %420 = tpu.matmul %419, %418, %cst_235 {dimension_numbers = #tpu.dot_dimension_numbers<[1], [0], [0], [1], [0, 0, 1, 1], [], []>} : vector<16x64xbf16>, vector<64x64xbf16>, vector<16x64xf32> -> vector<16x64xf32>
    %421 = arith.addf %417, %420 : vector<16x64xf32>
    %c0_236 = arith.constant 0 : index
    %c0_237 = arith.constant 0 : index
    %422 = vector.load %arg38[%c0_236, %c0_237] : memref<64x192xbf16, #tpu.memory_space<vmem>>, vector<64x192xbf16>
    %423 = arith.truncf %421 : vector<16x64xf32> to vector<16x64xbf16>
    %cst_238 = arith.constant dense<0.000000e+00> : vector<16x192xf32>
    %424 = tpu.matmul %423, %422, %cst_238 {dimension_numbers = #tpu.dot_dimension_numbers<[1], [0], [0], [1], [0, 0, 1, 1], [], []>} : vector<16x64xbf16>, vector<64x192xbf16>, vector<16x192xf32> -> vector<16x192xf32>
    %c0_239 = arith.constant 0 : index
    %c0_240 = arith.constant 0 : index
    %425 = vector.load %arg39[%c0_239, %c0_240] : memref<1x192xf32, #tpu.memory_space<vmem>>, vector<1x192xf32>
    %426 = vector.broadcast %425 : vector<1x192xf32> to vector<16x192xf32>
    %427 = arith.addf %424, %426 : vector<16x192xf32>
    %428 = vector.extract_strided_slice %427 {offsets = [0, 0], sizes = [16, 64], strides = [1, 1]} : vector<16x192xf32> to vector<16x64xf32>
    %429 = math.tanh %428 : vector<16x64xf32>
    %430 = vector.extract_strided_slice %427 {offsets = [0, 64], sizes = [16, 64], strides = [1, 1]} : vector<16x192xf32> to vector<16x64xf32>
    %cst_241 = arith.constant 1.000000e+00 : f32
    %431 = vector.broadcast %cst_241 : f32 to vector<16x64xf32>
    %432 = arith.subf %430, %431 : vector<16x64xf32>
    %433 = arith.negf %432 : vector<16x64xf32>
    %434 = math.exp %433 : vector<16x64xf32>
    %cst_242 = arith.constant 1.000000e+00 : f32
    %435 = vector.broadcast %cst_242 : f32 to vector<16x64xf32>
    %436 = arith.addf %435, %434 : vector<16x64xf32>
    %437 = arith.divf %435, %436 : vector<16x64xf32>
    %438 = vector.extract_strided_slice %427 {offsets = [0, 128], sizes = [16, 64], strides = [1, 1]} : vector<16x192xf32> to vector<16x64xf32>
    %cst_243 = arith.constant 1.000000e+00 : f32
    %439 = vector.broadcast %cst_243 : f32 to vector<16x64xf32>
    %440 = arith.addf %438, %439 : vector<16x64xf32>
    %441 = arith.negf %440 : vector<16x64xf32>
    %442 = math.exp %441 : vector<16x64xf32>
    %cst_244 = arith.constant 1.000000e+00 : f32
    %443 = vector.broadcast %cst_244 : f32 to vector<16x64xf32>
    %444 = arith.addf %443, %442 : vector<16x64xf32>
    %445 = arith.divf %443, %444 : vector<16x64xf32>
    %446 = arith.mulf %3, %445 : vector<16x64xf32>
    %447 = arith.mulf %429, %437 : vector<16x64xf32>
    %448 = arith.addf %446, %447 : vector<16x64xf32>
    %449 = arith.mulf %448, %448 : vector<16x64xf32>
    %cst_245 = arith.constant dense<0.000000e+00> : vector<16xf32>
    %450 = vector.multi_reduction <add>, %449, %cst_245 [1] : vector<16x64xf32> to vector<16xf32>
    %451 = vector.shape_cast %450 : vector<16xf32> to vector<16x1xf32>
    %cst_246 = arith.constant 6.400000e+01 : f32
    %452 = vector.broadcast %cst_246 : f32 to vector<16x1xf32>
    %453 = arith.divf %451, %452 : vector<16x1xf32>
    %cst_247 = arith.constant 1.000000e-16 : f32
    %454 = vector.broadcast %cst_247 : f32 to vector<16x1xf32>
    %455 = arith.maximumf %453, %454 : vector<16x1xf32>
    %456 = math.rsqrt %455 : vector<16x1xf32>
    %457 = vector.broadcast %456 : vector<16x1xf32> to vector<16x64xf32>
    %458 = arith.mulf %448, %457 : vector<16x64xf32>
    %459 = vector.extract_strided_slice %5 {offsets = [2, 0], sizes = [1, 64], strides = [1, 1]} : vector<3x64xf32> to vector<1x64xf32>
    %460 = vector.broadcast %459 : vector<1x64xf32> to vector<16x64xf32>
    %461 = arith.mulf %458, %460 : vector<16x64xf32>
    %c0_248 = arith.constant 0 : index
    %c0_249 = arith.constant 0 : index
    %462 = vector.load %arg46[%c0_248, %c0_249] : memref<64x256xbf16, #tpu.memory_space<vmem>>, vector<64x256xbf16>
    %463 = arith.truncf %461 : vector<16x64xf32> to vector<16x64xbf16>
    %cst_250 = arith.constant dense<0.000000e+00> : vector<16x256xf32>
    %464 = tpu.matmul %463, %462, %cst_250 {dimension_numbers = #tpu.dot_dimension_numbers<[1], [0], [0], [1], [0, 0, 1, 1], [], []>} : vector<16x64xbf16>, vector<64x256xbf16>, vector<16x256xf32> -> vector<16x256xf32>
    %c0_251 = arith.constant 0 : index
    %c0_252 = arith.constant 0 : index
    %465 = vector.load %arg47[%c0_251, %c0_252] : memref<1x256xf32, #tpu.memory_space<vmem>>, vector<1x256xf32>
    %466 = vector.broadcast %465 : vector<1x256xf32> to vector<16x256xf32>
    %467 = arith.addf %464, %466 : vector<16x256xf32>
    %cst_253 = arith.constant 5.000000e-01 : f32
    %468 = vector.broadcast %cst_253 : f32 to vector<16x256xf32>
    %469 = arith.mulf %468, %467 : vector<16x256xf32>
    %cst_254 = arith.constant 4.471500e-02 : f32
    %470 = vector.broadcast %cst_254 : f32 to vector<16x256xf32>
    %471 = arith.mulf %470, %467 : vector<16x256xf32>
    %472 = arith.mulf %471, %467 : vector<16x256xf32>
    %473 = arith.mulf %472, %467 : vector<16x256xf32>
    %474 = arith.addf %467, %473 : vector<16x256xf32>
    %cst_255 = arith.constant 0.797884583 : f32
    %475 = vector.broadcast %cst_255 : f32 to vector<16x256xf32>
    %476 = arith.mulf %475, %474 : vector<16x256xf32>
    %477 = math.tanh %476 : vector<16x256xf32>
    %cst_256 = arith.constant 1.000000e+00 : f32
    %478 = vector.broadcast %cst_256 : f32 to vector<16x256xf32>
    %479 = arith.addf %478, %477 : vector<16x256xf32>
    %480 = arith.mulf %469, %479 : vector<16x256xf32>
    %c0_257 = arith.constant 0 : index
    %c0_258 = arith.constant 0 : index
    %481 = vector.load %arg48[%c0_257, %c0_258] : memref<256x64xbf16, #tpu.memory_space<vmem>>, vector<256x64xbf16>
    %482 = arith.truncf %480 : vector<16x256xf32> to vector<16x256xbf16>
    %cst_259 = arith.constant dense<0.000000e+00> : vector<16x64xf32>
    %483 = tpu.matmul %482, %481, %cst_259 {dimension_numbers = #tpu.dot_dimension_numbers<[1], [0], [0], [1], [0, 0, 1, 1], [], []>} : vector<16x256xbf16>, vector<256x64xbf16>, vector<16x64xf32> -> vector<16x64xf32>
    %c0_260 = arith.constant 0 : index
    %c0_261 = arith.constant 0 : index
    %484 = vector.load %arg49[%c0_260, %c0_261] : memref<1x64xf32, #tpu.memory_space<vmem>>, vector<1x64xf32>
    %485 = vector.broadcast %484 : vector<1x64xf32> to vector<16x64xf32>
    %486 = arith.addf %483, %485 : vector<16x64xf32>
    %c0_262 = arith.constant 0 : index
    %c0_263 = arith.constant 0 : index
    %487 = vector.load %arg40[%c0_262, %c0_263] : memref<64x192xbf16, #tpu.memory_space<vmem>>, vector<64x192xbf16>
    %488 = arith.truncf %486 : vector<16x64xf32> to vector<16x64xbf16>
    %cst_264 = arith.constant dense<0.000000e+00> : vector<16x192xf32>
    %489 = tpu.matmul %488, %487, %cst_264 {dimension_numbers = #tpu.dot_dimension_numbers<[1], [0], [0], [1], [0, 0, 1, 1], [], []>} : vector<16x64xbf16>, vector<64x192xbf16>, vector<16x192xf32> -> vector<16x192xf32>
    %c0_265 = arith.constant 0 : index
    %c0_266 = arith.constant 0 : index
    %490 = vector.load %arg41[%c0_265, %c0_266] : memref<1x192xf32, #tpu.memory_space<vmem>>, vector<1x192xf32>
    %491 = vector.broadcast %490 : vector<1x192xf32> to vector<16x192xf32>
    %492 = arith.addf %489, %491 : vector<16x192xf32>
    %493 = vector.extract_strided_slice %492 {offsets = [0, 0], sizes = [16, 64], strides = [1, 1]} : vector<16x192xf32> to vector<16x64xf32>
    %494 = math.tanh %493 : vector<16x64xf32>
    %495 = vector.extract_strided_slice %492 {offsets = [0, 64], sizes = [16, 64], strides = [1, 1]} : vector<16x192xf32> to vector<16x64xf32>
    %cst_267 = arith.constant 1.000000e+00 : f32
    %496 = vector.broadcast %cst_267 : f32 to vector<16x64xf32>
    %497 = arith.subf %495, %496 : vector<16x64xf32>
    %498 = arith.negf %497 : vector<16x64xf32>
    %499 = math.exp %498 : vector<16x64xf32>
    %cst_268 = arith.constant 1.000000e+00 : f32
    %500 = vector.broadcast %cst_268 : f32 to vector<16x64xf32>
    %501 = arith.addf %500, %499 : vector<16x64xf32>
    %502 = arith.divf %500, %501 : vector<16x64xf32>
    %503 = vector.extract_strided_slice %492 {offsets = [0, 128], sizes = [16, 64], strides = [1, 1]} : vector<16x192xf32> to vector<16x64xf32>
    %cst_269 = arith.constant 1.000000e+00 : f32
    %504 = vector.broadcast %cst_269 : f32 to vector<16x64xf32>
    %505 = arith.addf %503, %504 : vector<16x64xf32>
    %506 = arith.negf %505 : vector<16x64xf32>
    %507 = math.exp %506 : vector<16x64xf32>
    %cst_270 = arith.constant 1.000000e+00 : f32
    %508 = vector.broadcast %cst_270 : f32 to vector<16x64xf32>
    %509 = arith.addf %508, %507 : vector<16x64xf32>
    %510 = arith.divf %508, %509 : vector<16x64xf32>
    %511 = arith.mulf %448, %510 : vector<16x64xf32>
    %512 = arith.mulf %494, %502 : vector<16x64xf32>
    %513 = arith.addf %511, %512 : vector<16x64xf32>
    %c0_271 = arith.constant 0 : index
    %c0_272 = arith.constant 0 : index
    %514 = vector.load %arg51[%c0_271, %c0_272] : memref<16x64xf32, #tpu.memory_space<vmem>>, vector<16x64xf32>
    tpu.vector_store %arg51[%c0_271, %c0_272], %513 {strides = array<i32>} : memref<16x64xf32, #tpu.memory_space<vmem>>, vector<16x64xf32>,
    return
  }
  func.func @transform_0(%arg0: i32) -> (i32, i32) {
    %c0_i32 = arith.constant 0 : i32
    %c0_i32_0 = arith.constant 0 : i32
    return %arg0, %c0_i32 : i32, i32
  }
  func.func @transform_1(%arg0: i32) -> (i32, i32) {
    %c0_i32 = arith.constant 0 : i32
    %c0_i32_0 = arith.constant 0 : i32
    return %arg0, %c0_i32 : i32, i32
  }
  func.func @transform_2(%arg0: i32) -> (i32, i32) {
    %c0_i32 = arith.constant 0 : i32
    %c0_i32_0 = arith.constant 0 : i32
    %c0_i32_1 = arith.constant 0 : i32
    return %c0_i32, %c0_i32_0 : i32, i32
  }
  func.func @transform_3(%arg0: i32) -> (i32, i32) {
    %c0_i32 = arith.constant 0 : i32
    %c0_i32_0 = arith.constant 0 : i32
    %c0_i32_1 = arith.constant 0 : i32
    return %c0_i32, %c0_i32_0 : i32, i32
  }
  func.func @transform_4(%arg0: i32) -> (i32, i32) {
    %c0_i32 = arith.constant 0 : i32
    %c0_i32_0 = arith.constant 0 : i32
    %c0_i32_1 = arith.constant 0 : i32
    return %c0_i32, %c0_i32_0 : i32, i32
  }
  func.func @transform_5(%arg0: i32) -> (i32, i32) {
    %c0_i32 = arith.constant 0 : i32
    %c0_i32_0 = arith.constant 0 : i32
    %c0_i32_1 = arith.constant 0 : i32
    return %c0_i32, %c0_i32_0 : i32, i32
  }
  func.func @transform_6(%arg0: i32) -> (i32, i32) {
    %c0_i32 = arith.constant 0 : i32
    %c0_i32_0 = arith.constant 0 : i32
    %c0_i32_1 = arith.constant 0 : i32
    return %c0_i32, %c0_i32_0 : i32, i32
  }
  func.func @transform_7(%arg0: i32) -> (i32, i32) {
    %c0_i32 = arith.constant 0 : i32
    %c0_i32_0 = arith.constant 0 : i32
    %c0_i32_1 = arith.constant 0 : i32
    return %c0_i32, %c0_i32_0 : i32, i32
  }
  func.func @transform_8(%arg0: i32) -> (i32, i32) {
    %c0_i32 = arith.constant 0 : i32
    %c0_i32_0 = arith.constant 0 : i32
    %c0_i32_1 = arith.constant 0 : i32
    return %c0_i32, %c0_i32_0 : i32, i32
  }
  func.func @transform_9(%arg0: i32) -> (i32, i32) {
    %c0_i32 = arith.constant 0 : i32
    %c0_i32_0 = arith.constant 0 : i32
    %c0_i32_1 = arith.constant 0 : i32
    return %c0_i32, %c0_i32_0 : i32, i32
  }
  func.func @transform_10(%arg0: i32) -> (i32, i32) {
    %c0_i32 = arith.constant 0 : i32
    %c0_i32_0 = arith.constant 0 : i32
    %c0_i32_1 = arith.constant 0 : i32
    return %c0_i32, %c0_i32_0 : i32, i32
  }
  func.func @transform_11(%arg0: i32) -> (i32, i32) {
    %c0_i32 = arith.constant 0 : i32
    %c0_i32_0 = arith.constant 0 : i32
    %c0_i32_1 = arith.constant 0 : i32
    return %c0_i32, %c0_i32_0 : i32, i32
  }
  func.func @transform_12(%arg0: i32) -> (i32, i32) {
    %c0_i32 = arith.constant 0 : i32
    %c0_i32_0 = arith.constant 0 : i32
    %c0_i32_1 = arith.constant 0 : i32
    return %c0_i32, %c0_i32_0 : i32, i32
  }
  func.func @transform_13(%arg0: i32) -> (i32, i32, i32) {
    %c0_i32 = arith.constant 0 : i32
    %c0_i32_0 = arith.constant 0 : i32
    %c0_i32_1 = arith.constant 0 : i32
    %c0_i32_2 = arith.constant 0 : i32
    return %c0_i32, %c0_i32_0, %c0_i32_1 : i32, i32, i32
  }
  func.func @transform_14(%arg0: i32) -> (i32, i32, i32) {
    %c0_i32 = arith.constant 0 : i32
    %c0_i32_0 = arith.constant 0 : i32
    %c0_i32_1 = arith.constant 0 : i32
    %c0_i32_2 = arith.constant 0 : i32
    return %c0_i32, %c0_i32_0, %c0_i32_1 : i32, i32, i32
  }
  func.func @transform_15(%arg0: i32) -> (i32, i32, i32) {
    %c0_i32 = arith.constant 0 : i32
    %c0_i32_0 = arith.constant 0 : i32
    %c0_i32_1 = arith.constant 0 : i32
    %c0_i32_2 = arith.constant 0 : i32
    return %c0_i32, %c0_i32_0, %c0_i32_1 : i32, i32, i32
  }
  func.func @transform_16(%arg0: i32) -> (i32, i32, i32) {
    %c0_i32 = arith.constant 0 : i32
    %c0_i32_0 = arith.constant 0 : i32
    %c0_i32_1 = arith.constant 0 : i32
    %c0_i32_2 = arith.constant 0 : i32
    return %c0_i32, %c0_i32_0, %c0_i32_1 : i32, i32, i32
  }
  func.func @transform_17(%arg0: i32) -> (i32, i32) {
    %c0_i32 = arith.constant 0 : i32
    %c0_i32_0 = arith.constant 0 : i32
    %c0_i32_1 = arith.constant 0 : i32
    return %c0_i32, %c0_i32_0 : i32, i32
  }
  func.func @transform_18(%arg0: i32) -> (i32, i32, i32) {
    %c0_i32 = arith.constant 0 : i32
    %c0_i32_0 = arith.constant 0 : i32
    %c0_i32_1 = arith.constant 0 : i32
    %c0_i32_2 = arith.constant 0 : i32
    return %c0_i32, %c0_i32_0, %c0_i32_1 : i32, i32, i32
  }
  func.func @transform_19(%arg0: i32) -> (i32, i32, i32) {
    %c0_i32 = arith.constant 0 : i32
    %c0_i32_0 = arith.constant 0 : i32
    %c0_i32_1 = arith.constant 0 : i32
    %c0_i32_2 = arith.constant 0 : i32
    return %c0_i32, %c0_i32_0, %c0_i32_1 : i32, i32, i32
  }
  func.func @transform_20(%arg0: i32) -> (i32, i32, i32) {
    %c0_i32 = arith.constant 0 : i32
    %c0_i32_0 = arith.constant 0 : i32
    %c0_i32_1 = arith.constant 0 : i32
    %c0_i32_2 = arith.constant 0 : i32
    return %c0_i32, %c0_i32_0, %c0_i32_1 : i32, i32, i32
  }
  func.func @transform_21(%arg0: i32) -> (i32, i32, i32) {
    %c0_i32 = arith.constant 0 : i32
    %c0_i32_0 = arith.constant 0 : i32
    %c0_i32_1 = arith.constant 0 : i32
    %c0_i32_2 = arith.constant 0 : i32
    return %c0_i32, %c0_i32_0, %c0_i32_1 : i32, i32, i32
  }
  func.func @transform_22(%arg0: i32) -> (i32, i32) {
    %c0_i32 = arith.constant 0 : i32
    %c0_i32_0 = arith.constant 0 : i32
    %c0_i32_1 = arith.constant 0 : i32
    return %c0_i32, %c0_i32_0 : i32, i32
  }
  func.func @transform_23(%arg0: i32) -> (i32, i32, i32) {
    %c0_i32 = arith.constant 0 : i32
    %c0_i32_0 = arith.constant 0 : i32
    %c0_i32_1 = arith.constant 0 : i32
    %c0_i32_2 = arith.constant 0 : i32
    return %c0_i32, %c0_i32_0, %c0_i32_1 : i32, i32, i32
  }
  func.func @transform_24(%arg0: i32) -> (i32, i32, i32) {
    %c0_i32 = arith.constant 0 : i32
    %c0_i32_0 = arith.constant 0 : i32
    %c0_i32_1 = arith.constant 0 : i32
    %c0_i32_2 = arith.constant 0 : i32
    return %c0_i32, %c0_i32_0, %c0_i32_1 : i32, i32, i32
  }
  func.func @transform_25(%arg0: i32) -> (i32, i32, i32) {
    %c0_i32 = arith.constant 0 : i32
    %c0_i32_0 = arith.constant 0 : i32
    %c0_i32_1 = arith.constant 0 : i32
    %c0_i32_2 = arith.constant 0 : i32
    return %c0_i32, %c0_i32_0, %c0_i32_1 : i32, i32, i32
  }
  func.func @transform_26(%arg0: i32) -> (i32, i32, i32) {
    %c0_i32 = arith.constant 0 : i32
    %c0_i32_0 = arith.constant 0 : i32
    %c0_i32_1 = arith.constant 0 : i32
    %c0_i32_2 = arith.constant 0 : i32
    return %c0_i32, %c0_i32_0, %c0_i32_1 : i32, i32, i32
  }
  func.func @transform_27(%arg0: i32) -> (i32, i32) {
    %c0_i32 = arith.constant 0 : i32
    %c0_i32_0 = arith.constant 0 : i32
    %c0_i32_1 = arith.constant 0 : i32
    return %c0_i32, %c0_i32_0 : i32, i32
  }
  func.func @transform_28(%arg0: i32) -> (i32, i32, i32) {
    %c0_i32 = arith.constant 0 : i32
    %c0_i32_0 = arith.constant 0 : i32
    %c0_i32_1 = arith.constant 0 : i32
    %c0_i32_2 = arith.constant 0 : i32
    return %c0_i32, %c0_i32_0, %c0_i32_1 : i32, i32, i32
  }
  func.func @transform_29(%arg0: i32) -> (i32, i32, i32) {
    %c0_i32 = arith.constant 0 : i32
    %c0_i32_0 = arith.constant 0 : i32
    %c0_i32_1 = arith.constant 0 : i32
    %c0_i32_2 = arith.constant 0 : i32
    return %c0_i32, %c0_i32_0, %c0_i32_1 : i32, i32, i32
  }
  func.func @transform_30(%arg0: i32) -> (i32, i32, i32) {
    %c0_i32 = arith.constant 0 : i32
    %c0_i32_0 = arith.constant 0 : i32
    %c0_i32_1 = arith.constant 0 : i32
    %c0_i32_2 = arith.constant 0 : i32
    return %c0_i32, %c0_i32_0, %c0_i32_1 : i32, i32, i32
  }
  func.func @transform_31(%arg0: i32) -> (i32, i32, i32) {
    %c0_i32 = arith.constant 0 : i32
    %c0_i32_0 = arith.constant 0 : i32
    %c0_i32_1 = arith.constant 0 : i32
    %c0_i32_2 = arith.constant 0 : i32
    return %c0_i32, %c0_i32_0, %c0_i32_1 : i32, i32, i32
  }
  func.func @transform_32(%arg0: i32) -> (i32, i32) {
    %c0_i32 = arith.constant 0 : i32
    %c0_i32_0 = arith.constant 0 : i32
    %c0_i32_1 = arith.constant 0 : i32
    return %c0_i32, %c0_i32_0 : i32, i32
  }
  func.func @transform_33(%arg0: i32) -> (i32, i32) {
    %c0_i32 = arith.constant 0 : i32
    %c0_i32_0 = arith.constant 0 : i32
    %c0_i32_1 = arith.constant 0 : i32
    return %c0_i32, %c0_i32_0 : i32, i32
  }
  func.func @transform_34(%arg0: i32) -> (i32, i32) {
    %c0_i32 = arith.constant 0 : i32
    %c0_i32_0 = arith.constant 0 : i32
    %c0_i32_1 = arith.constant 0 : i32
    return %c0_i32, %c0_i32_0 : i32, i32
  }
  func.func @transform_35(%arg0: i32) -> (i32, i32) {
    %c0_i32 = arith.constant 0 : i32
    %c0_i32_0 = arith.constant 0 : i32
    %c0_i32_1 = arith.constant 0 : i32
    return %c0_i32, %c0_i32_0 : i32, i32
  }
  func.func @transform_36(%arg0: i32) -> (i32, i32) {
    %c0_i32 = arith.constant 0 : i32
    %c0_i32_0 = arith.constant 0 : i32
    %c0_i32_1 = arith.constant 0 : i32
    return %c0_i32, %c0_i32_0 : i32, i32
  }
  func.func @transform_37(%arg0: i32) -> (i32, i32) {
    %c0_i32 = arith.constant 0 : i32
    %c0_i32_0 = arith.constant 0 : i32
    %c0_i32_1 = arith.constant 0 : i32
    return %c0_i32, %c0_i32_0 : i32, i32
  }
  func.func @transform_38(%arg0: i32) -> (i32, i32) {
    %c0_i32 = arith.constant 0 : i32
    %c0_i32_0 = arith.constant 0 : i32
    %c0_i32_1 = arith.constant 0 : i32
    return %c0_i32, %c0_i32_0 : i32, i32
  }
  func.func @transform_39(%arg0: i32) -> (i32, i32) {
    %c0_i32 = arith.constant 0 : i32
    %c0_i32_0 = arith.constant 0 : i32
    %c0_i32_1 = arith.constant 0 : i32
    return %c0_i32, %c0_i32_0 : i32, i32
  }
  func.func @transform_40(%arg0: i32) -> (i32, i32) {
    %c0_i32 = arith.constant 0 : i32
    %c0_i32_0 = arith.constant 0 : i32
    %c0_i32_1 = arith.constant 0 : i32
    return %c0_i32, %c0_i32_0 : i32, i32
  }
  func.func @transform_41(%arg0: i32) -> (i32, i32) {
    %c0_i32 = arith.constant 0 : i32
    %c0_i32_0 = arith.constant 0 : i32
    %c0_i32_1 = arith.constant 0 : i32
    return %c0_i32, %c0_i32_0 : i32, i32
  }
  func.func @transform_42(%arg0: i32) -> (i32, i32) {
    %c0_i32 = arith.constant 0 : i32
    %c0_i32_0 = arith.constant 0 : i32
    %c0_i32_1 = arith.constant 0 : i32
    return %c0_i32, %c0_i32_0 : i32, i32
  }
  func.func @transform_43(%arg0: i32) -> (i32, i32) {
    %c0_i32 = arith.constant 0 : i32
    %c0_i32_0 = arith.constant 0 : i32
    %c0_i32_1 = arith.constant 0 : i32
    return %c0_i32, %c0_i32_0 : i32, i32
  }
  func.func @transform_44(%arg0: i32) -> (i32, i32) {
    %c0_i32 = arith.constant 0 : i32
    %c0_i32_0 = arith.constant 0 : i32
    %c0_i32_1 = arith.constant 0 : i32
    return %c0_i32, %c0_i32_0 : i32, i32
  }
  func.func @transform_45(%arg0: i32) -> (i32, i32) {
    %c0_i32 = arith.constant 0 : i32
    %c0_i32_0 = arith.constant 0 : i32
    %c0_i32_1 = arith.constant 0 : i32
    return %c0_i32, %c0_i32_0 : i32, i32
  }
  func.func @transform_46(%arg0: i32) -> (i32, i32) {
    %c0_i32 = arith.constant 0 : i32
    %c0_i32_0 = arith.constant 0 : i32
    %c0_i32_1 = arith.constant 0 : i32
    return %c0_i32, %c0_i32_0 : i32, i32
  }
  func.func @transform_47(%arg0: i32) -> (i32, i32) {
    %c0_i32 = arith.constant 0 : i32
    %c0_i32_0 = arith.constant 0 : i32
    %c0_i32_1 = arith.constant 0 : i32
    return %c0_i32, %c0_i32_0 : i32, i32
  }
  func.func @transform_48(%arg0: i32) -> (i32, i32) {
    %c0_i32 = arith.constant 0 : i32
    %c0_i32_0 = arith.constant 0 : i32
    %c0_i32_1 = arith.constant 0 : i32
    return %c0_i32, %c0_i32_0 : i32, i32
  }
  func.func @transform_49(%arg0: i32) -> (i32, i32) {
    %c0_i32 = arith.constant 0 : i32
    %c0_i32_0 = arith.constant 0 : i32
    return %arg0, %c0_i32 : i32, i32
  }
  func.func @transform_50(%arg0: i32) -> (i32, i32) {
    %c0_i32 = arith.constant 0 : i32
    %c0_i32_0 = arith.constant 0 : i32
    return %arg0, %c0_i32 : i32, i32
  }
}

</mosaic_0001>

<bundles_post_ra>
// kernel: block_recurrent_attention.1
= control target key start
LH: loop header
LB: loop body
LE: loop exit
PB: predicated region body
PF: predicated region fallthrough
CT: control target
= control target key end

     0   :  { %s5463_s6 = smov 1   ;;  %s5464_s10 = smov 2   ;;  %s6481_s0 = inlined_call_operand.smem [shape: u32[51], index: -1, kind: input, shape index: {}] }
   0x1   :  { %s5527_s5 = sld [smem:[%s6481_s0]]   ;;  %s5465_s14 = smov 3  }
   0x2   :  { %s5532_s9 = sld [smem:[%s6481_s0 + %s5463_s6]]   ;;  %s5466_s18 = smov 4  }
   0x3   :  { %s5537_s13 = sld [smem:[%s6481_s0 + %s5464_s10]]   ;;  %s5467_s22 = smov 5  }
   0x4   :  { %s5542_s17 = sld [smem:[%s6481_s0 + %s5465_s14]]   ;;  %s5468_s26 = smov 6  }
   0x5   :  { %s5547_s21 = sld [smem:[%s6481_s0 + %s5466_s18]]   ;;  %s5469_s30 = smov 7  }
   0x6   :  { %s5552_s25 = sld [smem:[%s6481_s0 + %s5467_s22]]   ;;  %s5470_s4 = smov 8  }
   0x7   :  { %s5557_s29 = sld [smem:[%s6481_s0 + %s5468_s26]]   ;;  %s5471_s10 = smov 9  }
   0x8   :  { %s5562_s3 = sld [smem:[%s6481_s0 + %s5469_s30]]   ;;  %s5472_s15 = smov 10  }
   0x9   :  { %s5567_s8 = sld [smem:[%s6481_s0 + %s5470_s4]]   ;;  %s5473_s20 = smov 11  }
   0xa   :  { %6506 = sst [smem:[#allocation8_spill]] %s5542_s17  ;;  %s5474_s26 = smov 12  }
   0xb   :  { %s5572_s14 = sld [smem:[%s6481_s0 + %s5471_s10]]   ;;  %s5475_s1 = smov 13  }
   0xc   :  { %s5577_s19 = sld [smem:[%s6481_s0 + %s5472_s15]]   ;;  %s5476_s7 = smov 14  }
   0xd   :  { %6507 = sst [smem:[#allocation9_spill]] %s5557_s29  ;;  %s5477_s15 = smov 15  }
   0xe   :  { %6508 = sst [smem:[#allocation10_spill]] %s5562_s3  ;;  %s5478_s22 = smov 16  }
   0xf   :  { %s5582_s24 = sld [smem:[%s6481_s0 + %s5473_s20]]   ;;  %s5479_s28 = smov 17  }
  0x10   :  { %s5587_s30 = sld [smem:[%s6481_s0 + %s5474_s26]]  }
  0x11   :  { %s5592_s6 = sld [smem:[%s6481_s0 + %s5475_s1]]  }
  0x12   :  { %6509 = sst [smem:[#allocation11_spill]] %s5577_s19 }
  0x13   :  { %s5597_s12 = sld [smem:[%s6481_s0 + %s5476_s7]]   ;;  %s5480_s7 = smov 18  }
  0x14   :  { %s5602_s20 = sld [smem:[%s6481_s0 + %s5477_s15]]   ;;  %s5481_s15 = smov 19  }
  0x15   :  { %6510 = sst [smem:[#allocation12_spill]] %s5582_s24 }
  0x16   :  { %6511 = sst [smem:[#allocation13_spill]] %s5587_s30 }
  0x17   :  { %s5607_s27 = sld [smem:[%s6481_s0 + %s5478_s22]]   ;;  %s5482_s22 = smov 20  }
  0x18   :  { %s5612_s4 = sld [smem:[%s6481_s0 + %s5479_s28]]   ;;  %s5483_s28 = smov 21  }
  0x19   :  { %s5617_s30 = sld [smem:[%s6481_s0 + %s5480_s7]]   ;;  %s5484_s7 = smov 22  }
  0x1a   :  { %s5622_s24 = sld [smem:[%s6481_s0 + %s5481_s15]]   ;;  %s5485_s15 = smov 23  }
  0x1b   :  { %s5627_s29 = sld [smem:[%s6481_s0 + %s5482_s22]]   ;;  %s5486_s22 = smov 24  }
  0x1c   :  { %s5632_s3 = sld [smem:[%s6481_s0 + %s5483_s28]]   ;;  %s5487_s28 = smov 25  }
  0x1d   :  { %s5637_s17 = sld [smem:[%s6481_s0 + %s5484_s7]]   ;;  %s5488_s7 = smov 26  }
  0x1e   :  { %6512 = sst [smem:[#allocation14_spill]] %s5612_s4 }
  0x1f   :  { %s5642_s4 = sld [smem:[%s6481_s0 + %s5485_s15]]   ;;  %s5489_s15 = smov 27  }
  0x20   :  { %s5647_s19 = sld [smem:[%s6481_s0 + %s5486_s22]]   ;;  %s5490_s22 = smov 28  }
  0x22   :  { %6513 = sst [smem:[#allocation15_spill]] %s5632_s3 }
  0x23   :  { %6514 = sst [smem:[#allocation16_spill]] %s5637_s17 }
  0x24   :  { %s5652_s3 = sld [smem:[%s6481_s0 + %s5487_s28]]   ;;  %s5491_s28 = smov 29  }
  0x25   :  { %6515 = sst [smem:[#allocation17_spill]] %s5642_s4 }
  0x26   :  { %6516 = sst [smem:[#allocation18_spill]] %s5647_s19 }
  0x27   :  { %s5657_s17 = sld [smem:[%s6481_s0 + %s5488_s7]]   ;;  %s5492_s7 = smov 30  }
  0x28   :  { %s5662_s4 = sld [smem:[%s6481_s0 + %s5489_s15]]   ;;  %s5493_s15 = smov 31  }
  0x29   :  { %s5667_s19 = sld [smem:[%s6481_s0 + %s5490_s22]]   ;;  %s5494_s22 = smov 32  }
  0x2a   :  { %6517 = sst [smem:[#allocation19_spill]] %s5652_s3 }
  0x2b   :  { %s5672_s3 = sld [smem:[%s6481_s0 + %s5491_s28]]   ;;  %s5495_s28 = smov 33  }
  0x2d   :  { %6518 = sst [smem:[#allocation20_spill]] %s5657_s17 }
  0x2e   :  { %6519 = sst [smem:[#allocation21_spill]] %s5662_s4 }
  0x2f   :  { %6520 = sst [smem:[#allocation22_spill]] %s5667_s19 }
  0x30   :  { %s5677_s17 = sld [smem:[%s6481_s0 + %s5492_s7]]   ;;  %s5496_s7 = smov 34  }
  0x31   :  { %6521 = sst [smem:[#allocation23_spill]] %s5672_s3 }
  0x32   :  { %s5682_s4 = sld [smem:[%s6481_s0 + %s5493_s15]]   ;;  %s5497_s15 = smov 35  }
  0x33   :  { %s5687_s19 = sld [smem:[%s6481_s0 + %s5494_s22]]   ;;  %s5498_s22 = smov 36  }
  0x34   :  { %s5692_s3 = sld [smem:[%s6481_s0 + %s5495_s28]]   ;;  %s5499_s28 = smov 37  }
  0x36   :  { %6522 = sst [smem:[#allocation24_spill]] %s5677_s17 }
  0x37   :  { %s5697_s17 = sld [smem:[%s6481_s0 + %s5496_s7]]   ;;  %s5500_s7 = smov 38  }
  0x38   :  { %6523 = sst [smem:[#allocation25_spill]] %s5682_s4 }
  0x39   :  { %6524 = sst [smem:[#allocation26_spill]] %s5687_s19 }
  0x3a   :  { %6525 = sst [smem:[#allocation27_spill]] %s5692_s3 }
  0x3b   :  { %s5702_s4 = sld [smem:[%s6481_s0 + %s5497_s15]]   ;;  %s5501_s15 = smov 39  }
  0x3c   :  { %s5707_s19 = sld [smem:[%s6481_s0 + %s5498_s22]]   ;;  %s5502_s22 = smov 40  }
  0x3d   :  { %6526 = sst [smem:[#allocation28_spill]] %s5697_s17 }
  0x3e   :  { %s5712_s3 = sld [smem:[%s6481_s0 + %s5499_s28]]   ;;  %s5503_s28 = smov 41  }
  0x3f   :  { %s5717_s17 = sld [smem:[%s6481_s0 + %s5500_s7]]   ;;  %s5504_s7 = smov 42  }
  0x41   :  { %6527 = sst [smem:[#allocation29_spill]] %s5702_s4 }
  0x42   :  { %6528 = sst [smem:[#allocation30_spill]] %s5707_s19 }
  0x43   :  { %s5722_s4 = sld [smem:[%s6481_s0 + %s5501_s15]]   ;;  %s5505_s15 = smov 43  }
  0x44   :  { %6529 = sst [smem:[#allocation31_spill]] %s5712_s3 }
  0x45   :  { %6530 = sst [smem:[#allocation32_spill]] %s5717_s17 }
  0x46   :  { %s5727_s19 = sld [smem:[%s6481_s0 + %s5502_s22]]   ;;  %s5506_s22 = smov 44  }
  0x47   :  { %s5732_s3 = sld [smem:[%s6481_s0 + %s5503_s28]]   ;;  %s5507_s28 = smov 45  }
  0x48   :  { %s5737_s17 = sld [smem:[%s6481_s0 + %s5504_s7]]   ;;  %s5508_s7 = smov 46  }
  0x49   :  { %6531 = sst [smem:[#allocation33_spill]] %s5722_s4 }
  0x4a   :  { %s5742_s4 = sld [smem:[%s6481_s0 + %s5505_s15]]   ;;  %s5509_s15 = smov 47  }
  0x4c   :  { %6532 = sst [smem:[#allocation34_spill]] %s5727_s19 }
  0x4d   :  { %6533 = sst [smem:[#allocation35_spill]] %s5732_s3 }
  0x4e   :  { %6534 = sst [smem:[#allocation36_spill]] %s5737_s17 }
  0x4f   :  { %s5747_s19 = sld [smem:[%s6481_s0 + %s5506_s22]]   ;;  %s5510_s22 = smov 48  }
  0x50   :  { %6535 = sst [smem:[#allocation37_spill]] %s5742_s4 }
  0x51   :  { %s5752_s3 = sld [smem:[%s6481_s0 + %s5507_s28]]   ;;  %s5511_s28 = smov 49  }
  0x52   :  { %s5757_s17 = sld [smem:[%s6481_s0 + %s5508_s7]]   ;;  %s5512_s7 = smov 50  }
  0x53   :  { %s5762_s4 = sld [smem:[%s6481_s0 + %s5509_s15]]  }
  0x55   :  { %6536 = sst [smem:[#allocation38_spill]] %s5747_s19 }
  0x56   :  { %s5767_s19 = sld [smem:[%s6481_s0 + %s5510_s22]]  }
  0x57   :  { %6537 = sst [smem:[#allocation39_spill]] %s5752_s3 }
  0x58   :  { %6538 = sst [smem:[#allocation40_spill]] %s5757_s17 }
  0x59   :  { %s5772_s3 = sld [smem:[%s6481_s0 + %s5511_s28]]  }
  0x5a   :  { %s5777_s17 = sld [smem:[%s6481_s0 + %s5512_s7]]  }
  0x5b   :  { %107 = vsyncpa [#allocation3], 0  ;;  %v208_v0 = vld [vmem:[%s5527_s5] sm:$0xff]   ;;  %vm236_vm0 = vcmask 523264  }
  0x5c   :  { %v5780_v1 = vunpack.c.l.bf16 %v208_v0  ;;  %v5784_v3 = vunpack.c.h.bf16 %v208_v0 }
  0x5e   :  { %v234_v2 = vmul.f32 %v5780_v1, %v5780_v1 }
  0x5f   :  { %108 = vsyncpa [#allocation5], 0  ;;  %v235_v5 = vmul.f32 %v5784_v3, %v5784_v3  ;;  %v5513_v7 = vmov 64.0   ;;  %v5000_v11 = vld [vmem:[%s5592_s6 + $0x18] sm:$0xff]  ;;  %v4999_v15 = vld [vmem:[%s5592_s6 + $0x10] sm:$0xff]  ;;  %vm551_vm8 = vcmask 130048  }
  0x60   :  { %v237_v4 = vsel %vm236_vm0, %v234_v2, 0.0  ;;  %5267 = vrcp.f32 %v5513_v7  ;;  %v5004_v12 = vld [vmem:[%s5597_s12 + $0x18] sm:$0xff]  ;;  %355 = vmatpush.bf16.msra.mxu0 %v5000_v11  ;;  %v5003_v16 = vld [vmem:[%s5597_s12 + $0x10] sm:$0xff]  ;;  %v4998_v19 = vld [vmem:[%s5592_s6 + $0x8] sm:$0xff]  ;;  %s6539_s0 = sld [smem:[#allocation11_spill]] }
  0x61   :  { %238 = vadd.xlane.f32.xlu0 %v237_v4  ;;  %v240_v6 = vsel %vm236_vm0, %v235_v5, 0.0  ;;  %v5008_v13 = vld [vmem:[%s5602_s20 + $0x18] sm:$0xff]  ;;  %401 = vmatpush.bf16.msra.mxu1 %v5004_v12  ;;  %v5007_v17 = vld [vmem:[%s5602_s20 + $0x10] sm:$0xff]  ;;  %v5002_v20 = vld [vmem:[%s5597_s12 + $0x8] sm:$0xff]  ;;  %s6557_s15 = sld [smem:[#allocation10_spill]] }
  0x62   :  { %447 = vmatpush.bf16.msra.mxu2 %v5008_v13  ;;  %v5006_v21 = vld [vmem:[%s5602_s20 + $0x8] sm:$0xff]  ;;  %v4997_v24 = vld [vmem:[%s5592_s6] sm:$0xff]  ;;  %v5806_v29 = vld [vmem:[%s5567_s8 + $0x18] sm:$0xff]  ;;  %s6558_s16 = sld [smem:[#allocation9_spill]] }
  0x63   :  { %v5001_v25 = vld [vmem:[%s5597_s12] sm:$0xff]  ;;  %491 = vmatpush.bf16.msra.mxu3 %v5806_v29  ;;  %v4995_v58 = vld [vmem:[%s5567_s8 + $0x10] sm:$0xff]  ;;  %v4994_v59 = vld [vmem:[%s5567_s8 + $0x8] sm:$0xff]  ;;  %s6559_s18 = sld [smem:[#allocation12_spill]] }
  0x64   :  { %356 = vmatpush.bf16.msra.mxu0 %v4999_v15  ;;  %v5005_v26 = vld [vmem:[%s5602_s20] sm:$0xff]  ;;  %v5016_v61 = vld [vmem:[%s5592_s6 + $0x38] sm:$0xff]  ;;  %v5015_v63 = vld [vmem:[%s5592_s6 + $0x30] sm:$0xff]  ;;  %s6560_s22 = sld [smem:[#allocation20_spill]] }
  0x65   :  { %402 = vmatpush.bf16.msra.mxu1 %v5003_v16  ;;  %v216_v43 = vld [vmem:[%s5537_s13] sm:$0x7]  ;;  %v5020_v62 = vld [vmem:[%s5597_s12 + $0x38] sm:$0xff]  ;;  %v5019_v0 = vld [vmem:[%s5597_s12 + $0x30] sm:$0xff]  ;;  %s6561_s23 = sld [smem:[#allocation22_spill]] }
  0x66   :  { %v5268_v8 = vpop.eup %5267  ;;  %448 = vmatpush.bf16.msra.mxu2 %v5007_v17  ;;  %v310_v47 = vperm.slane %v216_v43, 0  ;;  %v952_v48 = vperm.slane %v216_v43, 1  ;;  %v4993_v60 = vld [vmem:[%s5567_s8] sm:$0xff]  ;;  %v5014_v2 = vld [vmem:[%s5592_s6 + $0x28] sm:$0xff]  ;;  %s6562_s26 = sld [smem:[#allocation23_spill]] }
  0x67   :  { %v244_v9 = vmul.f32 64.0, %v5268_v8  ;;  %vm248_vm1 = vweird.f32 %v5268_v8  ;;  %492 = vmatpush.bf16.msra.mxu3 %v4995_v58  ;;  %v5018_v4 = vld [vmem:[%s5597_s12 + $0x28] sm:$0xff]  ;;  %v5013_v5 = vld [vmem:[%s5592_s6 + $0x20] sm:$0xff]  ;;  %s6547_s6 = sld [smem:[#allocation18_spill]] }
  0x68   :  { %357 = vmatpush.bf16.msra.mxu0 %v4998_v19  ;;  %v5844_v17 = vld [vmem:[%s5552_s25] sm:$0xff]  ;;  %v5850_v19 = vld [vmem:[%s5547_s21 + $0x8] sm:$0xff]  ;;  %s6563_s28 = sld [smem:[#allocation24_spill]] }
  0x69   :  { %241 = vadd.xlane.f32.xlu0 %v240_v6  ;;  %v245_v10 = vsub.f32 1.0, %v244_v9  ;;  %403 = vmatpush.bf16.msra.mxu1 %v5002_v20  ;;  %v5017_v6 = vld [vmem:[%s5597_s12 + $0x20] sm:$0xff]  ;;  %v5022_v43 = vld [vmem:[%s5602_s20 + $0x28] sm:$0xff]  ;;  %s6548_s12 = sld [smem:[#allocation8_spill]] }
  0x6a   :  { %449 = vmatpush.bf16.msra.mxu2 %v5006_v21  ;;  %v5853_v21 = vld [vmem:[%s5552_s25 + $0x8] sm:$0xff]  ;;  %s6541_s25 = sld [smem:[#allocation15_spill]] }
  0x6b   :  { %v246_v14 = vmul.f32 %v5268_v8, %v245_v10  ;;  %493 = vmatpush.bf16.msra.mxu3 %v4994_v59  ;;  %s6565_s1 = sld [smem:[#allocation13_spill]] }
  0x6c   :  { %358 = vmatpush.bf16.msra.mxu0 %v4997_v24  ;;  %s6566_s2 = sld [smem:[#allocation30_spill]] }
  0x6d   :  { %v247_v18 = vadd.f32 %v5268_v8, %v246_v14  ;;  %404 = vmatpush.bf16.msra.mxu1 %v5001_v25  ;;  %s6567_s7 = sld [smem:[#allocation25_spill]] }
  0x6e   :  { %450 = vmatpush.bf16.msra.mxu2 %v5005_v26  ;;  %s6568_s10 = sld [smem:[#allocation29_spill]] }
  0x6f   :  { %v5799_v22 = vsel %vm248_vm1, %v5268_v8, %v247_v18  ;;  %494 = vmatpush.bf16.msra.mxu3 %v4993_v60  ;;  %v5847_v18 = vld [vmem:[%s5547_s21] sm:$0xff]  ;;  %s6540_s21 = sld [smem:[#allocation28_spill]] }
  0x70   :  { %515 = vmatpush.bf16.msrb.mxu0 %v5806_v29  ;;  %s6569_s11 = sld [smem:[#allocation31_spill]] }
  0x73   :  { %639 = vmatpush.bf16.msrb.mxu3 %v5016_v61 }
  0x74   :  { %516 = vmatpush.bf16.msrb.mxu0 %v4995_v58 }
  0x77   :  { %640 = vmatpush.bf16.msrb.mxu3 %v5015_v63 }
  0x78   :  { %517 = vmatpush.bf16.msrb.mxu0 %v4994_v59 }
  0x7b   :  { %641 = vmatpush.bf16.msrb.mxu3 %v5014_v2 }
  0x7c   :  { %518 = vmatpush.bf16.msrb.mxu0 %v4993_v60 }
  0x7f   :  { %642 = vmatpush.bf16.msrb.mxu3 %v5013_v5 }
  0xd4   :  { %v239_v23 = vpop.xlane.xlu0 %238 }
  0xd5   :  { %v250_v27 = vmul.f32 %v5799_v22, %v239_v23 }
  0xd7   :  { %v252_v28 = vmax.f32 %v250_v27, 1e-16 }
  0xd9   :  { %5269 = vrsqrt.f32 %v252_v28  ;;  %vm260_vm3 = vweird.f32 %v252_v28 }
  0xdc   :  { %v242_v30 = vpop.xlane.xlu0 %241 }
  0xdd   :  { %v251_v31 = vmul.f32 %v5799_v22, %v242_v30 }
  0xdf   :  { %v5270_v32 = vpop.eup %5269  ;;  %v253_v33 = vmax.f32 %v251_v31, 1e-16  ;;  %v5024_v31 = vld [vmem:[%s5602_s20 + $0x38] sm:$0xff] }
  0xe0   :  { %v255_v34 = vmul.f32 %v5270_v32, %v252_v28  ;;  %vm261_vm2 = vweird.f32 %v5270_v32 }
  0xe1   :  { %5271 = vrsqrt.f32 %v253_v33  ;;  %vm262_vm4 = vmor %vm260_vm3, %vm261_vm2  ;;  %vm270_vm6 = vweird.f32 %v253_v33 }
  0xe2   :  { %v256_v35 = vmul.f32 %v5270_v32, %v255_v34 }
  0xe4   :  { %v257_v36 = vmul.f32 0.5, %v256_v35 }
  0xe6   :  { %v258_v37 = vsub.f32 1.5, %v257_v36 }
  0xe7   :  { %v5272_v38 = vpop.eup %5271 }
  0xe8   :  { %v265_v39 = vmul.f32 %v5272_v38, %v253_v33  ;;  %v259_v40 = vmul.f32 %v5270_v32, %v258_v37  ;;  %vm271_vm5 = vweird.f32 %v5272_v38 }
  0xe9   :  { %vm272_vm7 = vmor %vm270_vm6, %vm271_vm5 }
  0xea   :  { %v266_v41 = vmul.f32 %v5272_v38, %v265_v39  ;;  %v263_v44 = vsel %vm262_vm4, %v5270_v32, %v259_v40  ;;  %v5023_v40 = vld [vmem:[%s5602_s20 + $0x30] sm:$0xff] }
  0xeb   :  { %v274_v49 = vmul.f32 %v263_v44, %v5780_v1 }
  0xec   :  { %v267_v42 = vmul.f32 0.5, %v266_v41 }
  0xed   :  { %v311_v52 = vmul.f32 %v310_v47, %v274_v49  ;;  %v953_v53 = vmul.f32 %v952_v48, %v274_v49 }
  0xee   :  { %v268_v45 = vsub.f32 1.5, %v267_v42 }
  0xf0   :  { %v269_v46 = vmul.f32 %v5272_v38, %v268_v45 }
  0xf2   :  { %v273_v50 = vsel %vm272_vm7, %v5272_v38, %v269_v46  ;;  %v5021_v46 = vld [vmem:[%s5602_s20 + $0x20] sm:$0xff]  ;;  %s6553_s20 = sld [smem:[#allocation19_spill]] }
  0xf3   :  { %v275_v51 = vmul.f32 %v273_v50, %v5784_v3 }
  0xf5   :  { %v312_v54 = vmul.f32 %v310_v47, %v275_v51  ;;  %v954_v55 = vmul.f32 %v952_v48, %v275_v51  ;;  %v5875_v48 = vld [vmem:[%s5572_s14] sm:$0xff] }
  0xf7   :  { %v5814_v56 = vpack.c.bf16 %v312_v54, %v311_v52  ;;  %v5816_v57 = vpack.c.bf16 %v954_v55, %v953_v53  ;;  %v5882_v53 = vld [vmem:[%s5572_s14 + $0x8] sm:$0xff]  ;;  %s6542_s14 = sld [smem:[#allocation14_spill]] }
  0xf9   :  { %3943 = vmatmul.msk.bf16.vlgmr.msra.gmra.mxu0 %vm236_vm0, %v5814_v56  ;;  %3960 = vmatmul.msk.bf16.vlgmr.msra.gmra.mxu1 %vm236_vm0, %v5814_v56 }
  0xfa   :  { %3977 = vmatmul.msk.bf16.vlgmr.msra.gmra.mxu2 %vm236_vm0, %v5814_v56  ;;  %686 = vmatpush.bf16.msra.mxu0 %v5020_v62 }
  0xfe   :  { %687 = vmatpush.bf16.msra.mxu0 %v5019_v0 }
 0x102   :  { %688 = vmatpush.bf16.msra.mxu0 %v5018_v4 }
 0x106   :  { %689 = vmatpush.bf16.msra.mxu0 %v5017_v6 }
 0x176   :  { %v360_v7 = vpop.f32.mrf.mxu0  ;;  %v406_v8 = vpop.f32.mrf.mxu1 }
 0x177   :  { %v505_v25 = vmul.f32 %v406_v8, %v5847_v18  ;;  %v457_v38 = vmul.f32 %v360_v7, %v5847_v18 }
 0x17d   :  { %v452_v9 = vpop.f32.mrf.mxu2 }
 0x17e   :  { %v362_v10 = vpop.f32.mrf.mxu0  ;;  %v408_v11 = vpop.f32.mrf.mxu1 }
 0x17f   :  { %v459_v12 = vpack.c.bf16 %v362_v10, %v360_v7  ;;  %v507_v13 = vpack.c.bf16 %v408_v11, %v406_v8  ;;  %v506_v26 = vmul.f32 %v408_v11, %v5850_v19  ;;  %v458_v33 = vmul.f32 %v362_v10, %v5850_v19 }
 0x181   :  { %3994 = vmatmul.msk.bf16.vlgmr.msra.gmra.mxu3 %vm236_vm0, %v459_v12  ;;  %3995 = vmatmul.msk.bf16.vlgmr.msrb.gmra.mxu0 %vm236_vm0, %v507_v13 }
 0x182   :  { %777 = vmatpush.bf16.msra.mxu3 %v5806_v29 }
 0x185   :  { %v454_v14 = vpop.f32.mrf.mxu2 }
 0x186   :  { %v575_v15 = vpack.c.bf16 %v454_v14, %v452_v9  ;;  %778 = vmatpush.bf16.msra.mxu3 %v4995_v58 }
 0x188   :  { %586 = vmatpush.bf16.msrb.mxu2 %v575_v15 }
 0x18a   :  { %779 = vmatpush.bf16.msra.mxu3 %v4994_v59 }
 0x18c   :  { %753 = vmatpush.bf16.msra.mxu2 %v5806_v29 }
 0x18e   :  { %780 = vmatpush.bf16.msra.mxu3 %v4993_v60 }
 0x190   :  { %754 = vmatpush.bf16.msra.mxu2 %v4995_v58 }
 0x191   :  { %4022 = vmatmul.msk.bf16.vlgmr.msrb.gmra.mxu3 %vm236_vm0, %v5814_v56  ;;  %4047 = vmatmul.msk.bf16.vlgmr.msra.gmra.mxu0 %vm236_vm0, %v5814_v56 }
 0x194   :  { %755 = vmatpush.bf16.msra.mxu2 %v4994_v59 }
 0x198   :  { %756 = vmatpush.bf16.msra.mxu2 %v4993_v60 }
 0x1fe   :  { %v520_v16 = vpop.f32.mrf.mxu0 }
 0x1ff   :  { %v525_v23 = vmul.f32 %v520_v16, %v5844_v17 }
 0x201   :  { %v527_v28 = vadd.f32 %v525_v23, %v505_v25  ;;  %v5012_v25 = vld [vmem:[%s5607_s27 + $0x18] sm:$0xff] }
 0x202   :  { %936 = vmatpush.bf16.msrb.mxu3 %v5012_v25  ;;  %v5027_v25 = vld [vmem:[%s5607_s27 + $0x30] sm:$0xff] }
 0x204   :  { %v496_v20 = vpop.f32.mrf.mxu3 }
 0x205   :  { %v501_v34 = vmul.f32 %v496_v20, %v5844_v17 }
 0x206   :  { %v522_v24 = vpop.f32.mrf.mxu0 }
 0x207   :  { %v526_v27 = vmul.f32 %v522_v24, %v5853_v21  ;;  %v503_v41 = vadd.f32 %v501_v34, %v457_v38  ;;  %v5010_v34 = vld [vmem:[%s5607_s27 + $0x8] sm:$0xff]  ;;  %v5031_v38 = vld [vmem:[%s5617_s30 + $0x10] sm:$0xff] }
 0x209   :  { %v528_v29 = vadd.f32 %v526_v27, %v506_v26 }
 0x20b   :  { %v530_v30 = vpack.c.bf16 %v528_v29, %v527_v28 }
 0x20c   :  { %v498_v32 = vpop.f32.mrf.mxu3 }
 0x20d   :  { %v502_v35 = vmul.f32 %v498_v32, %v5853_v21  ;;  %v535_v36 = vsel %vm236_vm0, %v530_v30, 0 }
 0x20e   :  { %544 = vmatpush.bf16.xpose.msrb.mxu1 %v535_v36  ;;  %v691_v37 = vpop.f32.mrf.mxu0  ;;  %v5032_v36 = vld [vmem:[%s5617_s30 + $0x18] sm:$0xff] }
 0x20f   :  { %v504_v39 = vadd.f32 %v502_v35, %v458_v33  ;;  %v767_v62 = vmul.f32 %v691_v37, %v5847_v18  ;;  %v5011_v33 = vld [vmem:[%s5607_s27 + $0x10] sm:$0xff]  ;;  %v5009_v35 = vld [vmem:[%s5607_s27] sm:$0xff] }
 0x210   :  { %937 = vmatpush.bf16.msrb.mxu3 %v5011_v33 }
 0x211   :  { %v529_v42 = vpack.c.bf16 %v504_v39, %v503_v41  ;;  %v5030_v39 = vld [vmem:[%s5617_s30 + $0x8] sm:$0xff] }
 0x214   :  { %v5872_v47 = vpop.f32.mrf.mxu3  ;;  %938 = vmatpush.bf16.msrb.mxu3 %v5010_v34 }
 0x215   :  { %3996 = vmatmul.msk.bf16.vlgmr.msrb.gmra.mxu1 %vm236_vm0, %v529_v42  ;;  %v5029_v42 = vld [vmem:[%s5617_s30] sm:$0xff] }
 0x216   :  { %733 = vmatpush.bf16.msra.mxu1 %v5024_v31  ;;  %v693_v44 = vpop.f32.mrf.mxu0 }
 0x217   :  { %v769_v45 = vpack.c.bf16 %v693_v44, %v691_v37  ;;  %v768_v63 = vmul.f32 %v693_v44, %v5850_v19 }
 0x218   :  { %939 = vmatpush.bf16.msrb.mxu3 %v5009_v35 }
 0x219   :  { %4074 = vmatmul.msk.bf16.vlgmr.msra.gmra.mxu3 %vm236_vm0, %v769_v45 }
 0x21a   :  { %734 = vmatpush.bf16.msra.mxu1 %v5023_v40 }
 0x21c   :  { %v5878_v51 = vpop.f32.mrf.mxu3 }
 0x21d   :  { %v745_v32 = vpack.c.bf16 %v5878_v51, %v5872_v47 }
 0x21e   :  { %735 = vmatpush.bf16.msra.mxu1 %v5022_v43 }
 0x222   :  { %736 = vmatpush.bf16.msra.mxu1 %v5021_v46  ;;  %v743_v46 = vmul.f32 %v5872_v47, %v5847_v18 }
 0x225   :  { %4072 = vmatmul.msk.bf16.vlgmr.msra.gmra.mxu1 %vm236_vm0, %v5814_v56 }
 0x292   :  { %v546_v49 = vpop.f32.mrf.mxu1 }
 0x293   :  { %v547_v50 = vadd.f32 %v546_v49, %v5875_v48  ;;  %v744_v49 = vmul.f32 %v5878_v51, %v5850_v19 }
 0x295   :  { %v552_v52 = vsel %vm551_vm8, %v547_v50, -inf }
 0x296   :  { %553 = vmax.xlane.f32.xlu1 %v552_v52 }
 0x29a   :  { %v548_v54 = vpop.f32.mrf.mxu1 }
 0x29b   :  { %v549_v55 = vadd.f32 %v548_v54, %v5882_v53 }
 0x29c   :  { %v782_v58 = vpop.f32.mrf.mxu3 }
 0x29d   :  { %v555_v56 = vsel %vm551_vm8, %v549_v55, -inf  ;;  %v787_v60 = vmul.f32 %v782_v58, %v5844_v17 }
 0x29e   :  { %556 = vmax.xlane.f32.xlu1 %v555_v56 }
 0x29f   :  { %v789_v2 = vadd.f32 %v787_v60, %v767_v62 }
 0x2a2   :  { %v738_v59 = vpop.f32.mrf.mxu1 }
 0x2a4   :  { %v784_v61 = vpop.f32.mrf.mxu3 }
 0x2a5   :  { %v788_v0 = vmul.f32 %v784_v61, %v5853_v21 }
 0x2a7   :  { %v790_v4 = vadd.f32 %v788_v0, %v768_v63 }
 0x2a9   :  { %v792_v5 = vpack.c.bf16 %v790_v4, %v789_v2  ;;  %v5036_v2 = vld [vmem:[%s5622_s24 + $0x18] sm:$0xff]  ;;  %v5035_v4 = vld [vmem:[%s5622_s24 + $0x10] sm:$0xff] }
 0x2aa   :  { %v740_v6 = vpop.f32.mrf.mxu1 }
 0x2ab   :  { %v836_v7 = vpack.c.bf16 %v740_v6, %v738_v59  ;;  %v797_v8 = vsel %vm236_vm0, %v792_v5, 0  ;;  %v5034_v5 = vld [vmem:[%s5622_s24 + $0x8] sm:$0xff]  ;;  %v5033_v6 = vld [vmem:[%s5622_s24] sm:$0xff] }
 0x2ac   :  { %806 = vmatpush.bf16.xpose.msrb.mxu0 %v797_v8 }
 0x2ad   :  { %847 = vmatpush.bf16.msrb.mxu1 %v836_v7 }
 0x2b1   :  { %1051 = vmatpush.bf16.msra.mxu1 %v5036_v2 }
 0x2b4   :  { %997 = vmatpush.bf16.msra.mxu0 %v5032_v36 }
 0x2b5   :  { %1052 = vmatpush.bf16.msra.mxu1 %v5035_v4 }
 0x2b8   :  { %998 = vmatpush.bf16.msra.mxu0 %v5031_v38 }
 0x2b9   :  { %1053 = vmatpush.bf16.msra.mxu1 %v5034_v5 }
 0x2bc   :  { %999 = vmatpush.bf16.msra.mxu0 %v5030_v39  ;;  %v5039_v39 = vld [vmem:[%s5627_s29 + $0x10] sm:$0xff] }
 0x2bd   :  { %1054 = vmatpush.bf16.msra.mxu1 %v5033_v6 }
 0x2c0   :  { %1000 = vmatpush.bf16.msra.mxu0 %v5029_v42  ;;  %v5052_v42 = vld [vmem:[%s5622_s24 + $0x38] sm:$0xff] }
 0x309   :  { %v554_v9 = vpop.xlane.xlu1 %553 }
 0x30a   :  { %v558_v10 = vsub.f32 %v547_v50, %v554_v9 }
 0x30c   :  { %v560_v11 = vmul.f32 1.442695, %v558_v10 }
 0x30e   :  { %5273 = vpow2.f32 %v560_v11 }
 0x311   :  { %v557_v12 = vpop.xlane.xlu1 %556 }
 0x312   :  { %v559_v13 = vsub.f32 %v549_v55, %v557_v12 }
 0x314   :  { %v5274_v14 = vpop.eup %5273  ;;  %v562_v15 = vmul.f32 1.442695, %v559_v13  ;;  %v5048_v13 = vld [vmem:[%s5617_s30 + $0x38] sm:$0xff] }
 0x315   :  { %v564_v16 = vsel %vm551_vm8, %v5274_v14, 0.0 }
 0x316   :  { %5275 = vpow2.f32 %v562_v15  ;;  %565 = vadd.xlane.f32.xlu2 %v564_v16  ;;  %v5028_v15 = vld [vmem:[%s5607_s27 + $0x38] sm:$0xff]  ;;  %v5047_v16 = vld [vmem:[%s5617_s30 + $0x30] sm:$0xff] }
 0x31c   :  { %v5276_v20 = vpop.eup %5275 }
 0x31d   :  { %v567_v23 = vsel %vm551_vm8, %v5276_v20, 0.0 }
 0x31e   :  { %568 = vadd.xlane.f32.xlu2 %v567_v23  ;;  %v5045_v23 = vld [vmem:[%s5617_s30 + $0x20] sm:$0xff] }
 0x389   :  { %v566_v24 = vpop.xlane.xlu2 %565 }
 0x38a   :  { %5277 = vrcp.f32 %v566_v24  ;;  %v5932_v24 = vld [vmem:[%s5532_s9] sm:$0xff] }
 0x390   :  { %v5278_v27 = vpop.eup %5277 }
 0x391   :  { %v569_v26 = vpop.xlane.xlu2 %568  ;;  %v572_v29 = vmul.f32 %v5278_v27, %v5274_v14  ;;  %v5025_v27 = vld [vmem:[%s5607_s27 + $0x20] sm:$0xff] }
 0x392   :  { %5279 = vrcp.f32 %v569_v26  ;;  %v5026_v26 = vld [vmem:[%s5607_s27 + $0x28] sm:$0xff]  ;;  %s6556_s27 = sld [smem:[#allocation38_spill]] }
 0x398   :  { %v5280_v28 = vpop.eup %5279 }
 0x399   :  { %v573_v30 = vmul.f32 %v5280_v28, %v5276_v20  ;;  %v5046_v20 = vld [vmem:[%s5617_s30 + $0x28] sm:$0xff]  ;;  %s6545_s30 = sld [smem:[#allocation35_spill]] }
 0x39b   :  { %v574_v31 = vpack.c.bf16 %v573_v30, %v572_v29 }
 0x39d   :  { %3997 = vmatmul.msk.bf16.vlgmr.msrb.gmra.mxu2 %vm551_vm8, %v574_v31 }
 0x39e   :  { %895 = vmatpush.bf16.msrb.mxu2 %v5028_v15  ;;  %v5068_v15 = vld [vmem:[%s6540_s21 + $0x18] sm:$0xff] }
 0x3a2   :  { %896 = vmatpush.bf16.msrb.mxu2 %v5027_v25  ;;  %v5067_v25 = vld [vmem:[%s6540_s21 + $0x10] sm:$0xff] }
 0x3a6   :  { %897 = vmatpush.bf16.msrb.mxu2 %v5026_v26  ;;  %v5055_v26 = vld [vmem:[%s5627_s29 + $0x30] sm:$0xff] }
 0x3aa   :  { %898 = vmatpush.bf16.msrb.mxu2 %v5025_v27  ;;  %v5066_v27 = vld [vmem:[%s6540_s21 + $0x8] sm:$0xff] }
 0x3ad   :  { %4073 = vmatmul.msk.bf16.vlgmr.msra.gmra.mxu2 %vm236_vm0, %v745_v32 }
 0x420   :  { %v588_v37 = vpop.f32.mrf.mxu2 }
 0x428   :  { %v590_v40 = vpop.f32.mrf.mxu2 }
 0x429   :  { %v601_v41 = vpack.c.bf16 %v590_v40, %v588_v37  ;;  %v5040_v37 = vld [vmem:[%s5627_s29 + $0x18] sm:$0xff]  ;;  %v5038_v40 = vld [vmem:[%s5627_s29 + $0x8] sm:$0xff] }
 0x42a   :  { %1097 = vmatpush.bf16.msra.mxu2 %v5040_v37 }
 0x42b   :  { %4118 = vmatmul.msk.bf16.vlgmr.msrb.gmra.mxu3 %vm236_vm0, %v601_v41  ;;  %v5037_v41 = vld [vmem:[%s5627_s29] sm:$0xff] }
 0x42e   :  { %1098 = vmatpush.bf16.msra.mxu2 %v5039_v39 }
 0x430   :  { %v758_v43 = vpop.f32.mrf.mxu2 }
 0x431   :  { %v763_v44 = vmul.f32 %v758_v43, %v5844_v17 }
 0x432   :  { %1099 = vmatpush.bf16.msra.mxu2 %v5038_v40  ;;  %v5043_v40 = vld [vmem:[%s6541_s25 + $0x10] sm:$0xff] }
 0x433   :  { %v765_v52 = vadd.f32 %v763_v44, %v743_v46  ;;  %v5051_v44 = vld [vmem:[%s5622_s24 + $0x30] sm:$0xff]  ;;  %v5050_v46 = vld [vmem:[%s5622_s24 + $0x28] sm:$0xff] }
 0x436   :  { %1100 = vmatpush.bf16.msra.mxu2 %v5037_v41  ;;  %v5042_v41 = vld [vmem:[%s6541_s25 + $0x8] sm:$0xff] }
 0x438   :  { %v760_v45 = vpop.f32.mrf.mxu2 }
 0x439   :  { %v764_v50 = vmul.f32 %v760_v45, %v5853_v21  ;;  %v5957_v45 = vld [vmem:[%s6539_s0] sm:$0xff] }
 0x43b   :  { %v766_v54 = vadd.f32 %v764_v50, %v744_v49 }
 0x43d   :  { %v791_v55 = vpack.c.bf16 %v766_v54, %v765_v52  ;;  %v5963_v54 = vld [vmem:[%s6539_s0 + $0x8] sm:$0xff]  ;;  %s6570_s0 = sld [smem:[#allocation26_spill]] }
 0x43f   :  { %4075 = vmatmul.msk.bf16.vlgmr.msrb.gmra.mxu0 %vm236_vm0, %v791_v55 }
 0x44f   :  { %4135 = vmatmul.msk.bf16.vlgmr.msra.gmra.mxu0 %vm236_vm0, %v5816_v57 }
 0x4ae   :  { %v5945_v38 = vpop.f32.mrf.mxu3 }
 0x4b6   :  { %v5951_v43 = vpop.f32.mrf.mxu3 }
 0x4bc   :  { %v808_v58 = vpop.f32.mrf.mxu0 }
 0x4bd   :  { %v809_v17 = vadd.f32 %v808_v58, %v5875_v48 }
 0x4bf   :  { %v813_v56 = vsel %vm551_vm8, %v809_v17, -inf }
 0x4c0   :  { %814 = vmax.xlane.f32.xlu0 %v813_v56  ;;  %v5049_v56 = vld [vmem:[%s5622_s24 + $0x20] sm:$0xff]  ;;  %s6544_s24 = sld [smem:[#allocation16_spill]] }
 0x4c4   :  { %v810_v18 = vpop.f32.mrf.mxu0 }
 0x4c5   :  { %v811_v47 = vadd.f32 %v810_v18, %v5882_v53 }
 0x4c7   :  { %v816_v19 = vsel %vm551_vm8, %v811_v47, -inf }
 0x4c8   :  { %817 = vmax.xlane.f32.xlu1 %v816_v19 }
 0x4cc   :  { %v1002_v32 = vpop.f32.mrf.mxu0 }
 0x4d4   :  { %v1004_v35 = vpop.f32.mrf.mxu0 }
 0x4d5   :  { %v1107_v36 = vpack.c.bf16 %v1004_v35, %v1002_v32  ;;  %v5044_v32 = vld [vmem:[%s6541_s25 + $0x18] sm:$0xff]  ;;  %v5261_v35 = vld [vmem:[%s6542_s14] ss:$0 sm:$0xff]  ;;  %s6572_s14 = sld [smem:[#allocation39_spill]] }
 0x533   :  { %v815_v21 = vpop.xlane.xlu0 %814 }
 0x534   :  { %v819_v51 = vsub.f32 %v809_v17, %v815_v21 }
 0x536   :  { %v821_v59 = vmul.f32 1.442695, %v819_v51 }
 0x538   :  { %5281 = vpow2.f32 %v821_v59 }
 0x53b   :  { %v818_v60 = vpop.xlane.xlu1 %817 }
 0x53c   :  { %v820_v61 = vsub.f32 %v811_v47, %v818_v60 }
 0x53e   :  { %v5282_v48 = vpop.eup %5281  ;;  %v823_v62 = vmul.f32 1.442695, %v820_v61 }
 0x53f   :  { %v825_v63 = vsel %vm551_vm8, %v5282_v48, 0.0 }
 0x540   :  { %5283 = vpow2.f32 %v823_v62  ;;  %826 = vadd.xlane.f32.xlu2 %v825_v63 }
 0x546   :  { %v5284_v53 = vpop.eup %5283 }
 0x547   :  { %v828_v0 = vsel %vm551_vm8, %v5284_v53, 0.0 }
 0x548   :  { %829 = vadd.xlane.f32.xlu0 %v828_v0 }
 0x5b3   :  { %v827_v7 = vpop.xlane.xlu2 %826 }
 0x5b4   :  { %5285 = vrcp.f32 %v827_v7 }
 0x5ba   :  { %v5286_v9 = vpop.eup %5285 }
 0x5bb   :  { %v830_v8 = vpop.xlane.xlu0 %829  ;;  %v833_v11 = vmul.f32 %v5286_v9, %v5282_v48 }
 0x5bc   :  { %5287 = vrcp.f32 %v830_v8 }
 0x5c2   :  { %v5288_v10 = vpop.eup %5287 }
 0x5c3   :  { %v834_v12 = vmul.f32 %v5288_v10, %v5284_v53 }
 0x5c5   :  { %v835_v14 = vpack.c.bf16 %v834_v12, %v833_v11 }
 0x5c7   :  { %4076 = vmatmul.msk.bf16.vlgmr.msrb.gmra.mxu1 %vm551_vm8, %v835_v14 }
 0x5c8   :  { %1216 = vmatpush.bf16.msrb.mxu1 %v5048_v13 }
 0x5cc   :  { %1217 = vmatpush.bf16.msrb.mxu1 %v5047_v16 }
 0x5d0   :  { %1218 = vmatpush.bf16.msrb.mxu1 %v5046_v20  ;;  %v5056_v20 = vld [vmem:[%s5627_s29 + $0x38] sm:$0xff] }
 0x5d4   :  { %1219 = vmatpush.bf16.msrb.mxu1 %v5045_v23 }
 0x5d7   :  { %4156 = vmatmul.msk.bf16.vlgmr.msra.gmra.mxu1 %vm236_vm0, %v5932_v24 }
 0x5e7   :  { %4200 = vmatmul.msk.bf16.vlgmr.msrb.gmra.mxu1 %vm236_vm0, %v5816_v57 }
 0x644   :  { %v849_v28 = vpop.f32.mrf.mxu1 }
 0x64c   :  { %v851_v29 = vpop.f32.mrf.mxu1 }
 0x64d   :  { %v863_v30 = vpack.c.bf16 %v851_v29, %v849_v28  ;;  %v5054_v28 = vld [vmem:[%s5627_s29 + $0x28] sm:$0xff]  ;;  %v5065_v29 = vld [vmem:[%s6540_s21] sm:$0xff]  ;;  %s6571_s21 = sld [smem:[#allocation32_spill]] }
 0x64f   :  { %4101 = vmatmul.msk.bf16.vlgmr.msrb.gmra.mxu2 %vm236_vm0, %v863_v30  ;;  %v5053_v30 = vld [vmem:[%s5627_s29 + $0x20] sm:$0xff]  ;;  %s6543_s29 = sld [smem:[#allocation27_spill]] }
 0x650   :  { %1263 = vmatpush.bf16.msrb.mxu2 %v5052_v42  ;;  %v5041_v42 = vld [vmem:[%s6541_s25] sm:$0xff] }
 0x654   :  { %v1056_v31 = vpop.f32.mrf.mxu1  ;;  %1264 = vmatpush.bf16.msrb.mxu2 %v5051_v44 }
 0x658   :  { %1265 = vmatpush.bf16.msrb.mxu2 %v5050_v46 }
 0x65c   :  { %v1058_v33 = vpop.f32.mrf.mxu1  ;;  %1266 = vmatpush.bf16.msrb.mxu2 %v5049_v56 }
 0x65d   :  { %v1108_v57 = vpack.c.bf16 %v1058_v33, %v1056_v31 }
 0x65f   :  { %v1113_v34 = vsel %vm236_vm0, %v1108_v57, 0  ;;  %4173 = vmatmul.msk.bf16.vlgmr.msra.gmra.mxu2 %vm236_vm0, %v5932_v24 }
 0x660   :  { %1122 = vmatpush.bf16.xpose.msra.mxu3 %v1113_v34 }
 0x664   :  { %v1221_v23 = vpop.f32.mrf.mxu1 }
 0x667   :  { %4174 = vmatmul.msk.bf16.vlgmr.msra.gmra.mxu3 %vm236_vm0, %v1107_v36 }
 0x668   :  { %1310 = vmatpush.bf16.msrb.mxu3 %v5056_v20 }
 0x66c   :  { %1311 = vmatpush.bf16.msrb.mxu3 %v5055_v26  ;;  %v1223_v31 = vpop.f32.mrf.mxu1 }
 0x66d   :  { %v1320_v33 = vpack.c.bf16 %v1223_v31, %v1221_v23 }
 0x66f   :  { %4225 = vmatmul.msk.bf16.vlgmr.msrb.gmra.mxu2 %vm236_vm0, %v5932_v24 }
 0x670   :  { %1312 = vmatpush.bf16.msrb.mxu3 %v5054_v28 }
 0x674   :  { %1313 = vmatpush.bf16.msrb.mxu3 %v5053_v30 }
 0x677   :  { %4250 = vmatmul.msk.bf16.vlgmr.msrb.gmra.mxu3 %vm236_vm0, %v5932_v24 }
 0x678   :  { %1465 = vmatpush.bf16.msra.mxu3 %v5044_v32  ;;  %v212_v32 = vld [vmem:[%s5532_s9] sm:$0xff]   ;;  %s6546_s9 = sld [smem:[#allocation17_spill]] }
 0x67c   :  { %1466 = vmatpush.bf16.msra.mxu3 %v5043_v40 }
 0x680   :  { %1467 = vmatpush.bf16.msra.mxu3 %v5042_v41  ;;  %v6023_v41 = vunpack.c.h.bf16 %v212_v32 }
 0x684   :  { %1468 = vmatpush.bf16.msra.mxu3 %v5041_v42 }
 0x6d2   :  { %v900_v63 = vpop.f32.mrf.mxu2 }
 0x6d3   :  { %v942_v34 = vadd.f32 %v5945_v38, %v900_v63 }
 0x6d5   :  { %v950_v37 = vadd.f32 %v5261_v35, %v942_v34 }
 0x6da   :  { %v902_v53 = vpop.f32.mrf.mxu2 }
 0x6db   :  { %v944_v57 = vadd.f32 %v5951_v43, %v902_v53 }
 0x6dd   :  { %v951_v36 = vadd.f32 %v5261_v35, %v944_v57 }
 0x6df   :  { %v1498_v39 = vpack.c.bf16 %v951_v36, %v950_v37 }
 0x6e2   :  { %v1102_v0 = vpop.f32.mrf.mxu2 }
 0x6ea   :  { %v1124_v49 = vpop.f32.mrf.mxu3  ;;  %v1104_v2 = vpop.f32.mrf.mxu2 }
 0x6eb   :  { %v1125_v50 = vadd.f32 %v1124_v49, %v5957_v45  ;;  %v1152_v4 = vpack.c.bf16 %v1104_v2, %v1102_v0 }
 0x6ed   :  { %v1129_v52 = vsel %vm551_vm8, %v1125_v50, -inf  ;;  %1163 = vmatpush.bf16.msrb.mxu0 %v1152_v4 }
 0x6ee   :  { %1130 = vmax.xlane.f32.xlu1 %v1129_v52 }
 0x6f2   :  { %v1126_v55 = vpop.f32.mrf.mxu3  ;;  %v1268_v5 = vpop.f32.mrf.mxu2 }
 0x6f3   :  { %v1127_v58 = vadd.f32 %v1126_v55, %v5963_v54 }
 0x6f5   :  { %v1132_v17 = vsel %vm551_vm8, %v1127_v58, -inf }
 0x6f6   :  { %1133 = vmax.xlane.f32.xlu2 %v1132_v17 }
 0x6fa   :  { %v1270_v6 = vpop.f32.mrf.mxu2 }
 0x6fb   :  { %v1321_v7 = vpack.c.bf16 %v1270_v6, %v1268_v5  ;;  %v5059_v6 = vld [vmem:[%s6541_s25 + $0x30] sm:$0xff] }
 0x6fd   :  { %v1326_v8 = vsel %vm236_vm0, %v1321_v7, 0  ;;  %v5058_v7 = vld [vmem:[%s6541_s25 + $0x28] sm:$0xff] }
 0x6fe   :  { %1335 = vmatpush.bf16.xpose.msra.mxu0 %v1326_v8  ;;  %v5057_v8 = vld [vmem:[%s6541_s25 + $0x20] sm:$0xff] }
 0x761   :  { %v1131_v18 = vpop.xlane.xlu1 %1130 }
 0x762   :  { %v1135_v47 = vsub.f32 %v1125_v50, %v1131_v18  ;;  %v1315_v50 = vpop.f32.mrf.mxu3 }
 0x764   :  { %v1137_v19 = vmul.f32 1.442695, %v1135_v47 }
 0x766   :  { %5289 = vpow2.f32 %v1137_v19 }
 0x769   :  { %v1134_v21 = vpop.xlane.xlu2 %1133 }
 0x76a   :  { %v1136_v51 = vsub.f32 %v1127_v58, %v1134_v21  ;;  %v1317_v17 = vpop.f32.mrf.mxu3 }
 0x76b   :  { %v1365_v56 = vpack.c.bf16 %v1317_v17, %v1315_v50 }
 0x76c   :  { %v5290_v59 = vpop.eup %5289  ;;  %v1139_v60 = vmul.f32 1.442695, %v1136_v51 }
 0x76d   :  { %v1141_v61 = vsel %vm551_vm8, %v5290_v59, 0.0  ;;  %1376 = vmatpush.bf16.msra.mxu1 %v1365_v56  ;;  %v4357_v56 = vld [vmem:[%s6545_s30 + $0x38] sm:$0xf0] }
 0x76e   :  { %5291 = vpow2.f32 %v1139_v60  ;;  %1142 = vadd.xlane.f32.xlu0 %v1141_v61 }
 0x774   :  { %v5292_v48 = vpop.eup %5291 }
 0x775   :  { %v1144_v62 = vsel %vm551_vm8, %v5292_v48, 0.0 }
 0x776   :  { %1145 = vadd.xlane.f32.xlu1 %v1144_v62 }
 0x7e1   :  { %v1143_v9 = vpop.xlane.xlu0 %1142 }
 0x7e2   :  { %5293 = vrcp.f32 %v1143_v9 }
 0x7e8   :  { %v5294_v11 = vpop.eup %5293 }
 0x7e9   :  { %v1146_v10 = vpop.xlane.xlu1 %1145  ;;  %v1149_v13 = vmul.f32 %v5294_v11, %v5290_v59 }
 0x7ea   :  { %5295 = vrcp.f32 %v1146_v10 }
 0x7f0   :  { %v5296_v12 = vpop.eup %5295 }
 0x7f1   :  { %v1150_v14 = vmul.f32 %v5296_v12, %v5292_v48  ;;  %v5060_v48 = vld [vmem:[%s6541_s25 + $0x38] sm:$0xff]  ;;  %s5514_s25 = smov 64  }
 0x7f2   :  { %1424 = vmatpush.bf16.msra.mxu2 %v5060_v48  ;;  %v5064_v12 = vld [vmem:[%s6543_s29 + $0x18] sm:$0xff] }
 0x7f3   :  { %v1151_v16 = vpack.c.bf16 %v1150_v14, %v1149_v13  ;;  %1571 = vmatpush.bf16.msrb.mxu1 %v5064_v12  ;;  %v5063_v13 = vld [vmem:[%s6543_s29 + $0x10] sm:$0xff]  ;;  %v5062_v14 = vld [vmem:[%s6543_s29 + $0x8] sm:$0xff]  ;;  %v5072_v48 = vld [vmem:[%s6545_s30 + $0x14] sm:$0xf0] }
 0x7f5   :  { %4175 = vmatmul.msk.bf16.vlgmr.msrb.gmra.mxu0 %vm551_vm8, %v1151_v16 }
 0x7f6   :  { %1530 = vmatpush.bf16.msrb.mxu0 %v5068_v15  ;;  %1425 = vmatpush.bf16.msra.mxu2 %v5059_v6  ;;  %v5061_v15 = vld [vmem:[%s6543_s29] sm:$0xff]  ;;  %s6573_s29 = sld [smem:[#allocation40_spill]] }
 0x7f7   :  { %1572 = vmatpush.bf16.msrb.mxu1 %v5063_v13  ;;  %v5069_v6 = vld [vmem:[%s6545_s30 + $0x4] sm:$0xf]  ;;  %v5096_v13 = vld [vmem:[%s6546_s9 + $0x18] sm:$0xff] }
 0x7fa   :  { %1531 = vmatpush.bf16.msrb.mxu0 %v5067_v25  ;;  %1426 = vmatpush.bf16.msra.mxu2 %v5058_v7  ;;  %v5262_v25 = vld [vmem:[%s6544_s24] ss:$0 sm:$0xff]  ;;  %s6575_s24 = sld [smem:[#allocation34_spill]] }
 0x7fb   :  { %1573 = vmatpush.bf16.msrb.mxu1 %v5062_v14  ;;  %v5100_v14 = vld [vmem:[%s6547_s6 + $0x18] sm:$0xff] }
 0x7fe   :  { %1532 = vmatpush.bf16.msrb.mxu0 %v5066_v27  ;;  %1427 = vmatpush.bf16.msra.mxu2 %v5057_v8 }
 0x7ff   :  { %1574 = vmatpush.bf16.msrb.mxu1 %v5061_v15 }
 0x802   :  { %1533 = vmatpush.bf16.msrb.mxu0 %v5065_v29 }
 0x805   :  { %4251 = vmatmul.msk.bf16.vlgmr.msra.gmra.mxu0 %vm236_vm0, %v1320_v33  ;;  %v6013_v33 = vunpack.c.l.bf16 %v212_v32  ;;  %v5094_v32 = vld [vmem:[%s6546_s9 + $0x8] sm:$0xff] }
 0x807   :  { %v276_v57 = vmul.f32 %v6013_v33, %v6013_v33 }
 0x809   :  { %v278_v34 = vsel %vm236_vm0, %v276_v57, 0.0  ;;  %v5098_v57 = vld [vmem:[%s6547_s6 + $0x8] sm:$0xff] }
 0x815   :  { %4311 = vmatmul.msk.bf16.vlgmr.msrb.gmra.mxu0 %vm236_vm0, %v1498_v39 }
 0x872   :  { %v1165_v44 = vpop.f32.mrf.mxu0 }
 0x87a   :  { %v1167_v46 = vpop.f32.mrf.mxu0 }
 0x87b   :  { %v1178_v49 = vpack.c.bf16 %v1167_v46, %v1165_v44 }
 0x87d   :  { %4294 = vmatmul.msk.bf16.vlgmr.msra.gmra.mxu3 %vm236_vm0, %v1178_v49 }
 0x882   :  { %v1337_v24 = vpop.f32.mrf.mxu0 }
 0x883   :  { %v1338_v38 = vadd.f32 %v1337_v24, %v5957_v45  ;;  %v277_v24 = vmul.f32 %v6023_v41, %v6023_v41 }
 0x885   :  { %v1342_v43 = vsel %vm551_vm8, %v1338_v38, -inf }
 0x886   :  { %1343 = vmax.xlane.f32.xlu2 %v1342_v43  ;;  %v281_v43 = vsel %vm236_vm0, %v277_v24, 0.0 }
 0x88a   :  { %v1339_v52 = vpop.f32.mrf.mxu0 }
 0x88b   :  { %v1340_v55 = vadd.f32 %v1339_v52, %v5963_v54  ;;  %v4355_v52 = vld [vmem:[%s6545_s30 + $0x30] sm:$0xf] }
 0x88d   :  { %v1345_v58 = vsel %vm551_vm8, %v1340_v55, -inf }
 0x88e   :  { %1346 = vmax.xlane.f32.xlu0 %v1345_v58  ;;  %v5075_v58 = vld [vmem:[%s6545_s30 + $0x34] sm:$0xf] }
 0x892   :  { %v1535_v35 = vpop.f32.mrf.mxu0 }
 0x89a   :  { %v1537_v44 = vpop.f32.mrf.mxu0 }
 0x8f9   :  { %v1344_v18 = vpop.xlane.xlu2 %1343 }
 0x8fa   :  { %v1348_v47 = vsub.f32 %v1338_v38, %v1344_v18  ;;  %v4347_v18 = vld [vmem:[%s6545_s30 + $0x20] sm:$0xf] }
 0x8fc   :  { %v1350_v19 = vmul.f32 1.442695, %v1348_v47  ;;  %v5074_v47 = vld [vmem:[%s6545_s30 + $0x24] sm:$0xf0] }
 0x8fe   :  { %5297 = vpow2.f32 %v1350_v19  ;;  %v5073_v19 = vld [vmem:[%s6545_s30 + $0x24] sm:$0xf] }
 0x900   :  { %v1470_v16 = vpop.f32.mrf.mxu3 }
 0x901   :  { %v1347_v21 = vpop.xlane.xlu0 %1346 }
 0x902   :  { %v1349_v45 = vsub.f32 %v1340_v55, %v1347_v21  ;;  %v5076_v55 = vld [vmem:[%s6545_s30 + $0x34] sm:$0xf0] }
 0x903   :  { %v4356_v17 = vor.u32 %v5076_v55, %v4355_v52 }
 0x904   :  { %v5298_v51 = vpop.eup %5297  ;;  %v1352_v59 = vmul.f32 1.442695, %v1349_v45  ;;  %v4348_v45 = vor.u32 %v5074_v47, %v4347_v18 }
 0x905   :  { %v1354_v60 = vsel %vm551_vm8, %v5298_v51, 0.0  ;;  %1682 = vmatpush.bf16.msrb.mxu2 %v4356_v17 }
 0x906   :  { %5299 = vpow2.f32 %v1352_v59  ;;  %1355 = vadd.xlane.f32.xlu1 %v1354_v60 }
 0x908   :  { %v1472_v26 = vpop.f32.mrf.mxu3 }
 0x909   :  { %1683 = vmatpush.bf16.msrb.mxu2 %v4348_v45 }
 0x90c   :  { %v5300_v54 = vpop.eup %5299 }
 0x90d   :  { %v1357_v61 = vsel %vm551_vm8, %v5300_v54, 0.0 }
 0x90e   :  { %1358 = vadd.xlane.f32.xlu2 %v1357_v61  ;;  %v4339_v61 = vld [vmem:[%s6545_s30 + $0x10] sm:$0xf] }
 0x916   :  { %279 = vadd.xlane.f32.xlu2 %v278_v34 }
 0x979   :  { %v1356_v62 = vpop.xlane.xlu1 %1355 }
 0x97a   :  { %5301 = vrcp.f32 %v1356_v62  ;;  %v4340_v62 = vor.u32 %v5072_v48, %v4339_v61 }
 0x97c   :  { %1684 = vmatpush.bf16.msrb.mxu2 %v4340_v62 }
 0x980   :  { %v5302_v53 = vpop.eup %5301 }
 0x981   :  { %v1359_v63 = vpop.xlane.xlu2 %1358  ;;  %v1362_v2 = vmul.f32 %v5302_v53, %v5298_v51  ;;  %v4349_v51 = vld [vmem:[%s6545_s30 + $0x28] sm:$0xf0]  ;;  %v4341_v53 = vld [vmem:[%s6545_s30 + $0x18] sm:$0xf0] }
 0x982   :  { %5303 = vrcp.f32 %v1359_v63  ;;  %v4352_v60 = vor.u32 %v5073_v19, %v4349_v51  ;;  %v5071_v63 = vld [vmem:[%s6545_s30 + $0x14] sm:$0xf] }
 0x988   :  { %v5304_v0 = vpop.eup %5303 }
 0x989   :  { %v1363_v4 = vmul.f32 %v5304_v0, %v5300_v54  ;;  %v280_v21 = vpop.xlane.xlu2 %279  ;;  %v4344_v0 = vor.u32 %v5071_v63, %v4341_v53 }
 0x98a   :  { %v284_v59 = vmul.f32 %v280_v21, %v5799_v22  ;;  %v217_v21 = vld [vmem:[%s6548_s12] sm:$0x7] }
 0x98b   :  { %v1364_v5 = vpack.c.bf16 %v1363_v4, %v1362_v2  ;;  %v4331_v4 = vld [vmem:[%s6545_s30] sm:$0xf] }
 0x98c   :  { %v6044_v54 = vmax.f32 %v284_v59, 1e-16 }
 0x98d   :  { %4252 = vmatmul.msk.bf16.vlgmr.msra.gmra.mxu1 %vm551_vm8, %v1364_v5  ;;  %v5070_v5 = vld [vmem:[%s6545_s30 + $0x4] sm:$0xf0] }
 0x98e   :  { %5305 = vrsqrt.f32 %v6044_v54  ;;  %v4332_v8 = vor.u32 %v5070_v5, %v4331_v4  ;;  %vm294_vm9 = vweird.f32 %v6044_v54 }
 0x990   :  { %1685 = vmatpush.bf16.msrb.mxu2 %v4332_v8 }
 0x994   :  { %v6056_v12 = vpop.eup %5305 }
 0x995   :  { %v289_v15 = vmul.f32 %v6056_v12, %v6044_v54  ;;  %vm295_vm10 = vweird.f32 %v6056_v12  ;;  %v5405_v54 = vld [vmem:[%s5537_s13] sm:$0x7]  ;;  %s6554_s13 = sld [smem:[#allocation37_spill]] }
 0x996   :  { %vm6074_vm13 = vmor %vm294_vm9, %vm295_vm10  ;;  %v1617_v61 = vperm.slane %v5405_v54, 2  ;;  %v5109_v54 = vld [vmem:[%s6546_s9 + $0x20] sm:$0xff] }
 0xa0a   :  { %v1378_v9 = vpop.f32.mrf.mxu1 }
 0xa12   :  { %v1380_v10 = vpop.f32.mrf.mxu1 }
 0xa13   :  { %v1392_v11 = vpack.c.bf16 %v1380_v10, %v1378_v9  ;;  %v4333_v9 = vld [vmem:[%s6545_s30 + $0x8] sm:$0xf0]  ;;  %s5515_s30 = smov [#allocation2]  }
 0xa14   :  { %v4336_v10 = vor.u32 %v5069_v6, %v4333_v9  ;;  %v5104_v9 = vld [vmem:[%s6553_s20 + $0x18] sm:$0xff] }
 0xa15   :  { %4277 = vmatmul.msk.bf16.vlgmr.msra.gmra.mxu2 %vm236_vm0, %v1392_v11 }
 0xa16   :  { %1953 = vmatpush.bf16.msra.mxu2 %v5096_v13  ;;  %v6100_v13 = vld [vmem:[%s5567_s8 + $0x18] sm:$0xff] }
 0xa98   :  { %v1429_v20 = vpop.f32.mrf.mxu2 }
 0xa99   :  { %v1471_v23 = vadd.f32 %v1470_v16, %v1429_v20  ;;  %v5095_v16 = vld [vmem:[%s6546_s9 + $0x10] sm:$0xff] }
 0xa9a   :  { %v5099_v20 = vld [vmem:[%s6547_s6 + $0x10] sm:$0xff]  ;;  %1954 = vmatpush.bf16.msra.mxu2 %v5095_v16 }
 0xa9b   :  { %v1479_v29 = vadd.f32 %v5262_v25, %v1471_v23  ;;  %v6105_v16 = vld [vmem:[%s5567_s8 + $0x10] sm:$0xff] }
 0xa9e   :  { %1955 = vmatpush.bf16.msra.mxu2 %v5094_v32  ;;  %v5091_v32 = vld [vmem:[%s6554_s13 + $0x70] sm:$0xff] }
 0xaa0   :  { %v1431_v27 = vpop.f32.mrf.mxu2 }
 0xaa1   :  { %v1473_v28 = vadd.f32 %v1472_v26, %v1431_v27 }
 0xaa3   :  { %v1480_v30 = vadd.f32 %v5262_v25, %v1473_v28 }
 0xaa5   :  { %v1489_v31 = vpack.c.bf16 %v1480_v30, %v1479_v29  ;;  %v290_v30 = vmul.f32 %v6056_v12, %v289_v15  ;;  %v5102_v15 = vld [vmem:[%s6553_s20 + $0x8] sm:$0xff] }
 0xaa7   :  { %4328 = vmatmul.msk.bf16.vlgmr.msrb.gmra.mxu1 %vm236_vm0, %v1489_v31 }
 0xb24   :  { %v1576_v36 = vpop.f32.mrf.mxu1 }
 0xb25   :  { %v1577_v37 = vadd.f32 %v1576_v36, %v1535_v35  ;;  %v291_v36 = vmul.f32 0.5, %v290_v30  ;;  %v5092_v30 = vld [vmem:[%s6554_s13 + $0x78] sm:$0xff] }
 0xb26   :  { %1890 = vmatpush.bf16.msra.mxu1 %v5092_v30 }
 0xb27   :  { %v6019_v39 = vadd.f32 %v1577_v37, %v5780_v1  ;;  %v5093_v37 = vld [vmem:[%s6546_s9] sm:$0xff] }
 0xb28   :  { %1956 = vmatpush.bf16.msra.mxu2 %v5093_v37  ;;  %v5080_v37 = vld [vmem:[%s6554_s13 + $0x18] sm:$0xff] }
 0xb29   :  { %v1583_v40 = vmul.f32 %v6019_v39, %v6019_v39 }
 0xb2a   :  { %1891 = vmatpush.bf16.msra.mxu1 %v5091_v32 }
 0xb2b   :  { %v1585_v42 = vsel %vm236_vm0, %v1583_v40, 0.0  ;;  %v5097_v40 = vld [vmem:[%s6547_s6] sm:$0xff] }
 0xb2c   :  { %v1578_v46 = vpop.f32.mrf.mxu1  ;;  %1586 = vadd.xlane.f32.xlu0 %v1585_v42 }
 0xb2d   :  { %v1579_v49 = vadd.f32 %v1578_v46, %v1537_v44 }
 0xb2f   :  { %v6029_v1 = vadd.f32 %v1579_v49, %v5784_v3  ;;  %v4360_v3 = vor.u32 %v5075_v58, %v4357_v56  ;;  %v292_v49 = vsub.f32 1.5, %v291_v36  ;;  %v5089_v36 = vld [vmem:[%s6554_s13 + $0x60] sm:$0xff] }
 0xb31   :  { %v1584_v38 = vmul.f32 %v6029_v1, %v6029_v1  ;;  %1696 = vmatpush.bf16.msrb.mxu3 %v4360_v3  ;;  %v293_v55 = vmul.f32 %v6056_v12, %v292_v49  ;;  %v5086_v49 = vld [vmem:[%s6554_s13 + $0x48] sm:$0xff] }
 0xb33   :  { %v1588_v50 = vsel %vm236_vm0, %v1584_v38, 0.0  ;;  %v297_v45 = vsel %vm6074_vm13, %v6056_v12, %v293_v55  ;;  %v5103_v12 = vld [vmem:[%s6553_s20 + $0x10] sm:$0xff] }
 0xb34   :  { %1589 = vadd.xlane.f32.xlu1 %v1588_v50  ;;  %282 = vadd.xlane.f32.xlu0 %v281_v43  ;;  %v308_v53 = vmul.f32 %v297_v45, %v6013_v33 }
 0xb35   :  { %1697 = vmatpush.bf16.msrb.mxu3 %v4352_v60  ;;  %v2525_v60 = vperm.slane %v217_v21, 1 }
 0xb37   :  { %v2526_v4 = vmul.f32 %v2525_v60, %v308_v53 }
 0xb39   :  { %1698 = vmatpush.bf16.msrb.mxu3 %v4344_v0 }
 0xb3d   :  { %1699 = vmatpush.bf16.msrb.mxu3 %v4336_v10 }
 0xb41   :  { %1999 = vmatpush.bf16.msra.mxu3 %v5100_v14  ;;  %v1908_v14 = vperm.slane %v217_v21, 0  ;;  %v5110_v21 = vld [vmem:[%s6546_s9 + $0x28] sm:$0xff] }
 0xb45   :  { %2000 = vmatpush.bf16.msra.mxu3 %v5099_v20  ;;  %v1909_v20 = vmul.f32 %v1908_v14, %v308_v53 }
 0xb49   :  { %2001 = vmatpush.bf16.msra.mxu3 %v5098_v57  ;;  %v5082_v57 = vld [vmem:[%s6554_s13 + $0x28] sm:$0xff] }
 0xb4d   :  { %2002 = vmatpush.bf16.msra.mxu3 %v5097_v40  ;;  %v5088_v40 = vld [vmem:[%s6554_s13 + $0x58] sm:$0xff] }
 0xb9f   :  { %v1587_v2 = vpop.xlane.xlu0 %1586 }
 0xba0   :  { %v1591_v7 = vmul.f32 %v1587_v2, %v5799_v22 }
 0xba2   :  { %v1593_v11 = vmax.f32 %v1591_v7, 1e-16 }
 0xba4   :  { %5307 = vrsqrt.f32 %v1593_v11  ;;  %vm1601_vm12 = vweird.f32 %v1593_v11 }
 0xba7   :  { %v1590_v23 = vpop.xlane.xlu1 %1589  ;;  %v283_v25 = vpop.xlane.xlu0 %282 }
 0xba8   :  { %v1592_v26 = vmul.f32 %v1590_v23, %v5799_v22  ;;  %v285_v27 = vmul.f32 %v283_v25, %v5799_v22  ;;  %v5101_v25 = vld [vmem:[%s6553_s20] sm:$0xff] }
 0xbaa   :  { %v5308_v28 = vpop.eup %5307  ;;  %v1594_v29 = vmax.f32 %v1592_v26, 1e-16  ;;  %v287_v31 = vmax.f32 %v285_v27, 1e-16  ;;  %v6110_v26 = vld [vmem:[%s5567_s8 + $0x8] sm:$0xff] }
 0xbab   :  { %v1596_v34 = vmul.f32 %v5308_v28, %v1593_v11  ;;  %vm1602_vm11 = vweird.f32 %v5308_v28 }
 0xbac   :  { %5309 = vrsqrt.f32 %v1594_v29  ;;  %vm6078_vm14 = vmor %vm1601_vm12, %vm1602_vm11  ;;  %vm304_vm15 = vweird.f32 %v287_v31  ;;  %vm1611_vm3 = vweird.f32 %v1594_v29 }
 0xbad   :  { %v1597_v35 = vmul.f32 %v5308_v28, %v1596_v34  ;;  %5311 = vrsqrt.f32 %v287_v31  ;;  %v5090_v34 = vld [vmem:[%s6554_s13 + $0x68] sm:$0xff] }
 0xbae   :  { %1892 = vmatpush.bf16.msra.mxu1 %v5090_v34 }
 0xbaf   :  { %v1598_v42 = vmul.f32 0.5, %v1597_v35  ;;  %v5081_v35 = vld [vmem:[%s6554_s13 + $0x20] sm:$0xff] }
 0xbb1   :  { %v1599_v44 = vsub.f32 1.5, %v1598_v42  ;;  %v5079_v42 = vld [vmem:[%s6554_s13 + $0x10] sm:$0xff] }
 0xbb2   :  { %v5310_v46 = vpop.eup %5309  ;;  %1893 = vmatpush.bf16.msra.mxu1 %v5089_v36 }
 0xbb3   :  { %v5312_v24 = vpop.eup %5311  ;;  %v1606_v38 = vmul.f32 %v5310_v46, %v1594_v29  ;;  %v1600_v50 = vmul.f32 %v5308_v28, %v1599_v44  ;;  %vm1612_vm2 = vweird.f32 %v5310_v46  ;;  %v5084_v29 = vld [vmem:[%s6554_s13 + $0x38] sm:$0xff]  ;;  %v5087_v44 = vld [vmem:[%s6554_s13 + $0x50] sm:$0xff] }
 0xbb4   :  { %v299_v43 = vmul.f32 %v5312_v24, %v287_v31  ;;  %vm305_vm1 = vweird.f32 %v5312_v24  ;;  %vm1613_vm5 = vmor %vm1611_vm3, %vm1612_vm2  ;;  %1876 = vmatpush.bf16.msra.mxu0 %v5084_v29  ;;  %v5083_v31 = vld [vmem:[%s6554_s13 + $0x30] sm:$0xff] }
 0xbb5   :  { %v1607_v52 = vmul.f32 %v5310_v46, %v1606_v38  ;;  %v1604_v47 = vsel %vm6078_vm14, %v5308_v28, %v1600_v50  ;;  %vm306_vm4 = vmor %vm304_vm15, %vm305_vm1  ;;  %v6116_v28 = vld [vmem:[%s5567_s8] sm:$0xff]  ;;  %s6555_s8 = sld [smem:[#allocation36_spill]]  ;;  %v5112_v38 = vld [vmem:[%s6546_s9 + $0x38] sm:$0xff] }
 0xbb6   :  { %v300_v58 = vmul.f32 %v5312_v24, %v299_v43  ;;  %v1615_v48 = vmul.f32 %v1604_v47, %v6019_v39  ;;  %1894 = vmatpush.bf16.msra.mxu1 %v5088_v40  ;;  %v5077_v43 = vld [vmem:[%s6554_s13] sm:$0xff] }
 0xbb7   :  { %v1608_v17 = vmul.f32 0.5, %v1607_v52  ;;  %v5085_v50 = vld [vmem:[%s6554_s13 + $0x40] sm:$0xff] }
 0xbb8   :  { %v301_v18 = vmul.f32 0.5, %v300_v58  ;;  %v1618_v6 = vmul.f32 %v1617_v61, %v1615_v48  ;;  %1877 = vmatpush.bf16.msra.mxu0 %v5083_v31  ;;  %v5111_v58 = vld [vmem:[%s6546_s9 + $0x30] sm:$0xff]  ;;  %s3845_s9 = sshll.u32 %s5515_s30, 4  ;;  %s3846_s9 = int_to_ptr.vmem [resolvable:$true] %s3845_s9 }
 0xbb9   :  { %v1609_v19 = vsub.f32 1.5, %v1608_v17 }
 0xbba   :  { %v302_v51 = vsub.f32 1.5, %v301_v18  ;;  %1895 = vmatpush.bf16.msra.mxu1 %v5087_v44 }
 0xbbb   :  { %v1610_v59 = vmul.f32 %v5310_v46, %v1609_v19 }
 0xbbc   :  { %v303_v62 = vmul.f32 %v5312_v24, %v302_v51  ;;  %1878 = vmatpush.bf16.msra.mxu0 %v5082_v57 }
 0xbbd   :  { %v1614_v63 = vsel %vm1613_vm5, %v5310_v46, %v1610_v59  ;;  %v5078_v46 = vld [vmem:[%s6554_s13 + $0x8] sm:$0xff] }
 0xbbe   :  { %v1616_v0 = vmul.f32 %v1614_v63, %v6029_v1  ;;  %v307_v2 = vsel %vm306_vm4, %v5312_v24, %v303_v62  ;;  %v1629_v24 = vld [vmem:[%s6555_s8] sm:$0x3]  ;;  %1896 = vmatpush.bf16.msra.mxu1 %v5086_v49 }
 0xbbf   :  { %v309_v5 = vmul.f32 %v307_v2, %v6023_v41  ;;  %v1631_v52 = vperm.slane %v1629_v24, 0  ;;  %v1632_v55 = vperm.slane %v1629_v24, 1 }
 0xbc0   :  { %v1619_v7 = vmul.f32 %v1617_v61, %v1616_v0  ;;  %1879 = vmatpush.bf16.msra.mxu0 %v5081_v35 }
 0xbc1   :  { %v2527_v8 = vmul.f32 %v2525_v60, %v309_v5  ;;  %v1910_v23 = vmul.f32 %v1908_v14, %v309_v5 }
 0xbc2   :  { %v1628_v10 = vpack.c.bf16 %v1619_v7, %v1618_v6  ;;  %1897 = vmatpush.bf16.msra.mxu1 %v5085_v50  ;;  %v5116_v50 = vld [vmem:[%s6547_s6 + $0x38] sm:$0xff] }
 0xbc3   :  { %v6094_v11 = vpack.c.bf16 %v2527_v8, %v2526_v4  ;;  %v6113_v27 = vpack.c.bf16 %v1910_v23, %v1909_v20 }
 0xbc4   :  { %4361 = vmatmul.msk.bf16.vlgmr.msrb.gmra.mxu2 %vm236_vm0, %v1628_v10  ;;  %4362 = vmatmul.msk.bf16.vlgmr.msrb.gmra.mxu3 %vm236_vm0, %v1628_v10 }
 0xbc5   :  { %2045 = vmatpush.bf16.msrb.mxu2 %v5104_v9  ;;  %2065 = vmatpush.bf16.msrb.mxu3 %v6100_v13 }
 0xbc6   :  { %1880 = vmatpush.bf16.msra.mxu0 %v5080_v37 }
 0xbc9   :  { %2046 = vmatpush.bf16.msrb.mxu2 %v5103_v12  ;;  %2066 = vmatpush.bf16.msrb.mxu3 %v6105_v16 }
 0xbca   :  { %1881 = vmatpush.bf16.msra.mxu0 %v5079_v42 }
 0xbcd   :  { %2047 = vmatpush.bf16.msrb.mxu2 %v5102_v15  ;;  %2067 = vmatpush.bf16.msrb.mxu3 %v6110_v26 }
 0xbce   :  { %1882 = vmatpush.bf16.msra.mxu0 %v5078_v46 }
 0xbd1   :  { %2048 = vmatpush.bf16.msrb.mxu2 %v5101_v25  ;;  %2068 = vmatpush.bf16.msrb.mxu3 %v6116_v28 }
 0xbd2   :  { %1883 = vmatpush.bf16.msra.mxu0 %v5077_v43 }
 0xbd4   :  { %4443 = vmatmul.msk.bf16.vlgmr.msra.gmra.mxu2 %vm236_vm0, %v6113_v27  ;;  %4460 = vmatmul.msk.bf16.vlgmr.msra.gmra.mxu3 %vm236_vm0, %v6113_v27 }
 0xbd5   :  { %2212 = vmatpush.bf16.msra.mxu3 %v5112_v38 }
 0xbd6   :  { %2089 = vmatpush.bf16.msrb.mxu0 %v6100_v13 }
 0xbd9   :  { %2213 = vmatpush.bf16.msra.mxu3 %v5111_v58 }
 0xbda   :  { %2090 = vmatpush.bf16.msrb.mxu0 %v6105_v16 }
 0xbdd   :  { %2214 = vmatpush.bf16.msra.mxu3 %v5110_v21 }
 0xbde   :  { %2091 = vmatpush.bf16.msrb.mxu0 %v6110_v26 }
 0xbe1   :  { %2215 = vmatpush.bf16.msra.mxu3 %v5109_v54 }
 0xbe2   :  { %2092 = vmatpush.bf16.msrb.mxu0 %v6116_v28 }
 0xbe4   :  { %4477 = vmatmul.msk.bf16.vlgmr.msrb.gmra.mxu2 %vm236_vm0, %v6113_v27 }
 0xc47   :  { %v1687_v17 = vpop.f32.mrf.mxu2  ;;  %v1701_v56 = vpop.f32.mrf.mxu3 }
 0xc48   :  { %v1688_v3 = vadd.f32 %v1687_v17, %v1631_v52  ;;  %v1702_v18 = vadd.f32 %v1701_v56, %v1632_v55  ;;  %v5115_v56 = vld [vmem:[%s6547_s6 + $0x30] sm:$0xff] }
 0xc4a   :  { %v1710_v47 = vmul.f32 0.044715, %v1688_v3  ;;  %v1711_v19 = vmul.f32 0.044715, %v1702_v18  ;;  %v1706_v36 = vmul.f32 0.5, %v1688_v3  ;;  %v1707_v42 = vmul.f32 0.5, %v1702_v18 }
 0xc4c   :  { %v1714_v45 = vmul.f32 %v1710_v47, %v1688_v3  ;;  %v1715_v51 = vmul.f32 %v1711_v19, %v1702_v18  ;;  %v5113_v19 = vld [vmem:[%s6547_s6 + $0x20] sm:$0xff] }
 0xc4e   :  { %v1718_v59 = vmul.f32 %v1714_v45, %v1688_v3  ;;  %v1719_v60 = vmul.f32 %v1715_v51, %v1702_v18  ;;  %v5263_v51 = vld [vmem:[%s6556_s27] ss:$0 sm:$0xff] }
 0xc4f   :  { %v1689_v61 = vpop.f32.mrf.mxu2  ;;  %v1703_v48 = vpop.f32.mrf.mxu3 }
 0xc50   :  { %v1722_v62 = vadd.f32 %v1718_v59, %v1688_v3  ;;  %v1690_v63 = vadd.f32 %v1689_v61, %v1631_v52  ;;  %v1704_v53 = vadd.f32 %v1703_v48, %v1632_v55  ;;  %v1723_v0 = vadd.f32 %v1719_v60, %v1702_v18  ;;  %v5114_v18 = vld [vmem:[%s6547_s6 + $0x28] sm:$0xff]  ;;  %v6173_v61 = vld [vmem:[%s6557_s15] sm:$0xff] }
 0xc52   :  { %v1712_v2 = vmul.f32 0.044715, %v1690_v63  ;;  %v1713_v4 = vmul.f32 0.044715, %v1704_v53  ;;  %v1726_v5 = vmul.f32 0.7978846, %v1722_v62 }
 0xc53   :  { %v1727_v7 = vmul.f32 0.7978846, %v1723_v0  ;;  %v1708_v37 = vmul.f32 0.5, %v1690_v63  ;;  %v1709_v44 = vmul.f32 0.5, %v1704_v53  ;;  %v6176_v62 = vld [vmem:[%s6558_s16] sm:$0xff] }
 0xc54   :  { %v1716_v6 = vmul.f32 %v1712_v2, %v1690_v63  ;;  %v1717_v8 = vmul.f32 %v1713_v4, %v1704_v53  ;;  %5313 = vtanh.f32 %v1726_v5 }
 0xc55   :  { %5315 = vtanh.f32 %v1727_v7 }
 0xc56   :  { %v1720_v9 = vmul.f32 %v1716_v6, %v1690_v63  ;;  %v1721_v10 = vmul.f32 %v1717_v8, %v1704_v53 }
 0xc57   :  { %v6150_v12 = vpop.f32.mrf.mxu2  ;;  %v2004_v17 = vpop.f32.mrf.mxu3 }
 0xc58   :  { %v1724_v14 = vadd.f32 %v1720_v9, %v1690_v63  ;;  %v1725_v15 = vadd.f32 %v1721_v10, %v1704_v53  ;;  %v2055_v0 = vmul.f32 %v6150_v12, %v6176_v62 }
 0xc5a   :  { %v1728_v20 = vmul.f32 0.7978846, %v1724_v14  ;;  %v1729_v23 = vmul.f32 0.7978846, %v1725_v15  ;;  %v5314_v25 = vpop.eup %5313 }
 0xc5b   :  { %v5316_v29 = vpop.eup %5315  ;;  %v1734_v32 = vadd.f32 1.0, %v5314_v25 }
 0xc5c   :  { %5317 = vtanh.f32 %v1728_v20  ;;  %v1735_v34 = vadd.f32 1.0, %v5316_v29 }
 0xc5d   :  { %5319 = vtanh.f32 %v1729_v23  ;;  %v1738_v49 = vmul.f32 %v1734_v32, %v1706_v36  ;;  %v2079_v23 = vmul.f32 %v2004_v17, %v6176_v62  ;;  %v5118_v36 = vld [vmem:[%s6553_s20 + $0x28] sm:$0xff] }
 0xc5e   :  { %v1739_v38 = vmul.f32 %v1735_v34, %v1707_v42  ;;  %v5117_v42 = vld [vmem:[%s6553_s20 + $0x20] sm:$0xff] }
 0xc5f   :  { %v1960_v30 = vpop.f32.mrf.mxu2  ;;  %v2006_v21 = vpop.f32.mrf.mxu3 }
 0xc60   :  { %v2057_v31 = vpack.c.bf16 %v1960_v30, %v6150_v12  ;;  %v2081_v45 = vpack.c.bf16 %v2006_v21, %v2004_v17 }
 0xc62   :  { %v5318_v57 = vpop.eup %5317  ;;  %4478 = vmatmul.msk.bf16.vlgmr.msrb.gmra.mxu3 %vm236_vm0, %v2057_v31 }
 0xc63   :  { %v5320_v35 = vpop.eup %5319  ;;  %v1736_v40 = vadd.f32 1.0, %v5318_v57  ;;  %2350 = vmatpush.bf16.msrb.mxu3 %v6100_v13  ;;  %v5120_v57 = vld [vmem:[%s6553_s20 + $0x38] sm:$0xff] }
 0xc64   :  { %v1737_v46 = vadd.f32 1.0, %v5320_v35  ;;  %v5119_v35 = vld [vmem:[%s6553_s20 + $0x30] sm:$0xff]  ;;  %s5427_s20 = scalar_lea.hbm %s5772_s3, 16 }
 0xc65   :  { %v1740_v24 = vmul.f32 %v1736_v40, %v1708_v37 }
 0xc66   :  { %v1741_v43 = vmul.f32 %v1737_v46, %v1709_v44  ;;  %v6209_v46 = vld [vmem:[%s6559_s18] sm:$0xff] }
 0xc67   :  { %v2050_v52 = vpop.f32.mrf.mxu2  ;;  %v1774_v55 = vpack.c.bf16 %v1740_v24, %v1738_v49  ;;  %2351 = vmatpush.bf16.msrb.mxu3 %v6105_v16 }
 0xc68   :  { %v1775_v58 = vpack.c.bf16 %v1741_v43, %v1739_v38 }
 0xc69   :  { %1884 = vmatmul.bf16.vlgmr.msra.gmra.mxu0 %v1774_v55 }
 0xc6a   :  { %1898 = vmatmul.bf16.vlgmr.msra.gmra.mxu1 %v1775_v58  ;;  %2259 = vmatpush.bf16.msra.mxu0 %v5116_v50  ;;  %v6216_v50 = vld [vmem:[%s6559_s18 + $0x8] sm:$0xff] }
 0xc6b   :  { %2352 = vmatpush.bf16.msrb.mxu3 %v6110_v26 }
 0xc6e   :  { %2260 = vmatpush.bf16.msra.mxu0 %v5115_v56 }
 0xc6f   :  { %v2052_v3 = vpop.f32.mrf.mxu2  ;;  %2353 = vmatpush.bf16.msrb.mxu3 %v6116_v28 }
 0xc70   :  { %v2148_v47 = vpack.c.bf16 %v2052_v3, %v2050_v52 }
 0xc72   :  { %2159 = vmatpush.bf16.msra.mxu2 %v2148_v47  ;;  %4506 = vmatmul.msk.bf16.vlgmr.msra.gmra.mxu3 %vm236_vm0, %v6113_v27 }
 0xc73   :  { %2261 = vmatpush.bf16.msra.mxu0 %v5114_v18 }
 0xc76   :  { %2326 = vmatpush.bf16.msrb.mxu2 %v6100_v13 }
 0xc77   :  { %2262 = vmatpush.bf16.msra.mxu0 %v5113_v19 }
 0xc79   :  { %4479 = vmatmul.msk.bf16.vlgmr.msrb.gmra.mxu0 %vm236_vm0, %v2081_v45 }
 0xc7a   :  { %2327 = vmatpush.bf16.msrb.mxu2 %v6105_v16  ;;  %v6179_v16 = vld [vmem:[%s6558_s16 + $0x8] sm:$0xff] }
 0xc7b   :  { %v2056_v2 = vmul.f32 %v1960_v30, %v6179_v16  ;;  %v2080_v25 = vmul.f32 %v2006_v21, %v6179_v16 }
 0xc7e   :  { %2328 = vmatpush.bf16.msrb.mxu2 %v6110_v26  ;;  %v6183_v26 = vld [vmem:[%s6557_s15 + $0x8] sm:$0xff] }
 0xc82   :  { %2329 = vmatpush.bf16.msrb.mxu2 %v6116_v28 }
 0xc89   :  { %4531 = vmatmul.msk.bf16.vlgmr.msra.gmra.mxu0 %vm236_vm0, %v6113_v27 }
 0xce5   :  { %v2070_v59 = vpop.f32.mrf.mxu3 }
 0xce6   :  { %v1885_v13 = vpop.f32.mrf.mxu0  ;;  %v2075_v28 = vmul.f32 %v2070_v59, %v6173_v61 }
 0xce7   :  { %v1886_v60 = vadd.f32 %v5263_v51, %v1885_v13  ;;  %v1899_v54 = vpop.f32.mrf.mxu1 }
 0xce8   :  { %v2077_v7 = vadd.f32 %v2075_v28, %v2055_v0 }
 0xce9   :  { %v1900_v48 = vadd.f32 %v1899_v54, %v1886_v60 }
 0xceb   :  { %v1904_v63 = vadd.f32 %v1900_v48, %v6019_v39 }
 0xced   :  { %1906 = vst.msk [vmem:[#allocation2] sm:$0xff] %vm236_vm0, %v1904_v63  ;;  %v2072_v53 = vpop.f32.mrf.mxu3 }
 0xcee   :  { %v2076_v4 = vmul.f32 %v2072_v53, %v6183_v26  ;;  %v1887_v5 = vpop.f32.mrf.mxu0 }
 0xcef   :  { %v1888_v6 = vadd.f32 %v5263_v51, %v1887_v5  ;;  %v1901_v39 = vpop.f32.mrf.mxu1 }
 0xcf0   :  { %v2078_v8 = vadd.f32 %v2076_v4, %v2056_v2 }
 0xcf1   :  { %v1902_v9 = vadd.f32 %v1901_v39, %v1888_v6 }
 0xcf2   :  { %v2103_v10 = vpack.c.bf16 %v2078_v8, %v2077_v7  ;;  %v5108_v8 = vld [vmem:[%s6560_s22 + $0x18] sm:$0xff] }
 0xcf3   :  { %v1905_v14 = vadd.f32 %v1902_v9, %v6029_v1  ;;  %2509 = vmatpush.bf16.msra.mxu3 %v5108_v8  ;;  %v5123_v8 = vld [vmem:[%s6560_s22 + $0x30] sm:$0xff] }
 0xcf5   :  { %1907 = vst.msk [vmem:[#allocation2 + $0x8] sm:$0xff] %vm236_vm0, %v1905_v14  ;;  %v6206_v44 = vpop.f32.mrf.mxu3 }
 0xcf6   :  { %v2094_v15 = vpop.f32.mrf.mxu0 }
 0xcf7   :  { %v2099_v12 = vmul.f32 %v2094_v15, %v6173_v61 }
 0xcf9   :  { %v2101_v30 = vadd.f32 %v2099_v12, %v2079_v23  ;;  %v5107_v23 = vld [vmem:[%s6560_s22 + $0x10] sm:$0xff] }
 0xcfa   :  { %2510 = vmatpush.bf16.msra.mxu3 %v5107_v23 }
 0xcfd   :  { %v6212_v38 = vpop.f32.mrf.mxu3 }
 0xcfe   :  { %v2096_v20 = vpop.f32.mrf.mxu0 }
 0xcff   :  { %v2100_v29 = vmul.f32 %v2096_v20, %v6183_v26  ;;  %v2318_v20 = vpack.c.bf16 %v6212_v38, %v6206_v44 }
 0xd01   :  { %v2102_v31 = vadd.f32 %v2100_v29, %v2080_v25  ;;  %v5106_v25 = vld [vmem:[%s6560_s22 + $0x8] sm:$0xff]  ;;  %v5105_v29 = vld [vmem:[%s6560_s22] sm:$0xff] }
 0xd02   :  { %2511 = vmatpush.bf16.msra.mxu3 %v5106_v25 }
 0xd03   :  { %v2104_v32 = vpack.c.bf16 %v2102_v31, %v2101_v30  ;;  %v5128_v30 = vld [vmem:[%s6561_s23 + $0x18] sm:$0xff] }
 0xd05   :  { %v2109_v1 = vsel %vm236_vm0, %v2104_v32, 0  ;;  %v5127_v32 = vld [vmem:[%s6561_s23 + $0x10] sm:$0xff] }
 0xd06   :  { %2118 = vmatpush.bf16.xpose.msrb.mxu1 %v2109_v1  ;;  %v2264_v34 = vpop.f32.mrf.mxu0  ;;  %2512 = vmatpush.bf16.msra.mxu3 %v5105_v29 }
 0xd07   :  { %v2340_v18 = vmul.f32 %v2264_v34, %v6176_v62 }
 0xd0d   :  { %4480 = vmatmul.msk.bf16.vlgmr.msrb.gmra.mxu1 %vm236_vm0, %v2103_v10 }
 0xd0e   :  { %2306 = vmatpush.bf16.msra.mxu1 %v5120_v57  ;;  %v2266_v37 = vpop.f32.mrf.mxu0  ;;  %v5126_v57 = vld [vmem:[%s6561_s23 + $0x8] sm:$0xff] }
 0xd0f   :  { %v2342_v40 = vpack.c.bf16 %v2266_v37, %v2264_v34  ;;  %v2341_v47 = vmul.f32 %v2266_v37, %v6179_v16 }
 0xd11   :  { %4558 = vmatmul.msk.bf16.vlgmr.msrb.gmra.mxu3 %vm236_vm0, %v2342_v40 }
 0xd12   :  { %2307 = vmatpush.bf16.msra.mxu1 %v5119_v35  ;;  %v5125_v35 = vld [vmem:[%s6561_s23] sm:$0xff] }
 0xd16   :  { %2308 = vmatpush.bf16.msra.mxu1 %v5118_v36 }
 0xd1a   :  { %2309 = vmatpush.bf16.msra.mxu1 %v5117_v42  ;;  %v2316_v42 = vmul.f32 %v6206_v44, %v6176_v62 }
 0xd1d   :  { %4556 = vmatmul.msk.bf16.vlgmr.msra.gmra.mxu1 %vm236_vm0, %v6113_v27 }
 0xd8a   :  { %v2120_v49 = vpop.f32.mrf.mxu1 }
 0xd8b   :  { %v2121_v24 = vadd.f32 %v2120_v49, %v6209_v46  ;;  %v2317_v49 = vmul.f32 %v6212_v38, %v6179_v16 }
 0xd8d   :  { %v2125_v43 = vsel %vm551_vm8, %v2121_v24, -inf }
 0xd8e   :  { %2126 = vmax.xlane.f32.xlu1 %v2125_v43 }
 0xd92   :  { %v2122_v52 = vpop.f32.mrf.mxu1 }
 0xd93   :  { %v2123_v55 = vadd.f32 %v2122_v52, %v6216_v50 }
 0xd94   :  { %v2355_v58 = vpop.f32.mrf.mxu3 }
 0xd95   :  { %v2128_v27 = vsel %vm551_vm8, %v2123_v55, -inf  ;;  %v2360_v56 = vmul.f32 %v2355_v58, %v6173_v61 }
 0xd96   :  { %2129 = vmax.xlane.f32.xlu2 %v2128_v27 }
 0xd97   :  { %v2362_v21 = vadd.f32 %v2360_v56, %v2340_v18 }
 0xd9a   :  { %v2311_v17 = vpop.f32.mrf.mxu1 }
 0xd9c   :  { %v2357_v3 = vpop.f32.mrf.mxu3 }
 0xd9d   :  { %v2361_v19 = vmul.f32 %v2357_v3, %v6183_v26 }
 0xd9f   :  { %v2363_v45 = vadd.f32 %v2361_v19, %v2341_v47 }
 0xda1   :  { %v2365_v51 = vpack.c.bf16 %v2363_v45, %v2362_v21  ;;  %v5132_v21 = vld [vmem:[%s6562_s26 + $0x18] sm:$0xff]  ;;  %v5131_v45 = vld [vmem:[%s6562_s26 + $0x10] sm:$0xff] }
 0xda2   :  { %v2313_v59 = vpop.f32.mrf.mxu1 }
 0xda3   :  { %v2409_v13 = vpack.c.bf16 %v2313_v59, %v2311_v17  ;;  %v2370_v60 = vsel %vm236_vm0, %v2365_v51, 0  ;;  %v5130_v51 = vld [vmem:[%s6562_s26 + $0x8] sm:$0xff]  ;;  %v5129_v59 = vld [vmem:[%s6562_s26] sm:$0xff] }
 0xda4   :  { %2379 = vmatpush.bf16.xpose.msrb.mxu0 %v2370_v60 }
 0xda5   :  { %2420 = vmatpush.bf16.msrb.mxu1 %v2409_v13 }
 0xda9   :  { %2624 = vmatpush.bf16.msra.mxu1 %v5132_v21 }
 0xdac   :  { %2570 = vmatpush.bf16.msra.mxu0 %v5128_v30 }
 0xdad   :  { %2625 = vmatpush.bf16.msra.mxu1 %v5131_v45 }
 0xdb0   :  { %2571 = vmatpush.bf16.msra.mxu0 %v5127_v32 }
 0xdb1   :  { %2626 = vmatpush.bf16.msra.mxu1 %v5130_v51 }
 0xdb4   :  { %2572 = vmatpush.bf16.msra.mxu0 %v5126_v57  ;;  %v5136_v57 = vld [vmem:[%s6563_s28 + $0x18] sm:$0xff] }
 0xdb5   :  { %2627 = vmatpush.bf16.msra.mxu1 %v5129_v59 }
 0xdb8   :  { %2573 = vmatpush.bf16.msra.mxu0 %v5125_v35 }
 0xe01   :  { %v2127_v54 = vpop.xlane.xlu1 %2126 }
 0xe02   :  { %v2131_v48 = vsub.f32 %v2121_v24, %v2127_v54 }
 0xe04   :  { %v2133_v63 = vmul.f32 1.442695, %v2131_v48 }
 0xe06   :  { %5321 = vpow2.f32 %v2133_v63 }
 0xe09   :  { %v2130_v28 = vpop.xlane.xlu2 %2129 }
 0xe0a   :  { %v2132_v53 = vsub.f32 %v2123_v55, %v2130_v28 }
 0xe0c   :  { %v5322_v0 = vpop.eup %5321  ;;  %v2135_v2 = vmul.f32 1.442695, %v2132_v53  ;;  %v5144_v53 = vld [vmem:[%s6561_s23 + $0x38] sm:$0xff] }
 0xe0d   :  { %v2137_v4 = vsel %vm551_vm8, %v5322_v0, 0.0 }
 0xe0e   :  { %5323 = vpow2.f32 %v2135_v2  ;;  %2138 = vadd.xlane.f32.xlu0 %v2137_v4  ;;  %v5124_v2 = vld [vmem:[%s6560_s22 + $0x38] sm:$0xff]  ;;  %v5143_v4 = vld [vmem:[%s6561_s23 + $0x30] sm:$0xff] }
 0xe14   :  { %v5324_v5 = vpop.eup %5323 }
 0xe15   :  { %v2140_v6 = vsel %vm551_vm8, %v5324_v5, 0.0 }
 0xe16   :  { %2141 = vadd.xlane.f32.xlu1 %v2140_v6  ;;  %v5141_v6 = vld [vmem:[%s6561_s23 + $0x20] sm:$0xff] }
 0xe81   :  { %v2139_v7 = vpop.xlane.xlu0 %2138 }
 0xe82   :  { %5325 = vrcp.f32 %v2139_v7  ;;  %v6266_v7 = vld [vmem:[%s5527_s5] sm:$0xff]  ;;  %s6564_s5 = sld [smem:[#allocation21_spill]] }
 0xe88   :  { %v5326_v9 = vpop.eup %5325  ;;  %v5264_v35 = vld [vmem:[%s6564_s5] ss:$0 sm:$0xff] }
 0xe89   :  { %v2142_v39 = vpop.xlane.xlu1 %2141  ;;  %v2145_v14 = vmul.f32 %v5326_v9, %v5322_v0  ;;  %v5121_v9 = vld [vmem:[%s6560_s22 + $0x20] sm:$0xff] }
 0xe8a   :  { %5327 = vrcp.f32 %v2142_v39  ;;  %v5122_v39 = vld [vmem:[%s6560_s22 + $0x28] sm:$0xff] }
 0xe90   :  { %v5328_v10 = vpop.eup %5327 }
 0xe91   :  { %v2146_v15 = vmul.f32 %v5328_v10, %v5324_v5  ;;  %v5142_v5 = vld [vmem:[%s6561_s23 + $0x28] sm:$0xff] }
 0xe93   :  { %v2147_v12 = vpack.c.bf16 %v2146_v15, %v2145_v14 }
 0xe95   :  { %4481 = vmatmul.msk.bf16.vlgmr.msra.gmra.mxu2 %vm551_vm8, %v2147_v12 }
 0xe96   :  { %2468 = vmatpush.bf16.msra.mxu2 %v5124_v2 }
 0xe9a   :  { %2469 = vmatpush.bf16.msra.mxu2 %v5123_v8 }
 0xe9e   :  { %2470 = vmatpush.bf16.msra.mxu2 %v5122_v39 }
 0xea2   :  { %2471 = vmatpush.bf16.msra.mxu2 %v5121_v9  ;;  %v5164_v9 = vld [vmem:[%s6566_s2 + $0x18] sm:$0xff] }
 0xea5   :  { %4557 = vmatmul.msk.bf16.vlgmr.msrb.gmra.mxu2 %vm236_vm0, %v2318_v20 }
 0xea6   :  { %2670 = vmatpush.bf16.msrb.mxu2 %v5136_v57  ;;  %v5139_v57 = vld [vmem:[%s6567_s7 + $0x10] sm:$0xff] }
 0xf18   :  { %v2161_v31 = vpop.f32.mrf.mxu2 }
 0xf20   :  { %v2163_v1 = vpop.f32.mrf.mxu2 }
 0xf21   :  { %v2174_v34 = vpack.c.bf16 %v2163_v1, %v2161_v31  ;;  %v5135_v1 = vld [vmem:[%s6563_s28 + $0x10] sm:$0xff] }
 0xf22   :  { %2671 = vmatpush.bf16.msrb.mxu2 %v5135_v1  ;;  %v5138_v1 = vld [vmem:[%s6567_s7 + $0x8] sm:$0xff] }
 0xf23   :  { %4602 = vmatmul.msk.bf16.vlgmr.msra.gmra.mxu3 %vm236_vm0, %v2174_v34 }
 0xf28   :  { %v2331_v36 = vpop.f32.mrf.mxu2 }
 0xf29   :  { %v2336_v37 = vmul.f32 %v2331_v36, %v6173_v61 }
 0xf2b   :  { %v2338_v43 = vadd.f32 %v2336_v37, %v2316_v42  ;;  %v5134_v42 = vld [vmem:[%s6563_s28 + $0x8] sm:$0xff] }
 0xf2c   :  { %2672 = vmatpush.bf16.msrb.mxu2 %v5134_v42 }
 0xf30   :  { %v2333_v40 = vpop.f32.mrf.mxu2 }
 0xf31   :  { %v2337_v24 = vmul.f32 %v2333_v40, %v6183_v26 }
 0xf33   :  { %v2339_v52 = vadd.f32 %v2337_v24, %v2317_v49 }
 0xf35   :  { %v2364_v55 = vpack.c.bf16 %v2339_v52, %v2338_v43  ;;  %v5133_v52 = vld [vmem:[%s6563_s28] sm:$0xff] }
 0xf36   :  { %2673 = vmatpush.bf16.msrb.mxu2 %v5133_v52 }
 0xf37   :  { %4559 = vmatmul.msk.bf16.vlgmr.msrb.gmra.mxu0 %vm236_vm0, %v2364_v55  ;;  %v5148_v55 = vld [vmem:[%s6562_s26 + $0x38] sm:$0xff] }
 0xf47   :  { %4619 = vmatmul.msk.bf16.vlgmr.msra.gmra.mxu0 %vm236_vm0, %v6094_v11 }
 0xfa6   :  { %v2514_v31 = vpop.f32.mrf.mxu3 }
 0xfae   :  { %v2516_v36 = vpop.f32.mrf.mxu3 }
 0xfb4   :  { %v2381_v58 = vpop.f32.mrf.mxu0 }
 0xfb5   :  { %v2382_v61 = vadd.f32 %v2381_v58, %v6209_v46  ;;  %v5147_v58 = vld [vmem:[%s6562_s26 + $0x30] sm:$0xff] }
 0xfb7   :  { %v2386_v27 = vsel %vm551_vm8, %v2382_v61, -inf }
 0xfb8   :  { %2387 = vmax.xlane.f32.xlu2 %v2386_v27  ;;  %v5146_v27 = vld [vmem:[%s6562_s26 + $0x28] sm:$0xff] }
 0xfbc   :  { %v2383_v62 = vpop.f32.mrf.mxu0 }
 0xfbd   :  { %v2384_v44 = vadd.f32 %v2383_v62, %v6216_v50 }
 0xfbf   :  { %v2389_v16 = vsel %vm551_vm8, %v2384_v44, -inf }
 0xfc0   :  { %2390 = vmax.xlane.f32.xlu0 %v2389_v16 }
 0xfc4   :  { %v2575_v20 = vpop.f32.mrf.mxu0 }
 0xfcc   :  { %v2577_v29 = vpop.f32.mrf.mxu0 }
 0xfcd   :  { %v2680_v30 = vpack.c.bf16 %v2577_v29, %v2575_v20  ;;  %v5151_v20 = vld [vmem:[%s6563_s28 + $0x30] sm:$0xff]  ;;  %v5149_v29 = vld [vmem:[%s6563_s28 + $0x20] sm:$0xff] }
0x102b   :  { %v2388_v26 = vpop.xlane.xlu2 %2387 }
0x102c   :  { %v2392_v38 = vsub.f32 %v2382_v61, %v2388_v26  ;;  %v6294_v61 = vld [vmem:[%s6565_s1] sm:$0xff]  ;;  %v6300_v26 = vld [vmem:[%s6565_s1 + $0x8] sm:$0xff] }
0x102e   :  { %v2394_v17 = vmul.f32 1.442695, %v2392_v38 }
0x1030   :  { %5329 = vpow2.f32 %v2394_v17 }
0x1033   :  { %v2391_v56 = vpop.xlane.xlu0 %2390 }
0x1034   :  { %v2393_v3 = vsub.f32 %v2384_v44, %v2391_v56 }
0x1036   :  { %v5330_v46 = vpop.eup %5329  ;;  %v2396_v18 = vmul.f32 1.442695, %v2393_v3  ;;  %v5145_v3 = vld [vmem:[%s6562_s26 + $0x20] sm:$0xff] }
0x1037   :  { %v2398_v47 = vsel %vm551_vm8, %v5330_v46, 0.0 }
0x1038   :  { %5331 = vpow2.f32 %v2396_v18  ;;  %2399 = vadd.xlane.f32.xlu1 %v2398_v47 }
0x103e   :  { %v5332_v50 = vpop.eup %5331 }
0x103f   :  { %v2401_v19 = vsel %vm551_vm8, %v5332_v50, 0.0 }
0x1040   :  { %2402 = vadd.xlane.f32.xlu2 %v2401_v19 }
0x10ab   :  { %v2400_v13 = vpop.xlane.xlu1 %2399 }
0x10ac   :  { %5333 = vrcp.f32 %v2400_v13 }
0x10b2   :  { %v5334_v54 = vpop.eup %5333 }
0x10b3   :  { %v2403_v60 = vpop.xlane.xlu2 %2402  ;;  %v2406_v63 = vmul.f32 %v5334_v54, %v5330_v46 }
0x10b4   :  { %5335 = vrcp.f32 %v2403_v60 }
0x10ba   :  { %v5336_v48 = vpop.eup %5335 }
0x10bb   :  { %v2407_v28 = vmul.f32 %v5336_v48, %v5332_v50 }
0x10bd   :  { %v2408_v0 = vpack.c.bf16 %v2407_v28, %v2406_v63 }
0x10bf   :  { %4560 = vmatmul.msk.bf16.vlgmr.msrb.gmra.mxu1 %vm551_vm8, %v2408_v0 }
0x10c0   :  { %2789 = vmatpush.bf16.msrb.mxu1 %v5144_v53 }
0x10c4   :  { %2790 = vmatpush.bf16.msrb.mxu1 %v5143_v4 }
0x10c8   :  { %2791 = vmatpush.bf16.msrb.mxu1 %v5142_v5 }
0x10cc   :  { %2792 = vmatpush.bf16.msrb.mxu1 %v5141_v6 }
0x10cf   :  { %4640 = vmatmul.msk.bf16.vlgmr.msra.gmra.mxu1 %vm236_vm0, %v6266_v7 }
0x10df   :  { %4684 = vmatmul.msk.bf16.vlgmr.msrb.gmra.mxu1 %vm236_vm0, %v6094_v11 }
0x113c   :  { %v2422_v10 = vpop.f32.mrf.mxu1 }
0x1144   :  { %v2424_v14 = vpop.f32.mrf.mxu1 }
0x1145   :  { %v2436_v15 = vpack.c.bf16 %v2424_v14, %v2422_v10  ;;  %v5152_v14 = vld [vmem:[%s6563_s28 + $0x38] sm:$0xff] }
0x1147   :  { %4585 = vmatmul.msk.bf16.vlgmr.msra.gmra.mxu2 %vm236_vm0, %v2436_v15 }
0x1148   :  { %2836 = vmatpush.bf16.msra.mxu2 %v5148_v55 }
0x114c   :  { %v2629_v12 = vpop.f32.mrf.mxu1  ;;  %2837 = vmatpush.bf16.msra.mxu2 %v5147_v58 }
0x1150   :  { %2838 = vmatpush.bf16.msra.mxu2 %v5146_v27 }
0x1154   :  { %v2631_v23 = vpop.f32.mrf.mxu1  ;;  %2839 = vmatpush.bf16.msra.mxu2 %v5145_v3 }
0x1155   :  { %v2681_v25 = vpack.c.bf16 %v2631_v23, %v2629_v12  ;;  %v5163_v12 = vld [vmem:[%s6566_s2 + $0x10] sm:$0xff]  ;;  %v5162_v23 = vld [vmem:[%s6566_s2 + $0x8] sm:$0xff] }
0x1157   :  { %v2686_v11 = vsel %vm236_vm0, %v2681_v25, 0  ;;  %4657 = vmatmul.msk.bf16.vlgmr.msrb.gmra.mxu2 %vm236_vm0, %v6266_v7  ;;  %v5150_v25 = vld [vmem:[%s6563_s28 + $0x28] sm:$0xff] }
0x1158   :  { %2695 = vmatpush.bf16.xpose.msrb.mxu3 %v2686_v11  ;;  %v5161_v11 = vld [vmem:[%s6566_s2] sm:$0xff] }
0x115c   :  { %v2794_v15 = vpop.f32.mrf.mxu1 }
0x115f   :  { %4658 = vmatmul.msk.bf16.vlgmr.msrb.gmra.mxu3 %vm236_vm0, %v2680_v30 }
0x1160   :  { %2883 = vmatpush.bf16.msra.mxu3 %v5152_v14 }
0x1164   :  { %2884 = vmatpush.bf16.msra.mxu3 %v5151_v20  ;;  %v2796_v30 = vpop.f32.mrf.mxu1 }
0x1167   :  { %4709 = vmatmul.msk.bf16.vlgmr.msra.gmra.mxu2 %vm236_vm0, %v6266_v7 }
0x1168   :  { %2885 = vmatpush.bf16.msra.mxu3 %v5150_v25 }
0x116c   :  { %2886 = vmatpush.bf16.msra.mxu3 %v5149_v29 }
0x116f   :  { %4734 = vmatmul.msk.bf16.vlgmr.msra.gmra.mxu3 %vm236_vm0, %v6266_v7 }
0x11ca   :  { %v2473_v32 = vpop.f32.mrf.mxu2 }
0x11cb   :  { %v2515_v34 = vadd.f32 %v2514_v31, %v2473_v32  ;;  %v5140_v31 = vld [vmem:[%s6567_s7 + $0x18] sm:$0xff]  ;;  %v2893_v32 = vpack.c.bf16 %v2796_v30, %v2794_v15 }
0x11cc   :  { %3038 = vmatpush.bf16.msrb.mxu3 %v5140_v31  ;;  %v4831_v31 = vld [vmem:[%s6569_s11 + $0x20] sm:$0xf] }
0x11cd   :  { %v6282_v49 = vadd.f32 %v5264_v35, %v2515_v34  ;;  %v5137_v34 = vld [vmem:[%s6567_s7] sm:$0xff] }
0x11d0   :  { %3039 = vmatpush.bf16.msrb.mxu3 %v5139_v57  ;;  %v5169_v57 = vld [vmem:[%s6569_s11 + $0x24] sm:$0xf] }
0x11d2   :  { %v2475_v37 = vpop.f32.mrf.mxu2 }
0x11d3   :  { %v2517_v40 = vadd.f32 %v2516_v36, %v2475_v37 }
0x11d4   :  { %3040 = vmatpush.bf16.msrb.mxu3 %v5138_v1 }
0x11d5   :  { %v6284_v24 = vadd.f32 %v5264_v35, %v2517_v40 }
0x11d7   :  { %v3071_v43 = vpack.c.bf16 %v6284_v24, %v6282_v49 }
0x11d8   :  { %3041 = vmatpush.bf16.msrb.mxu3 %v5137_v34  ;;  %v4833_v34 = vld [vmem:[%s6569_s11 + $0x28] sm:$0xf0] }
0x11da   :  { %v2675_v60 = vpop.f32.mrf.mxu2 }
0x11e2   :  { %v2697_v62 = vpop.f32.mrf.mxu3  ;;  %v2677_v54 = vpop.f32.mrf.mxu2 }
0x11e3   :  { %v2698_v44 = vadd.f32 %v2697_v62, %v6294_v61  ;;  %v2725_v48 = vpack.c.bf16 %v2677_v54, %v2675_v60  ;;  %v5153_v60 = vld [vmem:[%s6567_s7 + $0x20] sm:$0xff] }
0x11e5   :  { %v2702_v16 = vsel %vm551_vm8, %v2698_v44, -inf  ;;  %2736 = vmatpush.bf16.msrb.mxu0 %v2725_v48 }
0x11e6   :  { %2703 = vmax.xlane.f32.xlu0 %v2702_v16 }
0x11ea   :  { %v2699_v38 = vpop.f32.mrf.mxu3  ;;  %v2841_v63 = vpop.f32.mrf.mxu2 }
0x11eb   :  { %v2700_v17 = vadd.f32 %v2699_v38, %v6300_v26 }
0x11ed   :  { %v2705_v56 = vsel %vm551_vm8, %v2700_v17, -inf }
0x11ee   :  { %2706 = vmax.xlane.f32.xlu1 %v2705_v56 }
0x11f2   :  { %v2843_v28 = vpop.f32.mrf.mxu2  ;;  %v2888_v49 = vpop.f32.mrf.mxu3 }
0x11f3   :  { %v2894_v53 = vpack.c.bf16 %v2843_v28, %v2841_v63  ;;  %v5160_v28 = vld [vmem:[%s6568_s10 + $0x18] sm:$0xff] }
0x11f5   :  { %v2899_v0 = vsel %vm236_vm0, %v2894_v53, 0  ;;  %v5159_v53 = vld [vmem:[%s6568_s10 + $0x10] sm:$0xff] }
0x11f6   :  { %2908 = vmatpush.bf16.xpose.msra.mxu0 %v2899_v0  ;;  %v5158_v0 = vld [vmem:[%s6568_s10 + $0x8] sm:$0xff] }
0x11fa   :  { %v2890_v55 = vpop.f32.mrf.mxu3 }
0x11fb   :  { %v2938_v58 = vpack.c.bf16 %v2890_v55, %v2888_v49 }
0x11fd   :  { %2949 = vmatpush.bf16.msra.mxu1 %v2938_v58  ;;  %v4817_v58 = vld [vmem:[%s6569_s11 + $0x8] sm:$0xf0] }
0x1201   :  { %3144 = vmatpush.bf16.msrb.mxu1 %v5160_v28 }
0x1205   :  { %3145 = vmatpush.bf16.msrb.mxu1 %v5159_v53 }
0x1209   :  { %3146 = vmatpush.bf16.msrb.mxu1 %v5158_v0 }
0x1259   :  { %v2704_v46 = vpop.xlane.xlu0 %2703 }
0x125a   :  { %v2708_v18 = vsub.f32 %v2698_v44, %v2704_v46  ;;  %v5156_v46 = vld [vmem:[%s6567_s7 + $0x38] sm:$0xff] }
0x125b   :  { %2997 = vmatpush.bf16.msrb.mxu2 %v5156_v46 }
0x125c   :  { %v2710_v47 = vmul.f32 1.442695, %v2708_v18 }
0x125e   :  { %5337 = vpow2.f32 %v2710_v47 }
0x1261   :  { %v2707_v50 = vpop.xlane.xlu1 %2706 }
0x1262   :  { %v2709_v19 = vsub.f32 %v2700_v17, %v2707_v50 }
0x1264   :  { %v5338_v21 = vpop.eup %5337  ;;  %v2712_v45 = vmul.f32 1.442695, %v2709_v19 }
0x1265   :  { %v2714_v51 = vsel %vm551_vm8, %v5338_v21, 0.0 }
0x1266   :  { %5339 = vpow2.f32 %v2712_v45  ;;  %2715 = vadd.xlane.f32.xlu2 %v2714_v51 }
0x126c   :  { %v5340_v59 = vpop.eup %5339 }
0x126d   :  { %v2717_v13 = vsel %vm551_vm8, %v5340_v59, 0.0 }
0x126e   :  { %2718 = vadd.xlane.f32.xlu0 %v2717_v13  ;;  %v5154_v13 = vld [vmem:[%s6567_s7 + $0x28] sm:$0xff] }
0x12d9   :  { %v2716_v2 = vpop.xlane.xlu2 %2715 }
0x12da   :  { %5341 = vrcp.f32 %v2716_v2  ;;  %v5157_v2 = vld [vmem:[%s6568_s10] sm:$0xff] }
0x12db   :  { %3147 = vmatpush.bf16.msrb.mxu1 %v5157_v2 }
0x12e0   :  { %v5342_v5 = vpop.eup %5341 }
0x12e1   :  { %v2719_v4 = vpop.xlane.xlu0 %2718  ;;  %v2722_v8 = vmul.f32 %v5342_v5, %v5338_v21  ;;  %v5172_v5 = vld [vmem:[%s6569_s11 + $0x34] sm:$0xf0] }
0x12e2   :  { %5343 = vrcp.f32 %v2719_v4  ;;  %v4839_v4 = vld [vmem:[%s6569_s11 + $0x30] sm:$0xf] }
0x12e8   :  { %v5344_v6 = vpop.eup %5343 }
0x12e9   :  { %v2723_v39 = vmul.f32 %v5344_v6, %v5340_v59  ;;  %v5155_v59 = vld [vmem:[%s6567_s7 + $0x30] sm:$0xff] }
0x12ea   :  { %2998 = vmatpush.bf16.msrb.mxu2 %v5155_v59  ;;  %v5171_v6 = vld [vmem:[%s6569_s11 + $0x34] sm:$0xf] }
0x12eb   :  { %v2724_v10 = vpack.c.bf16 %v2723_v39, %v2722_v8  ;;  %v4840_v8 = vor.u32 %v5172_v5, %v4839_v4  ;;  %v4841_v39 = vld [vmem:[%s6569_s11 + $0x38] sm:$0xf0] }
0x12ed   :  { %4659 = vmatmul.msk.bf16.vlgmr.msrb.gmra.mxu0 %vm551_vm8, %v2724_v10 }
0x12ee   :  { %3103 = vmatpush.bf16.msrb.mxu0 %v5164_v9  ;;  %2999 = vmatpush.bf16.msrb.mxu2 %v5154_v13  ;;  %v4844_v9 = vor.u32 %v5171_v6, %v4841_v39 }
0x12f0   :  { %3230 = vmatpush.bf16.msra.mxu3 %v4844_v9 }
0x12f2   :  { %3104 = vmatpush.bf16.msrb.mxu0 %v5163_v12  ;;  %3000 = vmatpush.bf16.msrb.mxu2 %v5153_v60  ;;  %v5265_v12 = vld [vmem:[%s6570_s0] ss:$0 sm:$0xff] }
0x12f6   :  { %3105 = vmatpush.bf16.msrb.mxu0 %v5162_v23  ;;  %3216 = vmatpush.bf16.msra.mxu2 %v4840_v8 }
0x12fa   :  { %3106 = vmatpush.bf16.msrb.mxu0 %v5161_v11 }
0x12fd   :  { %4735 = vmatmul.msk.bf16.vlgmr.msra.gmra.mxu0 %vm236_vm0, %v2893_v32  ;;  %v5170_v32 = vld [vmem:[%s6569_s11 + $0x24] sm:$0xf0] }
0x12fe   :  { %v4832_v1 = vor.u32 %v5170_v32, %v4831_v31 }
0x1300   :  { %3217 = vmatpush.bf16.msra.mxu2 %v4832_v1 }
0x130d   :  { %4795 = vmatmul.msk.bf16.vlgmr.msrb.gmra.mxu0 %vm236_vm0, %v3071_v43 }
0x136a   :  { %v2738_v35 = vpop.f32.mrf.mxu0 }
0x1372   :  { %v2740_v36 = vpop.f32.mrf.mxu0 }
0x1373   :  { %v2751_v37 = vpack.c.bf16 %v2740_v36, %v2738_v35  ;;  %v4823_v35 = vld [vmem:[%s6569_s11 + $0x10] sm:$0xf]  ;;  %v5168_v36 = vld [vmem:[%s6569_s11 + $0x14] sm:$0xf0] }
0x1375   :  { %4778 = vmatmul.msk.bf16.vlgmr.msrb.gmra.mxu3 %vm236_vm0, %v2751_v37  ;;  %v4836_v37 = vor.u32 %v5169_v57, %v4833_v34 }
0x1377   :  { %3231 = vmatpush.bf16.msra.mxu3 %v4836_v37 }
0x137a   :  { %v2910_v40 = vpop.f32.mrf.mxu0 }
0x137b   :  { %v2911_v42 = vadd.f32 %v2910_v40, %v6294_v61  ;;  %v5167_v40 = vld [vmem:[%s6569_s11 + $0x14] sm:$0xf] }
0x137d   :  { %v2915_v7 = vsel %vm551_vm8, %v2911_v42, -inf }
0x137e   :  { %2916 = vmax.xlane.f32.xlu1 %v2915_v7  ;;  %v4824_v7 = vor.u32 %v5168_v36, %v4823_v35 }
0x1380   :  { %3218 = vmatpush.bf16.msra.mxu2 %v4824_v7 }
0x1382   :  { %v2912_v24 = vpop.f32.mrf.mxu0 }
0x1383   :  { %v2913_v43 = vadd.f32 %v2912_v24, %v6300_v26  ;;  %v4815_v24 = vld [vmem:[%s6569_s11] sm:$0xf] }
0x1385   :  { %v2918_v52 = vsel %vm551_vm8, %v2913_v43, -inf }
0x1386   :  { %2919 = vmax.xlane.f32.xlu2 %v2918_v52  ;;  %v5165_v52 = vld [vmem:[%s6569_s11 + $0x4] sm:$0xf] }
0x13f1   :  { %v2917_v27 = vpop.xlane.xlu1 %2916 }
0x13f2   :  { %v2921_v62 = vsub.f32 %v2911_v42, %v2917_v27  ;;  %v4825_v42 = vld [vmem:[%s6569_s11 + $0x18] sm:$0xf0]  ;;  %v4820_v27 = vor.u32 %v5165_v52, %v4817_v58 }
0x13f3   :  { %v4828_v49 = vor.u32 %v5167_v40, %v4825_v42 }
0x13f4   :  { %v2923_v44 = vmul.f32 1.442695, %v2921_v62  ;;  %v3108_v62 = vpop.f32.mrf.mxu0 }
0x13f5   :  { %3232 = vmatpush.bf16.msra.mxu3 %v4828_v49 }
0x13f6   :  { %5345 = vpow2.f32 %v2923_v44 }
0x13f8   :  { %v3043_v10 = vpop.f32.mrf.mxu3 }
0x13f9   :  { %v2920_v16 = vpop.xlane.xlu2 %2919  ;;  %3233 = vmatpush.bf16.msra.mxu3 %v4820_v27 }
0x13fa   :  { %v2922_v61 = vsub.f32 %v2913_v43, %v2920_v16  ;;  %v5166_v43 = vld [vmem:[%s6569_s11 + $0x4] sm:$0xf0] }
0x13fb   :  { %v4816_v55 = vor.u32 %v5166_v43, %v4815_v24 }
0x13fc   :  { %v5346_v38 = vpop.eup %5345  ;;  %v2925_v17 = vmul.f32 1.442695, %v2922_v61  ;;  %v3110_v16 = vpop.f32.mrf.mxu0 }
0x13fd   :  { %v2927_v56 = vsel %vm551_vm8, %v5346_v38, 0.0  ;;  %3219 = vmatpush.bf16.msra.mxu2 %v4816_v55 }
0x13fe   :  { %5347 = vpow2.f32 %v2925_v17  ;;  %2928 = vadd.xlane.f32.xlu0 %v2927_v56 }
0x1400   :  { %v3045_v20 = vpop.f32.mrf.mxu3 }
0x1404   :  { %v5348_v26 = vpop.eup %5347 }
0x1405   :  { %v2930_v3 = vsel %vm551_vm8, %v5348_v26, 0.0 }
0x1406   :  { %2931 = vadd.xlane.f32.xlu1 %v2930_v3 }
0x1471   :  { %v2929_v18 = vpop.xlane.xlu0 %2928 }
0x1472   :  { %5349 = vrcp.f32 %v2929_v18 }
0x1478   :  { %v5350_v50 = vpop.eup %5349 }
0x1479   :  { %v2932_v47 = vpop.xlane.xlu1 %2931  ;;  %v2935_v21 = vmul.f32 %v5350_v50, %v5346_v38 }
0x147a   :  { %5351 = vrcp.f32 %v2932_v47 }
0x1480   :  { %v5352_v19 = vpop.eup %5351 }
0x1481   :  { %v2936_v45 = vmul.f32 %v5352_v19, %v5348_v26  ;;  %v3163_v26 = vld [vmem:[%s6571_s21] sm:$0x3] }
0x1482   :  { %v3165_v3 = vperm.slane %v3163_v26, 0 }
0x1483   :  { %v2937_v51 = vpack.c.bf16 %v2936_v45, %v2935_v21 }
0x1485   :  { %4736 = vmatmul.msk.bf16.vlgmr.msra.gmra.mxu1 %vm551_vm8, %v2937_v51 }
0x1502   :  { %v2951_v54 = vpop.f32.mrf.mxu1 }
0x150a   :  { %v2953_v48 = vpop.f32.mrf.mxu1 }
0x150b   :  { %v2965_v63 = vpack.c.bf16 %v2953_v48, %v2951_v54 }
0x150d   :  { %4761 = vmatmul.msk.bf16.vlgmr.msrb.gmra.mxu2 %vm236_vm0, %v2965_v63 }
0x1590   :  { %v3002_v14 = vpop.f32.mrf.mxu2 }
0x1591   :  { %v3044_v15 = vadd.f32 %v3043_v10, %v3002_v14 }
0x1593   :  { %v3052_v11 = vadd.f32 %v5265_v12, %v3044_v15 }
0x1598   :  { %v3004_v23 = vpop.f32.mrf.mxu2 }
0x1599   :  { %v3046_v25 = vadd.f32 %v3045_v20, %v3004_v23 }
0x159b   :  { %v3053_v29 = vadd.f32 %v5265_v12, %v3046_v25 }
0x159d   :  { %v3062_v30 = vpack.c.bf16 %v3053_v29, %v3052_v11  ;;  %v3166_v29 = vperm.slane %v3163_v26, 1 }
0x159f   :  { %4812 = vmatmul.msk.bf16.vlgmr.msrb.gmra.mxu1 %vm236_vm0, %v3062_v30 }
0x161c   :  { %v3149_v44 = vpop.f32.mrf.mxu1 }
0x161d   :  { %v3150_v38 = vadd.f32 %v3149_v44, %v3108_v62 }
0x1624   :  { %v3151_v61 = vpop.f32.mrf.mxu1 }
0x1625   :  { %v3152_v17 = vadd.f32 %v3151_v61, %v3110_v16 }
0x1627   :  { %v3162_v56 = vpack.c.bf16 %v3152_v17, %v3150_v38 }
0x1629   :  { %4845 = vmatmul.msk.bf16.vlgmr.msra.gmra.mxu2 %vm236_vm0, %v3162_v56  ;;  %4846 = vmatmul.msk.bf16.vlgmr.msra.gmra.mxu3 %vm236_vm0, %v3162_v56 }
0x16ac   :  { %v3221_v46 = vpop.f32.mrf.mxu2  ;;  %v3235_v30 = vpop.f32.mrf.mxu3 }
0x16ad   :  { %v6368_v18 = vadd.f32 %v3221_v46, %v3165_v3  ;;  %v3236_v31 = vadd.f32 %v3235_v30, %v3166_v29  ;;  %v5175_v30 = vld [vmem:[%s6572_s14 + $0x14] sm:$0xf] }
0x16af   :  { %v4847_v47 = vadd.f32 -1.0, %v6368_v18  ;;  %v3282_v32 = vadd.f32 1.0, %v3236_v31 }
0x16b1   :  { %v4849_v50 = vmul.f32 -1.442695, %v4847_v47  ;;  %v4851_v57 = vmul.f32 -1.442695, %v3282_v32  ;;  %v4865_v32 = vld [vmem:[%s6572_s14 + $0x18] sm:$0xf0] }
0x16b3   :  { %5353 = vpow2.f32 %v4849_v50 }
0x16b4   :  { %v3223_v19 = vpop.f32.mrf.mxu2  ;;  %v3237_v35 = vpop.f32.mrf.mxu3 }
0x16b5   :  { %v6371_v21 = vadd.f32 %v3223_v19, %v3165_v3  ;;  %v3238_v37 = vadd.f32 %v3237_v35, %v3166_v29  ;;  %v5176_v29 = vld [vmem:[%s6572_s14 + $0x14] sm:$0xf0]  ;;  %v5174_v35 = vld [vmem:[%s6572_s14 + $0x4] sm:$0xf0] }
0x16b7   :  { %v4848_v45 = vadd.f32 -1.0, %v6371_v21  ;;  %v3283_v42 = vadd.f32 1.0, %v3238_v37 }
0x16b9   :  { %v5354_v51 = vpop.eup %5353  ;;  %v4850_v59 = vmul.f32 -1.442695, %v4848_v45  ;;  %v4852_v49 = vmul.f32 -1.442695, %v3283_v42 }
0x16ba   :  { %v3250_v13 = vadd.f32 1.0, %v5354_v51 }
0x16bb   :  { %5355 = vpow2.f32 %v4850_v59 }
0x16bc   :  { %5357 = vrcp.f32 %v3250_v13  ;;  %v3263_v53 = vand.u32 2147483648, %v3250_v13  ;;  %v3261_v2 = vand.u32 2147483647, %v3250_v13  ;;  %vm3257_vm7 = vweird.f32 %v3250_v13 }
0x16be   :  { %v3264_v6 = vor.u32 1.1754944e-38, %v3263_v53  ;;  %vm3262_vm9 = vcmp.eq.f32.partialorder %v3261_v2, 8.507059e+37 }
0x16c1   :  { %v5356_v60 = vpop.eup %5355 }
0x16c2   :  { %v5358_v54 = vpop.eup %5357  ;;  %v3251_v48 = vadd.f32 1.0, %v5356_v60 }
0x16c3   :  { %v3253_v63 = vmul.f32 %v5358_v54, %v3250_v13  ;;  %vm3258_vm6 = vweird.f32 %v5358_v54 }
0x16c4   :  { %5359 = vrcp.f32 %v3251_v48  ;;  %vm3259_vm8 = vmor %vm3257_vm7, %vm3258_vm6  ;;  %v3278_v14 = vand.u32 2147483648, %v3251_v48  ;;  %v3276_v12 = vand.u32 2147483647, %v3251_v48  ;;  %vm3272_vm11 = vweird.f32 %v3251_v48 }
0x16c5   :  { %v3254_v28 = vsub.f32 1.0, %v3253_v63  ;;  %5361 = vpow2.f32 %v4851_v57  ;;  %v4868_v57 = vor.u32 %v5175_v30, %v4865_v32 }
0x16c6   :  { %v3279_v23 = vor.u32 1.1754944e-38, %v3278_v14  ;;  %vm3277_vm13 = vcmp.eq.f32.partialorder %v3276_v12, 8.507059e+37  ;;  %v4871_v14 = vld [vmem:[%s6572_s14 + $0x20] sm:$0xf]  ;;  %v5177_v12 = vld [vmem:[%s6572_s14 + $0x24] sm:$0xf] }
0x16c7   :  { %v3255_v0 = vmul.f32 %v5358_v54, %v3254_v28 }
0x16c9   :  { %v3256_v4 = vadd.f32 %v5358_v54, %v3255_v0 }
0x16ca   :  { %v5360_v5 = vpop.eup %5359 }
0x16cb   :  { %v3260_v8 = vsel %vm3259_vm8, %v5358_v54, %v3256_v4  ;;  %v3268_v39 = vmul.f32 %v5360_v5, %v3251_v48  ;;  %vm3273_vm10 = vweird.f32 %v5360_v5  ;;  %v5362_v1 = vpop.eup %5361 }
0x16cc   :  { %v3265_v9 = vsel %vm3262_vm9, %v3264_v6, %v3260_v8  ;;  %vm3274_vm12 = vmor %vm3272_vm11, %vm3273_vm10  ;;  %v3290_v34 = vadd.f32 1.0, %v5362_v1  ;;  %v5180_v6 = vld [vmem:[%s6572_s14 + $0x34] sm:$0xf0]  ;;  %v5179_v8 = vld [vmem:[%s6572_s14 + $0x34] sm:$0xf] }
0x16cd   :  { %3326 = vrot.lane.b32.xlu2 %v3265_v9, %s5514_s25  ;;  %v3269_v10 = vsub.f32 1.0, %v3268_v39  ;;  %v4881_v39 = vld [vmem:[%s6572_s14 + $0x38] sm:$0xf0] }
0x16ce   :  { %5363 = vrcp.f32 %v3290_v34  ;;  %v3303_v52 = vand.u32 2147483648, %v3290_v34  ;;  %vm3297_vm15 = vweird.f32 %v3290_v34  ;;  %v3301_v55 = vand.u32 2147483647, %v3290_v34 }
0x16cf   :  { %v3270_v15 = vmul.f32 %v5360_v5, %v3269_v10  ;;  %5365 = vpow2.f32 %v4852_v49  ;;  %v4884_v10 = vor.u32 %v5179_v8, %v4881_v39  ;;  %v5182_v8 = vld [vmem:[%s5762_s4 + $0x8] sm:$0xff]  ;;  %v5181_v39 = vld [vmem:[%s5762_s4] sm:$0xff] }
0x16d0   :  { %5367 = vtanh.f32 %v6368_v18  ;;  %v3304_v62 = vor.u32 1.1754944e-38, %v3303_v52  ;;  %vm3302_vm2 = vcmp.eq.f32.partialorder %v3301_v55, 8.507059e+37 }
0x16d1   :  { %v3271_v20 = vadd.f32 %v5360_v5, %v3270_v15  ;;  %3449 = vmatpush.bf16.msra.mxu1 %v4884_v10  ;;  %v5178_v15 = vld [vmem:[%s6572_s14 + $0x24] sm:$0xf0] }
0x16d3   :  { %v3275_v25 = vsel %vm3274_vm12, %v5360_v5, %v3271_v20  ;;  %v4879_v5 = vld [vmem:[%s6572_s14 + $0x30] sm:$0xf]  ;;  %v4872_v20 = vor.u32 %v5178_v15, %v4871_v14 }
0x16d4   :  { %v3280_v11 = vsel %vm3277_vm13, %v3279_v23, %v3275_v25  ;;  %v5364_v36 = vpop.eup %5363  ;;  %v4873_v23 = vld [vmem:[%s6572_s14 + $0x28] sm:$0xf0] }
0x16d5   :  { %3328 = vrot.lane.b32.xlu0 %v3280_v11, %s5514_s25  ;;  %v3293_v40 = vmul.f32 %v5364_v36, %v3290_v34  ;;  %vm3298_vm14 = vweird.f32 %v5364_v36  ;;  %v5366_v58 = vpop.eup %5365  ;;  %v4876_v25 = vor.u32 %v5177_v12, %v4873_v23  ;;  %v4863_v11 = vld [vmem:[%s6572_s14 + $0x10] sm:$0xf]  ;;  %v4855_v34 = vld [vmem:[%s6572_s14] sm:$0xf] }
0x16d6   :  { %vm3299_vm1 = vmor %vm3297_vm15, %vm3298_vm14  ;;  %v3291_v44 = vadd.f32 1.0, %v5366_v58  ;;  %v5368_v61 = vpop.eup %5367  ;;  %v4864_v31 = vor.u32 %v5176_v29, %v4863_v11  ;;  %v4856_v37 = vor.u32 %v5174_v35, %v4855_v34 }
0x16d7   :  { %v3294_v7 = vsub.f32 1.0, %v3293_v40  ;;  %3450 = vmatpush.bf16.msra.mxu1 %v4876_v25  ;;  %v4857_v40 = vld [vmem:[%s6572_s14 + $0x8] sm:$0xf0] }
0x16d8   :  { %5369 = vrcp.f32 %v3291_v44  ;;  %v3318_v51 = vand.u32 2147483648, %v3291_v44  ;;  %vm3312_vm4 = vweird.f32 %v3291_v44  ;;  %v3316_v59 = vand.u32 2147483647, %v3291_v44 }
0x16d9   :  { %v3295_v24 = vmul.f32 %v5364_v36, %v3294_v7  ;;  %5371 = vtanh.f32 %v6371_v21 }
0x16da   :  { %v3319_v13 = vor.u32 1.1754944e-38, %v3318_v51  ;;  %vm3317_vm6 = vcmp.eq.f32.partialorder %v3316_v59, 8.507059e+37  ;;  %v5188_v51 = vld [vmem:[%s5762_s4 + $0x38] sm:$0xff] }
0x16db   :  { %v3296_v43 = vadd.f32 %v5364_v36, %v3295_v24  ;;  %3451 = vmatpush.bf16.msra.mxu1 %v4868_v57  ;;  %v5196_v59 = vld [vmem:[%s5762_s4 + $0x78] sm:$0xff]  ;;  %3629 = vmatpush.bf16.msrb.mxu2 %v5188_v51 }
0x16dc   :  { %3643 = vmatpush.bf16.msrb.mxu3 %v5196_v59 }
0x16dd   :  { %v3300_v27 = vsel %vm3299_vm1, %v5364_v36, %v3296_v43  ;;  %v5173_v36 = vld [vmem:[%s6572_s14 + $0x4] sm:$0xf] }
0x16de   :  { %v3305_v16 = vsel %vm3302_vm2, %v3304_v62, %v3300_v27  ;;  %v5370_v18 = vpop.eup %5369  ;;  %v4860_v42 = vor.u32 %v5173_v36, %v4857_v40 }
0x16df   :  { %v3322_v17 = vmul.f32 %v3305_v16, %v6013_v33  ;;  %v3308_v47 = vmul.f32 %v5370_v18, %v3291_v44  ;;  %vm3313_vm3 = vweird.f32 %v5370_v18  ;;  %v5372_v54 = vpop.eup %5371 }
0x16e0   :  { %vm3314_vm5 = vmor %vm3312_vm4, %vm3313_vm3  ;;  %3452 = vmatpush.bf16.msra.mxu1 %v4860_v42 }
0x16e1   :  { %v3309_v50 = vsub.f32 1.0, %v3308_v47 }
0x16e3   :  { %v3310_v19 = vmul.f32 %v5370_v18, %v3309_v50 }
0x16e5   :  { %v3311_v45 = vadd.f32 %v5370_v18, %v3310_v19 }
0x16e7   :  { %v3315_v33 = vsel %vm3314_vm5, %v5370_v18, %v3311_v45 }
0x16e8   :  { %v3320_v60 = vsel %vm3317_vm6, %v3319_v13, %v3315_v33  ;;  %v5187_v33 = vld [vmem:[%s5762_s4 + $0x30] sm:$0xff] }
0x16e9   :  { %v3323_v63 = vmul.f32 %v3320_v60, %v6023_v41  ;;  %v4880_v41 = vor.u32 %v5180_v6, %v4879_v5  ;;  %v5195_v13 = vld [vmem:[%s5762_s4 + $0x70] sm:$0xff]  ;;  %3630 = vmatpush.bf16.msrb.mxu2 %v5187_v33  ;;  %v5186_v60 = vld [vmem:[%s5762_s4 + $0x28] sm:$0xff] }
0x16ea   :  { %3644 = vmatpush.bf16.msrb.mxu3 %v5195_v13 }
0x16eb   :  { %3435 = vmatpush.bf16.msra.mxu0 %v4880_v41  ;;  %v5190_v41 = vld [vmem:[%s5762_s4 + $0x48] sm:$0xff] }
0x16ed   :  { %3631 = vmatpush.bf16.msrb.mxu2 %v5186_v60 }
0x16ef   :  { %3436 = vmatpush.bf16.msra.mxu0 %v4872_v20 }
0x16f3   :  { %3437 = vmatpush.bf16.msra.mxu0 %v4864_v31 }
0x16f7   :  { %3438 = vmatpush.bf16.msra.mxu0 %v4856_v37 }
0x1727   :  { %v3327_v38 = vpop.permute.xlu2 %3326 }
0x1728   :  { %v3332_v56 = vmul.f32 %v5368_v61, %v3327_v38 }
0x172a   :  { %v6378_v26 = vadd.f32 %v3332_v56, %v3322_v17  ;;  %v5410_v56 = vld [vmem:[%s6548_s12] sm:$0x7] }
0x172c   :  { %v3336_v3 = vmul.f32 %v6378_v26, %v6378_v26 }
0x172e   :  { %v3338_v46 = vsel %vm236_vm0, %v3336_v3, 0.0  ;;  %v3370_v3 = vperm.slane %v5410_v56, 2 }
0x172f   :  { %3339 = vadd.xlane.f32.xlu1 %v3338_v46 }
0x1747   :  { %v3329_v48 = vpop.permute.xlu0 %3328 }
0x1748   :  { %v3333_v28 = vmul.f32 %v5372_v54, %v3329_v48  ;;  %v5194_v54 = vld [vmem:[%s5762_s4 + $0x68] sm:$0xff]  ;;  %v5185_v48 = vld [vmem:[%s5762_s4 + $0x20] sm:$0xff] }
0x1749   :  { %3645 = vmatpush.bf16.msrb.mxu3 %v5194_v54  ;;  %3632 = vmatpush.bf16.msrb.mxu2 %v5185_v48 }
0x174a   :  { %v6385_v53 = vadd.f32 %v3333_v28, %v3323_v63  ;;  %v5193_v63 = vld [vmem:[%s5762_s4 + $0x60] sm:$0xff]  ;;  %v5184_v28 = vld [vmem:[%s5762_s4 + $0x18] sm:$0xff] }
0x174c   :  { %v3337_v21 = vmul.f32 %v6385_v53, %v6385_v53 }
0x174d   :  { %3646 = vmatpush.bf16.msrb.mxu3 %v5193_v63  ;;  %3633 = vmatpush.bf16.msrb.mxu2 %v5184_v28 }
0x174e   :  { %v3341_v0 = vsel %vm236_vm0, %v3337_v21, 0.0  ;;  %v5192_v21 = vld [vmem:[%s5762_s4 + $0x58] sm:$0xff] }
0x174f   :  { %3342 = vadd.xlane.f32.xlu1 %v3341_v0  ;;  %v5183_v0 = vld [vmem:[%s5762_s4 + $0x10] sm:$0xff] }
0x1751   :  { %3647 = vmatpush.bf16.msrb.mxu3 %v5192_v21  ;;  %3634 = vmatpush.bf16.msrb.mxu2 %v5183_v0 }
0x1755   :  { %3635 = vmatpush.bf16.msrb.mxu2 %v5182_v8 }
0x1759   :  { %3636 = vmatpush.bf16.msrb.mxu2 %v5181_v39 }
0x17a2   :  { %v3340_v2 = vpop.xlane.xlu1 %3339 }
0x17a3   :  { %v3344_v4 = vmul.f32 %v3340_v2, %v5799_v22  ;;  %v5191_v2 = vld [vmem:[%s5762_s4 + $0x50] sm:$0xff] }
0x17a4   :  { %3648 = vmatpush.bf16.msrb.mxu3 %v5191_v2 }
0x17a5   :  { %v3346_v9 = vmax.f32 %v3344_v4, 1e-16  ;;  %v3382_v4 = vld [vmem:[%s6573_s29] sm:$0x3] }
0x17a6   :  { %v3384_v5 = vperm.slane %v3382_v4, 0  ;;  %v3385_v6 = vperm.slane %v3382_v4, 1 }
0x17a7   :  { %5373 = vrsqrt.f32 %v3346_v9  ;;  %vm3354_vm8 = vweird.f32 %v3346_v9 }
0x17a8   :  { %3649 = vmatpush.bf16.msrb.mxu3 %v5190_v41 }
0x17ad   :  { %v5374_v1 = vpop.eup %5373 }
0x17ae   :  { %v3349_v7 = vmul.f32 %v5374_v1, %v3346_v9  ;;  %vm3355_vm7 = vweird.f32 %v5374_v1  ;;  %v5189_v9 = vld [vmem:[%s5762_s4 + $0x40] sm:$0xff]  ;;  %s6574_s4 = sld [smem:[#allocation33_spill]] }
0x17af   :  { %vm3356_vm9 = vmor %vm3354_vm8, %vm3355_vm7  ;;  %3650 = vmatpush.bf16.msrb.mxu3 %v5189_v9 }
0x17b0   :  { %v3350_v43 = vmul.f32 %v5374_v1, %v3349_v7 }
0x17b2   :  { %v3351_v55 = vmul.f32 0.5, %v3350_v43 }
0x17b4   :  { %v3352_v58 = vsub.f32 1.5, %v3351_v55  ;;  %v4977_v13 = vld [vmem:[%s6574_s4 + $0x30] sm:$0xf]  ;;  %v5204_v60 = vld [vmem:[%s6574_s4 + $0x34] sm:$0xf0] }
0x17b5   :  { %v5203_v54 = vld [vmem:[%s6574_s4 + $0x34] sm:$0xf]  ;;  %v4978_v48 = vor.u32 %v5204_v60, %v4977_v13  ;;  %v4979_v63 = vld [vmem:[%s6574_s4 + $0x38] sm:$0xf0]  ;;  %v4969_v21 = vld [vmem:[%s6574_s4 + $0x20] sm:$0xf] }
0x17b6   :  { %v3353_v44 = vmul.f32 %v5374_v1, %v3352_v58  ;;  %v4982_v28 = vor.u32 %v5203_v54, %v4979_v63  ;;  %v5202_v0 = vld [vmem:[%s6574_s4 + $0x24] sm:$0xf0]  ;;  %v5201_v2 = vld [vmem:[%s6574_s4 + $0x24] sm:$0xf]  ;;  %v4961_v8 = vld [vmem:[%s6574_s4 + $0x10] sm:$0xf] }
0x17b7   :  { %3719 = vmatpush.bf16.msrb.mxu0 %v4978_v48  ;;  %v4970_v4 = vor.u32 %v5202_v0, %v4969_v21  ;;  %v5200_v41 = vld [vmem:[%s6574_s4 + $0x14] sm:$0xf0]  ;;  %v5199_v39 = vld [vmem:[%s6574_s4 + $0x14] sm:$0xf] }
0x17b8   :  { %v3357_v38 = vsel %vm3356_vm9, %v5374_v1, %v3353_v44  ;;  %3733 = vmatpush.bf16.msrb.mxu1 %v4982_v28  ;;  %v4962_v9 = vor.u32 %v5200_v41, %v4961_v8 }
0x17b9   :  { %v3368_v46 = vmul.f32 %v3357_v38, %v6378_v26 }
0x17bb   :  { %v3371_v50 = vmul.f32 %v3370_v3, %v3368_v46  ;;  %3720 = vmatpush.bf16.msrb.mxu0 %v4970_v4 }
0x17bf   :  { %3721 = vmatpush.bf16.msrb.mxu0 %v4962_v9 }
0x17c2   :  { %v3343_v49 = vpop.xlane.xlu1 %3342 }
0x17c3   :  { %v3345_v24 = vmul.f32 %v3343_v49, %v5799_v22 }
0x17c5   :  { %v3347_v52 = vmax.f32 %v3345_v24, 1e-16 }
0x17c7   :  { %5375 = vrsqrt.f32 %v3347_v52  ;;  %vm3364_vm11 = vweird.f32 %v3347_v52 }
0x17cd   :  { %v5376_v27 = vpop.eup %5375 }
0x17ce   :  { %v3359_v62 = vmul.f32 %v5376_v27, %v3347_v52  ;;  %vm3365_vm10 = vweird.f32 %v5376_v27 }
0x17cf   :  { %vm3366_vm12 = vmor %vm3364_vm11, %vm3365_vm10 }
0x17d0   :  { %v3360_v16 = vmul.f32 %v5376_v27, %v3359_v62 }
0x17d2   :  { %v3361_v61 = vmul.f32 0.5, %v3360_v16 }
0x17d4   :  { %v3362_v17 = vsub.f32 1.5, %v3361_v61 }
0x17d6   :  { %v3363_v22 = vmul.f32 %v5376_v27, %v3362_v17 }
0x17d8   :  { %v3367_v18 = vsel %vm3366_vm12, %v5376_v27, %v3363_v22 }
0x17d9   :  { %v3369_v47 = vmul.f32 %v3367_v18, %v6385_v53 }
0x17db   :  { %v3372_v19 = vmul.f32 %v3370_v3, %v3369_v47 }
0x17dd   :  { %v3381_v45 = vpack.c.bf16 %v3372_v19, %v3371_v50 }
0x17df   :  { %4885 = vmatmul.msk.bf16.vlgmr.msra.gmra.mxu0 %vm236_vm0, %v3381_v45  ;;  %4886 = vmatmul.msk.bf16.vlgmr.msra.gmra.mxu1 %vm236_vm0, %v3381_v45 }
0x185c   :  { %v3440_v10 = vpop.f32.mrf.mxu0  ;;  %v3454_v14 = vpop.f32.mrf.mxu1 }
0x185d   :  { %v3441_v15 = vadd.f32 %v3440_v10, %v3384_v5  ;;  %v3455_v12 = vadd.f32 %v3454_v14, %v3385_v6  ;;  %v4963_v10 = vld [vmem:[%s6574_s4 + $0x18] sm:$0xf0] }
0x185e   :  { %v4966_v14 = vor.u32 %v5199_v39, %v4963_v10 }
0x185f   :  { %v3463_v20 = vmul.f32 0.044715, %v3441_v15  ;;  %v3464_v23 = vmul.f32 0.044715, %v3455_v12  ;;  %v3459_v22 = vmul.f32 0.5, %v3441_v15  ;;  %v3460_v46 = vmul.f32 0.5, %v3455_v12 }
0x1861   :  { %v3467_v25 = vmul.f32 %v3463_v20, %v3441_v15  ;;  %v3468_v11 = vmul.f32 %v3464_v23, %v3455_v12  ;;  %v5197_v20 = vld [vmem:[%s6574_s4 + $0x4] sm:$0xf] }
0x1863   :  { %v3471_v29 = vmul.f32 %v3467_v25, %v3441_v15  ;;  %v3472_v30 = vmul.f32 %v3468_v11, %v3455_v12  ;;  %v4955_v25 = vld [vmem:[%s6574_s4 + $0x8] sm:$0xf0] }
0x1864   :  { %v3442_v31 = vpop.f32.mrf.mxu0  ;;  %v3456_v32 = vpop.f32.mrf.mxu1  ;;  %v4958_v11 = vor.u32 %v5197_v20, %v4955_v25 }
0x1865   :  { %v3443_v57 = vadd.f32 %v3442_v31, %v3384_v5  ;;  %v3457_v1 = vadd.f32 %v3456_v32, %v3385_v6  ;;  %v3475_v34 = vadd.f32 %v3471_v29, %v3441_v15  ;;  %v3476_v35 = vadd.f32 %v3472_v30, %v3455_v12  ;;  %v4971_v5 = vld [vmem:[%s6574_s4 + $0x28] sm:$0xf0]  ;;  %v4953_v15 = vld [vmem:[%s6574_s4] sm:$0xf]  ;;  %v5198_v12 = vld [vmem:[%s6574_s4 + $0x4] sm:$0xf0] }
0x1866   :  { %v4974_v6 = vor.u32 %v5201_v2, %v4971_v5  ;;  %v4954_v23 = vor.u32 %v5198_v12, %v4953_v15  ;;  %v5266_v31 = vld [vmem:[%s5767_s19] ss:$0 sm:$0xff]  ;;  %s3847_s19 = sshll.u32 %s5772_s3, 4  ;;  %s3848_s19 = int_to_ptr.hbm [resolvable:$true] %s3847_s19 }
0x1867   :  { %v3465_v36 = vmul.f32 0.044715, %v3443_v57  ;;  %v3466_v37 = vmul.f32 0.044715, %v3457_v1  ;;  %v3479_v40 = vmul.f32 0.7978846, %v3475_v34 }
0x1868   :  { %v3480_v49 = vmul.f32 0.7978846, %v3476_v35  ;;  %v3461_v56 = vmul.f32 0.5, %v3443_v57  ;;  %v3462_v18 = vmul.f32 0.5, %v3457_v1  ;;  %3734 = vmatpush.bf16.msrb.mxu1 %v4974_v6  ;;  %3722 = vmatpush.bf16.msrb.mxu0 %v4954_v23  ;;  %s5423_s6 = sshra.s32 %s3848_s19, 4  ;;  %s5424_s6 = int_to_ptr.hbm [resolvable:$true] %s5423_s6 }
0x1869   :  { %v3469_v42 = vmul.f32 %v3465_v36, %v3443_v57  ;;  %v3470_v7 = vmul.f32 %v3466_v37, %v3457_v1  ;;  %5377 = vtanh.f32 %v3479_v40  ;;  %v6450_v40 = vld [vmem:[%s6575_s24] sm:$0x3]  ;;  %s5425_s12 = scalar_lea.hbm %s5424_s6, 16  ;;  %p5428_p1 = scmp.lt.s32.totalorder %s5424_s6, %s5772_s3 }
0x186a   :  { %5379 = vtanh.f32 %v3480_v49  ;;  %p5426_p0 = scmp.ne.s32.totalorder %s5424_s6, %s5425_s12  ;;  %p5429_p2 = scmp.lt.s32.totalorder %s5427_s20, %s5425_s12 }
0x186b   :  { %v3473_v24 = vmul.f32 %v3469_v42, %v3443_v57  ;;  %v3474_v43 = vmul.f32 %v3470_v7, %v3457_v1  ;;  %v3668_v42 = vperm.slane %v6450_v40, 0 }
0x186c   :  { %3735 = vmatpush.bf16.msrb.mxu1 %v4966_v14  ;;  %p5430_p3 = por %p5429_p2, %p5428_p1 }
0x186d   :  { %v3477_v52 = vadd.f32 %v3473_v24, %v3443_v57  ;;  %v3478_v55 = vadd.f32 %v3474_v43, %v3457_v1 }
0x186e   :  { %p5431_p4 = pnand %p5430_p3, %p5426_p0 }
0x186f   :  { %v3481_v58 = vmul.f32 0.7978846, %v3477_v52  ;;  %v3482_v27 = vmul.f32 0.7978846, %v3478_v55  ;;  %v5378_v62 = vpop.eup %5377 }
0x1870   :  { %v5380_v44 = vpop.eup %5379  ;;  %v3487_v16 = vadd.f32 1.0, %v5378_v62  ;;  %3736 = vmatpush.bf16.msrb.mxu1 %v4958_v11 }
0x1871   :  { %5381 = vtanh.f32 %v3481_v58  ;;  %v3488_v38 = vadd.f32 1.0, %v5380_v44 }
0x1872   :  { %5383 = vtanh.f32 %v3482_v27  ;;  %v3491_v50 = vmul.f32 %v3487_v16, %v3459_v22 }
0x1873   :  { %v3492_v45 = vmul.f32 %v3488_v38, %v3460_v46 }
0x1877   :  { %v5382_v61 = vpop.eup %5381 }
0x1878   :  { %v5384_v17 = vpop.eup %5383  ;;  %v3489_v3 = vadd.f32 1.0, %v5382_v61 }
0x1879   :  { %v3490_v47 = vadd.f32 1.0, %v5384_v17 }
0x187a   :  { %v3493_v19 = vmul.f32 %v3489_v3, %v3461_v56 }
0x187b   :  { %v3494_v51 = vmul.f32 %v3490_v47, %v3462_v18 }
0x187c   :  { %v3527_v59 = vpack.c.bf16 %v3493_v19, %v3491_v50 }
0x187d   :  { %v3528_v33 = vpack.c.bf16 %v3494_v51, %v3492_v45 }
0x187e   :  { %3637 = vmatmul.bf16.vlgmr.msrb.gmra.mxu2 %v3527_v59 }
0x187f   :  { %3651 = vmatmul.bf16.vlgmr.msrb.gmra.mxu3 %v3528_v33 }
0x1901   :  { %v3638_v29 = vpop.f32.mrf.mxu2 }
0x1902   :  { %v3652_v30 = vpop.f32.mrf.mxu3  ;;  %v3639_v32 = vadd.f32 %v5266_v31, %v3638_v29 }
0x1904   :  { %v3653_v35 = vadd.f32 %v3652_v30, %v3639_v32 }
0x1909   :  { %v3640_v57 = vpop.f32.mrf.mxu2 }
0x190a   :  { %v3641_v1 = vadd.f32 %v5266_v31, %v3640_v57  ;;  %v3654_v34 = vpop.f32.mrf.mxu3 }
0x190c   :  { %v3655_v36 = vadd.f32 %v3654_v34, %v3641_v1 }
0x190e   :  { %v3665_v37 = vpack.c.bf16 %v3655_v36, %v3653_v35 }
0x1910   :  { %4983 = vmatmul.msk.bf16.vlgmr.msrb.gmra.mxu0 %vm236_vm0, %v3665_v37  ;;  %4984 = vmatmul.msk.bf16.vlgmr.msrb.gmra.mxu1 %vm236_vm0, %v3665_v37 }
0x198d   :  { %v3724_v7 = vpop.f32.mrf.mxu0 }
0x198e   :  { %v6453_v49 = vadd.f32 %v3724_v7, %v3668_v42 }
0x1990   :  { %v4985_v24 = vadd.f32 -1.0, %v6453_v49 }
0x1992   :  { %v4987_v43 = vmul.f32 -1.442695, %v4985_v24 }
0x1994   :  { %5385 = vpow2.f32 %v4987_v43 }
0x1995   :  { %v3726_v52 = vpop.f32.mrf.mxu0 }
0x1996   :  { %v6456_v55 = vadd.f32 %v3726_v52, %v3668_v42 }
0x1998   :  { %v4986_v58 = vadd.f32 -1.0, %v6456_v55 }
0x199a   :  { %v5386_v27 = vpop.eup %5385  ;;  %v4988_v62 = vmul.f32 -1.442695, %v4986_v58 }
0x199b   :  { %v3753_v44 = vadd.f32 1.0, %v5386_v27 }
0x199c   :  { %5387 = vpow2.f32 %v4988_v62 }
0x199d   :  { %5389 = vrcp.f32 %v3753_v44  ;;  %v3766_v56 = vand.u32 2147483648, %v3753_v44  ;;  %v3764_v46 = vand.u32 2147483647, %v3753_v44 }
0x19a2   :  { %v5388_v16 = vpop.eup %5387 }
0x19a3   :  { %v5390_v61 = vpop.eup %5389  ;;  %v3754_v38 = vadd.f32 1.0, %v5388_v16 }
0x19a4   :  { %v3756_v17 = vmul.f32 %v5390_v61, %v3753_v44  ;;  %vm3761_vm13 = vweird.f32 %v5390_v61 }
0x19a5   :  { %5391 = vrcp.f32 %v3754_v38 }
0x19a6   :  { %v3757_v22 = vsub.f32 1.0, %v3756_v17 }
0x19a8   :  { %v3758_v3 = vmul.f32 %v5390_v61, %v3757_v22 }
0x19a9   :  { %5434 = shalt.err (!%p5431_p4)
}
0x19aa   :  { %s5516_s13 = smov 128   ;;  %s5517_s8 = smov 8   ;;  %v3759_v18 = vadd.f32 %v5390_v61, %v3758_v3  ;;  %vm3760_vm14 = vweird.f32 %v3753_v44  ;;  %v3767_v50 = vor.u32 1.1754944e-38, %v3766_v56  ;;  %vm3765_vm1 = vcmp.eq.f32.partialorder %v3764_v46, 8.507059e+37  ;;  %v3738_v21 = vpop.f32.mrf.mxu1 }
0x19ab   :  { %3853 = dma.vmem_to_hbm [thread:$0]  %s3846_s9, 256, %s3848_s19, [#allocation3], %s5516_s13, %s5516_s13, %s5517_s8   ;;  %v5392_v47 = vpop.eup %5391  ;;  %vm3762_vm15 = vmor %vm3760_vm14, %vm3761_vm13  ;;  %v3781_v33 = vand.u32 2147483648, %v3754_v38  ;;  %v3779_v60 = vand.u32 2147483647, %v3754_v38  ;;  %vm3775_vm3 = vweird.f32 %v3754_v38  ;;  %v3669_v2 = vperm.slane %v6450_v40, 1 }
0x19ac   :  { %v3763_v19 = vsel %vm3762_vm15, %v5390_v61, %v3759_v18  ;;  %v3771_v45 = vmul.f32 %v5392_v47, %v3754_v38  ;;  %vm3776_vm2 = vweird.f32 %v5392_v47  ;;  %s5518_s3 = smov [#allocation4]   ;;  %s3860_s15 = sshll.u32 %s5777_s17, 4  ;;  %s3861_s15 = int_to_ptr.hbm [resolvable:$true] %s3860_s15 }
0x19ad   :  { %v3768_v51 = vsel %vm3765_vm1, %v3767_v50, %v3763_v19  ;;  %vm3777_vm4 = vmor %vm3775_vm3, %vm3776_vm2  ;;  %v3782_v48 = vor.u32 1.1754944e-38, %v3781_v33  ;;  %vm3780_vm5 = vcmp.eq.f32.partialorder %v3779_v60, 8.507059e+37  ;;  %v3739_v8 = vadd.f32 %v3738_v21, %v3669_v2  ;;  %s3858_s27 = sshll.u32 %s5518_s3, 4  ;;  %s5447_s16 = sshra.s32 %s3861_s15, 4  ;;  %s3859_s27 = int_to_ptr.vmem [resolvable:$true] %s3858_s27  ;;  %s5448_s16 = int_to_ptr.hbm [resolvable:$true] %s5447_s16 }
0x19ae   :  { %3829 = vrot.lane.b32.xlu1 %v3768_v51, %s5514_s25  ;;  %v3772_v59 = vsub.f32 1.0, %v3771_v45  ;;  %s5449_s18 = scalar_lea.hbm %s5448_s16, 16  ;;  %s5451_s22 = scalar_lea.hbm %s5777_s17, 16 }
0x19af   :  { %v3785_v39 = vadd.f32 1.0, %v3739_v8  ;;  %p5450_p5 = scmp.ne.s32.totalorder %s5448_s16, %s5449_s18  ;;  %p5452_p6 = scmp.lt.s32.totalorder %s5448_s16, %s5777_s17 }
0x19b0   :  { %v3773_v13 = vmul.f32 %v5392_v47, %v3772_v59  ;;  %p5453_p7 = scmp.lt.s32.totalorder %s5451_s22, %s5449_s18 }
0x19b1   :  { %v4989_v10 = vmul.f32 -1.442695, %v3785_v39 }
0x19b2   :  { %v3774_v54 = vadd.f32 %v5392_v47, %v3773_v13  ;;  %v3740_v0 = vpop.f32.mrf.mxu1  ;;  %p5454_p8 = por %p5453_p7, %p5452_p6 }
0x19b3   :  { %v3741_v4 = vadd.f32 %v3740_v0, %v3669_v2 }
0x19b4   :  { %v3778_v63 = vsel %vm3777_vm4, %v5392_v47, %v3774_v54  ;;  %p5455_p9 = pnand %p5454_p8, %p5450_p5 }
0x19b5   :  { %v3783_v28 = vsel %vm3780_vm5, %v3782_v48, %v3778_v63  ;;  %v3786_v5 = vadd.f32 1.0, %v3741_v4 }
0x19b6   :  { %3831 = vrot.lane.b32.xlu2 %v3783_v28, %s5514_s25 }
0x19b7   :  { %v4990_v6 = vmul.f32 -1.442695, %v3786_v5 }
0x19b9   :  { %5393 = vpow2.f32 %v4990_v6 }
0x19bf   :  { %v5394_v41 = vpop.eup %5393 }
0x19c0   :  { %v3794_v9 = vadd.f32 1.0, %v5394_v41 }
0x19c2   :  { %5395 = vrcp.f32 %v3794_v9  ;;  %v3821_v30 = vand.u32 2147483648, %v3794_v9  ;;  %vm3815_vm7 = vweird.f32 %v3794_v9  ;;  %v3819_v31 = vand.u32 2147483647, %v3794_v9 }
0x19c3   :  { %5397 = vpow2.f32 %v4989_v10 }
0x19c4   :  { %v3822_v1 = vor.u32 1.1754944e-38, %v3821_v30  ;;  %vm3820_vm9 = vcmp.eq.f32.partialorder %v3819_v31, 8.507059e+37 }
0x19c8   :  { %v5396_v14 = vpop.eup %5395 }
0x19c9   :  { %v5398_v15 = vpop.eup %5397  ;;  %v3811_v12 = vmul.f32 %v5396_v14, %v3794_v9  ;;  %vm3816_vm6 = vweird.f32 %v5396_v14 }
0x19ca   :  { %v3793_v20 = vadd.f32 1.0, %v5398_v15  ;;  %vm3817_vm8 = vmor %vm3815_vm7, %vm3816_vm6 }
0x19cb   :  { %v3812_v23 = vsub.f32 1.0, %v3811_v12 }
0x19cc   :  { %5399 = vrcp.f32 %v3793_v20  ;;  %v3806_v52 = vand.u32 2147483648, %v3793_v20  ;;  %vm3800_vm11 = vweird.f32 %v3793_v20 }
0x19cd   :  { %v3813_v25 = vmul.f32 %v5396_v14, %v3812_v23  ;;  %5401 = vtanh.f32 %v6456_v55  ;;  %v3804_v55 = vand.u32 2147483647, %v3793_v20 }
0x19ce   :  { %5403 = vtanh.f32 %v6453_v49  ;;  %v3807_v27 = vor.u32 1.1754944e-38, %v3806_v52 }
0x19cf   :  { %v3814_v11 = vadd.f32 %v5396_v14, %v3813_v25  ;;  %vm3805_vm13 = vcmp.eq.f32.partialorder %v3804_v55, 8.507059e+37 }
0x19d1   :  { %v3818_v57 = vsel %vm3817_vm8, %v5396_v14, %v3814_v11 }
0x19d2   :  { %v5400_v29 = vpop.eup %5399  ;;  %v3823_v34 = vsel %vm3820_vm9, %v3822_v1, %v3818_v57 }
0x19d3   :  { %v3796_v32 = vmul.f32 %v5400_v29, %v3793_v20  ;;  %v5402_v36 = vpop.eup %5401  ;;  %v3826_v40 = vmul.f32 %v3823_v34, %v6385_v53  ;;  %vm3801_vm10 = vweird.f32 %v5400_v29 }
0x19d4   :  { %vm3802_vm12 = vmor %vm3800_vm11, %vm3801_vm10  ;;  %v5404_v53 = vpop.eup %5403 }
0x19d5   :  { %v3797_v35 = vsub.f32 1.0, %v3796_v32 }
0x19d7   :  { %v3798_v24 = vmul.f32 %v5400_v29, %v3797_v35 }
0x19d9   :  { %v3799_v43 = vadd.f32 %v5400_v29, %v3798_v24 }
0x19db   :  { %v3803_v58 = vsel %vm3802_vm12, %v5400_v29, %v3799_v43 }
0x19dc   :  { %v3808_v62 = vsel %vm3805_vm13, %v3807_v27, %v3803_v58 }
0x19dd   :  { %v3825_v16 = vmul.f32 %v3808_v62, %v6378_v26 }
0x1a10   :  { %v3832_v37 = vpop.permute.xlu2 %3831 }
0x1a11   :  { %v3836_v42 = vmul.f32 %v5402_v36, %v3832_v37 }
0x1a13   :  { %v3838_v7 = vadd.f32 %v3836_v42, %v3826_v40 }
0x1a15   :  { %3840 = vst.msk [vmem:[#allocation4 + $0x8] sm:$0xff] %vm236_vm0, %v3838_v7 }
0x1a20   :  { %v3830_v44 = vpop.permute.xlu1 %3829 }
0x1a21   :  { %v3835_v61 = vmul.f32 %v5404_v53, %v3830_v44 }
0x1a23   :  { %v3837_v38 = vadd.f32 %v3835_v61, %v3825_v16 }
0x1a25   :  { %3839 = vst.msk [vmem:[#allocation4] sm:$0xff] %vm236_vm0, %v3837_v38 }
0x1a26   :  { %5458 = shalt.err (!%p5455_p9)
}
0x1a27   :  { %3866 = dma.vmem_to_hbm [thread:$0]  %s3859_s27, 256, %s3861_s15, [#allocation5], %s5516_s13, %s5516_s13, %s5517_s8  }
0x1a28   :  { %5459 = dma.done.wait [#allocation3], 256  }
0x1a29   :  { %5460 = vsyncadd [#allocation3], 4294967040 }
0x1a2a   :  { %5461 = dma.done.wait [#allocation5], 256  }
0x1a2b   :  { %5462 = vsyncadd [#allocation5], 4294967040 }
0x1a2c   :  { %3875 = vsyncpa [#allocation3], 1 }
0x1a2d   :  { %3876 = vsyncpa [#allocation5], 1 }

// kernel: block_recurrent_attention.1
= control target key start
LH: loop header
LB: loop body
LE: loop exit
PB: predicated region body
PF: predicated region fallthrough
CT: control target
= control target key end

     0   :  { %s5463_s6 = smov 1   ;;  %s5464_s10 = smov 2   ;;  %s6481_s0 = inlined_call_operand.smem [shape: u32[51], index: -1, kind: input, shape index: {}] }
   0x1   :  { %s5527_s5 = sld [smem:[%s6481_s0]]   ;;  %s5465_s14 = smov 3  }
   0x2   :  { %s5532_s9 = sld [smem:[%s6481_s0 + %s5463_s6]]   ;;  %s5466_s18 = smov 4  }
   0x3   :  { %s5537_s13 = sld [smem:[%s6481_s0 + %s5464_s10]]   ;;  %s5467_s22 = smov 5  }
   0x4   :  { %s5542_s17 = sld [smem:[%s6481_s0 + %s5465_s14]]   ;;  %s5468_s26 = smov 6  }
   0x5   :  { %s5547_s21 = sld [smem:[%s6481_s0 + %s5466_s18]]   ;;  %s5469_s30 = smov 7  }
   0x6   :  { %s5552_s25 = sld [smem:[%s6481_s0 + %s5467_s22]]   ;;  %s5470_s4 = smov 8  }
   0x7   :  { %s5557_s29 = sld [smem:[%s6481_s0 + %s5468_s26]]   ;;  %s5471_s10 = smov 9  }
   0x8   :  { %s5562_s3 = sld [smem:[%s6481_s0 + %s5469_s30]]   ;;  %s5472_s15 = smov 10  }
   0x9   :  { %s5567_s8 = sld [smem:[%s6481_s0 + %s5470_s4]]   ;;  %s5473_s20 = smov 11  }
   0xa   :  { %6506 = sst [smem:[#allocation8_spill]] %s5542_s17  ;;  %s5474_s26 = smov 12  }
   0xb   :  { %s5572_s14 = sld [smem:[%s6481_s0 + %s5471_s10]]   ;;  %s5475_s1 = smov 13  }
   0xc   :  { %s5577_s19 = sld [smem:[%s6481_s0 + %s5472_s15]]   ;;  %s5476_s7 = smov 14  }
   0xd   :  { %6507 = sst [smem:[#allocation9_spill]] %s5557_s29  ;;  %s5477_s15 = smov 15  }
   0xe   :  { %6508 = sst [smem:[#allocation10_spill]] %s5562_s3  ;;  %s5478_s22 = smov 16  }
   0xf   :  { %s5582_s24 = sld [smem:[%s6481_s0 + %s5473_s20]]   ;;  %s5479_s28 = smov 17  }
  0x10   :  { %s5587_s30 = sld [smem:[%s6481_s0 + %s5474_s26]]  }
  0x11   :  { %s5592_s6 = sld [smem:[%s6481_s0 + %s5475_s1]]  }
  0x12   :  { %6509 = sst [smem:[#allocation11_spill]] %s5577_s19 }
  0x13   :  { %s5597_s12 = sld [smem:[%s6481_s0 + %s5476_s7]]   ;;  %s5480_s7 = smov 18  }
  0x14   :  { %s5602_s20 = sld [smem:[%s6481_s0 + %s5477_s15]]   ;;  %s5481_s15 = smov 19  }
  0x15   :  { %6510 = sst [smem:[#allocation12_spill]] %s5582_s24 }
  0x16   :  { %6511 = sst [smem:[#allocation13_spill]] %s5587_s30 }
  0x17   :  { %s5607_s27 = sld [smem:[%s6481_s0 + %s5478_s22]]   ;;  %s5482_s22 = smov 20  }
  0x18   :  { %s5612_s4 = sld [smem:[%s6481_s0 + %s5479_s28]]   ;;  %s5483_s28 = smov 21  }
  0x19   :  { %s5617_s30 = sld [smem:[%s6481_s0 + %s5480_s7]]   ;;  %s5484_s7 = smov 22  }
  0x1a   :  { %s5622_s24 = sld [smem:[%s6481_s0 + %s5481_s15]]   ;;  %s5485_s15 = smov 23  }
  0x1b   :  { %s5627_s29 = sld [smem:[%s6481_s0 + %s5482_s22]]   ;;  %s5486_s22 = smov 24  }
  0x1c   :  { %s5632_s3 = sld [smem:[%s6481_s0 + %s5483_s28]]   ;;  %s5487_s28 = smov 25  }
  0x1d   :  { %s5637_s17 = sld [smem:[%s6481_s0 + %s5484_s7]]   ;;  %s5488_s7 = smov 26  }
  0x1e   :  { %6512 = sst [smem:[#allocation14_spill]] %s5612_s4 }
  0x1f   :  { %s5642_s4 = sld [smem:[%s6481_s0 + %s5485_s15]]   ;;  %s5489_s15 = smov 27  }
  0x20   :  { %s5647_s19 = sld [smem:[%s6481_s0 + %s5486_s22]]   ;;  %s5490_s22 = smov 28  }
  0x22   :  { %6513 = sst [smem:[#allocation15_spill]] %s5632_s3 }
  0x23   :  { %6514 = sst [smem:[#allocation16_spill]] %s5637_s17 }
  0x24   :  { %s5652_s3 = sld [smem:[%s6481_s0 + %s5487_s28]]   ;;  %s5491_s28 = smov 29  }
  0x25   :  { %6515 = sst [smem:[#allocation17_spill]] %s5642_s4 }
  0x26   :  { %6516 = sst [smem:[#allocation18_spill]] %s5647_s19 }
  0x27   :  { %s5657_s17 = sld [smem:[%s6481_s0 + %s5488_s7]]   ;;  %s5492_s7 = smov 30  }
  0x28   :  { %s5662_s4 = sld [smem:[%s6481_s0 + %s5489_s15]]   ;;  %s5493_s15 = smov 31  }
  0x29   :  { %s5667_s19 = sld [smem:[%s6481_s0 + %s5490_s22]]   ;;  %s5494_s22 = smov 32  }
  0x2a   :  { %6517 = sst [smem:[#allocation19_spill]] %s5652_s3 }
  0x2b   :  { %s5672_s3 = sld [smem:[%s6481_s0 + %s5491_s28]]   ;;  %s5495_s28 = smov 33  }
  0x2d   :  { %6518 = sst [smem:[#allocation20_spill]] %s5657_s17 }
  0x2e   :  { %6519 = sst [smem:[#allocation21_spill]] %s5662_s4 }
  0x2f   :  { %6520 = sst [smem:[#allocation22_spill]] %s5667_s19 }
  0x30   :  { %s5677_s17 = sld [smem:[%s6481_s0 + %s5492_s7]]   ;;  %s5496_s7 = smov 34  }
  0x31   :  { %6521 = sst [smem:[#allocation23_spill]] %s5672_s3 }
  0x32   :  { %s5682_s4 = sld [smem:[%s6481_s0 + %s5493_s15]]   ;;  %s5497_s15 = smov 35  }
  0x33   :  { %s5687_s19 = sld [smem:[%s6481_s0 + %s5494_s22]]   ;;  %s5498_s22 = smov 36  }
  0x34   :  { %s5692_s3 = sld [smem:[%s6481_s0 + %s5495_s28]]   ;;  %s5499_s28 = smov 37  }
  0x36   :  { %6522 = sst [smem:[#allocation24_spill]] %s5677_s17 }
  0x37   :  { %s5697_s17 = sld [smem:[%s6481_s0 + %s5496_s7]]   ;;  %s5500_s7 = smov 38  }
  0x38   :  { %6523 = sst [smem:[#allocation25_spill]] %s5682_s4 }
  0x39   :  { %6524 = sst [smem:[#allocation26_spill]] %s5687_s19 }
  0x3a   :  { %6525 = sst [smem:[#allocation27_spill]] %s5692_s3 }
  0x3b   :  { %s5702_s4 = sld [smem:[%s6481_s0 + %s5497_s15]]   ;;  %s5501_s15 = smov 39  }
  0x3c   :  { %s5707_s19 = sld [smem:[%s6481_s0 + %s5498_s22]]   ;;  %s5502_s22 = smov 40  }
  0x3d   :  { %6526 = sst [smem:[#allocation28_spill]] %s5697_s17 }
  0x3e   :  { %s5712_s3 = sld [smem:[%s6481_s0 + %s5499_s28]]   ;;  %s5503_s28 = smov 41  }
  0x3f   :  { %s5717_s17 = sld [smem:[%s6481_s0 + %s5500_s7]]   ;;  %s5504_s7 = smov 42  }
  0x41   :  { %6527 = sst [smem:[#allocation29_spill]] %s5702_s4 }
  0x42   :  { %6528 = sst [smem:[#allocation30_spill]] %s5707_s19 }
  0x43   :  { %s5722_s4 = sld [smem:[%s6481_s0 + %s5501_s15]]   ;;  %s5505_s15 = smov 43  }
  0x44   :  { %6529 = sst [smem:[#allocation31_spill]] %s5712_s3 }
  0x45   :  { %6530 = sst [smem:[#allocation32_spill]] %s5717_s17 }
  0x46   :  { %s5727_s19 = sld [smem:[%s6481_s0 + %s5502_s22]]   ;;  %s5506_s22 = smov 44  }
  0x47   :  { %s5732_s3 = sld [smem:[%s6481_s0 + %s5503_s28]]   ;;  %s5507_s28 = smov 45  }
  0x48   :  { %s5737_s17 = sld [smem:[%s6481_s0 + %s5504_s7]]   ;;  %s5508_s7 = smov 46  }
  0x49   :  { %6531 = sst [smem:[#allocation33_spill]] %s5722_s4 }
  0x4a   :  { %s5742_s4 = sld [smem:[%s6481_s0 + %s5505_s15]]   ;;  %s5509_s15 = smov 47  }
  0x4c   :  { %6532 = sst [smem:[#allocation34_spill]] %s5727_s19 }
  0x4d   :  { %6533 = sst [smem:[#allocation35_spill]] %s5732_s3 }
  0x4e   :  { %6534 = sst [smem:[#allocation36_spill]] %s5737_s17 }
  0x4f   :  { %s5747_s19 = sld [smem:[%s6481_s0 + %s5506_s22]]   ;;  %s5510_s22 = smov 48  }
  0x50   :  { %6535 = sst [smem:[#allocation37_spill]] %s5742_s4 }
  0x51   :  { %s5752_s3 = sld [smem:[%s6481_s0 + %s5507_s28]]   ;;  %s5511_s28 = smov 49  }
  0x52   :  { %s5757_s17 = sld [smem:[%s6481_s0 + %s5508_s7]]   ;;  %s5512_s7 = smov 50  }
  0x53   :  { %s5762_s4 = sld [smem:[%s6481_s0 + %s5509_s15]]  }
  0x55   :  { %6536 = sst [smem:[#allocation38_spill]] %s5747_s19 }
  0x56   :  { %s5767_s19 = sld [smem:[%s6481_s0 + %s5510_s22]]  }
  0x57   :  { %6537 = sst [smem:[#allocation39_spill]] %s5752_s3 }
  0x58   :  { %6538 = sst [smem:[#allocation40_spill]] %s5757_s17 }
  0x59   :  { %s5772_s3 = sld [smem:[%s6481_s0 + %s5511_s28]]  }
  0x5a   :  { %s5777_s17 = sld [smem:[%s6481_s0 + %s5512_s7]]  }
  0x5b   :  { %107 = vsyncpa [#allocation3], 0  ;;  %v208_v0 = vld [vmem:[%s5527_s5] sm:$0xff]   ;;  %vm236_vm0 = vcmask 523264  }
  0x5c   :  { %v5780_v1 = vunpack.c.l.bf16 %v208_v0  ;;  %v5784_v3 = vunpack.c.h.bf16 %v208_v0 }
  0x5e   :  { %v234_v2 = vmul.f32 %v5780_v1, %v5780_v1 }
  0x5f   :  { %108 = vsyncpa [#allocation5], 0  ;;  %v235_v5 = vmul.f32 %v5784_v3, %v5784_v3  ;;  %v5513_v7 = vmov 64.0   ;;  %v5000_v11 = vld [vmem:[%s5592_s6 + $0x18] sm:$0xff]  ;;  %v4999_v15 = vld [vmem:[%s5592_s6 + $0x10] sm:$0xff]  ;;  %vm551_vm8 = vcmask 130048  }
  0x60   :  { %v237_v4 = vsel %vm236_vm0, %v234_v2, 0.0  ;;  %5267 = vrcp.f32 %v5513_v7  ;;  %v5004_v12 = vld [vmem:[%s5597_s12 + $0x18] sm:$0xff]  ;;  %355 = vmatpush.bf16.msra.mxu0 %v5000_v11  ;;  %v5003_v16 = vld [vmem:[%s5597_s12 + $0x10] sm:$0xff]  ;;  %v4998_v19 = vld [vmem:[%s5592_s6 + $0x8] sm:$0xff]  ;;  %s6539_s0 = sld [smem:[#allocation11_spill]] }
  0x61   :  { %238 = vadd.xlane.f32.xlu0 %v237_v4  ;;  %v240_v6 = vsel %vm236_vm0, %v235_v5, 0.0  ;;  %v5008_v13 = vld [vmem:[%s5602_s20 + $0x18] sm:$0xff]  ;;  %401 = vmatpush.bf16.msra.mxu1 %v5004_v12  ;;  %v5007_v17 = vld [vmem:[%s5602_s20 + $0x10] sm:$0xff]  ;;  %v5002_v20 = vld [vmem:[%s5597_s12 + $0x8] sm:$0xff]  ;;  %s6557_s15 = sld [smem:[#allocation10_spill]] }
  0x62   :  { %447 = vmatpush.bf16.msra.mxu2 %v5008_v13  ;;  %v5006_v21 = vld [vmem:[%s5602_s20 + $0x8] sm:$0xff]  ;;  %v4997_v24 = vld [vmem:[%s5592_s6] sm:$0xff]  ;;  %v5806_v29 = vld [vmem:[%s5567_s8 + $0x18] sm:$0xff]  ;;  %s6558_s16 = sld [smem:[#allocation9_spill]] }
  0x63   :  { %v5001_v25 = vld [vmem:[%s5597_s12] sm:$0xff]  ;;  %491 = vmatpush.bf16.msra.mxu3 %v5806_v29  ;;  %v4995_v58 = vld [vmem:[%s5567_s8 + $0x10] sm:$0xff]  ;;  %v4994_v59 = vld [vmem:[%s5567_s8 + $0x8] sm:$0xff]  ;;  %s6559_s18 = sld [smem:[#allocation12_spill]] }
  0x64   :  { %356 = vmatpush.bf16.msra.mxu0 %v4999_v15  ;;  %v5005_v26 = vld [vmem:[%s5602_s20] sm:$0xff]  ;;  %v5016_v61 = vld [vmem:[%s5592_s6 + $0x38] sm:$0xff]  ;;  %v5015_v63 = vld [vmem:[%s5592_s6 + $0x30] sm:$0xff]  ;;  %s6560_s22 = sld [smem:[#allocation20_spill]] }
  0x65   :  { %402 = vmatpush.bf16.msra.mxu1 %v5003_v16  ;;  %v216_v43 = vld [vmem:[%s5537_s13] sm:$0x7]  ;;  %v5020_v62 = vld [vmem:[%s5597_s12 + $0x38] sm:$0xff]  ;;  %v5019_v0 = vld [vmem:[%s5597_s12 + $0x30] sm:$0xff]  ;;  %s6561_s23 = sld [smem:[#allocation22_spill]] }
  0x66   :  { %v5268_v8 = vpop.eup %5267  ;;  %448 = vmatpush.bf16.msra.mxu2 %v5007_v17  ;;  %v310_v47 = vperm.slane %v216_v43, 0  ;;  %v952_v48 = vperm.slane %v216_v43, 1  ;;  %v4993_v60 = vld [vmem:[%s5567_s8] sm:$0xff]  ;;  %v5014_v2 = vld [vmem:[%s5592_s6 + $0x28] sm:$0xff]  ;;  %s6562_s26 = sld [smem:[#allocation23_spill]] }
  0x67   :  { %v244_v9 = vmul.f32 64.0, %v5268_v8  ;;  %vm248_vm1 = vweird.f32 %v5268_v8  ;;  %492 = vmatpush.bf16.msra.mxu3 %v4995_v58  ;;  %v5018_v4 = vld [vmem:[%s5597_s12 + $0x28] sm:$0xff]  ;;  %v5013_v5 = vld [vmem:[%s5592_s6 + $0x20] sm:$0xff]  ;;  %s6547_s6 = sld [smem:[#allocation18_spill]] }
  0x68   :  { %357 = vmatpush.bf16.msra.mxu0 %v4998_v19  ;;  %v5844_v17 = vld [vmem:[%s5552_s25] sm:$0xff]  ;;  %v5850_v19 = vld [vmem:[%s5547_s21 + $0x8] sm:$0xff]  ;;  %s6563_s28 = sld [smem:[#allocation24_spill]] }
  0x69   :  { %241 = vadd.xlane.f32.xlu0 %v240_v6  ;;  %v245_v10 = vsub.f32 1.0, %v244_v9  ;;  %403 = vmatpush.bf16.msra.mxu1 %v5002_v20  ;;  %v5017_v6 = vld [vmem:[%s5597_s12 + $0x20] sm:$0xff]  ;;  %v5022_v43 = vld [vmem:[%s5602_s20 + $0x28] sm:$0xff]  ;;  %s6548_s12 = sld [smem:[#allocation8_spill]] }
  0x6a   :  { %449 = vmatpush.bf16.msra.mxu2 %v5006_v21  ;;  %v5853_v21 = vld [vmem:[%s5552_s25 + $0x8] sm:$0xff]  ;;  %s6541_s25 = sld [smem:[#allocation15_spill]] }
  0x6b   :  { %v246_v14 = vmul.f32 %v5268_v8, %v245_v10  ;;  %493 = vmatpush.bf16.msra.mxu3 %v4994_v59  ;;  %s6565_s1 = sld [smem:[#allocation13_spill]] }
  0x6c   :  { %358 = vmatpush.bf16.msra.mxu0 %v4997_v24  ;;  %s6566_s2 = sld [smem:[#allocation30_spill]] }
  0x6d   :  { %v247_v18 = vadd.f32 %v5268_v8, %v246_v14  ;;  %404 = vmatpush.bf16.msra.mxu1 %v5001_v25  ;;  %s6567_s7 = sld [smem:[#allocation25_spill]] }
  0x6e   :  { %450 = vmatpush.bf16.msra.mxu2 %v5005_v26  ;;  %s6568_s10 = sld [smem:[#allocation29_spill]] }
  0x6f   :  { %v5799_v22 = vsel %vm248_vm1, %v5268_v8, %v247_v18  ;;  %494 = vmatpush.bf16.msra.mxu3 %v4993_v60  ;;  %v5847_v18 = vld [vmem:[%s5547_s21] sm:$0xff]  ;;  %s6540_s21 = sld [smem:[#allocation28_spill]] }
  0x70   :  { %515 = vmatpush.bf16.msrb.mxu0 %v5806_v29  ;;  %s6569_s11 = sld [smem:[#allocation31_spill]] }
  0x73   :  { %639 = vmatpush.bf16.msrb.mxu3 %v5016_v61 }
  0x74   :  { %516 = vmatpush.bf16.msrb.mxu0 %v4995_v58 }
  0x77   :  { %640 = vmatpush.bf16.msrb.mxu3 %v5015_v63 }
  0x78   :  { %517 = vmatpush.bf16.msrb.mxu0 %v4994_v59 }
  0x7b   :  { %641 = vmatpush.bf16.msrb.mxu3 %v5014_v2 }
  0x7c   :  { %518 = vmatpush.bf16.msrb.mxu0 %v4993_v60 }
  0x7f   :  { %642 = vmatpush.bf16.msrb.mxu3 %v5013_v5 }
  0xd4   :  { %v239_v23 = vpop.xlane.xlu0 %238 }
  0xd5   :  { %v250_v27 = vmul.f32 %v5799_v22, %v239_v23 }
  0xd7   :  { %v252_v28 = vmax.f32 %v250_v27, 1e-16 }
  0xd9   :  { %5269 = vrsqrt.f32 %v252_v28  ;;  %vm260_vm3 = vweird.f32 %v252_v28 }
  0xdc   :  { %v242_v30 = vpop.xlane.xlu0 %241 }
  0xdd   :  { %v251_v31 = vmul.f32 %v5799_v22, %v242_v30 }
  0xdf   :  { %v5270_v32 = vpop.eup %5269  ;;  %v253_v33 = vmax.f32 %v251_v31, 1e-16  ;;  %v5024_v31 = vld [vmem:[%s5602_s20 + $0x38] sm:$0xff] }
  0xe0   :  { %v255_v34 = vmul.f32 %v5270_v32, %v252_v28  ;;  %vm261_vm2 = vweird.f32 %v5270_v32 }
  0xe1   :  { %5271 = vrsqrt.f32 %v253_v33  ;;  %vm262_vm4 = vmor %vm260_vm3, %vm261_vm2  ;;  %vm270_vm6 = vweird.f32 %v253_v33 }
  0xe2   :  { %v256_v35 = vmul.f32 %v5270_v32, %v255_v34 }
  0xe4   :  { %v257_v36 = vmul.f32 0.5, %v256_v35 }
  0xe6   :  { %v258_v37 = vsub.f32 1.5, %v257_v36 }
  0xe7   :  { %v5272_v38 = vpop.eup %5271 }
  0xe8   :  { %v265_v39 = vmul.f32 %v5272_v38, %v253_v33  ;;  %v259_v40 = vmul.f32 %v5270_v32, %v258_v37  ;;  %vm271_vm5 = vweird.f32 %v5272_v38 }
  0xe9   :  { %vm272_vm7 = vmor %vm270_vm6, %vm271_vm5 }
  0xea   :  { %v266_v41 = vmul.f32 %v5272_v38, %v265_v39  ;;  %v263_v44 = vsel %vm262_vm4, %v5270_v32, %v259_v40  ;;  %v5023_v40 = vld [vmem:[%s5602_s20 + $0x30] sm:$0xff] }
  0xeb   :  { %v274_v49 = vmul.f32 %v263_v44, %v5780_v1 }
  0xec   :  { %v267_v42 = vmul.f32 0.5, %v266_v41 }
  0xed   :  { %v311_v52 = vmul.f32 %v310_v47, %v274_v49  ;;  %v953_v53 = vmul.f32 %v952_v48, %v274_v49 }
  0xee   :  { %v268_v45 = vsub.f32 1.5, %v267_v42 }
  0xf0   :  { %v269_v46 = vmul.f32 %v5272_v38, %v268_v45 }
  0xf2   :  { %v273_v50 = vsel %vm272_vm7, %v5272_v38, %v269_v46  ;;  %v5021_v46 = vld [vmem:[%s5602_s20 + $0x20] sm:$0xff]  ;;  %s6553_s20 = sld [smem:[#allocation19_spill]] }
  0xf3   :  { %v275_v51 = vmul.f32 %v273_v50, %v5784_v3 }
  0xf5   :  { %v312_v54 = vmul.f32 %v310_v47, %v275_v51  ;;  %v954_v55 = vmul.f32 %v952_v48, %v275_v51  ;;  %v5875_v48 = vld [vmem:[%s5572_s14] sm:$0xff] }
  0xf7   :  { %v5814_v56 = vpack.c.bf16 %v312_v54, %v311_v52  ;;  %v5816_v57 = vpack.c.bf16 %v954_v55, %v953_v53  ;;  %v5882_v53 = vld [vmem:[%s5572_s14 + $0x8] sm:$0xff]  ;;  %s6542_s14 = sld [smem:[#allocation14_spill]] }
  0xf9   :  { %3943 = vmatmul.msk.bf16.vlgmr.msra.gmra.mxu0 %vm236_vm0, %v5814_v56  ;;  %3960 = vmatmul.msk.bf16.vlgmr.msra.gmra.mxu1 %vm236_vm0, %v5814_v56 }
  0xfa   :  { %3977 = vmatmul.msk.bf16.vlgmr.msra.gmra.mxu2 %vm236_vm0, %v5814_v56  ;;  %686 = vmatpush.bf16.msra.mxu0 %v5020_v62 }
  0xfe   :  { %687 = vmatpush.bf16.msra.mxu0 %v5019_v0 }
 0x102   :  { %688 = vmatpush.bf16.msra.mxu0 %v5018_v4 }
 0x106   :  { %689 = vmatpush.bf16.msra.mxu0 %v5017_v6 }
 0x176   :  { %v360_v7 = vpop.f32.mrf.mxu0  ;;  %v406_v8 = vpop.f32.mrf.mxu1 }
 0x177   :  { %v505_v25 = vmul.f32 %v406_v8, %v5847_v18  ;;  %v457_v38 = vmul.f32 %v360_v7, %v5847_v18 }
 0x17d   :  { %v452_v9 = vpop.f32.mrf.mxu2 }
 0x17e   :  { %v362_v10 = vpop.f32.mrf.mxu0  ;;  %v408_v11 = vpop.f32.mrf.mxu1 }
 0x17f   :  { %v459_v12 = vpack.c.bf16 %v362_v10, %v360_v7  ;;  %v507_v13 = vpack.c.bf16 %v408_v11, %v406_v8  ;;  %v506_v26 = vmul.f32 %v408_v11, %v5850_v19  ;;  %v458_v33 = vmul.f32 %v362_v10, %v5850_v19 }
 0x181   :  { %3994 = vmatmul.msk.bf16.vlgmr.msra.gmra.mxu3 %vm236_vm0, %v459_v12  ;;  %3995 = vmatmul.msk.bf16.vlgmr.msrb.gmra.mxu0 %vm236_vm0, %v507_v13 }
 0x182   :  { %777 = vmatpush.bf16.msra.mxu3 %v5806_v29 }
 0x185   :  { %v454_v14 = vpop.f32.mrf.mxu2 }
 0x186   :  { %v575_v15 = vpack.c.bf16 %v454_v14, %v452_v9  ;;  %778 = vmatpush.bf16.msra.mxu3 %v4995_v58 }
 0x188   :  { %586 = vmatpush.bf16.msrb.mxu2 %v575_v15 }
 0x18a   :  { %779 = vmatpush.bf16.msra.mxu3 %v4994_v59 }
 0x18c   :  { %753 = vmatpush.bf16.msra.mxu2 %v5806_v29 }
 0x18e   :  { %780 = vmatpush.bf16.msra.mxu3 %v4993_v60 }
 0x190   :  { %754 = vmatpush.bf16.msra.mxu2 %v4995_v58 }
 0x191   :  { %4022 = vmatmul.msk.bf16.vlgmr.msrb.gmra.mxu3 %vm236_vm0, %v5814_v56  ;;  %4047 = vmatmul.msk.bf16.vlgmr.msra.gmra.mxu0 %vm236_vm0, %v5814_v56 }
 0x194   :  { %755 = vmatpush.bf16.msra.mxu2 %v4994_v59 }
 0x198   :  { %756 = vmatpush.bf16.msra.mxu2 %v4993_v60 }
 0x1fe   :  { %v520_v16 = vpop.f32.mrf.mxu0 }
 0x1ff   :  { %v525_v23 = vmul.f32 %v520_v16, %v5844_v17 }
 0x201   :  { %v527_v28 = vadd.f32 %v525_v23, %v505_v25  ;;  %v5012_v25 = vld [vmem:[%s5607_s27 + $0x18] sm:$0xff] }
 0x202   :  { %936 = vmatpush.bf16.msrb.mxu3 %v5012_v25  ;;  %v5027_v25 = vld [vmem:[%s5607_s27 + $0x30] sm:$0xff] }
 0x204   :  { %v496_v20 = vpop.f32.mrf.mxu3 }
 0x205   :  { %v501_v34 = vmul.f32 %v496_v20, %v5844_v17 }
 0x206   :  { %v522_v24 = vpop.f32.mrf.mxu0 }
 0x207   :  { %v526_v27 = vmul.f32 %v522_v24, %v5853_v21  ;;  %v503_v41 = vadd.f32 %v501_v34, %v457_v38  ;;  %v5010_v34 = vld [vmem:[%s5607_s27 + $0x8] sm:$0xff]  ;;  %v5031_v38 = vld [vmem:[%s5617_s30 + $0x10] sm:$0xff] }
 0x209   :  { %v528_v29 = vadd.f32 %v526_v27, %v506_v26 }
 0x20b   :  { %v530_v30 = vpack.c.bf16 %v528_v29, %v527_v28 }
 0x20c   :  { %v498_v32 = vpop.f32.mrf.mxu3 }
 0x20d   :  { %v502_v35 = vmul.f32 %v498_v32, %v5853_v21  ;;  %v535_v36 = vsel %vm236_vm0, %v530_v30, 0 }
 0x20e   :  { %544 = vmatpush.bf16.xpose.msrb.mxu1 %v535_v36  ;;  %v691_v37 = vpop.f32.mrf.mxu0  ;;  %v5032_v36 = vld [vmem:[%s5617_s30 + $0x18] sm:$0xff] }
 0x20f   :  { %v504_v39 = vadd.f32 %v502_v35, %v458_v33  ;;  %v767_v62 = vmul.f32 %v691_v37, %v5847_v18  ;;  %v5011_v33 = vld [vmem:[%s5607_s27 + $0x10] sm:$0xff]  ;;  %v5009_v35 = vld [vmem:[%s5607_s27] sm:$0xff] }
 0x210   :  { %937 = vmatpush.bf16.msrb.mxu3 %v5011_v33 }
 0x211   :  { %v529_v42 = vpack.c.bf16 %v504_v39, %v503_v41  ;;  %v5030_v39 = vld [vmem:[%s5617_s30 + $0x8] sm:$0xff] }
 0x214   :  { %v5872_v47 = vpop.f32.mrf.mxu3  ;;  %938 = vmatpush.bf16.msrb.mxu3 %v5010_v34 }
 0x215   :  { %3996 = vmatmul.msk.bf16.vlgmr.msrb.gmra.mxu1 %vm236_vm0, %v529_v42  ;;  %v5029_v42 = vld [vmem:[%s5617_s30] sm:$0xff] }
 0x216   :  { %733 = vmatpush.bf16.msra.mxu1 %v5024_v31  ;;  %v693_v44 = vpop.f32.mrf.mxu0 }
 0x217   :  { %v769_v45 = vpack.c.bf16 %v693_v44, %v691_v37  ;;  %v768_v63 = vmul.f32 %v693_v44, %v5850_v19 }
 0x218   :  { %939 = vmatpush.bf16.msrb.mxu3 %v5009_v35 }
 0x219   :  { %4074 = vmatmul.msk.bf16.vlgmr.msra.gmra.mxu3 %vm236_vm0, %v769_v45 }
 0x21a   :  { %734 = vmatpush.bf16.msra.mxu1 %v5023_v40 }
 0x21c   :  { %v5878_v51 = vpop.f32.mrf.mxu3 }
 0x21d   :  { %v745_v32 = vpack.c.bf16 %v5878_v51, %v5872_v47 }
 0x21e   :  { %735 = vmatpush.bf16.msra.mxu1 %v5022_v43 }
 0x222   :  { %736 = vmatpush.bf16.msra.mxu1 %v5021_v46  ;;  %v743_v46 = vmul.f32 %v5872_v47, %v5847_v18 }
 0x225   :  { %4072 = vmatmul.msk.bf16.vlgmr.msra.gmra.mxu1 %vm236_vm0, %v5814_v56 }
 0x292   :  { %v546_v49 = vpop.f32.mrf.mxu1 }
 0x293   :  { %v547_v50 = vadd.f32 %v546_v49, %v5875_v48  ;;  %v744_v49 = vmul.f32 %v5878_v51, %v5850_v19 }
 0x295   :  { %v552_v52 = vsel %vm551_vm8, %v547_v50, -inf }
 0x296   :  { %553 = vmax.xlane.f32.xlu1 %v552_v52 }
 0x29a   :  { %v548_v54 = vpop.f32.mrf.mxu1 }
 0x29b   :  { %v549_v55 = vadd.f32 %v548_v54, %v5882_v53 }
 0x29c   :  { %v782_v58 = vpop.f32.mrf.mxu3 }
 0x29d   :  { %v555_v56 = vsel %vm551_vm8, %v549_v55, -inf  ;;  %v787_v60 = vmul.f32 %v782_v58, %v5844_v17 }
 0x29e   :  { %556 = vmax.xlane.f32.xlu1 %v555_v56 }
 0x29f   :  { %v789_v2 = vadd.f32 %v787_v60, %v767_v62 }
 0x2a2   :  { %v738_v59 = vpop.f32.mrf.mxu1 }
 0x2a4   :  { %v784_v61 = vpop.f32.mrf.mxu3 }
 0x2a5   :  { %v788_v0 = vmul.f32 %v784_v61, %v5853_v21 }
 0x2a7   :  { %v790_v4 = vadd.f32 %v788_v0, %v768_v63 }
 0x2a9   :  { %v792_v5 = vpack.c.bf16 %v790_v4, %v789_v2  ;;  %v5036_v2 = vld [vmem:[%s5622_s24 + $0x18] sm:$0xff]  ;;  %v5035_v4 = vld [vmem:[%s5622_s24 + $0x10] sm:$0xff] }
 0x2aa   :  { %v740_v6 = vpop.f32.mrf.mxu1 }
 0x2ab   :  { %v836_v7 = vpack.c.bf16 %v740_v6, %v738_v59  ;;  %v797_v8 = vsel %vm236_vm0, %v792_v5, 0  ;;  %v5034_v5 = vld [vmem:[%s5622_s24 + $0x8] sm:$0xff]  ;;  %v5033_v6 = vld [vmem:[%s5622_s24] sm:$0xff] }
 0x2ac   :  { %806 = vmatpush.bf16.xpose.msrb.mxu0 %v797_v8 }
 0x2ad   :  { %847 = vmatpush.bf16.msrb.mxu1 %v836_v7 }
 0x2b1   :  { %1051 = vmatpush.bf16.msra.mxu1 %v5036_v2 }
 0x2b4   :  { %997 = vmatpush.bf16.msra.mxu0 %v5032_v36 }
 0x2b5   :  { %1052 = vmatpush.bf16.msra.mxu1 %v5035_v4 }
 0x2b8   :  { %998 = vmatpush.bf16.msra.mxu0 %v5031_v38 }
 0x2b9   :  { %1053 = vmatpush.bf16.msra.mxu1 %v5034_v5 }
 0x2bc   :  { %999 = vmatpush.bf16.msra.mxu0 %v5030_v39  ;;  %v5039_v39 = vld [vmem:[%s5627_s29 + $0x10] sm:$0xff] }
 0x2bd   :  { %1054 = vmatpush.bf16.msra.mxu1 %v5033_v6 }
 0x2c0   :  { %1000 = vmatpush.bf16.msra.mxu0 %v5029_v42  ;;  %v5052_v42 = vld [vmem:[%s5622_s24 + $0x38] sm:$0xff] }
 0x309   :  { %v554_v9 = vpop.xlane.xlu1 %553 }
 0x30a   :  { %v558_v10 = vsub.f32 %v547_v50, %v554_v9 }
 0x30c   :  { %v560_v11 = vmul.f32 1.442695, %v558_v10 }
 0x30e   :  { %5273 = vpow2.f32 %v560_v11 }
 0x311   :  { %v557_v12 = vpop.xlane.xlu1 %556 }
 0x312   :  { %v559_v13 = vsub.f32 %v549_v55, %v557_v12 }
 0x314   :  { %v5274_v14 = vpop.eup %5273  ;;  %v562_v15 = vmul.f32 1.442695, %v559_v13  ;;  %v5048_v13 = vld [vmem:[%s5617_s30 + $0x38] sm:$0xff] }
 0x315   :  { %v564_v16 = vsel %vm551_vm8, %v5274_v14, 0.0 }
 0x316   :  { %5275 = vpow2.f32 %v562_v15  ;;  %565 = vadd.xlane.f32.xlu2 %v564_v16  ;;  %v5028_v15 = vld [vmem:[%s5607_s27 + $0x38] sm:$0xff]  ;;  %v5047_v16 = vld [vmem:[%s5617_s30 + $0x30] sm:$0xff] }
 0x31c   :  { %v5276_v20 = vpop.eup %5275 }
 0x31d   :  { %v567_v23 = vsel %vm551_vm8, %v5276_v20, 0.0 }
 0x31e   :  { %568 = vadd.xlane.f32.xlu2 %v567_v23  ;;  %v5045_v23 = vld [vmem:[%s5617_s30 + $0x20] sm:$0xff] }
 0x389   :  { %v566_v24 = vpop.xlane.xlu2 %565 }
 0x38a   :  { %5277 = vrcp.f32 %v566_v24  ;;  %v5932_v24 = vld [vmem:[%s5532_s9] sm:$0xff] }
 0x390   :  { %v5278_v27 = vpop.eup %5277 }
 0x391   :  { %v569_v26 = vpop.xlane.xlu2 %568  ;;  %v572_v29 = vmul.f32 %v5278_v27, %v5274_v14  ;;  %v5025_v27 = vld [vmem:[%s5607_s27 + $0x20] sm:$0xff] }
 0x392   :  { %5279 = vrcp.f32 %v569_v26  ;;  %v5026_v26 = vld [vmem:[%s5607_s27 + $0x28] sm:$0xff]  ;;  %s6556_s27 = sld [smem:[#allocation38_spill]] }
 0x398   :  { %v5280_v28 = vpop.eup %5279 }
 0x399   :  { %v573_v30 = vmul.f32 %v5280_v28, %v5276_v20  ;;  %v5046_v20 = vld [vmem:[%s5617_s30 + $0x28] sm:$0xff]  ;;  %s6545_s30 = sld [smem:[#allocation35_spill]] }
 0x39b   :  { %v574_v31 = vpack.c.bf16 %v573_v30, %v572_v29 }
 0x39d   :  { %3997 = vmatmul.msk.bf16.vlgmr.msrb.gmra.mxu2 %vm551_vm8, %v574_v31 }
 0x39e   :  { %895 = vmatpush.bf16.msrb.mxu2 %v5028_v15  ;;  %v5068_v15 = vld [vmem:[%s6540_s21 + $0x18] sm:$0xff] }
 0x3a2   :  { %896 = vmatpush.bf16.msrb.mxu2 %v5027_v25  ;;  %v5067_v25 = vld [vmem:[%s6540_s21 + $0x10] sm:$0xff] }
 0x3a6   :  { %897 = vmatpush.bf16.msrb.mxu2 %v5026_v26  ;;  %v5055_v26 = vld [vmem:[%s5627_s29 + $0x30] sm:$0xff] }
 0x3aa   :  { %898 = vmatpush.bf16.msrb.mxu2 %v5025_v27  ;;  %v5066_v27 = vld [vmem:[%s6540_s21 + $0x8] sm:$0xff] }
 0x3ad   :  { %4073 = vmatmul.msk.bf16.vlgmr.msra.gmra.mxu2 %vm236_vm0, %v745_v32 }
 0x420   :  { %v588_v37 = vpop.f32.mrf.mxu2 }
 0x428   :  { %v590_v40 = vpop.f32.mrf.mxu2 }
 0x429   :  { %v601_v41 = vpack.c.bf16 %v590_v40, %v588_v37  ;;  %v5040_v37 = vld [vmem:[%s5627_s29 + $0x18] sm:$0xff]  ;;  %v5038_v40 = vld [vmem:[%s5627_s29 + $0x8] sm:$0xff] }
 0x42a   :  { %1097 = vmatpush.bf16.msra.mxu2 %v5040_v37 }
 0x42b   :  { %4118 = vmatmul.msk.bf16.vlgmr.msrb.gmra.mxu3 %vm236_vm0, %v601_v41  ;;  %v5037_v41 = vld [vmem:[%s5627_s29] sm:$0xff] }
 0x42e   :  { %1098 = vmatpush.bf16.msra.mxu2 %v5039_v39 }
 0x430   :  { %v758_v43 = vpop.f32.mrf.mxu2 }
 0x431   :  { %v763_v44 = vmul.f32 %v758_v43, %v5844_v17 }
 0x432   :  { %1099 = vmatpush.bf16.msra.mxu2 %v5038_v40  ;;  %v5043_v40 = vld [vmem:[%s6541_s25 + $0x10] sm:$0xff] }
 0x433   :  { %v765_v52 = vadd.f32 %v763_v44, %v743_v46  ;;  %v5051_v44 = vld [vmem:[%s5622_s24 + $0x30] sm:$0xff]  ;;  %v5050_v46 = vld [vmem:[%s5622_s24 + $0x28] sm:$0xff] }
 0x436   :  { %1100 = vmatpush.bf16.msra.mxu2 %v5037_v41  ;;  %v5042_v41 = vld [vmem:[%s6541_s25 + $0x8] sm:$0xff] }
 0x438   :  { %v760_v45 = vpop.f32.mrf.mxu2 }
 0x439   :  { %v764_v50 = vmul.f32 %v760_v45, %v5853_v21  ;;  %v5957_v45 = vld [vmem:[%s6539_s0] sm:$0xff] }
 0x43b   :  { %v766_v54 = vadd.f32 %v764_v50, %v744_v49 }
 0x43d   :  { %v791_v55 = vpack.c.bf16 %v766_v54, %v765_v52  ;;  %v5963_v54 = vld [vmem:[%s6539_s0 + $0x8] sm:$0xff]  ;;  %s6570_s0 = sld [smem:[#allocation26_spill]] }
 0x43f   :  { %4075 = vmatmul.msk.bf16.vlgmr.msrb.gmra.mxu0 %vm236_vm0, %v791_v55 }
 0x44f   :  { %4135 = vmatmul.msk.bf16.vlgmr.msra.gmra.mxu0 %vm236_vm0, %v5816_v57 }
 0x4ae   :  { %v5945_v38 = vpop.f32.mrf.mxu3 }
 0x4b6   :  { %v5951_v43 = vpop.f32.mrf.mxu3 }
 0x4bc   :  { %v808_v58 = vpop.f32.mrf.mxu0 }
 0x4bd   :  { %v809_v17 = vadd.f32 %v808_v58, %v5875_v48 }
 0x4bf   :  { %v813_v56 = vsel %vm551_vm8, %v809_v17, -inf }
 0x4c0   :  { %814 = vmax.xlane.f32.xlu0 %v813_v56  ;;  %v5049_v56 = vld [vmem:[%s5622_s24 + $0x20] sm:$0xff]  ;;  %s6544_s24 = sld [smem:[#allocation16_spill]] }
 0x4c4   :  { %v810_v18 = vpop.f32.mrf.mxu0 }
 0x4c5   :  { %v811_v47 = vadd.f32 %v810_v18, %v5882_v53 }
 0x4c7   :  { %v816_v19 = vsel %vm551_vm8, %v811_v47, -inf }
 0x4c8   :  { %817 = vmax.xlane.f32.xlu1 %v816_v19 }
 0x4cc   :  { %v1002_v32 = vpop.f32.mrf.mxu0 }
 0x4d4   :  { %v1004_v35 = vpop.f32.mrf.mxu0 }
 0x4d5   :  { %v1107_v36 = vpack.c.bf16 %v1004_v35, %v1002_v32  ;;  %v5044_v32 = vld [vmem:[%s6541_s25 + $0x18] sm:$0xff]  ;;  %v5261_v35 = vld [vmem:[%s6542_s14] ss:$0 sm:$0xff]  ;;  %s6572_s14 = sld [smem:[#allocation39_spill]] }
 0x533   :  { %v815_v21 = vpop.xlane.xlu0 %814 }
 0x534   :  { %v819_v51 = vsub.f32 %v809_v17, %v815_v21 }
 0x536   :  { %v821_v59 = vmul.f32 1.442695, %v819_v51 }
 0x538   :  { %5281 = vpow2.f32 %v821_v59 }
 0x53b   :  { %v818_v60 = vpop.xlane.xlu1 %817 }
 0x53c   :  { %v820_v61 = vsub.f32 %v811_v47, %v818_v60 }
 0x53e   :  { %v5282_v48 = vpop.eup %5281  ;;  %v823_v62 = vmul.f32 1.442695, %v820_v61 }
 0x53f   :  { %v825_v63 = vsel %vm551_vm8, %v5282_v48, 0.0 }
 0x540   :  { %5283 = vpow2.f32 %v823_v62  ;;  %826 = vadd.xlane.f32.xlu2 %v825_v63 }
 0x546   :  { %v5284_v53 = vpop.eup %5283 }
 0x547   :  { %v828_v0 = vsel %vm551_vm8, %v5284_v53, 0.0 }
 0x548   :  { %829 = vadd.xlane.f32.xlu0 %v828_v0 }
 0x5b3   :  { %v827_v7 = vpop.xlane.xlu2 %826 }
 0x5b4   :  { %5285 = vrcp.f32 %v827_v7 }
 0x5ba   :  { %v5286_v9 = vpop.eup %5285 }
 0x5bb   :  { %v830_v8 = vpop.xlane.xlu0 %829  ;;  %v833_v11 = vmul.f32 %v5286_v9, %v5282_v48 }
 0x5bc   :  { %5287 = vrcp.f32 %v830_v8 }
 0x5c2   :  { %v5288_v10 = vpop.eup %5287 }
 0x5c3   :  { %v834_v12 = vmul.f32 %v5288_v10, %v5284_v53 }
 0x5c5   :  { %v835_v14 = vpack.c.bf16 %v834_v12, %v833_v11 }
 0x5c7   :  { %4076 = vmatmul.msk.bf16.vlgmr.msrb.gmra.mxu1 %vm551_vm8, %v835_v14 }
 0x5c8   :  { %1216 = vmatpush.bf16.msrb.mxu1 %v5048_v13 }
 0x5cc   :  { %1217 = vmatpush.bf16.msrb.mxu1 %v5047_v16 }
 0x5d0   :  { %1218 = vmatpush.bf16.msrb.mxu1 %v5046_v20  ;;  %v5056_v20 = vld [vmem:[%s5627_s29 + $0x38] sm:$0xff] }
 0x5d4   :  { %1219 = vmatpush.bf16.msrb.mxu1 %v5045_v23 }
 0x5d7   :  { %4156 = vmatmul.msk.bf16.vlgmr.msra.gmra.mxu1 %vm236_vm0, %v5932_v24 }
 0x5e7   :  { %4200 = vmatmul.msk.bf16.vlgmr.msrb.gmra.mxu1 %vm236_vm0, %v5816_v57 }
 0x644   :  { %v849_v28 = vpop.f32.mrf.mxu1 }
 0x64c   :  { %v851_v29 = vpop.f32.mrf.mxu1 }
 0x64d   :  { %v863_v30 = vpack.c.bf16 %v851_v29, %v849_v28  ;;  %v5054_v28 = vld [vmem:[%s5627_s29 + $0x28] sm:$0xff]  ;;  %v5065_v29 = vld [vmem:[%s6540_s21] sm:$0xff]  ;;  %s6571_s21 = sld [smem:[#allocation32_spill]] }
 0x64f   :  { %4101 = vmatmul.msk.bf16.vlgmr.msrb.gmra.mxu2 %vm236_vm0, %v863_v30  ;;  %v5053_v30 = vld [vmem:[%s5627_s29 + $0x20] sm:$0xff]  ;;  %s6543_s29 = sld [smem:[#allocation27_spill]] }
 0x650   :  { %1263 = vmatpush.bf16.msrb.mxu2 %v5052_v42  ;;  %v5041_v42 = vld [vmem:[%s6541_s25] sm:$0xff] }
 0x654   :  { %v1056_v31 = vpop.f32.mrf.mxu1  ;;  %1264 = vmatpush.bf16.msrb.mxu2 %v5051_v44 }
 0x658   :  { %1265 = vmatpush.bf16.msrb.mxu2 %v5050_v46 }
 0x65c   :  { %v1058_v33 = vpop.f32.mrf.mxu1  ;;  %1266 = vmatpush.bf16.msrb.mxu2 %v5049_v56 }
 0x65d   :  { %v1108_v57 = vpack.c.bf16 %v1058_v33, %v1056_v31 }
 0x65f   :  { %v1113_v34 = vsel %vm236_vm0, %v1108_v57, 0  ;;  %4173 = vmatmul.msk.bf16.vlgmr.msra.gmra.mxu2 %vm236_vm0, %v5932_v24 }
 0x660   :  { %1122 = vmatpush.bf16.xpose.msra.mxu3 %v1113_v34 }
 0x664   :  { %v1221_v23 = vpop.f32.mrf.mxu1 }
 0x667   :  { %4174 = vmatmul.msk.bf16.vlgmr.msra.gmra.mxu3 %vm236_vm0, %v1107_v36 }
 0x668   :  { %1310 = vmatpush.bf16.msrb.mxu3 %v5056_v20 }
 0x66c   :  { %1311 = vmatpush.bf16.msrb.mxu3 %v5055_v26  ;;  %v1223_v31 = vpop.f32.mrf.mxu1 }
 0x66d   :  { %v1320_v33 = vpack.c.bf16 %v1223_v31, %v1221_v23 }
 0x66f   :  { %4225 = vmatmul.msk.bf16.vlgmr.msrb.gmra.mxu2 %vm236_vm0, %v5932_v24 }
 0x670   :  { %1312 = vmatpush.bf16.msrb.mxu3 %v5054_v28 }
 0x674   :  { %1313 = vmatpush.bf16.msrb.mxu3 %v5053_v30 }
 0x677   :  { %4250 = vmatmul.msk.bf16.vlgmr.msrb.gmra.mxu3 %vm236_vm0, %v5932_v24 }
 0x678   :  { %1465 = vmatpush.bf16.msra.mxu3 %v5044_v32  ;;  %v212_v32 = vld [vmem:[%s5532_s9] sm:$0xff]   ;;  %s6546_s9 = sld [smem:[#allocation17_spill]] }
 0x67c   :  { %1466 = vmatpush.bf16.msra.mxu3 %v5043_v40 }
 0x680   :  { %1467 = vmatpush.bf16.msra.mxu3 %v5042_v41  ;;  %v6023_v41 = vunpack.c.h.bf16 %v212_v32 }
 0x684   :  { %1468 = vmatpush.bf16.msra.mxu3 %v5041_v42 }
 0x6d2   :  { %v900_v63 = vpop.f32.mrf.mxu2 }
 0x6d3   :  { %v942_v34 = vadd.f32 %v5945_v38, %v900_v63 }
 0x6d5   :  { %v950_v37 = vadd.f32 %v5261_v35, %v942_v34 }
 0x6da   :  { %v902_v53 = vpop.f32.mrf.mxu2 }
 0x6db   :  { %v944_v57 = vadd.f32 %v5951_v43, %v902_v53 }
 0x6dd   :  { %v951_v36 = vadd.f32 %v5261_v35, %v944_v57 }
 0x6df   :  { %v1498_v39 = vpack.c.bf16 %v951_v36, %v950_v37 }
 0x6e2   :  { %v1102_v0 = vpop.f32.mrf.mxu2 }
 0x6ea   :  { %v1124_v49 = vpop.f32.mrf.mxu3  ;;  %v1104_v2 = vpop.f32.mrf.mxu2 }
 0x6eb   :  { %v1125_v50 = vadd.f32 %v1124_v49, %v5957_v45  ;;  %v1152_v4 = vpack.c.bf16 %v1104_v2, %v1102_v0 }
 0x6ed   :  { %v1129_v52 = vsel %vm551_vm8, %v1125_v50, -inf  ;;  %1163 = vmatpush.bf16.msrb.mxu0 %v1152_v4 }
 0x6ee   :  { %1130 = vmax.xlane.f32.xlu1 %v1129_v52 }
 0x6f2   :  { %v1126_v55 = vpop.f32.mrf.mxu3  ;;  %v1268_v5 = vpop.f32.mrf.mxu2 }
 0x6f3   :  { %v1127_v58 = vadd.f32 %v1126_v55, %v5963_v54 }
 0x6f5   :  { %v1132_v17 = vsel %vm551_vm8, %v1127_v58, -inf }
 0x6f6   :  { %1133 = vmax.xlane.f32.xlu2 %v1132_v17 }
 0x6fa   :  { %v1270_v6 = vpop.f32.mrf.mxu2 }
 0x6fb   :  { %v1321_v7 = vpack.c.bf16 %v1270_v6, %v1268_v5  ;;  %v5059_v6 = vld [vmem:[%s6541_s25 + $0x30] sm:$0xff] }
 0x6fd   :  { %v1326_v8 = vsel %vm236_vm0, %v1321_v7, 0  ;;  %v5058_v7 = vld [vmem:[%s6541_s25 + $0x28] sm:$0xff] }
 0x6fe   :  { %1335 = vmatpush.bf16.xpose.msra.mxu0 %v1326_v8  ;;  %v5057_v8 = vld [vmem:[%s6541_s25 + $0x20] sm:$0xff] }
 0x761   :  { %v1131_v18 = vpop.xlane.xlu1 %1130 }
 0x762   :  { %v1135_v47 = vsub.f32 %v1125_v50, %v1131_v18  ;;  %v1315_v50 = vpop.f32.mrf.mxu3 }
 0x764   :  { %v1137_v19 = vmul.f32 1.442695, %v1135_v47 }
 0x766   :  { %5289 = vpow2.f32 %v1137_v19 }
 0x769   :  { %v1134_v21 = vpop.xlane.xlu2 %1133 }
 0x76a   :  { %v1136_v51 = vsub.f32 %v1127_v58, %v1134_v21  ;;  %v1317_v17 = vpop.f32.mrf.mxu3 }
 0x76b   :  { %v1365_v56 = vpack.c.bf16 %v1317_v17, %v1315_v50 }
 0x76c   :  { %v5290_v59 = vpop.eup %5289  ;;  %v1139_v60 = vmul.f32 1.442695, %v1136_v51 }
 0x76d   :  { %v1141_v61 = vsel %vm551_vm8, %v5290_v59, 0.0  ;;  %1376 = vmatpush.bf16.msra.mxu1 %v1365_v56  ;;  %v4357_v56 = vld [vmem:[%s6545_s30 + $0x38] sm:$0xf0] }
 0x76e   :  { %5291 = vpow2.f32 %v1139_v60  ;;  %1142 = vadd.xlane.f32.xlu0 %v1141_v61 }
 0x774   :  { %v5292_v48 = vpop.eup %5291 }
 0x775   :  { %v1144_v62 = vsel %vm551_vm8, %v5292_v48, 0.0 }
 0x776   :  { %1145 = vadd.xlane.f32.xlu1 %v1144_v62 }
 0x7e1   :  { %v1143_v9 = vpop.xlane.xlu0 %1142 }
 0x7e2   :  { %5293 = vrcp.f32 %v1143_v9 }
 0x7e8   :  { %v5294_v11 = vpop.eup %5293 }
 0x7e9   :  { %v1146_v10 = vpop.xlane.xlu1 %1145  ;;  %v1149_v13 = vmul.f32 %v5294_v11, %v5290_v59 }
 0x7ea   :  { %5295 = vrcp.f32 %v1146_v10 }
 0x7f0   :  { %v5296_v12 = vpop.eup %5295 }
 0x7f1   :  { %v1150_v14 = vmul.f32 %v5296_v12, %v5292_v48  ;;  %v5060_v48 = vld [vmem:[%s6541_s25 + $0x38] sm:$0xff]  ;;  %s5514_s25 = smov 64  }
 0x7f2   :  { %1424 = vmatpush.bf16.msra.mxu2 %v5060_v48  ;;  %v5064_v12 = vld [vmem:[%s6543_s29 + $0x18] sm:$0xff] }
 0x7f3   :  { %v1151_v16 = vpack.c.bf16 %v1150_v14, %v1149_v13  ;;  %1571 = vmatpush.bf16.msrb.mxu1 %v5064_v12  ;;  %v5063_v13 = vld [vmem:[%s6543_s29 + $0x10] sm:$0xff]  ;;  %v5062_v14 = vld [vmem:[%s6543_s29 + $0x8] sm:$0xff]  ;;  %v5072_v48 = vld [vmem:[%s6545_s30 + $0x14] sm:$0xf0] }
 0x7f5   :  { %4175 = vmatmul.msk.bf16.vlgmr.msrb.gmra.mxu0 %vm551_vm8, %v1151_v16 }
 0x7f6   :  { %1530 = vmatpush.bf16.msrb.mxu0 %v5068_v15  ;;  %1425 = vmatpush.bf16.msra.mxu2 %v5059_v6  ;;  %v5061_v15 = vld [vmem:[%s6543_s29] sm:$0xff]  ;;  %s6573_s29 = sld [smem:[#allocation40_spill]] }
 0x7f7   :  { %1572 = vmatpush.bf16.msrb.mxu1 %v5063_v13  ;;  %v5069_v6 = vld [vmem:[%s6545_s30 + $0x4] sm:$0xf]  ;;  %v5096_v13 = vld [vmem:[%s6546_s9 + $0x18] sm:$0xff] }
 0x7fa   :  { %1531 = vmatpush.bf16.msrb.mxu0 %v5067_v25  ;;  %1426 = vmatpush.bf16.msra.mxu2 %v5058_v7  ;;  %v5262_v25 = vld [vmem:[%s6544_s24] ss:$0 sm:$0xff]  ;;  %s6575_s24 = sld [smem:[#allocation34_spill]] }
 0x7fb   :  { %1573 = vmatpush.bf16.msrb.mxu1 %v5062_v14  ;;  %v5100_v14 = vld [vmem:[%s6547_s6 + $0x18] sm:$0xff] }
 0x7fe   :  { %1532 = vmatpush.bf16.msrb.mxu0 %v5066_v27  ;;  %1427 = vmatpush.bf16.msra.mxu2 %v5057_v8 }
 0x7ff   :  { %1574 = vmatpush.bf16.msrb.mxu1 %v5061_v15 }
 0x802   :  { %1533 = vmatpush.bf16.msrb.mxu0 %v5065_v29 }
 0x805   :  { %4251 = vmatmul.msk.bf16.vlgmr.msra.gmra.mxu0 %vm236_vm0, %v1320_v33  ;;  %v6013_v33 = vunpack.c.l.bf16 %v212_v32  ;;  %v5094_v32 = vld [vmem:[%s6546_s9 + $0x8] sm:$0xff] }
 0x807   :  { %v276_v57 = vmul.f32 %v6013_v33, %v6013_v33 }
 0x809   :  { %v278_v34 = vsel %vm236_vm0, %v276_v57, 0.0  ;;  %v5098_v57 = vld [vmem:[%s6547_s6 + $0x8] sm:$0xff] }
 0x815   :  { %4311 = vmatmul.msk.bf16.vlgmr.msrb.gmra.mxu0 %vm236_vm0, %v1498_v39 }
 0x872   :  { %v1165_v44 = vpop.f32.mrf.mxu0 }
 0x87a   :  { %v1167_v46 = vpop.f32.mrf.mxu0 }
 0x87b   :  { %v1178_v49 = vpack.c.bf16 %v1167_v46, %v1165_v44 }
 0x87d   :  { %4294 = vmatmul.msk.bf16.vlgmr.msra.gmra.mxu3 %vm236_vm0, %v1178_v49 }
 0x882   :  { %v1337_v24 = vpop.f32.mrf.mxu0 }
 0x883   :  { %v1338_v38 = vadd.f32 %v1337_v24, %v5957_v45  ;;  %v277_v24 = vmul.f32 %v6023_v41, %v6023_v41 }
 0x885   :  { %v1342_v43 = vsel %vm551_vm8, %v1338_v38, -inf }
 0x886   :  { %1343 = vmax.xlane.f32.xlu2 %v1342_v43  ;;  %v281_v43 = vsel %vm236_vm0, %v277_v24, 0.0 }
 0x88a   :  { %v1339_v52 = vpop.f32.mrf.mxu0 }
 0x88b   :  { %v1340_v55 = vadd.f32 %v1339_v52, %v5963_v54  ;;  %v4355_v52 = vld [vmem:[%s6545_s30 + $0x30] sm:$0xf] }
 0x88d   :  { %v1345_v58 = vsel %vm551_vm8, %v1340_v55, -inf }
 0x88e   :  { %1346 = vmax.xlane.f32.xlu0 %v1345_v58  ;;  %v5075_v58 = vld [vmem:[%s6545_s30 + $0x34] sm:$0xf] }
 0x892   :  { %v1535_v35 = vpop.f32.mrf.mxu0 }
 0x89a   :  { %v1537_v44 = vpop.f32.mrf.mxu0 }
 0x8f9   :  { %v1344_v18 = vpop.xlane.xlu2 %1343 }
 0x8fa   :  { %v1348_v47 = vsub.f32 %v1338_v38, %v1344_v18  ;;  %v4347_v18 = vld [vmem:[%s6545_s30 + $0x20] sm:$0xf] }
 0x8fc   :  { %v1350_v19 = vmul.f32 1.442695, %v1348_v47  ;;  %v5074_v47 = vld [vmem:[%s6545_s30 + $0x24] sm:$0xf0] }
 0x8fe   :  { %5297 = vpow2.f32 %v1350_v19  ;;  %v5073_v19 = vld [vmem:[%s6545_s30 + $0x24] sm:$0xf] }
 0x900   :  { %v1470_v16 = vpop.f32.mrf.mxu3 }
 0x901   :  { %v1347_v21 = vpop.xlane.xlu0 %1346 }
 0x902   :  { %v1349_v45 = vsub.f32 %v1340_v55, %v1347_v21  ;;  %v5076_v55 = vld [vmem:[%s6545_s30 + $0x34] sm:$0xf0] }
 0x903   :  { %v4356_v17 = vor.u32 %v5076_v55, %v4355_v52 }
 0x904   :  { %v5298_v51 = vpop.eup %5297  ;;  %v1352_v59 = vmul.f32 1.442695, %v1349_v45  ;;  %v4348_v45 = vor.u32 %v5074_v47, %v4347_v18 }
 0x905   :  { %v1354_v60 = vsel %vm551_vm8, %v5298_v51, 0.0  ;;  %1682 = vmatpush.bf16.msrb.mxu2 %v4356_v17 }
 0x906   :  { %5299 = vpow2.f32 %v1352_v59  ;;  %1355 = vadd.xlane.f32.xlu1 %v1354_v60 }
 0x908   :  { %v1472_v26 = vpop.f32.mrf.mxu3 }
 0x909   :  { %1683 = vmatpush.bf16.msrb.mxu2 %v4348_v45 }
 0x90c   :  { %v5300_v54 = vpop.eup %5299 }
 0x90d   :  { %v1357_v61 = vsel %vm551_vm8, %v5300_v54, 0.0 }
 0x90e   :  { %1358 = vadd.xlane.f32.xlu2 %v1357_v61  ;;  %v4339_v61 = vld [vmem:[%s6545_s30 + $0x10] sm:$0xf] }
 0x916   :  { %279 = vadd.xlane.f32.xlu2 %v278_v34 }
 0x979   :  { %v1356_v62 = vpop.xlane.xlu1 %1355 }
 0x97a   :  { %5301 = vrcp.f32 %v1356_v62  ;;  %v4340_v62 = vor.u32 %v5072_v48, %v4339_v61 }
 0x97c   :  { %1684 = vmatpush.bf16.msrb.mxu2 %v4340_v62 }
 0x980   :  { %v5302_v53 = vpop.eup %5301 }
 0x981   :  { %v1359_v63 = vpop.xlane.xlu2 %1358  ;;  %v1362_v2 = vmul.f32 %v5302_v53, %v5298_v51  ;;  %v4349_v51 = vld [vmem:[%s6545_s30 + $0x28] sm:$0xf0]  ;;  %v4341_v53 = vld [vmem:[%s6545_s30 + $0x18] sm:$0xf0] }
 0x982   :  { %5303 = vrcp.f32 %v1359_v63  ;;  %v4352_v60 = vor.u32 %v5073_v19, %v4349_v51  ;;  %v5071_v63 = vld [vmem:[%s6545_s30 + $0x14] sm:$0xf] }
 0x988   :  { %v5304_v0 = vpop.eup %5303 }
 0x989   :  { %v1363_v4 = vmul.f32 %v5304_v0, %v5300_v54  ;;  %v280_v21 = vpop.xlane.xlu2 %279  ;;  %v4344_v0 = vor.u32 %v5071_v63, %v4341_v53 }
 0x98a   :  { %v284_v59 = vmul.f32 %v280_v21, %v5799_v22  ;;  %v217_v21 = vld [vmem:[%s6548_s12] sm:$0x7] }
 0x98b   :  { %v1364_v5 = vpack.c.bf16 %v1363_v4, %v1362_v2  ;;  %v4331_v4 = vld [vmem:[%s6545_s30] sm:$0xf] }
 0x98c   :  { %v6044_v54 = vmax.f32 %v284_v59, 1e-16 }
 0x98d   :  { %4252 = vmatmul.msk.bf16.vlgmr.msra.gmra.mxu1 %vm551_vm8, %v1364_v5  ;;  %v5070_v5 = vld [vmem:[%s6545_s30 + $0x4] sm:$0xf0] }
 0x98e   :  { %5305 = vrsqrt.f32 %v6044_v54  ;;  %v4332_v8 = vor.u32 %v5070_v5, %v4331_v4  ;;  %vm294_vm9 = vweird.f32 %v6044_v54 }
 0x990   :  { %1685 = vmatpush.bf16.msrb.mxu2 %v4332_v8 }
 0x994   :  { %v6056_v12 = vpop.eup %5305 }
 0x995   :  { %v289_v15 = vmul.f32 %v6056_v12, %v6044_v54  ;;  %vm295_vm10 = vweird.f32 %v6056_v12  ;;  %v5405_v54 = vld [vmem:[%s5537_s13] sm:$0x7]  ;;  %s6554_s13 = sld [smem:[#allocation37_spill]] }
 0x996   :  { %vm6074_vm13 = vmor %vm294_vm9, %vm295_vm10  ;;  %v1617_v61 = vperm.slane %v5405_v54, 2  ;;  %v5109_v54 = vld [vmem:[%s6546_s9 + $0x20] sm:$0xff] }
 0xa0a   :  { %v1378_v9 = vpop.f32.mrf.mxu1 }
 0xa12   :  { %v1380_v10 = vpop.f32.mrf.mxu1 }
 0xa13   :  { %v1392_v11 = vpack.c.bf16 %v1380_v10, %v1378_v9  ;;  %v4333_v9 = vld [vmem:[%s6545_s30 + $0x8] sm:$0xf0]  ;;  %s5515_s30 = smov [#allocation2]  }
 0xa14   :  { %v4336_v10 = vor.u32 %v5069_v6, %v4333_v9  ;;  %v5104_v9 = vld [vmem:[%s6553_s20 + $0x18] sm:$0xff] }
 0xa15   :  { %4277 = vmatmul.msk.bf16.vlgmr.msra.gmra.mxu2 %vm236_vm0, %v1392_v11 }
 0xa16   :  { %1953 = vmatpush.bf16.msra.mxu2 %v5096_v13  ;;  %v6100_v13 = vld [vmem:[%s5567_s8 + $0x18] sm:$0xff] }
 0xa98   :  { %v1429_v20 = vpop.f32.mrf.mxu2 }
 0xa99   :  { %v1471_v23 = vadd.f32 %v1470_v16, %v1429_v20  ;;  %v5095_v16 = vld [vmem:[%s6546_s9 + $0x10] sm:$0xff] }
 0xa9a   :  { %v5099_v20 = vld [vmem:[%s6547_s6 + $0x10] sm:$0xff]  ;;  %1954 = vmatpush.bf16.msra.mxu2 %v5095_v16 }
 0xa9b   :  { %v1479_v29 = vadd.f32 %v5262_v25, %v1471_v23  ;;  %v6105_v16 = vld [vmem:[%s5567_s8 + $0x10] sm:$0xff] }
 0xa9e   :  { %1955 = vmatpush.bf16.msra.mxu2 %v5094_v32  ;;  %v5091_v32 = vld [vmem:[%s6554_s13 + $0x70] sm:$0xff] }
 0xaa0   :  { %v1431_v27 = vpop.f32.mrf.mxu2 }
 0xaa1   :  { %v1473_v28 = vadd.f32 %v1472_v26, %v1431_v27 }
 0xaa3   :  { %v1480_v30 = vadd.f32 %v5262_v25, %v1473_v28 }
 0xaa5   :  { %v1489_v31 = vpack.c.bf16 %v1480_v30, %v1479_v29  ;;  %v290_v30 = vmul.f32 %v6056_v12, %v289_v15  ;;  %v5102_v15 = vld [vmem:[%s6553_s20 + $0x8] sm:$0xff] }
 0xaa7   :  { %4328 = vmatmul.msk.bf16.vlgmr.msrb.gmra.mxu1 %vm236_vm0, %v1489_v31 }
 0xb24   :  { %v1576_v36 = vpop.f32.mrf.mxu1 }
 0xb25   :  { %v1577_v37 = vadd.f32 %v1576_v36, %v1535_v35  ;;  %v291_v36 = vmul.f32 0.5, %v290_v30  ;;  %v5092_v30 = vld [vmem:[%s6554_s13 + $0x78] sm:$0xff] }
 0xb26   :  { %1890 = vmatpush.bf16.msra.mxu1 %v5092_v30 }
 0xb27   :  { %v6019_v39 = vadd.f32 %v1577_v37, %v5780_v1  ;;  %v5093_v37 = vld [vmem:[%s6546_s9] sm:$0xff] }
 0xb28   :  { %1956 = vmatpush.bf16.msra.mxu2 %v5093_v37  ;;  %v5080_v37 = vld [vmem:[%s6554_s13 + $0x18] sm:$0xff] }
 0xb29   :  { %v1583_v40 = vmul.f32 %v6019_v39, %v6019_v39 }
 0xb2a   :  { %1891 = vmatpush.bf16.msra.mxu1 %v5091_v32 }
 0xb2b   :  { %v1585_v42 = vsel %vm236_vm0, %v1583_v40, 0.0  ;;  %v5097_v40 = vld [vmem:[%s6547_s6] sm:$0xff] }
 0xb2c   :  { %v1578_v46 = vpop.f32.mrf.mxu1  ;;  %1586 = vadd.xlane.f32.xlu0 %v1585_v42 }
 0xb2d   :  { %v1579_v49 = vadd.f32 %v1578_v46, %v1537_v44 }
 0xb2f   :  { %v6029_v1 = vadd.f32 %v1579_v49, %v5784_v3  ;;  %v4360_v3 = vor.u32 %v5075_v58, %v4357_v56  ;;  %v292_v49 = vsub.f32 1.5, %v291_v36  ;;  %v5089_v36 = vld [vmem:[%s6554_s13 + $0x60] sm:$0xff] }
 0xb31   :  { %v1584_v38 = vmul.f32 %v6029_v1, %v6029_v1  ;;  %1696 = vmatpush.bf16.msrb.mxu3 %v4360_v3  ;;  %v293_v55 = vmul.f32 %v6056_v12, %v292_v49  ;;  %v5086_v49 = vld [vmem:[%s6554_s13 + $0x48] sm:$0xff] }
 0xb33   :  { %v1588_v50 = vsel %vm236_vm0, %v1584_v38, 0.0  ;;  %v297_v45 = vsel %vm6074_vm13, %v6056_v12, %v293_v55  ;;  %v5103_v12 = vld [vmem:[%s6553_s20 + $0x10] sm:$0xff] }
 0xb34   :  { %1589 = vadd.xlane.f32.xlu1 %v1588_v50  ;;  %282 = vadd.xlane.f32.xlu0 %v281_v43  ;;  %v308_v53 = vmul.f32 %v297_v45, %v6013_v33 }
 0xb35   :  { %1697 = vmatpush.bf16.msrb.mxu3 %v4352_v60  ;;  %v2525_v60 = vperm.slane %v217_v21, 1 }
 0xb37   :  { %v2526_v4 = vmul.f32 %v2525_v60, %v308_v53 }
 0xb39   :  { %1698 = vmatpush.bf16.msrb.mxu3 %v4344_v0 }
 0xb3d   :  { %1699 = vmatpush.bf16.msrb.mxu3 %v4336_v10 }
 0xb41   :  { %1999 = vmatpush.bf16.msra.mxu3 %v5100_v14  ;;  %v1908_v14 = vperm.slane %v217_v21, 0  ;;  %v5110_v21 = vld [vmem:[%s6546_s9 + $0x28] sm:$0xff] }
 0xb45   :  { %2000 = vmatpush.bf16.msra.mxu3 %v5099_v20  ;;  %v1909_v20 = vmul.f32 %v1908_v14, %v308_v53 }
 0xb49   :  { %2001 = vmatpush.bf16.msra.mxu3 %v5098_v57  ;;  %v5082_v57 = vld [vmem:[%s6554_s13 + $0x28] sm:$0xff] }
 0xb4d   :  { %2002 = vmatpush.bf16.msra.mxu3 %v5097_v40  ;;  %v5088_v40 = vld [vmem:[%s6554_s13 + $0x58] sm:$0xff] }
 0xb9f   :  { %v1587_v2 = vpop.xlane.xlu0 %1586 }
 0xba0   :  { %v1591_v7 = vmul.f32 %v1587_v2, %v5799_v22 }
 0xba2   :  { %v1593_v11 = vmax.f32 %v1591_v7, 1e-16 }
 0xba4   :  { %5307 = vrsqrt.f32 %v1593_v11  ;;  %vm1601_vm12 = vweird.f32 %v1593_v11 }
 0xba7   :  { %v1590_v23 = vpop.xlane.xlu1 %1589  ;;  %v283_v25 = vpop.xlane.xlu0 %282 }
 0xba8   :  { %v1592_v26 = vmul.f32 %v1590_v23, %v5799_v22  ;;  %v285_v27 = vmul.f32 %v283_v25, %v5799_v22  ;;  %v5101_v25 = vld [vmem:[%s6553_s20] sm:$0xff] }
 0xbaa   :  { %v5308_v28 = vpop.eup %5307  ;;  %v1594_v29 = vmax.f32 %v1592_v26, 1e-16  ;;  %v287_v31 = vmax.f32 %v285_v27, 1e-16  ;;  %v6110_v26 = vld [vmem:[%s5567_s8 + $0x8] sm:$0xff] }
 0xbab   :  { %v1596_v34 = vmul.f32 %v5308_v28, %v1593_v11  ;;  %vm1602_vm11 = vweird.f32 %v5308_v28 }
 0xbac   :  { %5309 = vrsqrt.f32 %v1594_v29  ;;  %vm6078_vm14 = vmor %vm1601_vm12, %vm1602_vm11  ;;  %vm304_vm15 = vweird.f32 %v287_v31  ;;  %vm1611_vm3 = vweird.f32 %v1594_v29 }
 0xbad   :  { %v1597_v35 = vmul.f32 %v5308_v28, %v1596_v34  ;;  %5311 = vrsqrt.f32 %v287_v31  ;;  %v5090_v34 = vld [vmem:[%s6554_s13 + $0x68] sm:$0xff] }
 0xbae   :  { %1892 = vmatpush.bf16.msra.mxu1 %v5090_v34 }
 0xbaf   :  { %v1598_v42 = vmul.f32 0.5, %v1597_v35  ;;  %v5081_v35 = vld [vmem:[%s6554_s13 + $0x20] sm:$0xff] }
 0xbb1   :  { %v1599_v44 = vsub.f32 1.5, %v1598_v42  ;;  %v5079_v42 = vld [vmem:[%s6554_s13 + $0x10] sm:$0xff] }
 0xbb2   :  { %v5310_v46 = vpop.eup %5309  ;;  %1893 = vmatpush.bf16.msra.mxu1 %v5089_v36 }
 0xbb3   :  { %v5312_v24 = vpop.eup %5311  ;;  %v1606_v38 = vmul.f32 %v5310_v46, %v1594_v29  ;;  %v1600_v50 = vmul.f32 %v5308_v28, %v1599_v44  ;;  %vm1612_vm2 = vweird.f32 %v5310_v46  ;;  %v5084_v29 = vld [vmem:[%s6554_s13 + $0x38] sm:$0xff]  ;;  %v5087_v44 = vld [vmem:[%s6554_s13 + $0x50] sm:$0xff] }
 0xbb4   :  { %v299_v43 = vmul.f32 %v5312_v24, %v287_v31  ;;  %vm305_vm1 = vweird.f32 %v5312_v24  ;;  %vm1613_vm5 = vmor %vm1611_vm3, %vm1612_vm2  ;;  %1876 = vmatpush.bf16.msra.mxu0 %v5084_v29  ;;  %v5083_v31 = vld [vmem:[%s6554_s13 + $0x30] sm:$0xff] }
 0xbb5   :  { %v1607_v52 = vmul.f32 %v5310_v46, %v1606_v38  ;;  %v1604_v47 = vsel %vm6078_vm14, %v5308_v28, %v1600_v50  ;;  %vm306_vm4 = vmor %vm304_vm15, %vm305_vm1  ;;  %v6116_v28 = vld [vmem:[%s5567_s8] sm:$0xff]  ;;  %s6555_s8 = sld [smem:[#allocation36_spill]]  ;;  %v5112_v38 = vld [vmem:[%s6546_s9 + $0x38] sm:$0xff] }
 0xbb6   :  { %v300_v58 = vmul.f32 %v5312_v24, %v299_v43  ;;  %v1615_v48 = vmul.f32 %v1604_v47, %v6019_v39  ;;  %1894 = vmatpush.bf16.msra.mxu1 %v5088_v40  ;;  %v5077_v43 = vld [vmem:[%s6554_s13] sm:$0xff] }
 0xbb7   :  { %v1608_v17 = vmul.f32 0.5, %v1607_v52  ;;  %v5085_v50 = vld [vmem:[%s6554_s13 + $0x40] sm:$0xff] }
 0xbb8   :  { %v301_v18 = vmul.f32 0.5, %v300_v58  ;;  %v1618_v6 = vmul.f32 %v1617_v61, %v1615_v48  ;;  %1877 = vmatpush.bf16.msra.mxu0 %v5083_v31  ;;  %v5111_v58 = vld [vmem:[%s6546_s9 + $0x30] sm:$0xff]  ;;  %s3845_s9 = sshll.u32 %s5515_s30, 4  ;;  %s3846_s9 = int_to_ptr.vmem [resolvable:$true] %s3845_s9 }
 0xbb9   :  { %v1609_v19 = vsub.f32 1.5, %v1608_v17 }
 0xbba   :  { %v302_v51 = vsub.f32 1.5, %v301_v18  ;;  %1895 = vmatpush.bf16.msra.mxu1 %v5087_v44 }
 0xbbb   :  { %v1610_v59 = vmul.f32 %v5310_v46, %v1609_v19 }
 0xbbc   :  { %v303_v62 = vmul.f32 %v5312_v24, %v302_v51  ;;  %1878 = vmatpush.bf16.msra.mxu0 %v5082_v57 }
 0xbbd   :  { %v1614_v63 = vsel %vm1613_vm5, %v5310_v46, %v1610_v59  ;;  %v5078_v46 = vld [vmem:[%s6554_s13 + $0x8] sm:$0xff] }
 0xbbe   :  { %v1616_v0 = vmul.f32 %v1614_v63, %v6029_v1  ;;  %v307_v2 = vsel %vm306_vm4, %v5312_v24, %v303_v62  ;;  %v1629_v24 = vld [vmem:[%s6555_s8] sm:$0x3]  ;;  %1896 = vmatpush.bf16.msra.mxu1 %v5086_v49 }
 0xbbf   :  { %v309_v5 = vmul.f32 %v307_v2, %v6023_v41  ;;  %v1631_v52 = vperm.slane %v1629_v24, 0  ;;  %v1632_v55 = vperm.slane %v1629_v24, 1 }
 0xbc0   :  { %v1619_v7 = vmul.f32 %v1617_v61, %v1616_v0  ;;  %1879 = vmatpush.bf16.msra.mxu0 %v5081_v35 }
 0xbc1   :  { %v2527_v8 = vmul.f32 %v2525_v60, %v309_v5  ;;  %v1910_v23 = vmul.f32 %v1908_v14, %v309_v5 }
 0xbc2   :  { %v1628_v10 = vpack.c.bf16 %v1619_v7, %v1618_v6  ;;  %1897 = vmatpush.bf16.msra.mxu1 %v5085_v50  ;;  %v5116_v50 = vld [vmem:[%s6547_s6 + $0x38] sm:$0xff] }
 0xbc3   :  { %v6094_v11 = vpack.c.bf16 %v2527_v8, %v2526_v4  ;;  %v6113_v27 = vpack.c.bf16 %v1910_v23, %v1909_v20 }
 0xbc4   :  { %4361 = vmatmul.msk.bf16.vlgmr.msrb.gmra.mxu2 %vm236_vm0, %v1628_v10  ;;  %4362 = vmatmul.msk.bf16.vlgmr.msrb.gmra.mxu3 %vm236_vm0, %v1628_v10 }
 0xbc5   :  { %2045 = vmatpush.bf16.msrb.mxu2 %v5104_v9  ;;  %2065 = vmatpush.bf16.msrb.mxu3 %v6100_v13 }
 0xbc6   :  { %1880 = vmatpush.bf16.msra.mxu0 %v5080_v37 }
 0xbc9   :  { %2046 = vmatpush.bf16.msrb.mxu2 %v5103_v12  ;;  %2066 = vmatpush.bf16.msrb.mxu3 %v6105_v16 }
 0xbca   :  { %1881 = vmatpush.bf16.msra.mxu0 %v5079_v42 }
 0xbcd   :  { %2047 = vmatpush.bf16.msrb.mxu2 %v5102_v15  ;;  %2067 = vmatpush.bf16.msrb.mxu3 %v6110_v26 }
 0xbce   :  { %1882 = vmatpush.bf16.msra.mxu0 %v5078_v46 }
 0xbd1   :  { %2048 = vmatpush.bf16.msrb.mxu2 %v5101_v25  ;;  %2068 = vmatpush.bf16.msrb.mxu3 %v6116_v28 }
 0xbd2   :  { %1883 = vmatpush.bf16.msra.mxu0 %v5077_v43 }
 0xbd4   :  { %4443 = vmatmul.msk.bf16.vlgmr.msra.gmra.mxu2 %vm236_vm0, %v6113_v27  ;;  %4460 = vmatmul.msk.bf16.vlgmr.msra.gmra.mxu3 %vm236_vm0, %v6113_v27 }
 0xbd5   :  { %2212 = vmatpush.bf16.msra.mxu3 %v5112_v38 }
 0xbd6   :  { %2089 = vmatpush.bf16.msrb.mxu0 %v6100_v13 }
 0xbd9   :  { %2213 = vmatpush.bf16.msra.mxu3 %v5111_v58 }
 0xbda   :  { %2090 = vmatpush.bf16.msrb.mxu0 %v6105_v16 }
 0xbdd   :  { %2214 = vmatpush.bf16.msra.mxu3 %v5110_v21 }
 0xbde   :  { %2091 = vmatpush.bf16.msrb.mxu0 %v6110_v26 }
 0xbe1   :  { %2215 = vmatpush.bf16.msra.mxu3 %v5109_v54 }
 0xbe2   :  { %2092 = vmatpush.bf16.msrb.mxu0 %v6116_v28 }
 0xbe4   :  { %4477 = vmatmul.msk.bf16.vlgmr.msrb.gmra.mxu2 %vm236_vm0, %v6113_v27 }
 0xc47   :  { %v1687_v17 = vpop.f32.mrf.mxu2  ;;  %v1701_v56 = vpop.f32.mrf.mxu3 }
 0xc48   :  { %v1688_v3 = vadd.f32 %v1687_v17, %v1631_v52  ;;  %v1702_v18 = vadd.f32 %v1701_v56, %v1632_v55  ;;  %v5115_v56 = vld [vmem:[%s6547_s6 + $0x30] sm:$0xff] }
 0xc4a   :  { %v1710_v47 = vmul.f32 0.044715, %v1688_v3  ;;  %v1711_v19 = vmul.f32 0.044715, %v1702_v18  ;;  %v1706_v36 = vmul.f32 0.5, %v1688_v3  ;;  %v1707_v42 = vmul.f32 0.5, %v1702_v18 }
 0xc4c   :  { %v1714_v45 = vmul.f32 %v1710_v47, %v1688_v3  ;;  %v1715_v51 = vmul.f32 %v1711_v19, %v1702_v18  ;;  %v5113_v19 = vld [vmem:[%s6547_s6 + $0x20] sm:$0xff] }
 0xc4e   :  { %v1718_v59 = vmul.f32 %v1714_v45, %v1688_v3  ;;  %v1719_v60 = vmul.f32 %v1715_v51, %v1702_v18  ;;  %v5263_v51 = vld [vmem:[%s6556_s27] ss:$0 sm:$0xff] }
 0xc4f   :  { %v1689_v61 = vpop.f32.mrf.mxu2  ;;  %v1703_v48 = vpop.f32.mrf.mxu3 }
 0xc50   :  { %v1722_v62 = vadd.f32 %v1718_v59, %v1688_v3  ;;  %v1690_v63 = vadd.f32 %v1689_v61, %v1631_v52  ;;  %v1704_v53 = vadd.f32 %v1703_v48, %v1632_v55  ;;  %v1723_v0 = vadd.f32 %v1719_v60, %v1702_v18  ;;  %v5114_v18 = vld [vmem:[%s6547_s6 + $0x28] sm:$0xff]  ;;  %v6173_v61 = vld [vmem:[%s6557_s15] sm:$0xff] }
 0xc52   :  { %v1712_v2 = vmul.f32 0.044715, %v1690_v63  ;;  %v1713_v4 = vmul.f32 0.044715, %v1704_v53  ;;  %v1726_v5 = vmul.f32 0.7978846, %v1722_v62 }
 0xc53   :  { %v1727_v7 = vmul.f32 0.7978846, %v1723_v0  ;;  %v1708_v37 = vmul.f32 0.5, %v1690_v63  ;;  %v1709_v44 = vmul.f32 0.5, %v1704_v53  ;;  %v6176_v62 = vld [vmem:[%s6558_s16] sm:$0xff] }
 0xc54   :  { %v1716_v6 = vmul.f32 %v1712_v2, %v1690_v63  ;;  %v1717_v8 = vmul.f32 %v1713_v4, %v1704_v53  ;;  %5313 = vtanh.f32 %v1726_v5 }
 0xc55   :  { %5315 = vtanh.f32 %v1727_v7 }
 0xc56   :  { %v1720_v9 = vmul.f32 %v1716_v6, %v1690_v63  ;;  %v1721_v10 = vmul.f32 %v1717_v8, %v1704_v53 }
 0xc57   :  { %v6150_v12 = vpop.f32.mrf.mxu2  ;;  %v2004_v17 = vpop.f32.mrf.mxu3 }
 0xc58   :  { %v1724_v14 = vadd.f32 %v1720_v9, %v1690_v63  ;;  %v1725_v15 = vadd.f32 %v1721_v10, %v1704_v53  ;;  %v2055_v0 = vmul.f32 %v6150_v12, %v6176_v62 }
 0xc5a   :  { %v1728_v20 = vmul.f32 0.7978846, %v1724_v14  ;;  %v1729_v23 = vmul.f32 0.7978846, %v1725_v15  ;;  %v5314_v25 = vpop.eup %5313 }
 0xc5b   :  { %v5316_v29 = vpop.eup %5315  ;;  %v1734_v32 = vadd.f32 1.0, %v5314_v25 }
 0xc5c   :  { %5317 = vtanh.f32 %v1728_v20  ;;  %v1735_v34 = vadd.f32 1.0, %v5316_v29 }
 0xc5d   :  { %5319 = vtanh.f32 %v1729_v23  ;;  %v1738_v49 = vmul.f32 %v1734_v32, %v1706_v36  ;;  %v2079_v23 = vmul.f32 %v2004_v17, %v6176_v62  ;;  %v5118_v36 = vld [vmem:[%s6553_s20 + $0x28] sm:$0xff] }
 0xc5e   :  { %v1739_v38 = vmul.f32 %v1735_v34, %v1707_v42  ;;  %v5117_v42 = vld [vmem:[%s6553_s20 + $0x20] sm:$0xff] }
 0xc5f   :  { %v1960_v30 = vpop.f32.mrf.mxu2  ;;  %v2006_v21 = vpop.f32.mrf.mxu3 }
 0xc60   :  { %v2057_v31 = vpack.c.bf16 %v1960_v30, %v6150_v12  ;;  %v2081_v45 = vpack.c.bf16 %v2006_v21, %v2004_v17 }
 0xc62   :  { %v5318_v57 = vpop.eup %5317  ;;  %4478 = vmatmul.msk.bf16.vlgmr.msrb.gmra.mxu3 %vm236_vm0, %v2057_v31 }
 0xc63   :  { %v5320_v35 = vpop.eup %5319  ;;  %v1736_v40 = vadd.f32 1.0, %v5318_v57  ;;  %2350 = vmatpush.bf16.msrb.mxu3 %v6100_v13  ;;  %v5120_v57 = vld [vmem:[%s6553_s20 + $0x38] sm:$0xff] }
 0xc64   :  { %v1737_v46 = vadd.f32 1.0, %v5320_v35  ;;  %v5119_v35 = vld [vmem:[%s6553_s20 + $0x30] sm:$0xff]  ;;  %s5427_s20 = scalar_lea.hbm %s5772_s3, 16 }
 0xc65   :  { %v1740_v24 = vmul.f32 %v1736_v40, %v1708_v37 }
 0xc66   :  { %v1741_v43 = vmul.f32 %v1737_v46, %v1709_v44  ;;  %v6209_v46 = vld [vmem:[%s6559_s18] sm:$0xff] }
 0xc67   :  { %v2050_v52 = vpop.f32.mrf.mxu2  ;;  %v1774_v55 = vpack.c.bf16 %v1740_v24, %v1738_v49  ;;  %2351 = vmatpush.bf16.msrb.mxu3 %v6105_v16 }
 0xc68   :  { %v1775_v58 = vpack.c.bf16 %v1741_v43, %v1739_v38 }
 0xc69   :  { %1884 = vmatmul.bf16.vlgmr.msra.gmra.mxu0 %v1774_v55 }
 0xc6a   :  { %1898 = vmatmul.bf16.vlgmr.msra.gmra.mxu1 %v1775_v58  ;;  %2259 = vmatpush.bf16.msra.mxu0 %v5116_v50  ;;  %v6216_v50 = vld [vmem:[%s6559_s18 + $0x8] sm:$0xff] }
 0xc6b   :  { %2352 = vmatpush.bf16.msrb.mxu3 %v6110_v26 }
 0xc6e   :  { %2260 = vmatpush.bf16.msra.mxu0 %v5115_v56 }
 0xc6f   :  { %v2052_v3 = vpop.f32.mrf.mxu2  ;;  %2353 = vmatpush.bf16.msrb.mxu3 %v6116_v28 }
 0xc70   :  { %v2148_v47 = vpack.c.bf16 %v2052_v3, %v2050_v52 }
 0xc72   :  { %2159 = vmatpush.bf16.msra.mxu2 %v2148_v47  ;;  %4506 = vmatmul.msk.bf16.vlgmr.msra.gmra.mxu3 %vm236_vm0, %v6113_v27 }
 0xc73   :  { %2261 = vmatpush.bf16.msra.mxu0 %v5114_v18 }
 0xc76   :  { %2326 = vmatpush.bf16.msrb.mxu2 %v6100_v13 }
 0xc77   :  { %2262 = vmatpush.bf16.msra.mxu0 %v5113_v19 }
 0xc79   :  { %4479 = vmatmul.msk.bf16.vlgmr.msrb.gmra.mxu0 %vm236_vm0, %v2081_v45 }
 0xc7a   :  { %2327 = vmatpush.bf16.msrb.mxu2 %v6105_v16  ;;  %v6179_v16 = vld [vmem:[%s6558_s16 + $0x8] sm:$0xff] }
 0xc7b   :  { %v2056_v2 = vmul.f32 %v1960_v30, %v6179_v16  ;;  %v2080_v25 = vmul.f32 %v2006_v21, %v6179_v16 }
 0xc7e   :  { %2328 = vmatpush.bf16.msrb.mxu2 %v6110_v26  ;;  %v6183_v26 = vld [vmem:[%s6557_s15 + $0x8] sm:$0xff] }
 0xc82   :  { %2329 = vmatpush.bf16.msrb.mxu2 %v6116_v28 }
 0xc89   :  { %4531 = vmatmul.msk.bf16.vlgmr.msra.gmra.mxu0 %vm236_vm0, %v6113_v27 }
 0xce5   :  { %v2070_v59 = vpop.f32.mrf.mxu3 }
 0xce6   :  { %v1885_v13 = vpop.f32.mrf.mxu0  ;;  %v2075_v28 = vmul.f32 %v2070_v59, %v6173_v61 }
 0xce7   :  { %v1886_v60 = vadd.f32 %v5263_v51, %v1885_v13  ;;  %v1899_v54 = vpop.f32.mrf.mxu1 }
 0xce8   :  { %v2077_v7 = vadd.f32 %v2075_v28, %v2055_v0 }
 0xce9   :  { %v1900_v48 = vadd.f32 %v1899_v54, %v1886_v60 }
 0xceb   :  { %v1904_v63 = vadd.f32 %v1900_v48, %v6019_v39 }
 0xced   :  { %1906 = vst.msk [vmem:[#allocation2] sm:$0xff] %vm236_vm0, %v1904_v63  ;;  %v2072_v53 = vpop.f32.mrf.mxu3 }
 0xcee   :  { %v2076_v4 = vmul.f32 %v2072_v53, %v6183_v26  ;;  %v1887_v5 = vpop.f32.mrf.mxu0 }
 0xcef   :  { %v1888_v6 = vadd.f32 %v5263_v51, %v1887_v5  ;;  %v1901_v39 = vpop.f32.mrf.mxu1 }
 0xcf0   :  { %v2078_v8 = vadd.f32 %v2076_v4, %v2056_v2 }
 0xcf1   :  { %v1902_v9 = vadd.f32 %v1901_v39, %v1888_v6 }
 0xcf2   :  { %v2103_v10 = vpack.c.bf16 %v2078_v8, %v2077_v7  ;;  %v5108_v8 = vld [vmem:[%s6560_s22 + $0x18] sm:$0xff] }
 0xcf3   :  { %v1905_v14 = vadd.f32 %v1902_v9, %v6029_v1  ;;  %2509 = vmatpush.bf16.msra.mxu3 %v5108_v8  ;;  %v5123_v8 = vld [vmem:[%s6560_s22 + $0x30] sm:$0xff] }
 0xcf5   :  { %1907 = vst.msk [vmem:[#allocation2 + $0x8] sm:$0xff] %vm236_vm0, %v1905_v14  ;;  %v6206_v44 = vpop.f32.mrf.mxu3 }
 0xcf6   :  { %v2094_v15 = vpop.f32.mrf.mxu0 }
 0xcf7   :  { %v2099_v12 = vmul.f32 %v2094_v15, %v6173_v61 }
 0xcf9   :  { %v2101_v30 = vadd.f32 %v2099_v12, %v2079_v23  ;;  %v5107_v23 = vld [vmem:[%s6560_s22 + $0x10] sm:$0xff] }
 0xcfa   :  { %2510 = vmatpush.bf16.msra.mxu3 %v5107_v23 }
 0xcfd   :  { %v6212_v38 = vpop.f32.mrf.mxu3 }
 0xcfe   :  { %v2096_v20 = vpop.f32.mrf.mxu0 }
 0xcff   :  { %v2100_v29 = vmul.f32 %v2096_v20, %v6183_v26  ;;  %v2318_v20 = vpack.c.bf16 %v6212_v38, %v6206_v44 }
 0xd01   :  { %v2102_v31 = vadd.f32 %v2100_v29, %v2080_v25  ;;  %v5106_v25 = vld [vmem:[%s6560_s22 + $0x8] sm:$0xff]  ;;  %v5105_v29 = vld [vmem:[%s6560_s22] sm:$0xff] }
 0xd02   :  { %2511 = vmatpush.bf16.msra.mxu3 %v5106_v25 }
 0xd03   :  { %v2104_v32 = vpack.c.bf16 %v2102_v31, %v2101_v30  ;;  %v5128_v30 = vld [vmem:[%s6561_s23 + $0x18] sm:$0xff] }
 0xd05   :  { %v2109_v1 = vsel %vm236_vm0, %v2104_v32, 0  ;;  %v5127_v32 = vld [vmem:[%s6561_s23 + $0x10] sm:$0xff] }
 0xd06   :  { %2118 = vmatpush.bf16.xpose.msrb.mxu1 %v2109_v1  ;;  %v2264_v34 = vpop.f32.mrf.mxu0  ;;  %2512 = vmatpush.bf16.msra.mxu3 %v5105_v29 }
 0xd07   :  { %v2340_v18 = vmul.f32 %v2264_v34, %v6176_v62 }
 0xd0d   :  { %4480 = vmatmul.msk.bf16.vlgmr.msrb.gmra.mxu1 %vm236_vm0, %v2103_v10 }
 0xd0e   :  { %2306 = vmatpush.bf16.msra.mxu1 %v5120_v57  ;;  %v2266_v37 = vpop.f32.mrf.mxu0  ;;  %v5126_v57 = vld [vmem:[%s6561_s23 + $0x8] sm:$0xff] }
 0xd0f   :  { %v2342_v40 = vpack.c.bf16 %v2266_v37, %v2264_v34  ;;  %v2341_v47 = vmul.f32 %v2266_v37, %v6179_v16 }
 0xd11   :  { %4558 = vmatmul.msk.bf16.vlgmr.msrb.gmra.mxu3 %vm236_vm0, %v2342_v40 }
 0xd12   :  { %2307 = vmatpush.bf16.msra.mxu1 %v5119_v35  ;;  %v5125_v35 = vld [vmem:[%s6561_s23] sm:$0xff] }
 0xd16   :  { %2308 = vmatpush.bf16.msra.mxu1 %v5118_v36 }
 0xd1a   :  { %2309 = vmatpush.bf16.msra.mxu1 %v5117_v42  ;;  %v2316_v42 = vmul.f32 %v6206_v44, %v6176_v62 }
 0xd1d   :  { %4556 = vmatmul.msk.bf16.vlgmr.msra.gmra.mxu1 %vm236_vm0, %v6113_v27 }
 0xd8a   :  { %v2120_v49 = vpop.f32.mrf.mxu1 }
 0xd8b   :  { %v2121_v24 = vadd.f32 %v2120_v49, %v6209_v46  ;;  %v2317_v49 = vmul.f32 %v6212_v38, %v6179_v16 }
 0xd8d   :  { %v2125_v43 = vsel %vm551_vm8, %v2121_v24, -inf }
 0xd8e   :  { %2126 = vmax.xlane.f32.xlu1 %v2125_v43 }
 0xd92   :  { %v2122_v52 = vpop.f32.mrf.mxu1 }
 0xd93   :  { %v2123_v55 = vadd.f32 %v2122_v52, %v6216_v50 }
 0xd94   :  { %v2355_v58 = vpop.f32.mrf.mxu3 }
 0xd95   :  { %v2128_v27 = vsel %vm551_vm8, %v2123_v55, -inf  ;;  %v2360_v56 = vmul.f32 %v2355_v58, %v6173_v61 }
 0xd96   :  { %2129 = vmax.xlane.f32.xlu2 %v2128_v27 }
 0xd97   :  { %v2362_v21 = vadd.f32 %v2360_v56, %v2340_v18 }
 0xd9a   :  { %v2311_v17 = vpop.f32.mrf.mxu1 }
 0xd9c   :  { %v2357_v3 = vpop.f32.mrf.mxu3 }
 0xd9d   :  { %v2361_v19 = vmul.f32 %v2357_v3, %v6183_v26 }
 0xd9f   :  { %v2363_v45 = vadd.f32 %v2361_v19, %v2341_v47 }
 0xda1   :  { %v2365_v51 = vpack.c.bf16 %v2363_v45, %v2362_v21  ;;  %v5132_v21 = vld [vmem:[%s6562_s26 + $0x18] sm:$0xff]  ;;  %v5131_v45 = vld [vmem:[%s6562_s26 + $0x10] sm:$0xff] }
 0xda2   :  { %v2313_v59 = vpop.f32.mrf.mxu1 }
 0xda3   :  { %v2409_v13 = vpack.c.bf16 %v2313_v59, %v2311_v17  ;;  %v2370_v60 = vsel %vm236_vm0, %v2365_v51, 0  ;;  %v5130_v51 = vld [vmem:[%s6562_s26 + $0x8] sm:$0xff]  ;;  %v5129_v59 = vld [vmem:[%s6562_s26] sm:$0xff] }
 0xda4   :  { %2379 = vmatpush.bf16.xpose.msrb.mxu0 %v2370_v60 }
 0xda5   :  { %2420 = vmatpush.bf16.msrb.mxu1 %v2409_v13 }
 0xda9   :  { %2624 = vmatpush.bf16.msra.mxu1 %v5132_v21 }
 0xdac   :  { %2570 = vmatpush.bf16.msra.mxu0 %v5128_v30 }
 0xdad   :  { %2625 = vmatpush.bf16.msra.mxu1 %v5131_v45 }
 0xdb0   :  { %2571 = vmatpush.bf16.msra.mxu0 %v5127_v32 }
 0xdb1   :  { %2626 = vmatpush.bf16.msra.mxu1 %v5130_v51 }
 0xdb4   :  { %2572 = vmatpush.bf16.msra.mxu0 %v5126_v57  ;;  %v5136_v57 = vld [vmem:[%s6563_s28 + $0x18] sm:$0xff] }
 0xdb5   :  { %2627 = vmatpush.bf16.msra.mxu1 %v5129_v59 }
 0xdb8   :  { %2573 = vmatpush.bf16.msra.mxu0 %v5125_v35 }
 0xe01   :  { %v2127_v54 = vpop.xlane.xlu1 %2126 }
 0xe02   :  { %v2131_v48 = vsub.f32 %v2121_v24, %v2127_v54 }
 0xe04   :  { %v2133_v63 = vmul.f32 1.442695, %v2131_v48 }
 0xe06   :  { %5321 = vpow2.f32 %v2133_v63 }
 0xe09   :  { %v2130_v28 = vpop.xlane.xlu2 %2129 }
 0xe0a   :  { %v2132_v53 = vsub.f32 %v2123_v55, %v2130_v28 }
 0xe0c   :  { %v5322_v0 = vpop.eup %5321  ;;  %v2135_v2 = vmul.f32 1.442695, %v2132_v53  ;;  %v5144_v53 = vld [vmem:[%s6561_s23 + $0x38] sm:$0xff] }
 0xe0d   :  { %v2137_v4 = vsel %vm551_vm8, %v5322_v0, 0.0 }
 0xe0e   :  { %5323 = vpow2.f32 %v2135_v2  ;;  %2138 = vadd.xlane.f32.xlu0 %v2137_v4  ;;  %v5124_v2 = vld [vmem:[%s6560_s22 + $0x38] sm:$0xff]  ;;  %v5143_v4 = vld [vmem:[%s6561_s23 + $0x30] sm:$0xff] }
 0xe14   :  { %v5324_v5 = vpop.eup %5323 }
 0xe15   :  { %v2140_v6 = vsel %vm551_vm8, %v5324_v5, 0.0 }
 0xe16   :  { %2141 = vadd.xlane.f32.xlu1 %v2140_v6  ;;  %v5141_v6 = vld [vmem:[%s6561_s23 + $0x20] sm:$0xff] }
 0xe81   :  { %v2139_v7 = vpop.xlane.xlu0 %2138 }
 0xe82   :  { %5325 = vrcp.f32 %v2139_v7  ;;  %v6266_v7 = vld [vmem:[%s5527_s5] sm:$0xff]  ;;  %s6564_s5 = sld [smem:[#allocation21_spill]] }
 0xe88   :  { %v5326_v9 = vpop.eup %5325  ;;  %v5264_v35 = vld [vmem:[%s6564_s5] ss:$0 sm:$0xff] }
 0xe89   :  { %v2142_v39 = vpop.xlane.xlu1 %2141  ;;  %v2145_v14 = vmul.f32 %v5326_v9, %v5322_v0  ;;  %v5121_v9 = vld [vmem:[%s6560_s22 + $0x20] sm:$0xff] }
 0xe8a   :  { %5327 = vrcp.f32 %v2142_v39  ;;  %v5122_v39 = vld [vmem:[%s6560_s22 + $0x28] sm:$0xff] }
 0xe90   :  { %v5328_v10 = vpop.eup %5327 }
 0xe91   :  { %v2146_v15 = vmul.f32 %v5328_v10, %v5324_v5  ;;  %v5142_v5 = vld [vmem:[%s6561_s23 + $0x28] sm:$0xff] }
 0xe93   :  { %v2147_v12 = vpack.c.bf16 %v2146_v15, %v2145_v14 }
 0xe95   :  { %4481 = vmatmul.msk.bf16.vlgmr.msra.gmra.mxu2 %vm551_vm8, %v2147_v12 }
 0xe96   :  { %2468 = vmatpush.bf16.msra.mxu2 %v5124_v2 }
 0xe9a   :  { %2469 = vmatpush.bf16.msra.mxu2 %v5123_v8 }
 0xe9e   :  { %2470 = vmatpush.bf16.msra.mxu2 %v5122_v39 }
 0xea2   :  { %2471 = vmatpush.bf16.msra.mxu2 %v5121_v9  ;;  %v5164_v9 = vld [vmem:[%s6566_s2 + $0x18] sm:$0xff] }
 0xea5   :  { %4557 = vmatmul.msk.bf16.vlgmr.msrb.gmra.mxu2 %vm236_vm0, %v2318_v20 }
 0xea6   :  { %2670 = vmatpush.bf16.msrb.mxu2 %v5136_v57  ;;  %v5139_v57 = vld [vmem:[%s6567_s7 + $0x10] sm:$0xff] }
 0xf18   :  { %v2161_v31 = vpop.f32.mrf.mxu2 }
 0xf20   :  { %v2163_v1 = vpop.f32.mrf.mxu2 }
 0xf21   :  { %v2174_v34 = vpack.c.bf16 %v2163_v1, %v2161_v31  ;;  %v5135_v1 = vld [vmem:[%s6563_s28 + $0x10] sm:$0xff] }
 0xf22   :  { %2671 = vmatpush.bf16.msrb.mxu2 %v5135_v1  ;;  %v5138_v1 = vld [vmem:[%s6567_s7 + $0x8] sm:$0xff] }
 0xf23   :  { %4602 = vmatmul.msk.bf16.vlgmr.msra.gmra.mxu3 %vm236_vm0, %v2174_v34 }
 0xf28   :  { %v2331_v36 = vpop.f32.mrf.mxu2 }
 0xf29   :  { %v2336_v37 = vmul.f32 %v2331_v36, %v6173_v61 }
 0xf2b   :  { %v2338_v43 = vadd.f32 %v2336_v37, %v2316_v42  ;;  %v5134_v42 = vld [vmem:[%s6563_s28 + $0x8] sm:$0xff] }
 0xf2c   :  { %2672 = vmatpush.bf16.msrb.mxu2 %v5134_v42 }
 0xf30   :  { %v2333_v40 = vpop.f32.mrf.mxu2 }
 0xf31   :  { %v2337_v24 = vmul.f32 %v2333_v40, %v6183_v26 }
 0xf33   :  { %v2339_v52 = vadd.f32 %v2337_v24, %v2317_v49 }
 0xf35   :  { %v2364_v55 = vpack.c.bf16 %v2339_v52, %v2338_v43  ;;  %v5133_v52 = vld [vmem:[%s6563_s28] sm:$0xff] }
 0xf36   :  { %2673 = vmatpush.bf16.msrb.mxu2 %v5133_v52 }
 0xf37   :  { %4559 = vmatmul.msk.bf16.vlgmr.msrb.gmra.mxu0 %vm236_vm0, %v2364_v55  ;;  %v5148_v55 = vld [vmem:[%s6562_s26 + $0x38] sm:$0xff] }
 0xf47   :  { %4619 = vmatmul.msk.bf16.vlgmr.msra.gmra.mxu0 %vm236_vm0, %v6094_v11 }
 0xfa6   :  { %v2514_v31 = vpop.f32.mrf.mxu3 }
 0xfae   :  { %v2516_v36 = vpop.f32.mrf.mxu3 }
 0xfb4   :  { %v2381_v58 = vpop.f32.mrf.mxu0 }
 0xfb5   :  { %v2382_v61 = vadd.f32 %v2381_v58, %v6209_v46  ;;  %v5147_v58 = vld [vmem:[%s6562_s26 + $0x30] sm:$0xff] }
 0xfb7   :  { %v2386_v27 = vsel %vm551_vm8, %v2382_v61, -inf }
 0xfb8   :  { %2387 = vmax.xlane.f32.xlu2 %v2386_v27  ;;  %v5146_v27 = vld [vmem:[%s6562_s26 + $0x28] sm:$0xff] }
 0xfbc   :  { %v2383_v62 = vpop.f32.mrf.mxu0 }
 0xfbd   :  { %v2384_v44 = vadd.f32 %v2383_v62, %v6216_v50 }
 0xfbf   :  { %v2389_v16 = vsel %vm551_vm8, %v2384_v44, -inf }
 0xfc0   :  { %2390 = vmax.xlane.f32.xlu0 %v2389_v16 }
 0xfc4   :  { %v2575_v20 = vpop.f32.mrf.mxu0 }
 0xfcc   :  { %v2577_v29 = vpop.f32.mrf.mxu0 }
 0xfcd   :  { %v2680_v30 = vpack.c.bf16 %v2577_v29, %v2575_v20  ;;  %v5151_v20 = vld [vmem:[%s6563_s28 + $0x30] sm:$0xff]  ;;  %v5149_v29 = vld [vmem:[%s6563_s28 + $0x20] sm:$0xff] }
0x102b   :  { %v2388_v26 = vpop.xlane.xlu2 %2387 }
0x102c   :  { %v2392_v38 = vsub.f32 %v2382_v61, %v2388_v26  ;;  %v6294_v61 = vld [vmem:[%s6565_s1] sm:$0xff]  ;;  %v6300_v26 = vld [vmem:[%s6565_s1 + $0x8] sm:$0xff] }
0x102e   :  { %v2394_v17 = vmul.f32 1.442695, %v2392_v38 }
0x1030   :  { %5329 = vpow2.f32 %v2394_v17 }
0x1033   :  { %v2391_v56 = vpop.xlane.xlu0 %2390 }
0x1034   :  { %v2393_v3 = vsub.f32 %v2384_v44, %v2391_v56 }
0x1036   :  { %v5330_v46 = vpop.eup %5329  ;;  %v2396_v18 = vmul.f32 1.442695, %v2393_v3  ;;  %v5145_v3 = vld [vmem:[%s6562_s26 + $0x20] sm:$0xff] }
0x1037   :  { %v2398_v47 = vsel %vm551_vm8, %v5330_v46, 0.0 }
0x1038   :  { %5331 = vpow2.f32 %v2396_v18  ;;  %2399 = vadd.xlane.f32.xlu1 %v2398_v47 }
0x103e   :  { %v5332_v50 = vpop.eup %5331 }
0x103f   :  { %v2401_v19 = vsel %vm551_vm8, %v5332_v50, 0.0 }
0x1040   :  { %2402 = vadd.xlane.f32.xlu2 %v2401_v19 }
0x10ab   :  { %v2400_v13 = vpop.xlane.xlu1 %2399 }
0x10ac   :  { %5333 = vrcp.f32 %v2400_v13 }
0x10b2   :  { %v5334_v54 = vpop.eup %5333 }
0x10b3   :  { %v2403_v60 = vpop.xlane.xlu2 %2402  ;;  %v2406_v63 = vmul.f32 %v5334_v54, %v5330_v46 }
0x10b4   :  { %5335 = vrcp.f32 %v2403_v60 }
0x10ba   :  { %v5336_v48 = vpop.eup %5335 }
0x10bb   :  { %v2407_v28 = vmul.f32 %v5336_v48, %v5332_v50 }
0x10bd   :  { %v2408_v0 = vpack.c.bf16 %v2407_v28, %v2406_v63 }
0x10bf   :  { %4560 = vmatmul.msk.bf16.vlgmr.msrb.gmra.mxu1 %vm551_vm8, %v2408_v0 }
0x10c0   :  { %2789 = vmatpush.bf16.msrb.mxu1 %v5144_v53 }
0x10c4   :  { %2790 = vmatpush.bf16.msrb.mxu1 %v5143_v4 }
0x10c8   :  { %2791 = vmatpush.bf16.msrb.mxu1 %v5142_v5 }
0x10cc   :  { %2792 = vmatpush.bf16.msrb.mxu1 %v5141_v6 }
0x10cf   :  { %4640 = vmatmul.msk.bf16.vlgmr.msra.gmra.mxu1 %vm236_vm0, %v6266_v7 }
0x10df   :  { %4684 = vmatmul.msk.bf16.vlgmr.msrb.gmra.mxu1 %vm236_vm0, %v6094_v11 }
0x113c   :  { %v2422_v10 = vpop.f32.mrf.mxu1 }
0x1144   :  { %v2424_v14 = vpop.f32.mrf.mxu1 }
0x1145   :  { %v2436_v15 = vpack.c.bf16 %v2424_v14, %v2422_v10  ;;  %v5152_v14 = vld [vmem:[%s6563_s28 + $0x38] sm:$0xff] }
0x1147   :  { %4585 = vmatmul.msk.bf16.vlgmr.msra.gmra.mxu2 %vm236_vm0, %v2436_v15 }
0x1148   :  { %2836 = vmatpush.bf16.msra.mxu2 %v5148_v55 }
0x114c   :  { %v2629_v12 = vpop.f32.mrf.mxu1  ;;  %2837 = vmatpush.bf16.msra.mxu2 %v5147_v58 }
0x1150   :  { %2838 = vmatpush.bf16.msra.mxu2 %v5146_v27 }
0x1154   :  { %v2631_v23 = vpop.f32.mrf.mxu1  ;;  %2839 = vmatpush.bf16.msra.mxu2 %v5145_v3 }
0x1155   :  { %v2681_v25 = vpack.c.bf16 %v2631_v23, %v2629_v12  ;;  %v5163_v12 = vld [vmem:[%s6566_s2 + $0x10] sm:$0xff]  ;;  %v5162_v23 = vld [vmem:[%s6566_s2 + $0x8] sm:$0xff] }
0x1157   :  { %v2686_v11 = vsel %vm236_vm0, %v2681_v25, 0  ;;  %4657 = vmatmul.msk.bf16.vlgmr.msrb.gmra.mxu2 %vm236_vm0, %v6266_v7  ;;  %v5150_v25 = vld [vmem:[%s6563_s28 + $0x28] sm:$0xff] }
0x1158   :  { %2695 = vmatpush.bf16.xpose.msrb.mxu3 %v2686_v11  ;;  %v5161_v11 = vld [vmem:[%s6566_s2] sm:$0xff] }
0x115c   :  { %v2794_v15 = vpop.f32.mrf.mxu1 }
0x115f   :  { %4658 = vmatmul.msk.bf16.vlgmr.msrb.gmra.mxu3 %vm236_vm0, %v2680_v30 }
0x1160   :  { %2883 = vmatpush.bf16.msra.mxu3 %v5152_v14 }
0x1164   :  { %2884 = vmatpush.bf16.msra.mxu3 %v5151_v20  ;;  %v2796_v30 = vpop.f32.mrf.mxu1 }
0x1167   :  { %4709 = vmatmul.msk.bf16.vlgmr.msra.gmra.mxu2 %vm236_vm0, %v6266_v7 }
0x1168   :  { %2885 = vmatpush.bf16.msra.mxu3 %v5150_v25 }
0x116c   :  { %2886 = vmatpush.bf16.msra.mxu3 %v5149_v29 }
0x116f   :  { %4734 = vmatmul.msk.bf16.vlgmr.msra.gmra.mxu3 %vm236_vm0, %v6266_v7 }
0x11ca   :  { %v2473_v32 = vpop.f32.mrf.mxu2 }
0x11cb   :  { %v2515_v34 = vadd.f32 %v2514_v31, %v2473_v32  ;;  %v5140_v31 = vld [vmem:[%s6567_s7 + $0x18] sm:$0xff]  ;;  %v2893_v32 = vpack.c.bf16 %v2796_v30, %v2794_v15 }
0x11cc   :  { %3038 = vmatpush.bf16.msrb.mxu3 %v5140_v31  ;;  %v4831_v31 = vld [vmem:[%s6569_s11 + $0x20] sm:$0xf] }
0x11cd   :  { %v6282_v49 = vadd.f32 %v5264_v35, %v2515_v34  ;;  %v5137_v34 = vld [vmem:[%s6567_s7] sm:$0xff] }
0x11d0   :  { %3039 = vmatpush.bf16.msrb.mxu3 %v5139_v57  ;;  %v5169_v57 = vld [vmem:[%s6569_s11 + $0x24] sm:$0xf] }
0x11d2   :  { %v2475_v37 = vpop.f32.mrf.mxu2 }
0x11d3   :  { %v2517_v40 = vadd.f32 %v2516_v36, %v2475_v37 }
0x11d4   :  { %3040 = vmatpush.bf16.msrb.mxu3 %v5138_v1 }
0x11d5   :  { %v6284_v24 = vadd.f32 %v5264_v35, %v2517_v40 }
0x11d7   :  { %v3071_v43 = vpack.c.bf16 %v6284_v24, %v6282_v49 }
0x11d8   :  { %3041 = vmatpush.bf16.msrb.mxu3 %v5137_v34  ;;  %v4833_v34 = vld [vmem:[%s6569_s11 + $0x28] sm:$0xf0] }
0x11da   :  { %v2675_v60 = vpop.f32.mrf.mxu2 }
0x11e2   :  { %v2697_v62 = vpop.f32.mrf.mxu3  ;;  %v2677_v54 = vpop.f32.mrf.mxu2 }
0x11e3   :  { %v2698_v44 = vadd.f32 %v2697_v62, %v6294_v61  ;;  %v2725_v48 = vpack.c.bf16 %v2677_v54, %v2675_v60  ;;  %v5153_v60 = vld [vmem:[%s6567_s7 + $0x20] sm:$0xff] }
0x11e5   :  { %v2702_v16 = vsel %vm551_vm8, %v2698_v44, -inf  ;;  %2736 = vmatpush.bf16.msrb.mxu0 %v2725_v48 }
0x11e6   :  { %2703 = vmax.xlane.f32.xlu0 %v2702_v16 }
0x11ea   :  { %v2699_v38 = vpop.f32.mrf.mxu3  ;;  %v2841_v63 = vpop.f32.mrf.mxu2 }
0x11eb   :  { %v2700_v17 = vadd.f32 %v2699_v38, %v6300_v26 }
0x11ed   :  { %v2705_v56 = vsel %vm551_vm8, %v2700_v17, -inf }
0x11ee   :  { %2706 = vmax.xlane.f32.xlu1 %v2705_v56 }
0x11f2   :  { %v2843_v28 = vpop.f32.mrf.mxu2  ;;  %v2888_v49 = vpop.f32.mrf.mxu3 }
0x11f3   :  { %v2894_v53 = vpack.c.bf16 %v2843_v28, %v2841_v63  ;;  %v5160_v28 = vld [vmem:[%s6568_s10 + $0x18] sm:$0xff] }
0x11f5   :  { %v2899_v0 = vsel %vm236_vm0, %v2894_v53, 0  ;;  %v5159_v53 = vld [vmem:[%s6568_s10 + $0x10] sm:$0xff] }
0x11f6   :  { %2908 = vmatpush.bf16.xpose.msra.mxu0 %v2899_v0  ;;  %v5158_v0 = vld [vmem:[%s6568_s10 + $0x8] sm:$0xff] }
0x11fa   :  { %v2890_v55 = vpop.f32.mrf.mxu3 }
0x11fb   :  { %v2938_v58 = vpack.c.bf16 %v2890_v55, %v2888_v49 }
0x11fd   :  { %2949 = vmatpush.bf16.msra.mxu1 %v2938_v58  ;;  %v4817_v58 = vld [vmem:[%s6569_s11 + $0x8] sm:$0xf0] }
0x1201   :  { %3144 = vmatpush.bf16.msrb.mxu1 %v5160_v28 }
0x1205   :  { %3145 = vmatpush.bf16.msrb.mxu1 %v5159_v53 }
0x1209   :  { %3146 = vmatpush.bf16.msrb.mxu1 %v5158_v0 }
0x1259   :  { %v2704_v46 = vpop.xlane.xlu0 %2703 }
0x125a   :  { %v2708_v18 = vsub.f32 %v2698_v44, %v2704_v46  ;;  %v5156_v46 = vld [vmem:[%s6567_s7 + $0x38] sm:$0xff] }
0x125b   :  { %2997 = vmatpush.bf16.msrb.mxu2 %v5156_v46 }
0x125c   :  { %v2710_v47 = vmul.f32 1.442695, %v2708_v18 }
0x125e   :  { %5337 = vpow2.f32 %v2710_v47 }
0x1261   :  { %v2707_v50 = vpop.xlane.xlu1 %2706 }
0x1262   :  { %v2709_v19 = vsub.f32 %v2700_v17, %v2707_v50 }
0x1264   :  { %v5338_v21 = vpop.eup %5337  ;;  %v2712_v45 = vmul.f32 1.442695, %v2709_v19 }
0x1265   :  { %v2714_v51 = vsel %vm551_vm8, %v5338_v21, 0.0 }
0x1266   :  { %5339 = vpow2.f32 %v2712_v45  ;;  %2715 = vadd.xlane.f32.xlu2 %v2714_v51 }
0x126c   :  { %v5340_v59 = vpop.eup %5339 }
0x126d   :  { %v2717_v13 = vsel %vm551_vm8, %v5340_v59, 0.0 }
0x126e   :  { %2718 = vadd.xlane.f32.xlu0 %v2717_v13  ;;  %v5154_v13 = vld [vmem:[%s6567_s7 + $0x28] sm:$0xff] }
0x12d9   :  { %v2716_v2 = vpop.xlane.xlu2 %2715 }
0x12da   :  { %5341 = vrcp.f32 %v2716_v2  ;;  %v5157_v2 = vld [vmem:[%s6568_s10] sm:$0xff] }
0x12db   :  { %3147 = vmatpush.bf16.msrb.mxu1 %v5157_v2 }
0x12e0   :  { %v5342_v5 = vpop.eup %5341 }
0x12e1   :  { %v2719_v4 = vpop.xlane.xlu0 %2718  ;;  %v2722_v8 = vmul.f32 %v5342_v5, %v5338_v21  ;;  %v5172_v5 = vld [vmem:[%s6569_s11 + $0x34] sm:$0xf0] }
0x12e2   :  { %5343 = vrcp.f32 %v2719_v4  ;;  %v4839_v4 = vld [vmem:[%s6569_s11 + $0x30] sm:$0xf] }
0x12e8   :  { %v5344_v6 = vpop.eup %5343 }
0x12e9   :  { %v2723_v39 = vmul.f32 %v5344_v6, %v5340_v59  ;;  %v5155_v59 = vld [vmem:[%s6567_s7 + $0x30] sm:$0xff] }
0x12ea   :  { %2998 = vmatpush.bf16.msrb.mxu2 %v5155_v59  ;;  %v5171_v6 = vld [vmem:[%s6569_s11 + $0x34] sm:$0xf] }
0x12eb   :  { %v2724_v10 = vpack.c.bf16 %v2723_v39, %v2722_v8  ;;  %v4840_v8 = vor.u32 %v5172_v5, %v4839_v4  ;;  %v4841_v39 = vld [vmem:[%s6569_s11 + $0x38] sm:$0xf0] }
0x12ed   :  { %4659 = vmatmul.msk.bf16.vlgmr.msrb.gmra.mxu0 %vm551_vm8, %v2724_v10 }
0x12ee   :  { %3103 = vmatpush.bf16.msrb.mxu0 %v5164_v9  ;;  %2999 = vmatpush.bf16.msrb.mxu2 %v5154_v13  ;;  %v4844_v9 = vor.u32 %v5171_v6, %v4841_v39 }
0x12f0   :  { %3230 = vmatpush.bf16.msra.mxu3 %v4844_v9 }
0x12f2   :  { %3104 = vmatpush.bf16.msrb.mxu0 %v5163_v12  ;;  %3000 = vmatpush.bf16.msrb.mxu2 %v5153_v60  ;;  %v5265_v12 = vld [vmem:[%s6570_s0] ss:$0 sm:$0xff] }
0x12f6   :  { %3105 = vmatpush.bf16.msrb.mxu0 %v5162_v23  ;;  %3216 = vmatpush.bf16.msra.mxu2 %v4840_v8 }
0x12fa   :  { %3106 = vmatpush.bf16.msrb.mxu0 %v5161_v11 }
0x12fd   :  { %4735 = vmatmul.msk.bf16.vlgmr.msra.gmra.mxu0 %vm236_vm0, %v2893_v32  ;;  %v5170_v32 = vld [vmem:[%s6569_s11 + $0x24] sm:$0xf0] }
0x12fe   :  { %v4832_v1 = vor.u32 %v5170_v32, %v4831_v31 }
0x1300   :  { %3217 = vmatpush.bf16.msra.mxu2 %v4832_v1 }
0x130d   :  { %4795 = vmatmul.msk.bf16.vlgmr.msrb.gmra.mxu0 %vm236_vm0, %v3071_v43 }
0x136a   :  { %v2738_v35 = vpop.f32.mrf.mxu0 }
0x1372   :  { %v2740_v36 = vpop.f32.mrf.mxu0 }
0x1373   :  { %v2751_v37 = vpack.c.bf16 %v2740_v36, %v2738_v35  ;;  %v4823_v35 = vld [vmem:[%s6569_s11 + $0x10] sm:$0xf]  ;;  %v5168_v36 = vld [vmem:[%s6569_s11 + $0x14] sm:$0xf0] }
0x1375   :  { %4778 = vmatmul.msk.bf16.vlgmr.msrb.gmra.mxu3 %vm236_vm0, %v2751_v37  ;;  %v4836_v37 = vor.u32 %v5169_v57, %v4833_v34 }
0x1377   :  { %3231 = vmatpush.bf16.msra.mxu3 %v4836_v37 }
0x137a   :  { %v2910_v40 = vpop.f32.mrf.mxu0 }
0x137b   :  { %v2911_v42 = vadd.f32 %v2910_v40, %v6294_v61  ;;  %v5167_v40 = vld [vmem:[%s6569_s11 + $0x14] sm:$0xf] }
0x137d   :  { %v2915_v7 = vsel %vm551_vm8, %v2911_v42, -inf }
0x137e   :  { %2916 = vmax.xlane.f32.xlu1 %v2915_v7  ;;  %v4824_v7 = vor.u32 %v5168_v36, %v4823_v35 }
0x1380   :  { %3218 = vmatpush.bf16.msra.mxu2 %v4824_v7 }
0x1382   :  { %v2912_v24 = vpop.f32.mrf.mxu0 }
0x1383   :  { %v2913_v43 = vadd.f32 %v2912_v24, %v6300_v26  ;;  %v4815_v24 = vld [vmem:[%s6569_s11] sm:$0xf] }
0x1385   :  { %v2918_v52 = vsel %vm551_vm8, %v2913_v43, -inf }
0x1386   :  { %2919 = vmax.xlane.f32.xlu2 %v2918_v52  ;;  %v5165_v52 = vld [vmem:[%s6569_s11 + $0x4] sm:$0xf] }
0x13f1   :  { %v2917_v27 = vpop.xlane.xlu1 %2916 }
0x13f2   :  { %v2921_v62 = vsub.f32 %v2911_v42, %v2917_v27  ;;  %v4825_v42 = vld [vmem:[%s6569_s11 + $0x18] sm:$0xf0]  ;;  %v4820_v27 = vor.u32 %v5165_v52, %v4817_v58 }
0x13f3   :  { %v4828_v49 = vor.u32 %v5167_v40, %v4825_v42 }
0x13f4   :  { %v2923_v44 = vmul.f32 1.442695, %v2921_v62  ;;  %v3108_v62 = vpop.f32.mrf.mxu0 }
0x13f5   :  { %3232 = vmatpush.bf16.msra.mxu3 %v4828_v49 }
0x13f6   :  { %5345 = vpow2.f32 %v2923_v44 }
0x13f8   :  { %v3043_v10 = vpop.f32.mrf.mxu3 }
0x13f9   :  { %v2920_v16 = vpop.xlane.xlu2 %2919  ;;  %3233 = vmatpush.bf16.msra.mxu3 %v4820_v27 }
0x13fa   :  { %v2922_v61 = vsub.f32 %v2913_v43, %v2920_v16  ;;  %v5166_v43 = vld [vmem:[%s6569_s11 + $0x4] sm:$0xf0] }
0x13fb   :  { %v4816_v55 = vor.u32 %v5166_v43, %v4815_v24 }
0x13fc   :  { %v5346_v38 = vpop.eup %5345  ;;  %v2925_v17 = vmul.f32 1.442695, %v2922_v61  ;;  %v3110_v16 = vpop.f32.mrf.mxu0 }
0x13fd   :  { %v2927_v56 = vsel %vm551_vm8, %v5346_v38, 0.0  ;;  %3219 = vmatpush.bf16.msra.mxu2 %v4816_v55 }
0x13fe   :  { %5347 = vpow2.f32 %v2925_v17  ;;  %2928 = vadd.xlane.f32.xlu0 %v2927_v56 }
0x1400   :  { %v3045_v20 = vpop.f32.mrf.mxu3 }
0x1404   :  { %v5348_v26 = vpop.eup %5347 }
0x1405   :  { %v2930_v3 = vsel %vm551_vm8, %v5348_v26, 0.0 }
0x1406   :  { %2931 = vadd.xlane.f32.xlu1 %v2930_v3 }
0x1471   :  { %v2929_v18 = vpop.xlane.xlu0 %2928 }
0x1472   :  { %5349 = vrcp.f32 %v2929_v18 }
0x1478   :  { %v5350_v50 = vpop.eup %5349 }
0x1479   :  { %v2932_v47 = vpop.xlane.xlu1 %2931  ;;  %v2935_v21 = vmul.f32 %v5350_v50, %v5346_v38 }
0x147a   :  { %5351 = vrcp.f32 %v2932_v47 }
0x1480   :  { %v5352_v19 = vpop.eup %5351 }
0x1481   :  { %v2936_v45 = vmul.f32 %v5352_v19, %v5348_v26  ;;  %v3163_v26 = vld [vmem:[%s6571_s21] sm:$0x3] }
0x1482   :  { %v3165_v3 = vperm.slane %v3163_v26, 0 }
0x1483   :  { %v2937_v51 = vpack.c.bf16 %v2936_v45, %v2935_v21 }
0x1485   :  { %4736 = vmatmul.msk.bf16.vlgmr.msra.gmra.mxu1 %vm551_vm8, %v2937_v51 }
0x1502   :  { %v2951_v54 = vpop.f32.mrf.mxu1 }
0x150a   :  { %v2953_v48 = vpop.f32.mrf.mxu1 }
0x150b   :  { %v2965_v63 = vpack.c.bf16 %v2953_v48, %v2951_v54 }
0x150d   :  { %4761 = vmatmul.msk.bf16.vlgmr.msrb.gmra.mxu2 %vm236_vm0, %v2965_v63 }
0x1590   :  { %v3002_v14 = vpop.f32.mrf.mxu2 }
0x1591   :  { %v3044_v15 = vadd.f32 %v3043_v10, %v3002_v14 }
0x1593   :  { %v3052_v11 = vadd.f32 %v5265_v12, %v3044_v15 }
0x1598   :  { %v3004_v23 = vpop.f32.mrf.mxu2 }
0x1599   :  { %v3046_v25 = vadd.f32 %v3045_v20, %v3004_v23 }
0x159b   :  { %v3053_v29 = vadd.f32 %v5265_v12, %v3046_v25 }
0x159d   :  { %v3062_v30 = vpack.c.bf16 %v3053_v29, %v3052_v11  ;;  %v3166_v29 = vperm.slane %v3163_v26, 1 }
0x159f   :  { %4812 = vmatmul.msk.bf16.vlgmr.msrb.gmra.mxu1 %vm236_vm0, %v3062_v30 }
0x161c   :  { %v3149_v44 = vpop.f32.mrf.mxu1 }
0x161d   :  { %v3150_v38 = vadd.f32 %v3149_v44, %v3108_v62 }
0x1624   :  { %v3151_v61 = vpop.f32.mrf.mxu1 }
0x1625   :  { %v3152_v17 = vadd.f32 %v3151_v61, %v3110_v16 }
0x1627   :  { %v3162_v56 = vpack.c.bf16 %v3152_v17, %v3150_v38 }
0x1629   :  { %4845 = vmatmul.msk.bf16.vlgmr.msra.gmra.mxu2 %vm236_vm0, %v3162_v56  ;;  %4846 = vmatmul.msk.bf16.vlgmr.msra.gmra.mxu3 %vm236_vm0, %v3162_v56 }
0x16ac   :  { %v3221_v46 = vpop.f32.mrf.mxu2  ;;  %v3235_v30 = vpop.f32.mrf.mxu3 }
0x16ad   :  { %v6368_v18 = vadd.f32 %v3221_v46, %v3165_v3  ;;  %v3236_v31 = vadd.f32 %v3235_v30, %v3166_v29  ;;  %v5175_v30 = vld [vmem:[%s6572_s14 + $0x14] sm:$0xf] }
0x16af   :  { %v4847_v47 = vadd.f32 -1.0, %v6368_v18  ;;  %v3282_v32 = vadd.f32 1.0, %v3236_v31 }
0x16b1   :  { %v4849_v50 = vmul.f32 -1.442695, %v4847_v47  ;;  %v4851_v57 = vmul.f32 -1.442695, %v3282_v32  ;;  %v4865_v32 = vld [vmem:[%s6572_s14 + $0x18] sm:$0xf0] }
0x16b3   :  { %5353 = vpow2.f32 %v4849_v50 }
0x16b4   :  { %v3223_v19 = vpop.f32.mrf.mxu2  ;;  %v3237_v35 = vpop.f32.mrf.mxu3 }
0x16b5   :  { %v6371_v21 = vadd.f32 %v3223_v19, %v3165_v3  ;;  %v3238_v37 = vadd.f32 %v3237_v35, %v3166_v29  ;;  %v5176_v29 = vld [vmem:[%s6572_s14 + $0x14] sm:$0xf0]  ;;  %v5174_v35 = vld [vmem:[%s6572_s14 + $0x4] sm:$0xf0] }
0x16b7   :  { %v4848_v45 = vadd.f32 -1.0, %v6371_v21  ;;  %v3283_v42 = vadd.f32 1.0, %v3238_v37 }
0x16b9   :  { %v5354_v51 = vpop.eup %5353  ;;  %v4850_v59 = vmul.f32 -1.442695, %v4848_v45  ;;  %v4852_v49 = vmul.f32 -1.442695, %v3283_v42 }
0x16ba   :  { %v3250_v13 = vadd.f32 1.0, %v5354_v51 }
0x16bb   :  { %5355 = vpow2.f32 %v4850_v59 }
0x16bc   :  { %5357 = vrcp.f32 %v3250_v13  ;;  %v3263_v53 = vand.u32 2147483648, %v3250_v13  ;;  %v3261_v2 = vand.u32 2147483647, %v3250_v13  ;;  %vm3257_vm7 = vweird.f32 %v3250_v13 }
0x16be   :  { %v3264_v6 = vor.u32 1.1754944e-38, %v3263_v53  ;;  %vm3262_vm9 = vcmp.eq.f32.partialorder %v3261_v2, 8.507059e+37 }
0x16c1   :  { %v5356_v60 = vpop.eup %5355 }
0x16c2   :  { %v5358_v54 = vpop.eup %5357  ;;  %v3251_v48 = vadd.f32 1.0, %v5356_v60 }
0x16c3   :  { %v3253_v63 = vmul.f32 %v5358_v54, %v3250_v13  ;;  %vm3258_vm6 = vweird.f32 %v5358_v54 }
0x16c4   :  { %5359 = vrcp.f32 %v3251_v48  ;;  %vm3259_vm8 = vmor %vm3257_vm7, %vm3258_vm6  ;;  %v3278_v14 = vand.u32 2147483648, %v3251_v48  ;;  %v3276_v12 = vand.u32 2147483647, %v3251_v48  ;;  %vm3272_vm11 = vweird.f32 %v3251_v48 }
0x16c5   :  { %v3254_v28 = vsub.f32 1.0, %v3253_v63  ;;  %5361 = vpow2.f32 %v4851_v57  ;;  %v4868_v57 = vor.u32 %v5175_v30, %v4865_v32 }
0x16c6   :  { %v3279_v23 = vor.u32 1.1754944e-38, %v3278_v14  ;;  %vm3277_vm13 = vcmp.eq.f32.partialorder %v3276_v12, 8.507059e+37  ;;  %v4871_v14 = vld [vmem:[%s6572_s14 + $0x20] sm:$0xf]  ;;  %v5177_v12 = vld [vmem:[%s6572_s14 + $0x24] sm:$0xf] }
0x16c7   :  { %v3255_v0 = vmul.f32 %v5358_v54, %v3254_v28 }
0x16c9   :  { %v3256_v4 = vadd.f32 %v5358_v54, %v3255_v0 }
0x16ca   :  { %v5360_v5 = vpop.eup %5359 }
0x16cb   :  { %v3260_v8 = vsel %vm3259_vm8, %v5358_v54, %v3256_v4  ;;  %v3268_v39 = vmul.f32 %v5360_v5, %v3251_v48  ;;  %vm3273_vm10 = vweird.f32 %v5360_v5  ;;  %v5362_v1 = vpop.eup %5361 }
0x16cc   :  { %v3265_v9 = vsel %vm3262_vm9, %v3264_v6, %v3260_v8  ;;  %vm3274_vm12 = vmor %vm3272_vm11, %vm3273_vm10  ;;  %v3290_v34 = vadd.f32 1.0, %v5362_v1  ;;  %v5180_v6 = vld [vmem:[%s6572_s14 + $0x34] sm:$0xf0]  ;;  %v5179_v8 = vld [vmem:[%s6572_s14 + $0x34] sm:$0xf] }
0x16cd   :  { %3326 = vrot.lane.b32.xlu2 %v3265_v9, %s5514_s25  ;;  %v3269_v10 = vsub.f32 1.0, %v3268_v39  ;;  %v4881_v39 = vld [vmem:[%s6572_s14 + $0x38] sm:$0xf0] }
0x16ce   :  { %5363 = vrcp.f32 %v3290_v34  ;;  %v3303_v52 = vand.u32 2147483648, %v3290_v34  ;;  %vm3297_vm15 = vweird.f32 %v3290_v34  ;;  %v3301_v55 = vand.u32 2147483647, %v3290_v34 }
0x16cf   :  { %v3270_v15 = vmul.f32 %v5360_v5, %v3269_v10  ;;  %5365 = vpow2.f32 %v4852_v49  ;;  %v4884_v10 = vor.u32 %v5179_v8, %v4881_v39  ;;  %v5182_v8 = vld [vmem:[%s5762_s4 + $0x8] sm:$0xff]  ;;  %v5181_v39 = vld [vmem:[%s5762_s4] sm:$0xff] }
0x16d0   :  { %5367 = vtanh.f32 %v6368_v18  ;;  %v3304_v62 = vor.u32 1.1754944e-38, %v3303_v52  ;;  %vm3302_vm2 = vcmp.eq.f32.partialorder %v3301_v55, 8.507059e+37 }
0x16d1   :  { %v3271_v20 = vadd.f32 %v5360_v5, %v3270_v15  ;;  %3449 = vmatpush.bf16.msra.mxu1 %v4884_v10  ;;  %v5178_v15 = vld [vmem:[%s6572_s14 + $0x24] sm:$0xf0] }
0x16d3   :  { %v3275_v25 = vsel %vm3274_vm12, %v5360_v5, %v3271_v20  ;;  %v4879_v5 = vld [vmem:[%s6572_s14 + $0x30] sm:$0xf]  ;;  %v4872_v20 = vor.u32 %v5178_v15, %v4871_v14 }
0x16d4   :  { %v3280_v11 = vsel %vm3277_vm13, %v3279_v23, %v3275_v25  ;;  %v5364_v36 = vpop.eup %5363  ;;  %v4873_v23 = vld [vmem:[%s6572_s14 + $0x28] sm:$0xf0] }
0x16d5   :  { %3328 = vrot.lane.b32.xlu0 %v3280_v11, %s5514_s25  ;;  %v3293_v40 = vmul.f32 %v5364_v36, %v3290_v34  ;;  %vm3298_vm14 = vweird.f32 %v5364_v36  ;;  %v5366_v58 = vpop.eup %5365  ;;  %v4876_v25 = vor.u32 %v5177_v12, %v4873_v23  ;;  %v4863_v11 = vld [vmem:[%s6572_s14 + $0x10] sm:$0xf]  ;;  %v4855_v34 = vld [vmem:[%s6572_s14] sm:$0xf] }
0x16d6   :  { %vm3299_vm1 = vmor %vm3297_vm15, %vm3298_vm14  ;;  %v3291_v44 = vadd.f32 1.0, %v5366_v58  ;;  %v5368_v61 = vpop.eup %5367  ;;  %v4864_v31 = vor.u32 %v5176_v29, %v4863_v11  ;;  %v4856_v37 = vor.u32 %v5174_v35, %v4855_v34 }
0x16d7   :  { %v3294_v7 = vsub.f32 1.0, %v3293_v40  ;;  %3450 = vmatpush.bf16.msra.mxu1 %v4876_v25  ;;  %v4857_v40 = vld [vmem:[%s6572_s14 + $0x8] sm:$0xf0] }
0x16d8   :  { %5369 = vrcp.f32 %v3291_v44  ;;  %v3318_v51 = vand.u32 2147483648, %v3291_v44  ;;  %vm3312_vm4 = vweird.f32 %v3291_v44  ;;  %v3316_v59 = vand.u32 2147483647, %v3291_v44 }
0x16d9   :  { %v3295_v24 = vmul.f32 %v5364_v36, %v3294_v7  ;;  %5371 = vtanh.f32 %v6371_v21 }
0x16da   :  { %v3319_v13 = vor.u32 1.1754944e-38, %v3318_v51  ;;  %vm3317_vm6 = vcmp.eq.f32.partialorder %v3316_v59, 8.507059e+37  ;;  %v5188_v51 = vld [vmem:[%s5762_s4 + $0x38] sm:$0xff] }
0x16db   :  { %v3296_v43 = vadd.f32 %v5364_v36, %v3295_v24  ;;  %3451 = vmatpush.bf16.msra.mxu1 %v4868_v57  ;;  %v5196_v59 = vld [vmem:[%s5762_s4 + $0x78] sm:$0xff]  ;;  %3629 = vmatpush.bf16.msrb.mxu2 %v5188_v51 }
0x16dc   :  { %3643 = vmatpush.bf16.msrb.mxu3 %v5196_v59 }
0x16dd   :  { %v3300_v27 = vsel %vm3299_vm1, %v5364_v36, %v3296_v43  ;;  %v5173_v36 = vld [vmem:[%s6572_s14 + $0x4] sm:$0xf] }
0x16de   :  { %v3305_v16 = vsel %vm3302_vm2, %v3304_v62, %v3300_v27  ;;  %v5370_v18 = vpop.eup %5369  ;;  %v4860_v42 = vor.u32 %v5173_v36, %v4857_v40 }
0x16df   :  { %v3322_v17 = vmul.f32 %v3305_v16, %v6013_v33  ;;  %v3308_v47 = vmul.f32 %v5370_v18, %v3291_v44  ;;  %vm3313_vm3 = vweird.f32 %v5370_v18  ;;  %v5372_v54 = vpop.eup %5371 }
0x16e0   :  { %vm3314_vm5 = vmor %vm3312_vm4, %vm3313_vm3  ;;  %3452 = vmatpush.bf16.msra.mxu1 %v4860_v42 }
0x16e1   :  { %v3309_v50 = vsub.f32 1.0, %v3308_v47 }
0x16e3   :  { %v3310_v19 = vmul.f32 %v5370_v18, %v3309_v50 }
0x16e5   :  { %v3311_v45 = vadd.f32 %v5370_v18, %v3310_v19 }
0x16e7   :  { %v3315_v33 = vsel %vm3314_vm5, %v5370_v18, %v3311_v45 }
0x16e8   :  { %v3320_v60 = vsel %vm3317_vm6, %v3319_v13, %v3315_v33  ;;  %v5187_v33 = vld [vmem:[%s5762_s4 + $0x30] sm:$0xff] }
0x16e9   :  { %v3323_v63 = vmul.f32 %v3320_v60, %v6023_v41  ;;  %v4880_v41 = vor.u32 %v5180_v6, %v4879_v5  ;;  %v5195_v13 = vld [vmem:[%s5762_s4 + $0x70] sm:$0xff]  ;;  %3630 = vmatpush.bf16.msrb.mxu2 %v5187_v33  ;;  %v5186_v60 = vld [vmem:[%s5762_s4 + $0x28] sm:$0xff] }
0x16ea   :  { %3644 = vmatpush.bf16.msrb.mxu3 %v5195_v13 }
0x16eb   :  { %3435 = vmatpush.bf16.msra.mxu0 %v4880_v41  ;;  %v5190_v41 = vld [vmem:[%s5762_s4 + $0x48] sm:$0xff] }
0x16ed   :  { %3631 = vmatpush.bf16.msrb.mxu2 %v5186_v60 }
0x16ef   :  { %3436 = vmatpush.bf16.msra.mxu0 %v4872_v20 }
0x16f3   :  { %3437 = vmatpush.bf16.msra.mxu0 %v4864_v31 }
0x16f7   :  { %3438 = vmatpush.bf16.msra.mxu0 %v4856_v37 }
0x1727   :  { %v3327_v38 = vpop.permute.xlu2 %3326 }
0x1728   :  { %v3332_v56 = vmul.f32 %v5368_v61, %v3327_v38 }
0x172a   :  { %v6378_v26 = vadd.f32 %v3332_v56, %v3322_v17  ;;  %v5410_v56 = vld [vmem:[%s6548_s12] sm:$0x7] }
0x172c   :  { %v3336_v3 = vmul.f32 %v6378_v26, %v6378_v26 }
0x172e   :  { %v3338_v46 = vsel %vm236_vm0, %v3336_v3, 0.0  ;;  %v3370_v3 = vperm.slane %v5410_v56, 2 }
0x172f   :  { %3339 = vadd.xlane.f32.xlu1 %v3338_v46 }
0x1747   :  { %v3329_v48 = vpop.permute.xlu0 %3328 }
0x1748   :  { %v3333_v28 = vmul.f32 %v5372_v54, %v3329_v48  ;;  %v5194_v54 = vld [vmem:[%s5762_s4 + $0x68] sm:$0xff]  ;;  %v5185_v48 = vld [vmem:[%s5762_s4 + $0x20] sm:$0xff] }
0x1749   :  { %3645 = vmatpush.bf16.msrb.mxu3 %v5194_v54  ;;  %3632 = vmatpush.bf16.msrb.mxu2 %v5185_v48 }
0x174a   :  { %v6385_v53 = vadd.f32 %v3333_v28, %v3323_v63  ;;  %v5193_v63 = vld [vmem:[%s5762_s4 + $0x60] sm:$0xff]  ;;  %v5184_v28 = vld [vmem:[%s5762_s4 + $0x18] sm:$0xff] }
0x174c   :  { %v3337_v21 = vmul.f32 %v6385_v53, %v6385_v53 }
0x174d   :  { %3646 = vmatpush.bf16.msrb.mxu3 %v5193_v63  ;;  %3633 = vmatpush.bf16.msrb.mxu2 %v5184_v28 }
0x174e   :  { %v3341_v0 = vsel %vm236_vm0, %v3337_v21, 0.0  ;;  %v5192_v21 = vld [vmem:[%s5762_s4 + $0x58] sm:$0xff] }
0x174f   :  { %3342 = vadd.xlane.f32.xlu1 %v3341_v0  ;;  %v5183_v0 = vld [vmem:[%s5762_s4 + $0x10] sm:$0xff] }
0x1751   :  { %3647 = vmatpush.bf16.msrb.mxu3 %v5192_v21  ;;  %3634 = vmatpush.bf16.msrb.mxu2 %v5183_v0 }
0x1755   :  { %3635 = vmatpush.bf16.msrb.mxu2 %v5182_v8 }
0x1759   :  { %3636 = vmatpush.bf16.msrb.mxu2 %v5181_v39 }
0x17a2   :  { %v3340_v2 = vpop.xlane.xlu1 %3339 }
0x17a3   :  { %v3344_v4 = vmul.f32 %v3340_v2, %v5799_v22  ;;  %v5191_v2 = vld [vmem:[%s5762_s4 + $0x50] sm:$0xff] }
0x17a4   :  { %3648 = vmatpush.bf16.msrb.mxu3 %v5191_v2 }
0x17a5   :  { %v3346_v9 = vmax.f32 %v3344_v4, 1e-16  ;;  %v3382_v4 = vld [vmem:[%s6573_s29] sm:$0x3] }
0x17a6   :  { %v3384_v5 = vperm.slane %v3382_v4, 0  ;;  %v3385_v6 = vperm.slane %v3382_v4, 1 }
0x17a7   :  { %5373 = vrsqrt.f32 %v3346_v9  ;;  %vm3354_vm8 = vweird.f32 %v3346_v9 }
0x17a8   :  { %3649 = vmatpush.bf16.msrb.mxu3 %v5190_v41 }
0x17ad   :  { %v5374_v1 = vpop.eup %5373 }
0x17ae   :  { %v3349_v7 = vmul.f32 %v5374_v1, %v3346_v9  ;;  %vm3355_vm7 = vweird.f32 %v5374_v1  ;;  %v5189_v9 = vld [vmem:[%s5762_s4 + $0x40] sm:$0xff]  ;;  %s6574_s4 = sld [smem:[#allocation33_spill]] }
0x17af   :  { %vm3356_vm9 = vmor %vm3354_vm8, %vm3355_vm7  ;;  %3650 = vmatpush.bf16.msrb.mxu3 %v5189_v9 }
0x17b0   :  { %v3350_v43 = vmul.f32 %v5374_v1, %v3349_v7 }
0x17b2   :  { %v3351_v55 = vmul.f32 0.5, %v3350_v43 }
0x17b4   :  { %v3352_v58 = vsub.f32 1.5, %v3351_v55  ;;  %v4977_v13 = vld [vmem:[%s6574_s4 + $0x30] sm:$0xf]  ;;  %v5204_v60 = vld [vmem:[%s6574_s4 + $0x34] sm:$0xf0] }
0x17b5   :  { %v5203_v54 = vld [vmem:[%s6574_s4 + $0x34] sm:$0xf]  ;;  %v4978_v48 = vor.u32 %v5204_v60, %v4977_v13  ;;  %v4979_v63 = vld [vmem:[%s6574_s4 + $0x38] sm:$0xf0]  ;;  %v4969_v21 = vld [vmem:[%s6574_s4 + $0x20] sm:$0xf] }
0x17b6   :  { %v3353_v44 = vmul.f32 %v5374_v1, %v3352_v58  ;;  %v4982_v28 = vor.u32 %v5203_v54, %v4979_v63  ;;  %v5202_v0 = vld [vmem:[%s6574_s4 + $0x24] sm:$0xf0]  ;;  %v5201_v2 = vld [vmem:[%s6574_s4 + $0x24] sm:$0xf]  ;;  %v4961_v8 = vld [vmem:[%s6574_s4 + $0x10] sm:$0xf] }
0x17b7   :  { %3719 = vmatpush.bf16.msrb.mxu0 %v4978_v48  ;;  %v4970_v4 = vor.u32 %v5202_v0, %v4969_v21  ;;  %v5200_v41 = vld [vmem:[%s6574_s4 + $0x14] sm:$0xf0]  ;;  %v5199_v39 = vld [vmem:[%s6574_s4 + $0x14] sm:$0xf] }
0x17b8   :  { %v3357_v38 = vsel %vm3356_vm9, %v5374_v1, %v3353_v44  ;;  %3733 = vmatpush.bf16.msrb.mxu1 %v4982_v28  ;;  %v4962_v9 = vor.u32 %v5200_v41, %v4961_v8 }
0x17b9   :  { %v3368_v46 = vmul.f32 %v3357_v38, %v6378_v26 }
0x17bb   :  { %v3371_v50 = vmul.f32 %v3370_v3, %v3368_v46  ;;  %3720 = vmatpush.bf16.msrb.mxu0 %v4970_v4 }
0x17bf   :  { %3721 = vmatpush.bf16.msrb.mxu0 %v4962_v9 }
0x17c2   :  { %v3343_v49 = vpop.xlane.xlu1 %3342 }
0x17c3   :  { %v3345_v24 = vmul.f32 %v3343_v49, %v5799_v22 }
0x17c5   :  { %v3347_v52 = vmax.f32 %v3345_v24, 1e-16 }
0x17c7   :  { %5375 = vrsqrt.f32 %v3347_v52  ;;  %vm3364_vm11 = vweird.f32 %v3347_v52 }
0x17cd   :  { %v5376_v27 = vpop.eup %5375 }
0x17ce   :  { %v3359_v62 = vmul.f32 %v5376_v27, %v3347_v52  ;;  %vm3365_vm10 = vweird.f32 %v5376_v27 }
0x17cf   :  { %vm3366_vm12 = vmor %vm3364_vm11, %vm3365_vm10 }
0x17d0   :  { %v3360_v16 = vmul.f32 %v5376_v27, %v3359_v62 }
0x17d2   :  { %v3361_v61 = vmul.f32 0.5, %v3360_v16 }
0x17d4   :  { %v3362_v17 = vsub.f32 1.5, %v3361_v61 }
0x17d6   :  { %v3363_v22 = vmul.f32 %v5376_v27, %v3362_v17 }
0x17d8   :  { %v3367_v18 = vsel %vm3366_vm12, %v5376_v27, %v3363_v22 }
0x17d9   :  { %v3369_v47 = vmul.f32 %v3367_v18, %v6385_v53 }
0x17db   :  { %v3372_v19 = vmul.f32 %v3370_v3, %v3369_v47 }
0x17dd   :  { %v3381_v45 = vpack.c.bf16 %v3372_v19, %v3371_v50 }
0x17df   :  { %4885 = vmatmul.msk.bf16.vlgmr.msra.gmra.mxu0 %vm236_vm0, %v3381_v45  ;;  %4886 = vmatmul.msk.bf16.vlgmr.msra.gmra.mxu1 %vm236_vm0, %v3381_v45 }
0x185c   :  { %v3440_v10 = vpop.f32.mrf.mxu0  ;;  %v3454_v14 = vpop.f32.mrf.mxu1 }
0x185d   :  { %v3441_v15 = vadd.f32 %v3440_v10, %v3384_v5  ;;  %v3455_v12 = vadd.f32 %v3454_v14, %v3385_v6  ;;  %v4963_v10 = vld [vmem:[%s6574_s4 + $0x18] sm:$0xf0] }
0x185e   :  { %v4966_v14 = vor.u32 %v5199_v39, %v4963_v10 }
0x185f   :  { %v3463_v20 = vmul.f32 0.044715, %v3441_v15  ;;  %v3464_v23 = vmul.f32 0.044715, %v3455_v12  ;;  %v3459_v22 = vmul.f32 0.5, %v3441_v15  ;;  %v3460_v46 = vmul.f32 0.5, %v3455_v12 }
0x1861   :  { %v3467_v25 = vmul.f32 %v3463_v20, %v3441_v15  ;;  %v3468_v11 = vmul.f32 %v3464_v23, %v3455_v12  ;;  %v5197_v20 = vld [vmem:[%s6574_s4 + $0x4] sm:$0xf] }
0x1863   :  { %v3471_v29 = vmul.f32 %v3467_v25, %v3441_v15  ;;  %v3472_v30 = vmul.f32 %v3468_v11, %v3455_v12  ;;  %v4955_v25 = vld [vmem:[%s6574_s4 + $0x8] sm:$0xf0] }
0x1864   :  { %v3442_v31 = vpop.f32.mrf.mxu0  ;;  %v3456_v32 = vpop.f32.mrf.mxu1  ;;  %v4958_v11 = vor.u32 %v5197_v20, %v4955_v25 }
0x1865   :  { %v3443_v57 = vadd.f32 %v3442_v31, %v3384_v5  ;;  %v3457_v1 = vadd.f32 %v3456_v32, %v3385_v6  ;;  %v3475_v34 = vadd.f32 %v3471_v29, %v3441_v15  ;;  %v3476_v35 = vadd.f32 %v3472_v30, %v3455_v12  ;;  %v4971_v5 = vld [vmem:[%s6574_s4 + $0x28] sm:$0xf0]  ;;  %v4953_v15 = vld [vmem:[%s6574_s4] sm:$0xf]  ;;  %v5198_v12 = vld [vmem:[%s6574_s4 + $0x4] sm:$0xf0] }
0x1866   :  { %v4974_v6 = vor.u32 %v5201_v2, %v4971_v5  ;;  %v4954_v23 = vor.u32 %v5198_v12, %v4953_v15  ;;  %v5266_v31 = vld [vmem:[%s5767_s19] ss:$0 sm:$0xff]  ;;  %s3847_s19 = sshll.u32 %s5772_s3, 4  ;;  %s3848_s19 = int_to_ptr.hbm [resolvable:$true] %s3847_s19 }
0x1867   :  { %v3465_v36 = vmul.f32 0.044715, %v3443_v57  ;;  %v3466_v37 = vmul.f32 0.044715, %v3457_v1  ;;  %v3479_v40 = vmul.f32 0.7978846, %v3475_v34 }
0x1868   :  { %v3480_v49 = vmul.f32 0.7978846, %v3476_v35  ;;  %v3461_v56 = vmul.f32 0.5, %v3443_v57  ;;  %v3462_v18 = vmul.f32 0.5, %v3457_v1  ;;  %3734 = vmatpush.bf16.msrb.mxu1 %v4974_v6  ;;  %3722 = vmatpush.bf16.msrb.mxu0 %v4954_v23  ;;  %s5423_s6 = sshra.s32 %s3848_s19, 4  ;;  %s5424_s6 = int_to_ptr.hbm [resolvable:$true] %s5423_s6 }
0x1869   :  { %v3469_v42 = vmul.f32 %v3465_v36, %v3443_v57  ;;  %v3470_v7 = vmul.f32 %v3466_v37, %v3457_v1  ;;  %5377 = vtanh.f32 %v3479_v40  ;;  %v6450_v40 = vld [vmem:[%s6575_s24] sm:$0x3]  ;;  %s5425_s12 = scalar_lea.hbm %s5424_s6, 16  ;;  %p5428_p1 = scmp.lt.s32.totalorder %s5424_s6, %s5772_s3 }
0x186a   :  { %5379 = vtanh.f32 %v3480_v49  ;;  %p5426_p0 = scmp.ne.s32.totalorder %s5424_s6, %s5425_s12  ;;  %p5429_p2 = scmp.lt.s32.totalorder %s5427_s20, %s5425_s12 }
0x186b   :  { %v3473_v24 = vmul.f32 %v3469_v42, %v3443_v57  ;;  %v3474_v43 = vmul.f32 %v3470_v7, %v3457_v1  ;;  %v3668_v42 = vperm.slane %v6450_v40, 0 }
0x186c   :  { %3735 = vmatpush.bf16.msrb.mxu1 %v4966_v14  ;;  %p5430_p3 = por %p5429_p2, %p5428_p1 }
0x186d   :  { %v3477_v52 = vadd.f32 %v3473_v24, %v3443_v57  ;;  %v3478_v55 = vadd.f32 %v3474_v43, %v3457_v1 }
0x186e   :  { %p5431_p4 = pnand %p5430_p3, %p5426_p0 }
0x186f   :  { %v3481_v58 = vmul.f32 0.7978846, %v3477_v52  ;;  %v3482_v27 = vmul.f32 0.7978846, %v3478_v55  ;;  %v5378_v62 = vpop.eup %5377 }
0x1870   :  { %v5380_v44 = vpop.eup %5379  ;;  %v3487_v16 = vadd.f32 1.0, %v5378_v62  ;;  %3736 = vmatpush.bf16.msrb.mxu1 %v4958_v11 }
0x1871   :  { %5381 = vtanh.f32 %v3481_v58  ;;  %v3488_v38 = vadd.f32 1.0, %v5380_v44 }
0x1872   :  { %5383 = vtanh.f32 %v3482_v27  ;;  %v3491_v50 = vmul.f32 %v3487_v16, %v3459_v22 }
0x1873   :  { %v3492_v45 = vmul.f32 %v3488_v38, %v3460_v46 }
0x1877   :  { %v5382_v61 = vpop.eup %5381 }
0x1878   :  { %v5384_v17 = vpop.eup %5383  ;;  %v3489_v3 = vadd.f32 1.0, %v5382_v61 }
0x1879   :  { %v3490_v47 = vadd.f32 1.0, %v5384_v17 }
0x187a   :  { %v3493_v19 = vmul.f32 %v3489_v3, %v3461_v56 }
0x187b   :  { %v3494_v51 = vmul.f32 %v3490_v47, %v3462_v18 }
0x187c   :  { %v3527_v59 = vpack.c.bf16 %v3493_v19, %v3491_v50 }
0x187d   :  { %v3528_v33 = vpack.c.bf16 %v3494_v51, %v3492_v45 }
0x187e   :  { %3637 = vmatmul.bf16.vlgmr.msrb.gmra.mxu2 %v3527_v59 }
0x187f   :  { %3651 = vmatmul.bf16.vlgmr.msrb.gmra.mxu3 %v3528_v33 }
0x1901   :  { %v3638_v29 = vpop.f32.mrf.mxu2 }
0x1902   :  { %v3652_v30 = vpop.f32.mrf.mxu3  ;;  %v3639_v32 = vadd.f32 %v5266_v31, %v3638_v29 }
0x1904   :  { %v3653_v35 = vadd.f32 %v3652_v30, %v3639_v32 }
0x1909   :  { %v3640_v57 = vpop.f32.mrf.mxu2 }
0x190a   :  { %v3641_v1 = vadd.f32 %v5266_v31, %v3640_v57  ;;  %v3654_v34 = vpop.f32.mrf.mxu3 }
0x190c   :  { %v3655_v36 = vadd.f32 %v3654_v34, %v3641_v1 }
0x190e   :  { %v3665_v37 = vpack.c.bf16 %v3655_v36, %v3653_v35 }
0x1910   :  { %4983 = vmatmul.msk.bf16.vlgmr.msrb.gmra.mxu0 %vm236_vm0, %v3665_v37  ;;  %4984 = vmatmul.msk.bf16.vlgmr.msrb.gmra.mxu1 %vm236_vm0, %v3665_v37 }
0x198d   :  { %v3724_v7 = vpop.f32.mrf.mxu0 }
0x198e   :  { %v6453_v49 = vadd.f32 %v3724_v7, %v3668_v42 }
0x1990   :  { %v4985_v24 = vadd.f32 -1.0, %v6453_v49 }
0x1992   :  { %v4987_v43 = vmul.f32 -1.442695, %v4985_v24 }
0x1994   :  { %5385 = vpow2.f32 %v4987_v43 }
0x1995   :  { %v3726_v52 = vpop.f32.mrf.mxu0 }
0x1996   :  { %v6456_v55 = vadd.f32 %v3726_v52, %v3668_v42 }
0x1998   :  { %v4986_v58 = vadd.f32 -1.0, %v6456_v55 }
0x199a   :  { %v5386_v27 = vpop.eup %5385  ;;  %v4988_v62 = vmul.f32 -1.442695, %v4986_v58 }
0x199b   :  { %v3753_v44 = vadd.f32 1.0, %v5386_v27 }
0x199c   :  { %5387 = vpow2.f32 %v4988_v62 }
0x199d   :  { %5389 = vrcp.f32 %v3753_v44  ;;  %v3766_v56 = vand.u32 2147483648, %v3753_v44  ;;  %v3764_v46 = vand.u32 2147483647, %v3753_v44 }
0x19a2   :  { %v5388_v16 = vpop.eup %5387 }
0x19a3   :  { %v5390_v61 = vpop.eup %5389  ;;  %v3754_v38 = vadd.f32 1.0, %v5388_v16 }
0x19a4   :  { %v3756_v17 = vmul.f32 %v5390_v61, %v3753_v44  ;;  %vm3761_vm13 = vweird.f32 %v5390_v61 }
0x19a5   :  { %5391 = vrcp.f32 %v3754_v38 }
0x19a6   :  { %v3757_v22 = vsub.f32 1.0, %v3756_v17 }
0x19a8   :  { %v3758_v3 = vmul.f32 %v5390_v61, %v3757_v22 }
0x19a9   :  { %5434 = shalt.err (!%p5431_p4)
}
0x19aa   :  { %s5516_s13 = smov 128   ;;  %s5517_s8 = smov 8   ;;  %v3759_v18 = vadd.f32 %v5390_v61, %v3758_v3  ;;  %vm3760_vm14 = vweird.f32 %v3753_v44  ;;  %v3767_v50 = vor.u32 1.1754944e-38, %v3766_v56  ;;  %vm3765_vm1 = vcmp.eq.f32.partialorder %v3764_v46, 8.507059e+37  ;;  %v3738_v21 = vpop.f32.mrf.mxu1 }
0x19ab   :  { %3853 = dma.vmem_to_hbm [thread:$0]  %s3846_s9, 256, %s3848_s19, [#allocation3], %s5516_s13, %s5516_s13, %s5517_s8   ;;  %v5392_v47 = vpop.eup %5391  ;;  %vm3762_vm15 = vmor %vm3760_vm14, %vm3761_vm13  ;;  %v3781_v33 = vand.u32 2147483648, %v3754_v38  ;;  %v3779_v60 = vand.u32 2147483647, %v3754_v38  ;;  %vm3775_vm3 = vweird.f32 %v3754_v38  ;;  %v3669_v2 = vperm.slane %v6450_v40, 1 }
0x19ac   :  { %v3763_v19 = vsel %vm3762_vm15, %v5390_v61, %v3759_v18  ;;  %v3771_v45 = vmul.f32 %v5392_v47, %v3754_v38  ;;  %vm3776_vm2 = vweird.f32 %v5392_v47  ;;  %s5518_s3 = smov [#allocation4]   ;;  %s3860_s15 = sshll.u32 %s5777_s17, 4  ;;  %s3861_s15 = int_to_ptr.hbm [resolvable:$true] %s3860_s15 }
0x19ad   :  { %v3768_v51 = vsel %vm3765_vm1, %v3767_v50, %v3763_v19  ;;  %vm3777_vm4 = vmor %vm3775_vm3, %vm3776_vm2  ;;  %v3782_v48 = vor.u32 1.1754944e-38, %v3781_v33  ;;  %vm3780_vm5 = vcmp.eq.f32.partialorder %v3779_v60, 8.507059e+37  ;;  %v3739_v8 = vadd.f32 %v3738_v21, %v3669_v2  ;;  %s3858_s27 = sshll.u32 %s5518_s3, 4  ;;  %s5447_s16 = sshra.s32 %s3861_s15, 4  ;;  %s3859_s27 = int_to_ptr.vmem [resolvable:$true] %s3858_s27  ;;  %s5448_s16 = int_to_ptr.hbm [resolvable:$true] %s5447_s16 }
0x19ae   :  { %3829 = vrot.lane.b32.xlu1 %v3768_v51, %s5514_s25  ;;  %v3772_v59 = vsub.f32 1.0, %v3771_v45  ;;  %s5449_s18 = scalar_lea.hbm %s5448_s16, 16  ;;  %s5451_s22 = scalar_lea.hbm %s5777_s17, 16 }
0x19af   :  { %v3785_v39 = vadd.f32 1.0, %v3739_v8  ;;  %p5450_p5 = scmp.ne.s32.totalorder %s5448_s16, %s5449_s18  ;;  %p5452_p6 = scmp.lt.s32.totalorder %s5448_s16, %s5777_s17 }
0x19b0   :  { %v3773_v13 = vmul.f32 %v5392_v47, %v3772_v59  ;;  %p5453_p7 = scmp.lt.s32.totalorder %s5451_s22, %s5449_s18 }
0x19b1   :  { %v4989_v10 = vmul.f32 -1.442695, %v3785_v39 }
0x19b2   :  { %v3774_v54 = vadd.f32 %v5392_v47, %v3773_v13  ;;  %v3740_v0 = vpop.f32.mrf.mxu1  ;;  %p5454_p8 = por %p5453_p7, %p5452_p6 }
0x19b3   :  { %v3741_v4 = vadd.f32 %v3740_v0, %v3669_v2 }
0x19b4   :  { %v3778_v63 = vsel %vm3777_vm4, %v5392_v47, %v3774_v54  ;;  %p5455_p9 = pnand %p5454_p8, %p5450_p5 }
0x19b5   :  { %v3783_v28 = vsel %vm3780_vm5, %v3782_v48, %v3778_v63  ;;  %v3786_v5 = vadd.f32 1.0, %v3741_v4 }
0x19b6   :  { %3831 = vrot.lane.b32.xlu2 %v3783_v28, %s5514_s25 }
0x19b7   :  { %v4990_v6 = vmul.f32 -1.442695, %v3786_v5 }
0x19b9   :  { %5393 = vpow2.f32 %v4990_v6 }
0x19bf   :  { %v5394_v41 = vpop.eup %5393 }
0x19c0   :  { %v3794_v9 = vadd.f32 1.0, %v5394_v41 }
0x19c2   :  { %5395 = vrcp.f32 %v3794_v9  ;;  %v3821_v30 = vand.u32 2147483648, %v3794_v9  ;;  %vm3815_vm7 = vweird.f32 %v3794_v9  ;;  %v3819_v31 = vand.u32 2147483647, %v3794_v9 }
0x19c3   :  { %5397 = vpow2.f32 %v4989_v10 }
0x19c4   :  { %v3822_v1 = vor.u32 1.1754944e-38, %v3821_v30  ;;  %vm3820_vm9 = vcmp.eq.f32.partialorder %v3819_v31, 8.507059e+37 }
0x19c8   :  { %v5396_v14 = vpop.eup %5395 }
0x19c9   :  { %v5398_v15 = vpop.eup %5397  ;;  %v3811_v12 = vmul.f32 %v5396_v14, %v3794_v9  ;;  %vm3816_vm6 = vweird.f32 %v5396_v14 }
0x19ca   :  { %v3793_v20 = vadd.f32 1.0, %v5398_v15  ;;  %vm3817_vm8 = vmor %vm3815_vm7, %vm3816_vm6 }
0x19cb   :  { %v3812_v23 = vsub.f32 1.0, %v3811_v12 }
0x19cc   :  { %5399 = vrcp.f32 %v3793_v20  ;;  %v3806_v52 = vand.u32 2147483648, %v3793_v20  ;;  %vm3800_vm11 = vweird.f32 %v3793_v20 }
0x19cd   :  { %v3813_v25 = vmul.f32 %v5396_v14, %v3812_v23  ;;  %5401 = vtanh.f32 %v6456_v55  ;;  %v3804_v55 = vand.u32 2147483647, %v3793_v20 }
0x19ce   :  { %5403 = vtanh.f32 %v6453_v49  ;;  %v3807_v27 = vor.u32 1.1754944e-38, %v3806_v52 }
0x19cf   :  { %v3814_v11 = vadd.f32 %v5396_v14, %v3813_v25  ;;  %vm3805_vm13 = vcmp.eq.f32.partialorder %v3804_v55, 8.507059e+37 }
0x19d1   :  { %v3818_v57 = vsel %vm3817_vm8, %v5396_v14, %v3814_v11 }
0x19d2   :  { %v5400_v29 = vpop.eup %5399  ;;  %v3823_v34 = vsel %vm3820_vm9, %v3822_v1, %v3818_v57 }
0x19d3   :  { %v3796_v32 = vmul.f32 %v5400_v29, %v3793_v20  ;;  %v5402_v36 = vpop.eup %5401  ;;  %v3826_v40 = vmul.f32 %v3823_v34, %v6385_v53  ;;  %vm3801_vm10 = vweird.f32 %v5400_v29 }
0x19d4   :  { %vm3802_vm12 = vmor %vm3800_vm11, %vm3801_vm10  ;;  %v5404_v53 = vpop.eup %5403 }
0x19d5   :  { %v3797_v35 = vsub.f32 1.0, %v3796_v32 }
0x19d7   :  { %v3798_v24 = vmul.f32 %v5400_v29, %v3797_v35 }
0x19d9   :  { %v3799_v43 = vadd.f32 %v5400_v29, %v3798_v24 }
0x19db   :  { %v3803_v58 = vsel %vm3802_vm12, %v5400_v29, %v3799_v43 }
0x19dc   :  { %v3808_v62 = vsel %vm3805_vm13, %v3807_v27, %v3803_v58 }
0x19dd   :  { %v3825_v16 = vmul.f32 %v3808_v62, %v6378_v26 }
0x1a10   :  { %v3832_v37 = vpop.permute.xlu2 %3831 }
0x1a11   :  { %v3836_v42 = vmul.f32 %v5402_v36, %v3832_v37 }
0x1a13   :  { %v3838_v7 = vadd.f32 %v3836_v42, %v3826_v40 }
0x1a15   :  { %3840 = vst.msk [vmem:[#allocation4 + $0x8] sm:$0xff] %vm236_vm0, %v3838_v7 }
0x1a20   :  { %v3830_v44 = vpop.permute.xlu1 %3829 }
0x1a21   :  { %v3835_v61 = vmul.f32 %v5404_v53, %v3830_v44 }
0x1a23   :  { %v3837_v38 = vadd.f32 %v3835_v61, %v3825_v16 }
0x1a25   :  { %3839 = vst.msk [vmem:[#allocation4] sm:$0xff] %vm236_vm0, %v3837_v38 }
0x1a26   :  { %5458 = shalt.err (!%p5455_p9)
}
0x1a27   :  { %3866 = dma.vmem_to_hbm [thread:$0]  %s3859_s27, 256, %s3861_s15, [#allocation5], %s5516_s13, %s5516_s13, %s5517_s8  }
0x1a28   :  { %5459 = dma.done.wait [#allocation3], 256  }
0x1a29   :  { %5460 = vsyncadd [#allocation3], 4294967040 }
0x1a2a   :  { %5461 = dma.done.wait [#allocation5], 256  }
0x1a2b   :  { %5462 = vsyncadd [#allocation5], 4294967040 }
0x1a2c   :  { %3875 = vsyncpa [#allocation3], 1 }
0x1a2d   :  { %3876 = vsyncpa [#allocation5], 1 }

</bundles_post_ra>
